<compile_context>
chip_gen: v7x
topology: tpu7x:2x2x1
jax: 0.10.0
libtpu: 0.0.40
codegen_flags: <defaults>
</compile_context>

<pallas_src>
import functools

import jax
import jax.numpy as jnp
from jax import lax
from jax.experimental import pallas as pl
from jax.experimental.pallas import tpu as pltpu

BN_EPS = 1e-5
C_LANE = 128                      # lane-dense channel padding
VMEM_LIMIT = 32 * 1024 * 1024     # explicit scoped-VMEM limit (safe on v5e..v7x)


# --------------------------------------------------------------------------
# In-kernel helpers
# --------------------------------------------------------------------------
def _fill_halo(xh_ref, x_blk, dil):
    """Zero the halo scratch and copy a (D,H,W,C) block into its interior."""
    D, H, W, _ = x_blk.shape
    xh_ref[...] = jnp.zeros_like(xh_ref)
    xh_ref[pl.ds(dil, D), pl.ds(dil, H), pl.ds(dil, W), :] = (
        x_blk.astype(xh_ref.dtype))


def _conv3d_im2col(xh_ref, col_ref, w_ref, D, H, W, dil):
    """3x3x3 dilated conv as a single big MXU matmul.

    xh_ref : (D+2d, H+2d, W+2d, C) f32 zero-haloed input (VMEM scratch)
    col_ref: (D*H*W, 27*C) bf16 im2col slab (VMEM scratch)
    w_ref  : (27*C, Cout) bf16 tap-major weight matrix (BN scale folded in)
    returns: (D*H*W, Cout) f32
    """
    C = xh_ref.shape[-1]
    for kd in range(3):
        for kh in range(3):
            for kw in range(3):
                tap = (kd * 3 + kh) * 3 + kw
                win = xh_ref[pl.ds(kd * dil, D),
                             pl.ds(kh * dil, H),
                             pl.ds(kw * dil, W), :]
                col_ref[:, tap * C:(tap + 1) * C] = (
                    win.reshape(D * H * W, C).astype(col_ref.dtype))
    return jnp.dot(col_ref[...], w_ref[...],
                   preferred_element_type=jnp.float32)


# --------------------------------------------------------------------------
# Kernels
# --------------------------------------------------------------------------
def _conv_bias_kernel(x_ref, w_ref, b_ref, o_ref, xh_ref, col_ref, *,
                      dil, relu):
    """conv3d(3x3x3, dilation=dil) + bias (+ optional ReLU), one batch."""
    _, D, H, W, C = o_ref.shape
    _fill_halo(xh_ref, x_ref[0], dil)
    out = _conv3d_im2col(xh_ref, col_ref, w_ref, D, H, W, dil) + b_ref[0]
    if relu:
        out = jnp.maximum(out, 0.0)
    o_ref[...] = out.reshape(1, D, H, W, C).astype(o_ref.dtype)


def _aspp_branch_kernel(*refs, dil, add_carry, add_residual):
    """Fused conv1 -> bn1 -> relu -> conv2 -> bn2 (+carry) (+residual & relu)."""
    if add_carry:
        (x_ref, y_ref, w1_ref, s1_ref, w2_ref, s2_ref,
         o_ref, xh_ref, hh_ref, col_ref) = refs
    else:
        (x_ref, w1_ref, s1_ref, w2_ref, s2_ref,
         o_ref, xh_ref, hh_ref, col_ref) = refs
        y_ref = None
    _, D, H, W, C = o_ref.shape

    # conv1 + bn1 (scale folded into w1, shift here) + relu
    _fill_halo(xh_ref, x_ref[0], dil)
    h = _conv3d_im2col(xh_ref, col_ref, w1_ref, D, H, W, dil) + s1_ref[0]
    h = jnp.maximum(h, 0.0)

    # conv2 + bn2 -- the intermediate never leaves VMEM
    _fill_halo(hh_ref, h.reshape(D, H, W, C), dil)
    t = _conv3d_im2col(hh_ref, col_ref, w2_ref, D, H, W, dil) + s2_ref[0]

    if add_carry:      # running sum over ASPP branches (in-place via aliasing)
        t = t + y_ref[0].reshape(D * H * W, C).astype(jnp.float32)
    if add_residual:   # fused relu(y + x_in)
        t = jnp.maximum(
            t + x_ref[0].reshape(D * H * W, C).astype(jnp.float32), 0.0)
    o_ref[...] = t.reshape(1, D, H, W, C).astype(o_ref.dtype)


# --------------------------------------------------------------------------
# pallas_call wrappers
# --------------------------------------------------------------------------
def _act_spec(D, H, W):
    return pl.BlockSpec((1, D, H, W, C_LANE), lambda b: (b, 0, 0, 0, 0))


def _scratches(D, H, W, dil, n_halo):
    Dp, Hp, Wp = D + 2 * dil, H + 2 * dil, W + 2 * dil
    s = [pltpu.VMEM((Dp, Hp, Wp, C_LANE), jnp.float32) for _ in range(n_halo)]
    s.append(pltpu.VMEM((D * H * W, 27 * C_LANE), jnp.bfloat16))
    return s


def conv3d_bias(x, w_mat, bias, *, dil, relu):
    B, D, H, W, _ = x.shape
    kernel = functools.partial(_conv_bias_kernel, dil=dil, relu=relu)
    return pl.pallas_call(
        kernel,
        out_shape=jax.ShapeDtypeStruct((B, D, H, W, C_LANE), jnp.bfloat16),
        grid=(B,),
        in_specs=[
            _act_spec(D, H, W),
            pl.BlockSpec((27 * C_LANE, C_LANE), lambda b: (0, 0)),
            pl.BlockSpec((1, C_LANE), lambda b: (0, 0)),
        ],
        out_specs=_act_spec(D, H, W),
        scratch_shapes=_scratches(D, H, W, dil, 1),
        compiler_params=pltpu.CompilerParams(
            dimension_semantics=("parallel",),
            vmem_limit_bytes=VMEM_LIMIT),
    )(x, w_mat, bias)


def aspp_branch(x, carry, w1, s1, w2, s2, *, dil, add_residual):
    B, D, H, W, _ = x.shape
    add_carry = carry is not None
    kernel = functools.partial(_aspp_branch_kernel, dil=dil,
                               add_carry=add_carry,
                               add_residual=add_residual)
    in_specs = [_act_spec(D, H, W)]
    args = [x]
    io_alias = {}
    if add_carry:
        in_specs.append(_act_spec(D, H, W))
        args.append(carry)
        io_alias = {1: 0}            # accumulate the branch sum in place
    in_specs += [
        pl.BlockSpec((27 * C_LANE, C_LANE), lambda b: (0, 0)),
        pl.BlockSpec((1, C_LANE), lambda b: (0, 0)),
        pl.BlockSpec((27 * C_LANE, C_LANE), lambda b: (0, 0)),
        pl.BlockSpec((1, C_LANE), lambda b: (0, 0)),
    ]
    args += [w1, s1, w2, s2]
    return pl.pallas_call(
        kernel,
        out_shape=jax.ShapeDtypeStruct((B, D, H, W, C_LANE), jnp.bfloat16),
        grid=(B,),
        in_specs=in_specs,
        out_specs=_act_spec(D, H, W),
        scratch_shapes=_scratches(D, H, W, dil, 2),
        input_output_aliases=io_alias,
        compiler_params=pltpu.CompilerParams(
            dimension_semantics=("parallel",),
            vmem_limit_bytes=VMEM_LIMIT),
    )(*args)


# --------------------------------------------------------------------------
# Host-side parameter preparation / glue
# --------------------------------------------------------------------------
def bn_to_affine(gamma, beta, rmean, rvar):
    scale = gamma / jnp.sqrt(rvar + BN_EPS)
    shift = beta - rmean * scale
    return scale, shift


def _pad_channels(a, target=C_LANE):
    pad = target - a.shape[-1]
    if pad == 0:
        return a
    return jnp.pad(a, [(0, 0)] * (a.ndim - 1) + [(0, pad)])


def _prep_weight(w, scale=None):
    """(3,3,3,Cin,Cout) f32 -> (27*C_LANE, C_LANE) bf16, BN scale folded in."""
    if scale is not None:
        w = w * scale                           # fold per-Cout scale
    cin, cout = w.shape[3], w.shape[4]
    wp = jnp.zeros((3, 3, 3, C_LANE, C_LANE), jnp.float32)
    wp = wp.at[:, :, :, :cin, :cout].set(w)
    return wp.reshape(27 * C_LANE, C_LANE).astype(jnp.bfloat16)


def _prep_shift(s):
    return _pad_channels(s.reshape(1, -1).astype(jnp.float32))


def segmentation_head_forward(x, params, dilations, planes, nbr_classes):
    """x: (B, D, H, W, inplanes) f32 (channels-last version of NCDHW)."""
    del planes  # implied by the parameter shapes
    xp = _pad_channels(x).astype(jnp.bfloat16)   # pad channels once, keep padded

    # conv0 + ReLU
    x0 = conv3d_bias(xp, _prep_weight(params["conv0_w"]),
                     _prep_shift(params["conv0_b"]), dil=1, relu=True)

    # Fused ASPP branches; branch sum accumulated in place, residual + ReLU
    # folded into the last branch.
    y = None
    for j, d in enumerate(dilations):
        s1, t1 = bn_to_affine(params[f"bn1_{j}_gamma"], params[f"bn1_{j}_beta"],
                              params[f"bn1_{j}_rmean"], params[f"bn1_{j}_rvar"])
        s2, t2 = bn_to_affine(params[f"bn2_{j}_gamma"], params[f"bn2_{j}_beta"],
                              params[f"bn2_{j}_rmean"], params[f"bn2_{j}_rvar"])
        y = aspp_branch(
            x0, y,
            _prep_weight(params[f"conv1_{j}_w"], s1), _prep_shift(t1),
            _prep_weight(params[f"conv2_{j}_w"], s2), _prep_shift(t2),
            dil=d, add_residual=(j == len(dilations) - 1))

    # classifier conv
    out = conv3d_bias(y, _prep_weight(params["cls_w"]),
                      _prep_shift(params["cls_b"]), dil=1, relu=False)
    return out[..., :nbr_classes].astype(jnp.float32)


def init_params(key, inplanes, planes, nbr_classes, dilations):
    def rnd(idx, shape, s=0.2):
        return s * jax.random.normal(jax.random.fold_in(key, idx), shape,
                                     jnp.float32)

    p = {}
    i = 0
    p["conv0_w"] = rnd(i, (3, 3, 3, inplanes, planes)); i += 1
    p["conv0_b"] = rnd(i, (planes,), 0.1); i += 1
    for j, _ in enumerate(dilations):
        p[f"conv1_{j}_w"] = rnd(i, (3, 3, 3, planes, planes)); i += 1
        p[f"conv2_{j}_w"] = rnd(i, (3, 3, 3, planes, planes)); i += 1
        for bn in ("bn1", "bn2"):
            p[f"{bn}_{j}_gamma"] = 1.0 + rnd(i, (planes,), 0.1); i += 1
            p[f"{bn}_{j}_beta"] = rnd(i, (planes,), 0.1); i += 1
            p[f"{bn}_{j}_rmean"] = rnd(i, (planes,), 0.1); i += 1
            p[f"{bn}_{j}_rvar"] = 1.0 + jnp.abs(rnd(i, (planes,), 0.1)); i += 1
    p["cls_w"] = rnd(i, (3, 3, 3, planes, nbr_classes)); i += 1
    p["cls_b"] = rnd(i, (nbr_classes,), 0.1); i += 1
    return p


# --------------------------------------------------------------------------
# Pure-JAX f32 reference (for verification)
# --------------------------------------------------------------------------
def _conv_ref(x, w, dil):
    return lax.conv_general_dilated(
        x, w, window_strides=(1, 1, 1), padding=[(dil, dil)] * 3,
        rhs_dilation=(dil, dil, dil),
        dimension_numbers=("NDHWC", "DHWIO", "NDHWC"),
        precision=lax.Precision.HIGHEST)


def reference_forward(x, params, dilations):
    x = jax.nn.relu(_conv_ref(x, params["conv0_w"], 1) + params["conv0_b"])
    y = None
    for j, d in enumerate(dilations):
        s1, t1 = bn_to_affine(params[f"bn1_{j}_gamma"], params[f"bn1_{j}_beta"],
                              params[f"bn1_{j}_rmean"], params[f"bn1_{j}_rvar"])
        h = jax.nn.relu(_conv_ref(x, params[f"conv1_{j}_w"], d) * s1 + t1)
        s2, t2 = bn_to_affine(params[f"bn2_{j}_gamma"], params[f"bn2_{j}_beta"],
                              params[f"bn2_{j}_rmean"], params[f"bn2_{j}_rvar"])
        h = _conv_ref(h, params[f"conv2_{j}_w"], d) * s2 + t2
        y = h if y is None else y + h
    x = jax.nn.relu(y + x)
    return _conv_ref(x, params["cls_w"], 1) + params["cls_b"]


# --------------------------------------------------------------------------
if __name__ == "__main__":
    B, inplanes, planes, nbr_classes = 2, 4, 8, 5
    D = H = W = 8
    dilations = [1, 2]

    key = jax.random.PRNGKey(0)
    x = jax.random.normal(jax.random.fold_in(key, 1000),
                          (B, D, H, W, inplanes), jnp.float32)
    params = init_params(key, inplanes, planes, nbr_classes, dilations)

    out = segmentation_head_forward(x, params, dilations, planes, nbr_classes)
    out = jax.block_until_ready(out)

    ref = jax.block_until_ready(reference_forward(x, params, dilations))
    rel_err = float(jnp.max(jnp.abs(out - ref)) /
                    (jnp.max(jnp.abs(ref)) + 1e-6))
    assert out.shape == (B, D, H, W, nbr_classes)
    # Tolerance sized for bf16 MXU operands (f32 accumulation) across four
    # stacked 3x3x3 convolutions; the f32 reference uses HIGHEST precision.
    assert rel_err < 3e-2, f"mismatch vs reference: rel_err={rel_err}"

    print("KERNEL_OK")
</pallas_src>

<mosaic_0001>
module attributes {stable_mosaic.version = 11 : i64} {
  func.func @_conv_bias_kernel(%arg0: i32, %arg1: memref<1x8x8x8x128xbf16, #tpu.memory_space<vmem>>, %arg2: memref<3456x128xbf16, #tpu.memory_space<vmem>>, %arg3: memref<1x128xf32, #tpu.memory_space<vmem>>, %arg4: memref<1x8x8x8x128xbf16, #tpu.memory_space<vmem>>, %arg5: memref<10x10x10x128xf32, #tpu.memory_space<vmem>>, %arg6: memref<512x3456xbf16, #tpu.memory_space<vmem>>) attributes {dimension_semantics = [#tpu.dimension_semantics<parallel>], iteration_bounds = array<i64: 2>, scalar_prefetch = 0 : i64, scratch_operands = 2 : i64, tpu.core_type = #tpu.core_type<tc>, window_params = [{transform_indices = @transform_0, window_bounds = array<i64: 1, 8, 8, 8, 128>}, {pipeline_mode = #tpu.pipeline_mode<synchronous>, transform_indices = @transform_1, window_bounds = array<i64: 3456, 128>}, {pipeline_mode = #tpu.pipeline_mode<synchronous>, transform_indices = @transform_2, window_bounds = array<i64: 1, 128>}, {transform_indices = @transform_3, window_bounds = array<i64: 1, 8, 8, 8, 128>}]} {
    %c0 = arith.constant 0 : index
    %c0_0 = arith.constant 0 : index
    %c0_1 = arith.constant 0 : index
    %c0_2 = arith.constant 0 : index
    %c0_3 = arith.constant 0 : index
    %0 = vector.load %arg1[%c0, %c0_0, %c0_1, %c0_2, %c0_3] : memref<1x8x8x8x128xbf16, #tpu.memory_space<vmem>>, vector<1x8x8x8x128xbf16>
    %1 = vector.shape_cast %0 : vector<1x8x8x8x128xbf16> to vector<8x8x8x128xbf16>
    %cst = arith.constant 0.000000e+00 : f32
    %2 = vector.broadcast %cst : f32 to vector<10x10x10x128xf32>
    %c0_4 = arith.constant 0 : index
    %c0_5 = arith.constant 0 : index
    %c0_6 = arith.constant 0 : index
    %c0_7 = arith.constant 0 : index
    %3 = vector.load %arg5[%c0_4, %c0_5, %c0_6, %c0_7] : memref<10x10x10x128xf32, #tpu.memory_space<vmem>>, vector<10x10x10x128xf32>
    tpu.vector_store %arg5[%c0_4, %c0_5, %c0_6, %c0_7], %2 {strides = array<i32>} : memref<10x10x10x128xf32, #tpu.memory_space<vmem>>, vector<10x10x10x128xf32>,
    %4 = arith.extf %1 : vector<8x8x8x128xbf16> to vector<8x8x8x128xf32>
    %c1 = arith.constant 1 : index
    %c1_8 = arith.constant 1 : index
    %c1_9 = arith.constant 1 : index
    %c0_10 = arith.constant 0 : index
    %5 = vector.load %arg5[%c1, %c1_8, %c1_9, %c0_10] : memref<10x10x10x128xf32, #tpu.memory_space<vmem>>, vector<8x8x8x128xf32>
    tpu.vector_store %arg5[%c1, %c1_8, %c1_9, %c0_10], %4 {strides = array<i32>} : memref<10x10x10x128xf32, #tpu.memory_space<vmem>>, vector<8x8x8x128xf32>,
    %c0_11 = arith.constant 0 : index
    %c0_12 = arith.constant 0 : index
    %c0_13 = arith.constant 0 : index
    %c0_14 = arith.constant 0 : index
    %6 = vector.load %arg5[%c0_11, %c0_12, %c0_13, %c0_14] : memref<10x10x10x128xf32, #tpu.memory_space<vmem>>, vector<8x8x8x128xf32>
    %7 = vector.shape_cast %6 : vector<8x8x8x128xf32> to vector<512x128xf32>
    %8 = arith.truncf %7 : vector<512x128xf32> to vector<512x128xbf16>
    %c0_15 = arith.constant 0 : index
    %c0_16 = arith.constant 0 : index
    %9 = vector.load %arg6[%c0_15, %c0_16] : memref<512x3456xbf16, #tpu.memory_space<vmem>>, vector<512x128xbf16>
    tpu.vector_store %arg6[%c0_15, %c0_16], %8 {strides = array<i32>} : memref<512x3456xbf16, #tpu.memory_space<vmem>>, vector<512x128xbf16>,
    %c0_17 = arith.constant 0 : index
    %c0_18 = arith.constant 0 : index
    %c1_19 = arith.constant 1 : index
    %c0_20 = arith.constant 0 : index
    %10 = vector.load %arg5[%c0_17, %c0_18, %c1_19, %c0_20] : memref<10x10x10x128xf32, #tpu.memory_space<vmem>>, vector<8x8x8x128xf32>
    %11 = vector.shape_cast %10 : vector<8x8x8x128xf32> to vector<512x128xf32>
    %12 = arith.truncf %11 : vector<512x128xf32> to vector<512x128xbf16>
    %c0_21 = arith.constant 0 : index
    %c128 = arith.constant 128 : index
    %13 = vector.load %arg6[%c0_21, %c128] : memref<512x3456xbf16, #tpu.memory_space<vmem>>, vector<512x128xbf16>
    tpu.vector_store %arg6[%c0_21, %c128], %12 {strides = array<i32>} : memref<512x3456xbf16, #tpu.memory_space<vmem>>, vector<512x128xbf16>,
    %c0_22 = arith.constant 0 : index
    %c0_23 = arith.constant 0 : index
    %c2 = arith.constant 2 : index
    %c0_24 = arith.constant 0 : index
    %14 = vector.load %arg5[%c0_22, %c0_23, %c2, %c0_24] : memref<10x10x10x128xf32, #tpu.memory_space<vmem>>, vector<8x8x8x128xf32>
    %15 = vector.shape_cast %14 : vector<8x8x8x128xf32> to vector<512x128xf32>
    %16 = arith.truncf %15 : vector<512x128xf32> to vector<512x128xbf16>
    %c0_25 = arith.constant 0 : index
    %c256 = arith.constant 256 : index
    %17 = vector.load %arg6[%c0_25, %c256] : memref<512x3456xbf16, #tpu.memory_space<vmem>>, vector<512x128xbf16>
    tpu.vector_store %arg6[%c0_25, %c256], %16 {strides = array<i32>} : memref<512x3456xbf16, #tpu.memory_space<vmem>>, vector<512x128xbf16>,
    %c0_26 = arith.constant 0 : index
    %c1_27 = arith.constant 1 : index
    %c0_28 = arith.constant 0 : index
    %c0_29 = arith.constant 0 : index
    %18 = vector.load %arg5[%c0_26, %c1_27, %c0_28, %c0_29] : memref<10x10x10x128xf32, #tpu.memory_space<vmem>>, vector<8x8x8x128xf32>
    %19 = vector.shape_cast %18 : vector<8x8x8x128xf32> to vector<512x128xf32>
    %20 = arith.truncf %19 : vector<512x128xf32> to vector<512x128xbf16>
    %c0_30 = arith.constant 0 : index
    %c384 = arith.constant 384 : index
    %21 = vector.load %arg6[%c0_30, %c384] : memref<512x3456xbf16, #tpu.memory_space<vmem>>, vector<512x128xbf16>
    tpu.vector_store %arg6[%c0_30, %c384], %20 {strides = array<i32>} : memref<512x3456xbf16, #tpu.memory_space<vmem>>, vector<512x128xbf16>,
    %c0_31 = arith.constant 0 : index
    %c1_32 = arith.constant 1 : index
    %c1_33 = arith.constant 1 : index
    %c0_34 = arith.constant 0 : index
    %22 = vector.load %arg5[%c0_31, %c1_32, %c1_33, %c0_34] : memref<10x10x10x128xf32, #tpu.memory_space<vmem>>, vector<8x8x8x128xf32>
    %23 = vector.shape_cast %22 : vector<8x8x8x128xf32> to vector<512x128xf32>
    %24 = arith.truncf %23 : vector<512x128xf32> to vector<512x128xbf16>
    %c0_35 = arith.constant 0 : index
    %c512 = arith.constant 512 : index
    %25 = vector.load %arg6[%c0_35, %c512] : memref<512x3456xbf16, #tpu.memory_space<vmem>>, vector<512x128xbf16>
    tpu.vector_store %arg6[%c0_35, %c512], %24 {strides = array<i32>} : memref<512x3456xbf16, #tpu.memory_space<vmem>>, vector<512x128xbf16>,
    %c0_36 = arith.constant 0 : index
    %c1_37 = arith.constant 1 : index
    %c2_38 = arith.constant 2 : index
    %c0_39 = arith.constant 0 : index
    %26 = vector.load %arg5[%c0_36, %c1_37, %c2_38, %c0_39] : memref<10x10x10x128xf32, #tpu.memory_space<vmem>>, vector<8x8x8x128xf32>
    %27 = vector.shape_cast %26 : vector<8x8x8x128xf32> to vector<512x128xf32>
    %28 = arith.truncf %27 : vector<512x128xf32> to vector<512x128xbf16>
    %c0_40 = arith.constant 0 : index
    %c640 = arith.constant 640 : index
    %29 = vector.load %arg6[%c0_40, %c640] : memref<512x3456xbf16, #tpu.memory_space<vmem>>, vector<512x128xbf16>
    tpu.vector_store %arg6[%c0_40, %c640], %28 {strides = array<i32>} : memref<512x3456xbf16, #tpu.memory_space<vmem>>, vector<512x128xbf16>,
    %c0_41 = arith.constant 0 : index
    %c2_42 = arith.constant 2 : index
    %c0_43 = arith.constant 0 : index
    %c0_44 = arith.constant 0 : index
    %30 = vector.load %arg5[%c0_41, %c2_42, %c0_43, %c0_44] : memref<10x10x10x128xf32, #tpu.memory_space<vmem>>, vector<8x8x8x128xf32>
    %31 = vector.shape_cast %30 : vector<8x8x8x128xf32> to vector<512x128xf32>
    %32 = arith.truncf %31 : vector<512x128xf32> to vector<512x128xbf16>
    %c0_45 = arith.constant 0 : index
    %c768 = arith.constant 768 : index
    %33 = vector.load %arg6[%c0_45, %c768] : memref<512x3456xbf16, #tpu.memory_space<vmem>>, vector<512x128xbf16>
    tpu.vector_store %arg6[%c0_45, %c768], %32 {strides = array<i32>} : memref<512x3456xbf16, #tpu.memory_space<vmem>>, vector<512x128xbf16>,
    %c0_46 = arith.constant 0 : index
    %c2_47 = arith.constant 2 : index
    %c1_48 = arith.constant 1 : index
    %c0_49 = arith.constant 0 : index
    %34 = vector.load %arg5[%c0_46, %c2_47, %c1_48, %c0_49] : memref<10x10x10x128xf32, #tpu.memory_space<vmem>>, vector<8x8x8x128xf32>
    %35 = vector.shape_cast %34 : vector<8x8x8x128xf32> to vector<512x128xf32>
    %36 = arith.truncf %35 : vector<512x128xf32> to vector<512x128xbf16>
    %c0_50 = arith.constant 0 : index
    %c896 = arith.constant 896 : index
    %37 = vector.load %arg6[%c0_50, %c896] : memref<512x3456xbf16, #tpu.memory_space<vmem>>, vector<512x128xbf16>
    tpu.vector_store %arg6[%c0_50, %c896], %36 {strides = array<i32>} : memref<512x3456xbf16, #tpu.memory_space<vmem>>, vector<512x128xbf16>,
    %c0_51 = arith.constant 0 : index
    %c2_52 = arith.constant 2 : index
    %c2_53 = arith.constant 2 : index
    %c0_54 = arith.constant 0 : index
    %38 = vector.load %arg5[%c0_51, %c2_52, %c2_53, %c0_54] : memref<10x10x10x128xf32, #tpu.memory_space<vmem>>, vector<8x8x8x128xf32>
    %39 = vector.shape_cast %38 : vector<8x8x8x128xf32> to vector<512x128xf32>
    %40 = arith.truncf %39 : vector<512x128xf32> to vector<512x128xbf16>
    %c0_55 = arith.constant 0 : index
    %c1024 = arith.constant 1024 : index
    %41 = vector.load %arg6[%c0_55, %c1024] : memref<512x3456xbf16, #tpu.memory_space<vmem>>, vector<512x128xbf16>
    tpu.vector_store %arg6[%c0_55, %c1024], %40 {strides = array<i32>} : memref<512x3456xbf16, #tpu.memory_space<vmem>>, vector<512x128xbf16>,
    %c1_56 = arith.constant 1 : index
    %c0_57 = arith.constant 0 : index
    %c0_58 = arith.constant 0 : index
    %c0_59 = arith.constant 0 : index
    %42 = vector.load %arg5[%c1_56, %c0_57, %c0_58, %c0_59] : memref<10x10x10x128xf32, #tpu.memory_space<vmem>>, vector<8x8x8x128xf32>
    %43 = vector.shape_cast %42 : vector<8x8x8x128xf32> to vector<512x128xf32>
    %44 = arith.truncf %43 : vector<512x128xf32> to vector<512x128xbf16>
    %c0_60 = arith.constant 0 : index
    %c1152 = arith.constant 1152 : index
    %45 = vector.load %arg6[%c0_60, %c1152] : memref<512x3456xbf16, #tpu.memory_space<vmem>>, vector<512x128xbf16>
    tpu.vector_store %arg6[%c0_60, %c1152], %44 {strides = array<i32>} : memref<512x3456xbf16, #tpu.memory_space<vmem>>, vector<512x128xbf16>,
    %c1_61 = arith.constant 1 : index
    %c0_62 = arith.constant 0 : index
    %c1_63 = arith.constant 1 : index
    %c0_64 = arith.constant 0 : index
    %46 = vector.load %arg5[%c1_61, %c0_62, %c1_63, %c0_64] : memref<10x10x10x128xf32, #tpu.memory_space<vmem>>, vector<8x8x8x128xf32>
    %47 = vector.shape_cast %46 : vector<8x8x8x128xf32> to vector<512x128xf32>
    %48 = arith.truncf %47 : vector<512x128xf32> to vector<512x128xbf16>
    %c0_65 = arith.constant 0 : index
    %c1280 = arith.constant 1280 : index
    %49 = vector.load %arg6[%c0_65, %c1280] : memref<512x3456xbf16, #tpu.memory_space<vmem>>, vector<512x128xbf16>
    tpu.vector_store %arg6[%c0_65, %c1280], %48 {strides = array<i32>} : memref<512x3456xbf16, #tpu.memory_space<vmem>>, vector<512x128xbf16>,
    %c1_66 = arith.constant 1 : index
    %c0_67 = arith.constant 0 : index
    %c2_68 = arith.constant 2 : index
    %c0_69 = arith.constant 0 : index
    %50 = vector.load %arg5[%c1_66, %c0_67, %c2_68, %c0_69] : memref<10x10x10x128xf32, #tpu.memory_space<vmem>>, vector<8x8x8x128xf32>
    %51 = vector.shape_cast %50 : vector<8x8x8x128xf32> to vector<512x128xf32>
    %52 = arith.truncf %51 : vector<512x128xf32> to vector<512x128xbf16>
    %c0_70 = arith.constant 0 : index
    %c1408 = arith.constant 1408 : index
    %53 = vector.load %arg6[%c0_70, %c1408] : memref<512x3456xbf16, #tpu.memory_space<vmem>>, vector<512x128xbf16>
    tpu.vector_store %arg6[%c0_70, %c1408], %52 {strides = array<i32>} : memref<512x3456xbf16, #tpu.memory_space<vmem>>, vector<512x128xbf16>,
    %c1_71 = arith.constant 1 : index
    %c1_72 = arith.constant 1 : index
    %c0_73 = arith.constant 0 : index
    %c0_74 = arith.constant 0 : index
    %54 = vector.load %arg5[%c1_71, %c1_72, %c0_73, %c0_74] : memref<10x10x10x128xf32, #tpu.memory_space<vmem>>, vector<8x8x8x128xf32>
    %55 = vector.shape_cast %54 : vector<8x8x8x128xf32> to vector<512x128xf32>
    %56 = arith.truncf %55 : vector<512x128xf32> to vector<512x128xbf16>
    %c0_75 = arith.constant 0 : index
    %c1536 = arith.constant 1536 : index
    %57 = vector.load %arg6[%c0_75, %c1536] : memref<512x3456xbf16, #tpu.memory_space<vmem>>, vector<512x128xbf16>
    tpu.vector_store %arg6[%c0_75, %c1536], %56 {strides = array<i32>} : memref<512x3456xbf16, #tpu.memory_space<vmem>>, vector<512x128xbf16>,
    %c1_76 = arith.constant 1 : index
    %c1_77 = arith.constant 1 : index
    %c1_78 = arith.constant 1 : index
    %c0_79 = arith.constant 0 : index
    %58 = vector.load %arg5[%c1_76, %c1_77, %c1_78, %c0_79] : memref<10x10x10x128xf32, #tpu.memory_space<vmem>>, vector<8x8x8x128xf32>
    %59 = vector.shape_cast %58 : vector<8x8x8x128xf32> to vector<512x128xf32>
    %60 = arith.truncf %59 : vector<512x128xf32> to vector<512x128xbf16>
    %c0_80 = arith.constant 0 : index
    %c1664 = arith.constant 1664 : index
    %61 = vector.load %arg6[%c0_80, %c1664] : memref<512x3456xbf16, #tpu.memory_space<vmem>>, vector<512x128xbf16>
    tpu.vector_store %arg6[%c0_80, %c1664], %60 {strides = array<i32>} : memref<512x3456xbf16, #tpu.memory_space<vmem>>, vector<512x128xbf16>,
    %c1_81 = arith.constant 1 : index
    %c1_82 = arith.constant 1 : index
    %c2_83 = arith.constant 2 : index
    %c0_84 = arith.constant 0 : index
    %62 = vector.load %arg5[%c1_81, %c1_82, %c2_83, %c0_84] : memref<10x10x10x128xf32, #tpu.memory_space<vmem>>, vector<8x8x8x128xf32>
    %63 = vector.shape_cast %62 : vector<8x8x8x128xf32> to vector<512x128xf32>
    %64 = arith.truncf %63 : vector<512x128xf32> to vector<512x128xbf16>
    %c0_85 = arith.constant 0 : index
    %c1792 = arith.constant 1792 : index
    %65 = vector.load %arg6[%c0_85, %c1792] : memref<512x3456xbf16, #tpu.memory_space<vmem>>, vector<512x128xbf16>
    tpu.vector_store %arg6[%c0_85, %c1792], %64 {strides = array<i32>} : memref<512x3456xbf16, #tpu.memory_space<vmem>>, vector<512x128xbf16>,
    %c1_86 = arith.constant 1 : index
    %c2_87 = arith.constant 2 : index
    %c0_88 = arith.constant 0 : index
    %c0_89 = arith.constant 0 : index
    %66 = vector.load %arg5[%c1_86, %c2_87, %c0_88, %c0_89] : memref<10x10x10x128xf32, #tpu.memory_space<vmem>>, vector<8x8x8x128xf32>
    %67 = vector.shape_cast %66 : vector<8x8x8x128xf32> to vector<512x128xf32>
    %68 = arith.truncf %67 : vector<512x128xf32> to vector<512x128xbf16>
    %c0_90 = arith.constant 0 : index
    %c1920 = arith.constant 1920 : index
    %69 = vector.load %arg6[%c0_90, %c1920] : memref<512x3456xbf16, #tpu.memory_space<vmem>>, vector<512x128xbf16>
    tpu.vector_store %arg6[%c0_90, %c1920], %68 {strides = array<i32>} : memref<512x3456xbf16, #tpu.memory_space<vmem>>, vector<512x128xbf16>,
    %c1_91 = arith.constant 1 : index
    %c2_92 = arith.constant 2 : index
    %c1_93 = arith.constant 1 : index
    %c0_94 = arith.constant 0 : index
    %70 = vector.load %arg5[%c1_91, %c2_92, %c1_93, %c0_94] : memref<10x10x10x128xf32, #tpu.memory_space<vmem>>, vector<8x8x8x128xf32>
    %71 = vector.shape_cast %70 : vector<8x8x8x128xf32> to vector<512x128xf32>
    %72 = arith.truncf %71 : vector<512x128xf32> to vector<512x128xbf16>
    %c0_95 = arith.constant 0 : index
    %c2048 = arith.constant 2048 : index
    %73 = vector.load %arg6[%c0_95, %c2048] : memref<512x3456xbf16, #tpu.memory_space<vmem>>, vector<512x128xbf16>
    tpu.vector_store %arg6[%c0_95, %c2048], %72 {strides = array<i32>} : memref<512x3456xbf16, #tpu.memory_space<vmem>>, vector<512x128xbf16>,
    %c1_96 = arith.constant 1 : index
    %c2_97 = arith.constant 2 : index
    %c2_98 = arith.constant 2 : index
    %c0_99 = arith.constant 0 : index
    %74 = vector.load %arg5[%c1_96, %c2_97, %c2_98, %c0_99] : memref<10x10x10x128xf32, #tpu.memory_space<vmem>>, vector<8x8x8x128xf32>
    %75 = vector.shape_cast %74 : vector<8x8x8x128xf32> to vector<512x128xf32>
    %76 = arith.truncf %75 : vector<512x128xf32> to vector<512x128xbf16>
    %c0_100 = arith.constant 0 : index
    %c2176 = arith.constant 2176 : index
    %77 = vector.load %arg6[%c0_100, %c2176] : memref<512x3456xbf16, #tpu.memory_space<vmem>>, vector<512x128xbf16>
    tpu.vector_store %arg6[%c0_100, %c2176], %76 {strides = array<i32>} : memref<512x3456xbf16, #tpu.memory_space<vmem>>, vector<512x128xbf16>,
    %c2_101 = arith.constant 2 : index
    %c0_102 = arith.constant 0 : index
    %c0_103 = arith.constant 0 : index
    %c0_104 = arith.constant 0 : index
    %78 = vector.load %arg5[%c2_101, %c0_102, %c0_103, %c0_104] : memref<10x10x10x128xf32, #tpu.memory_space<vmem>>, vector<8x8x8x128xf32>
    %79 = vector.shape_cast %78 : vector<8x8x8x128xf32> to vector<512x128xf32>
    %80 = arith.truncf %79 : vector<512x128xf32> to vector<512x128xbf16>
    %c0_105 = arith.constant 0 : index
    %c2304 = arith.constant 2304 : index
    %81 = vector.load %arg6[%c0_105, %c2304] : memref<512x3456xbf16, #tpu.memory_space<vmem>>, vector<512x128xbf16>
    tpu.vector_store %arg6[%c0_105, %c2304], %80 {strides = array<i32>} : memref<512x3456xbf16, #tpu.memory_space<vmem>>, vector<512x128xbf16>,
    %c2_106 = arith.constant 2 : index
    %c0_107 = arith.constant 0 : index
    %c1_108 = arith.constant 1 : index
    %c0_109 = arith.constant 0 : index
    %82 = vector.load %arg5[%c2_106, %c0_107, %c1_108, %c0_109] : memref<10x10x10x128xf32, #tpu.memory_space<vmem>>, vector<8x8x8x128xf32>
    %83 = vector.shape_cast %82 : vector<8x8x8x128xf32> to vector<512x128xf32>
    %84 = arith.truncf %83 : vector<512x128xf32> to vector<512x128xbf16>
    %c0_110 = arith.constant 0 : index
    %c2432 = arith.constant 2432 : index
    %85 = vector.load %arg6[%c0_110, %c2432] : memref<512x3456xbf16, #tpu.memory_space<vmem>>, vector<512x128xbf16>
    tpu.vector_store %arg6[%c0_110, %c2432], %84 {strides = array<i32>} : memref<512x3456xbf16, #tpu.memory_space<vmem>>, vector<512x128xbf16>,
    %c2_111 = arith.constant 2 : index
    %c0_112 = arith.constant 0 : index
    %c2_113 = arith.constant 2 : index
    %c0_114 = arith.constant 0 : index
    %86 = vector.load %arg5[%c2_111, %c0_112, %c2_113, %c0_114] : memref<10x10x10x128xf32, #tpu.memory_space<vmem>>, vector<8x8x8x128xf32>
    %87 = vector.shape_cast %86 : vector<8x8x8x128xf32> to vector<512x128xf32>
    %88 = arith.truncf %87 : vector<512x128xf32> to vector<512x128xbf16>
    %c0_115 = arith.constant 0 : index
    %c2560 = arith.constant 2560 : index
    %89 = vector.load %arg6[%c0_115, %c2560] : memref<512x3456xbf16, #tpu.memory_space<vmem>>, vector<512x128xbf16>
    tpu.vector_store %arg6[%c0_115, %c2560], %88 {strides = array<i32>} : memref<512x3456xbf16, #tpu.memory_space<vmem>>, vector<512x128xbf16>,
    %c2_116 = arith.constant 2 : index
    %c1_117 = arith.constant 1 : index
    %c0_118 = arith.constant 0 : index
    %c0_119 = arith.constant 0 : index
    %90 = vector.load %arg5[%c2_116, %c1_117, %c0_118, %c0_119] : memref<10x10x10x128xf32, #tpu.memory_space<vmem>>, vector<8x8x8x128xf32>
    %91 = vector.shape_cast %90 : vector<8x8x8x128xf32> to vector<512x128xf32>
    %92 = arith.truncf %91 : vector<512x128xf32> to vector<512x128xbf16>
    %c0_120 = arith.constant 0 : index
    %c2688 = arith.constant 2688 : index
    %93 = vector.load %arg6[%c0_120, %c2688] : memref<512x3456xbf16, #tpu.memory_space<vmem>>, vector<512x128xbf16>
    tpu.vector_store %arg6[%c0_120, %c2688], %92 {strides = array<i32>} : memref<512x3456xbf16, #tpu.memory_space<vmem>>, vector<512x128xbf16>,
    %c2_121 = arith.constant 2 : index
    %c1_122 = arith.constant 1 : index
    %c1_123 = arith.constant 1 : index
    %c0_124 = arith.constant 0 : index
    %94 = vector.load %arg5[%c2_121, %c1_122, %c1_123, %c0_124] : memref<10x10x10x128xf32, #tpu.memory_space<vmem>>, vector<8x8x8x128xf32>
    %95 = vector.shape_cast %94 : vector<8x8x8x128xf32> to vector<512x128xf32>
    %96 = arith.truncf %95 : vector<512x128xf32> to vector<512x128xbf16>
    %c0_125 = arith.constant 0 : index
    %c2816 = arith.constant 2816 : index
    %97 = vector.load %arg6[%c0_125, %c2816] : memref<512x3456xbf16, #tpu.memory_space<vmem>>, vector<512x128xbf16>
    tpu.vector_store %arg6[%c0_125, %c2816], %96 {strides = array<i32>} : memref<512x3456xbf16, #tpu.memory_space<vmem>>, vector<512x128xbf16>,
    %c2_126 = arith.constant 2 : index
    %c1_127 = arith.constant 1 : index
    %c2_128 = arith.constant 2 : index
    %c0_129 = arith.constant 0 : index
    %98 = vector.load %arg5[%c2_126, %c1_127, %c2_128, %c0_129] : memref<10x10x10x128xf32, #tpu.memory_space<vmem>>, vector<8x8x8x128xf32>
    %99 = vector.shape_cast %98 : vector<8x8x8x128xf32> to vector<512x128xf32>
    %100 = arith.truncf %99 : vector<512x128xf32> to vector<512x128xbf16>
    %c0_130 = arith.constant 0 : index
    %c2944 = arith.constant 2944 : index
    %101 = vector.load %arg6[%c0_130, %c2944] : memref<512x3456xbf16, #tpu.memory_space<vmem>>, vector<512x128xbf16>
    tpu.vector_store %arg6[%c0_130, %c2944], %100 {strides = array<i32>} : memref<512x3456xbf16, #tpu.memory_space<vmem>>, vector<512x128xbf16>,
    %c2_131 = arith.constant 2 : index
    %c2_132 = arith.constant 2 : index
    %c0_133 = arith.constant 0 : index
    %c0_134 = arith.constant 0 : index
    %102 = vector.load %arg5[%c2_131, %c2_132, %c0_133, %c0_134] : memref<10x10x10x128xf32, #tpu.memory_space<vmem>>, vector<8x8x8x128xf32>
    %103 = vector.shape_cast %102 : vector<8x8x8x128xf32> to vector<512x128xf32>
    %104 = arith.truncf %103 : vector<512x128xf32> to vector<512x128xbf16>
    %c0_135 = arith.constant 0 : index
    %c3072 = arith.constant 3072 : index
    %105 = vector.load %arg6[%c0_135, %c3072] : memref<512x3456xbf16, #tpu.memory_space<vmem>>, vector<512x128xbf16>
    tpu.vector_store %arg6[%c0_135, %c3072], %104 {strides = array<i32>} : memref<512x3456xbf16, #tpu.memory_space<vmem>>, vector<512x128xbf16>,
    %c2_136 = arith.constant 2 : index
    %c2_137 = arith.constant 2 : index
    %c1_138 = arith.constant 1 : index
    %c0_139 = arith.constant 0 : index
    %106 = vector.load %arg5[%c2_136, %c2_137, %c1_138, %c0_139] : memref<10x10x10x128xf32, #tpu.memory_space<vmem>>, vector<8x8x8x128xf32>
    %107 = vector.shape_cast %106 : vector<8x8x8x128xf32> to vector<512x128xf32>
    %108 = arith.truncf %107 : vector<512x128xf32> to vector<512x128xbf16>
    %c0_140 = arith.constant 0 : index
    %c3200 = arith.constant 3200 : index
    %109 = vector.load %arg6[%c0_140, %c3200] : memref<512x3456xbf16, #tpu.memory_space<vmem>>, vector<512x128xbf16>
    tpu.vector_store %arg6[%c0_140, %c3200], %108 {strides = array<i32>} : memref<512x3456xbf16, #tpu.memory_space<vmem>>, vector<512x128xbf16>,
    %c2_141 = arith.constant 2 : index
    %c2_142 = arith.constant 2 : index
    %c2_143 = arith.constant 2 : index
    %c0_144 = arith.constant 0 : index
    %110 = vector.load %arg5[%c2_141, %c2_142, %c2_143, %c0_144] : memref<10x10x10x128xf32, #tpu.memory_space<vmem>>, vector<8x8x8x128xf32>
    %111 = vector.shape_cast %110 : vector<8x8x8x128xf32> to vector<512x128xf32>
    %112 = arith.truncf %111 : vector<512x128xf32> to vector<512x128xbf16>
    %c0_145 = arith.constant 0 : index
    %c3328 = arith.constant 3328 : index
    %113 = vector.load %arg6[%c0_145, %c3328] : memref<512x3456xbf16, #tpu.memory_space<vmem>>, vector<512x128xbf16>
    tpu.vector_store %arg6[%c0_145, %c3328], %112 {strides = array<i32>} : memref<512x3456xbf16, #tpu.memory_space<vmem>>, vector<512x128xbf16>,
    %c0_146 = arith.constant 0 : index
    %c0_147 = arith.constant 0 : index
    %114 = vector.load %arg6[%c0_146, %c0_147] : memref<512x3456xbf16, #tpu.memory_space<vmem>>, vector<512x3456xbf16>
    %c0_148 = arith.constant 0 : index
    %c0_149 = arith.constant 0 : index
    %115 = vector.load %arg2[%c0_148, %c0_149] : memref<3456x128xbf16, #tpu.memory_space<vmem>>, vector<3456x128xbf16>
    %cst_150 = arith.constant dense<0.000000e+00> : vector<512x128xf32>
    %116 = tpu.matmul %114, %115, %cst_150 {dimension_numbers = #tpu.dot_dimension_numbers<[1], [0], [0], [1], [0, 0, 1, 1], [], []>} : vector<512x3456xbf16>, vector<3456x128xbf16>, vector<512x128xf32> -> vector<512x128xf32>
    %c0_151 = arith.constant 0 : index
    %c0_152 = arith.constant 0 : index
    %117 = vector.load %arg3[%c0_151, %c0_152] : memref<1x128xf32, #tpu.memory_space<vmem>>, vector<1x128xf32>
    %118 = vector.shape_cast %117 : vector<1x128xf32> to vector<128xf32>
    %119 = vector.shape_cast %118 : vector<128xf32> to vector<1x128xf32>
    %120 = vector.broadcast %119 : vector<1x128xf32> to vector<512x128xf32>
    %121 = arith.addf %116, %120 : vector<512x128xf32>
    %cst_153 = arith.constant 0.000000e+00 : f32
    %122 = vector.broadcast %cst_153 : f32 to vector<512x128xf32>
    %123 = arith.maximumf %121, %122 : vector<512x128xf32>
    %124 = vector.shape_cast %123 : vector<512x128xf32> to vector<1x8x8x8x128xf32>
    %125 = arith.truncf %124 : vector<1x8x8x8x128xf32> to vector<1x8x8x8x128xbf16>
    %c0_154 = arith.constant 0 : index
    %c0_155 = arith.constant 0 : index
    %c0_156 = arith.constant 0 : index
    %c0_157 = arith.constant 0 : index
    %c0_158 = arith.constant 0 : index
    %126 = vector.load %arg4[%c0_154, %c0_155, %c0_156, %c0_157, %c0_158] : memref<1x8x8x8x128xbf16, #tpu.memory_space<vmem>>, vector<1x8x8x8x128xbf16>
    tpu.vector_store %arg4[%c0_154, %c0_155, %c0_156, %c0_157, %c0_158], %125 {strides = array<i32>} : memref<1x8x8x8x128xbf16, #tpu.memory_space<vmem>>, vector<1x8x8x8x128xbf16>,
    return
  }
  func.func @transform_0(%arg0: i32) -> (i32, i32, i32, i32, i32) {
    %c0_i32 = arith.constant 0 : i32
    %c0_i32_0 = arith.constant 0 : i32
    %c0_i32_1 = arith.constant 0 : i32
    %c0_i32_2 = arith.constant 0 : i32
    %c0_i32_3 = arith.constant 0 : i32
    return %arg0, %c0_i32, %c0_i32_0, %c0_i32_1, %c0_i32_2 : i32, i32, i32, i32, i32
  }
  func.func @transform_1(%arg0: i32) -> (i32, i32) {
    %c0_i32 = arith.constant 0 : i32
    %c0_i32_0 = arith.constant 0 : i32
    %c0_i32_1 = arith.constant 0 : i32
    return %c0_i32, %c0_i32_0 : i32, i32
  }
  func.func @transform_2(%arg0: i32) -> (i32, i32) {
    %c0_i32 = arith.constant 0 : i32
    %c0_i32_0 = arith.constant 0 : i32
    %c0_i32_1 = arith.constant 0 : i32
    return %c0_i32, %c0_i32_0 : i32, i32
  }
  func.func @transform_3(%arg0: i32) -> (i32, i32, i32, i32, i32) {
    %c0_i32 = arith.constant 0 : i32
    %c0_i32_0 = arith.constant 0 : i32
    %c0_i32_1 = arith.constant 0 : i32
    %c0_i32_2 = arith.constant 0 : i32
    %c0_i32_3 = arith.constant 0 : i32
    return %arg0, %c0_i32, %c0_i32_0, %c0_i32_1, %c0_i32_2 : i32, i32, i32, i32, i32
  }
}

</mosaic_0001>

<bundles_post_ra>
// kernel: tpu_custom_call.1
= control target key start
LH: loop header
LB: loop body
LE: loop exit
PB: predicated region body
PF: predicated region fallthrough
CT: control target
= control target key end

     0   :  { %8 = vsyncpa [#allocation5], 0  ;;  %s16930_s0 = inlined_call_operand.hbm [shape: bf16[2,8,8,8,128], index: 0, kind: input, shape index: {}]   ;;  %s16931_s1 = inlined_call_operand.hbm [shape: bf16[3456,128], index: 1, kind: input, shape index: {}]   ;;  %s16932_s2 = inlined_call_operand.vmem [shape: f32[1,128], index: 2, kind: input, shape index: {}]   ;;  %s16933_s3 = inlined_call_operand.hbm [shape: bf16[2,8,8,8,128], index: 3, kind: output, shape index: {}]  }
   0x1   :  { %10 = vsyncpa [#allocation5 + $0x1], 0 }
   0x2   :  { %11 = vsyncpa [#allocation8], 0 }
   0x3   :  { %12 = vsyncpa [#allocation6], 0 }
   0x4   :  { %14 = vsyncpa [#allocation6 + $0x1], 0  ;;  %s13778_s12 = smov 0   ;;  %s13780_s13 = smov 0  }
   0x5   :  { %s13782_s14 = smov 0   ;;  %s13784_s15 = smov 0  }
   0x6 LB: > { %s13799_s16 = sadd.s32 4294967295, %s13746_s15   ;;  %s10995_s17 = sadd.s32 4294967294, %s13746_s15   ;;  %s13746_s15 = sphi %s13784_s15, %s17018_s15   ;;  %s13742_s14 = sphi %s13782_s14, %s17017_s14   ;;  %s13738_s13 = sphi %s13780_s13, %s17016_s13   ;;  %s13734_s12 = sphi %s13778_s12, %s17015_s12  }
   0x7   : > { %p40_p0 = scmp.ne.s32.totalorder %s13738_s13, %s13734_s12  ;;  %p16934_p1 = scmp.eq.s32.totalorder %s13799_s16, 0 }
   0x8   : > { %p112_p3 = scmp.eq.s32.totalorder %s10995_s17, 1  ;;  %p10996_p5 = scmp.ge.s32.totalorder %s13746_s15, 1 }
   0x9   : > { %p13808_p4 = por %p16934_p1, %p40_p0  ;;  %p119_p7 = scmp.lt.s32.totalorder %s13746_s15, 3 }
   0xa   : > { %p13813_p6 = por %p112_p3, %p40_p0  ;;  %s13748_s21 = smov [#allocation7]  }
   0xb   : > { %s16944_s18 = scalar_select %p13808_p4, 1, 0 }
   0xc   : > { %s16945_s19 = scalar_select %p13813_p6, 1, 0 }
   0xd   : > { %p13818_p8 = pnand %p10996_p5, %p119_p7  ;;  %s131_s22 = sshll.u32 %s13748_s21, 4  ;;  %s13822_s22 = int_to_ptr.vmem [resolvable:$true] %s131_s22 }
   0xe   : > { %s13834_s24 = sadd.s32 1, %s13746_s15   ;;  %s27_s25 = sadd.s32 1, %s13742_s14 }
   0xf   : > { %s16946_s20 = scalar_select %p13818_p8, 1, 0 }
  0x10   : > { %p13276_p9 = pneg %p13818_p8  ;;  %s24_s26 = ssub.s32 %s13746_s15, %s13834_s24 }
  0x11   : > { %s13618_s29 = scalar_lea.hbm %s16931_s1, 27648 }
  0x12   : > { %p13829_p11 = pnand %p13276_p9, %p16934_p1  ;;  %p13619_p12 = scmp.ne.s32.totalorder %s16931_s1, %s13618_s29 }
  0x13   : > { %p13625_p5 = scmp.lt.u32.totalorder %s13618_s29, %s16931_s1 }
  0x14   : > { %p13620_p13 = pneg %p13829_p11 }
  0x16   : > { %p13621_p0 = pnand %p13620_p13, %p13619_p12 }
  0x18   : > { %p13622_p3 = pneg %p13621_p0 }
  0x1a   : > { %p13627_p7 = pnand %p13625_p5, %p13622_p3 }
  0x1c   : > { %13630 = shalt.err (!%p13627_p7)
}
  0x1d   : > { %s13631_s7 = scalar_lea.vmem %s13822_s22, 27648  ;;  %p13639_p2 = scmp.lt.s32.totalorder %s13822_s22, %s13822_s22 }
  0x1e   : > { %p13632_p9 = scmp.ne.s32.totalorder %s13822_s22, %s13631_s7  ;;  %p13640_p6 = scmp.lt.s32.totalorder %s13631_s7, %s13631_s7 }
  0x20   : > { %p13634_p10 = pnand %p13632_p9, %p13620_p13  ;;  %p13641_p4 = por %p13640_p6, %p13639_p2 }
  0x22   : > { %p13635_p1 = pneg %p13634_p10 }
  0x24   : > { %p13642_p8 = pnand %p13641_p4, %p13635_p1 }
  0x26   : > { %13645 = shalt.err (!%p13642_p8)
}
  0x27   : > { %s13749_s8 = smov 64   ;;  %s13750_s9 = smov 4  }
  0x28   : > { %13279 = dma.hbm_to_vmem [thread:$0]  (!%p13829_p11), %s16931_s1, 27648, %s13822_s22, [#allocation8], %s13749_s8, %s13749_s8, %s13750_s9  }
  0x29   : > { %p25_p1 = scmp.eq.s32.totalorder %s24_s26, 0  ;;  %p34_p2 = scmp.ne.s32.totalorder %s13742_s14, %s13738_s13 }
  0x2a   : > { %p35_p4 = scmp.eq.s32.totalorder %s13746_s15, 0  ;;  %p13289_p6 = scmp.lt.s32.totalorder %s13746_s15, 2 }
  0x2b   : > { %s13868_s17 = scalar_select %p25_p1, %s13742_s14, %s27_s25  }
  0x2c   : > { %p36_p8 = por %p35_p4, %p34_p2  ;;  %p16948_p10 = scmp.eq.s32.totalorder %s13799_s16, 1 }
  0x2d   : > { %s148_s23 = sand.u32 1, %s13742_s14   ;;  %s11228_s27 = sshll.u32 %s13746_s15, 12 }
  0x2e   : > { %p13872_p12 = por %p16948_p10, %p34_p2  ;;  %s10999_s28 = sshll.u32 %s148_s23, 8 }
  0x2f   : > { %s13881_s4 = scalar_lea.hbm %s16930_s0, %s11228_s27  ;;  %s152_s22 = scalar_lea.vmem [#allocation4], %s10999_s28 }
  0x30   : > { %s159_s25 = sshll.u32 %s152_s22, 4  ;;  %p13883_p11 = pnand %p13289_p6, %p36_p8  ;;  %s13887_s25 = int_to_ptr.vmem [resolvable:$true] %s159_s25 }
  0x31   : > { %s13889_s5 = scalar_lea.sflag [#allocation5], %s148_s23  ;;  %s13646_s6 = scalar_lea.hbm %s13881_s4, 4096 }
  0x32   : > { %p13647_p13 = scmp.ne.s32.totalorder %s13881_s4, %s13646_s6  ;;  %p13648_p0 = pneg %p13883_p11 }
  0x33   : > { %s13651_s11 = scalar_lea.hbm %s16930_s0, 8192  ;;  %p13652_p7 = scmp.lt.u32.totalorder %s13881_s4, %s16930_s0 }
  0x34   : > { %p13649_p3 = pnand %p13648_p0, %p13647_p13  ;;  %p13653_p9 = scmp.lt.u32.totalorder %s13651_s11, %s13646_s6 }
  0x35   : > { %p13655_p2 = scmp.lt.u32.totalorder %s13646_s6, %s13881_s4 }
  0x36   : > { %p13650_p5 = pneg %p13649_p3  ;;  %p13654_p1 = por %p13653_p9, %p13652_p7 }
  0x38   : > { %p13656_p4 = por %p13655_p2, %p13654_p1 }
  0x3a   : > { %p13657_p6 = pnand %p13656_p4, %p13650_p5 }
  0x3c   : > { %13660 = shalt.err (!%p13657_p6)
}
  0x3d   : > { %s13661_s23 = scalar_lea.vmem %s13887_s25, 4096  ;;  %s13751_s29 = smov [#allocation4]  }
  0x3e   : > { %p13662_p8 = scmp.ne.s32.totalorder %s13887_s25, %s13661_s23  ;;  %s13666_s30 = sshll.u32 %s13751_s29, 4  ;;  %s13667_s30 = int_to_ptr.vmem [resolvable:$false] %s13666_s30 }
  0x3f   : > { %s13668_s22 = scalar_lea.vmem %s13667_s30, 8192  ;;  %p13669_p3 = scmp.lt.s32.totalorder %s13887_s25, %s13667_s30 }
  0x40   : > { %p13664_p10 = pnand %p13662_p8, %p13648_p0  ;;  %p13670_p7 = scmp.lt.s32.totalorder %s13668_s22, %s13661_s23 }
  0x42   : > { %p13665_p13 = pneg %p13664_p10  ;;  %p13671_p9 = por %p13670_p7, %p13669_p3 }
  0x44   : > { %p13672_p1 = pnand %p13671_p9, %p13665_p13 }
  0x46   : > { %13675 = shalt.err (!%p13672_p1)
}
  0x47   : > { %13283 = dma.hbm_to_vmem [thread:$0]  (!%p13883_p11), %s13881_s4, 4096, %s13887_s25, %s13889_s5, %s13749_s8, %s13749_s8, %s13750_s9  }
  0x48   : > { %p16951_p0 = scmp.ne.s32.totalorder %s16946_s20, 0 }
  0x4a   : > { %171 = sbr.rel (%p16951_p0) target bundleno = 2157 (0x86d), region = 32 }
  0x51   : > { %s13923_s6 = sand.u32 1, %s13738_s13   ;;  %p16952_p5 = scmp.ne.s32.totalorder %s16944_s18, 0 }
  0x52   : > { %s11003_s7 = sshll.u32 %s13923_s6, 8  ;;  %s174_s10 = scalar_lea.sflag [#allocation5], %s13923_s6 }
  0x53   : > { %s13929_s26 = scalar_lea.vmem [#allocation4], %s11003_s7 }
  0x54   : > { %13721 = dma.done.wait (%p16952_p5), %s174_s10, 4096  }
  0x55   : > { %13723 = vsyncadd (%p16952_p5), %s174_s10, 4294963200  ;;  %p16953_p11 = scmp.eq.s32.totalorder %s13799_s16, 0 }
  0x57   : > { %13725 = dma.done.wait (%p16953_p11), [#allocation8], 27648   ;;  %p16954_p2 = pmov %p16953_p11 }
  0x58   : > { %v13752_v0 = vmov 0   ;;  %v13753_v1 = vmov 0.0   ;;  %v13331_v2 = vld [vmem:[#allocation7] sm:$0xff]   ;;  %v13333_v4 = vld [vmem:[#allocation7 + $0x8] sm:$0xff]   ;;  %v13335_v6 = vld [vmem:[#allocation7 + $0x10] sm:$0xff]   ;;  %s16692_s8 = scalar_lea.vmem [#allocation9], %s11003_s7 }
  0x59   : > { %13727 = vsyncadd (%p16954_p2), [#allocation8], 4294939648  ;;  %6660 = vmatprep.subr.bf16.mxu1 %v13752_v0  ;;  %8394 = vmatprep.subr.bf16.mxu0 %v13752_v0  ;;  %269 = vst [vmem:[#allocation2] sm:$0xff] %v13753_v1  ;;  %v13332_v3 = vld [vmem:[#allocation7 + $0x300] sm:$0xff]   ;;  %v13334_v5 = vld [vmem:[#allocation7 + $0x308] sm:$0xff]   ;;  %s11229_s25 = sshll.u32 %s13799_s16, 12 }
  0x5a   : > { %270 = vst [vmem:[#allocation2 + $0x8] sm:$0x3] %v13753_v1  ;;  %271 = vst [vmem:[#allocation2 + $0x10] sm:$0xff] %v13753_v1  ;;  %6661 = vmatpush1.bf16.msra.mxu1 %v13331_v2  ;;  %8395 = vmatpush1.bf16.msra.mxu0 %v13332_v3  ;;  %v13336_v7 = vld [vmem:[#allocation7 + $0x310] sm:$0xff]   ;;  %v13337_v8 = vld [vmem:[#allocation7 + $0x18] sm:$0xff]   ;;  %s10912_s5 = sshll.u32 %s16692_s8, 4  ;;  %s16882_s28 = scalar_lea.hbm %s16933_s3, %s11229_s25  ;;  %s16884_s5 = int_to_ptr.vmem [resolvable:$true] %s10912_s5 }
  0x5b   : > { %272 = vst [vmem:[#allocation2 + $0x18] sm:$0x3] %v13753_v1  ;;  %273 = vst [vmem:[#allocation2 + $0x20] sm:$0xff] %v13753_v1  ;;  %6662 = vmatprep.subr.bf16.mxu1 %v13752_v0  ;;  %8396 = vmatprep.subr.bf16.mxu0 %v13752_v0  ;;  %v13338_v9 = vld [vmem:[#allocation7 + $0x318] sm:$0xff]   ;;  %v13339_v10 = vld [vmem:[#allocation7 + $0x20] sm:$0xff]   ;;  %s10899_s23 = scalar_lea.sflag [#allocation6], %s13923_s6 }
  0x5c   : > { %274 = vst [vmem:[#allocation2 + $0x28] sm:$0x3] %v13753_v1  ;;  %275 = vst [vmem:[#allocation2 + $0x30] sm:$0xff] %v13753_v1  ;;  %v13340_v11 = vld [vmem:[#allocation7 + $0x320] sm:$0xff]   ;;  %v13341_v12 = vld [vmem:[#allocation7 + $0x28] sm:$0xff]   ;;  %s13676_s29 = scalar_lea.vmem %s16884_s5, 4096 }
  0x5d   : > { %276 = vst [vmem:[#allocation2 + $0x38] sm:$0x3] %v13753_v1  ;;  %277 = vst [vmem:[#allocation2 + $0x40] sm:$0xff] %v13753_v1  ;;  %v13342_v13 = vld [vmem:[#allocation7 + $0x328] sm:$0xff]   ;;  %v13343_v14 = vld [vmem:[#allocation7 + $0x30] sm:$0xff]   ;;  %p13677_p4 = scmp.ne.s32.totalorder %s16884_s5, %s13676_s29  ;;  %s13755_s16 = smov [#allocation9]  }
  0x5e   : > { %278 = vst [vmem:[#allocation2 + $0x48] sm:$0x3] %v13753_v1  ;;  %279 = vst [vmem:[#allocation2 + $0x50] sm:$0xff] %v13753_v1  ;;  %6663 = vmatpush1.bf16.msra.mxu1 %v13333_v4  ;;  %8397 = vmatpush1.bf16.msra.mxu0 %v13334_v5  ;;  %v13344_v15 = vld [vmem:[#allocation7 + $0x330] sm:$0xff]   ;;  %v13345_v16 = vld [vmem:[#allocation7 + $0x38] sm:$0xff]   ;;  %s13680_s30 = sshll.u32 %s13755_s16, 4  ;;  %s13681_s30 = int_to_ptr.vmem [resolvable:$false] %s13680_s30 }
  0x5f   : > { %280 = vst [vmem:[#allocation2 + $0x58] sm:$0x3] %v13753_v1  ;;  %281 = vst [vmem:[#allocation2 + $0x60] sm:$0xff] %v13753_v1  ;;  %6664 = vmatprep.subr.bf16.mxu1 %v13752_v0  ;;  %8398 = vmatprep.subr.bf16.mxu0 %v13752_v0  ;;  %v13346_v17 = vld [vmem:[#allocation7 + $0x338] sm:$0xff]   ;;  %v13347_v18 = vld [vmem:[#allocation7 + $0x40] sm:$0xff]   ;;  %p13678_p6 = pnand %p13677_p4, %p13872_p12  ;;  %s13682_s22 = scalar_lea.vmem %s13681_s30, 8192 }
  0x60   : > { %282 = vst [vmem:[#allocation2 + $0x68] sm:$0x3] %v13753_v1  ;;  %283 = vst [vmem:[#allocation2 + $0x70] sm:$0xff] %v13753_v1  ;;  %v13348_v19 = vld [vmem:[#allocation7 + $0x340] sm:$0xff]   ;;  %v13349_v27 = vld [vmem:[#allocation7 + $0x48] sm:$0xff]   ;;  %p13683_p10 = scmp.lt.s32.totalorder %s16884_s5, %s13681_s30  ;;  %p13684_p13 = scmp.lt.s32.totalorder %s13682_s22, %s13676_s29 }
  0x61   : > { %284 = vst [vmem:[#allocation2 + $0x78] sm:$0x3] %v13753_v1  ;;  %285 = vst [vmem:[#allocation2 + $0x80] sm:$0xff] %v13753_v1  ;;  %v726_v20 = vld [vmem:[#allocation2 + $0x1] sm:$0xff]  ;;  %v13351_v32 = vld [vmem:[#allocation7 + $0x50] sm:$0xff]   ;;  %p13679_p8 = pneg %p13678_p6 }
  0x62   : > { %286 = vst [vmem:[#allocation2 + $0x88] sm:$0x3] %v13753_v1  ;;  %287 = vst [vmem:[#allocation2 + $0x90] sm:$0xff] %v13753_v1  ;;  %6665 = vmatpush1.bf16.msra.mxu1 %v13335_v6  ;;  %8399 = vmatpush1.bf16.msra.mxu0 %v13336_v7  ;;  %v727_v21 = vld [vmem:[#allocation2 + $0x11] sm:$0xff]  ;;  %v14158_v22 = vld [vmem:[%s13929_s26] sm:$0xff]   ;;  %p13685_p3 = por %p13684_p13, %p13683_p10 }
  0x63   : > { %288 = vst [vmem:[#allocation2 + $0x98] sm:$0x3] %v13753_v1  ;;  %289 = vst [vmem:[#allocation2 + $0xa0] sm:$0xff] %v13753_v1  ;;  %6666 = vmatprep.subr.bf16.mxu1 %v13752_v0  ;;  %8400 = vmatprep.subr.bf16.mxu0 %v13752_v0  ;;  %v790_v23 = vpack.c.bf16 %v727_v21, %v726_v20  ;;  %v11232_v24 = vunpack.c.l.bf16 %v14158_v22  ;;  %v11233_v25 = vunpack.c.h.bf16 %v14158_v22  ;;  %v13363_v26 = vld [vmem:[%s13929_s26] sm:$0xff]  ;;  %v13350_v28 = vld [vmem:[#allocation7 + $0x348] sm:$0xff]  }
  0x64   : > { %290 = vst [vmem:[#allocation2 + $0xa8] sm:$0x3] %v13753_v1  ;;  %291 = vst [vmem:[#allocation2 + $0xb0] sm:$0xff] %v13753_v1  ;;  %v11518_v29 = vld [vmem:[%s13929_s26 + $0x8] sm:$0xff]   ;;  %8426 = vmatprep.mubr.bf16.mxu0 %v13363_v26  ;;  %v11519_v33 = vld [vmem:[%s13929_s26 + $0x10] sm:$0xff]   ;;  %p13686_p7 = pnand %p13685_p3, %p13679_p8 }
  0x65   : > { %292 = vst [vmem:[#allocation2 + $0xb8] sm:$0x3] %v13753_v1  ;;  %293 = vst [vmem:[#allocation2 + $0xc0] sm:$0xff] %v13753_v1  ;;  %6692 = vmatprep.mubr.bf16.mxu1 %v790_v23  ;;  %v11236_v30 = vunpack.c.l.bf16 %v11518_v29  ;;  %v11237_v31 = vunpack.c.h.bf16 %v11518_v29  ;;  %v13352_v34 = vld [vmem:[#allocation7 + $0x350] sm:$0xff]   ;;  %v11240_v35 = vunpack.c.l.bf16 %v11519_v33  ;;  %v11241_v36 = vunpack.c.h.bf16 %v11519_v33  ;;  %v11520_v37 = vld [vmem:[%s13929_s26 + $0x18] sm:$0xff]  }
  0x66   : > { %294 = vst [vmem:[#allocation2 + $0xc8] sm:$0x3] %v13753_v1  ;;  %295 = vst [vmem:[#allocation2 + $0xd0] sm:$0xff] %v13753_v1  ;;  %6667 = vmatpush1.bf16.msra.mxu1 %v13337_v8  ;;  %8401 = vmatpush1.bf16.msra.mxu0 %v13338_v9  ;;  %v11244_v38 = vunpack.c.l.bf16 %v11520_v37  ;;  %v11245_v39 = vunpack.c.h.bf16 %v11520_v37  ;;  %v13353_v40 = vld [vmem:[#allocation7 + $0x58] sm:$0xff]   ;;  %v14174_v42 = vld [vmem:[%s13929_s26 + $0x20] sm:$0xff]  }
  0x67   : > { %296 = vst [vmem:[#allocation2 + $0xd8] sm:$0x3] %v13753_v1  ;;  %297 = vst [vmem:[#allocation2 + $0xe0] sm:$0xff] %v13753_v1  ;;  %6668 = vmatprep.subr.bf16.mxu1 %v13752_v0  ;;  %8402 = vmatprep.subr.bf16.mxu0 %v13752_v0  ;;  %v13354_v41 = vld [vmem:[#allocation7 + $0x358] sm:$0xff]   ;;  %v11248_v43 = vunpack.c.l.bf16 %v14174_v42  ;;  %v11249_v44 = vunpack.c.h.bf16 %v14174_v42  ;;  %v13355_v45 = vld [vmem:[#allocation7 + $0x60] sm:$0xff]  }
  0x68   : > { %298 = vst [vmem:[#allocation2 + $0xe8] sm:$0x3] %v13753_v1  ;;  %299 = vst [vmem:[#allocation2 + $0xf0] sm:$0xff] %v13753_v1  ;;  %v13356_v46 = vld [vmem:[#allocation7 + $0x360] sm:$0xff]   ;;  %v11522_v47 = vld [vmem:[%s13929_s26 + $0x28] sm:$0xff]  }
  0x69   : > { %300 = vst [vmem:[#allocation2 + $0xf8] sm:$0x3] %v13753_v1  ;;  %301 = vst [vmem:[#allocation2 + $0x100] sm:$0xff] %v13753_v1  ;;  %v11252_v48 = vunpack.c.l.bf16 %v11522_v47  ;;  %v11253_v49 = vunpack.c.h.bf16 %v11522_v47  ;;  %v11523_v50 = vld [vmem:[%s13929_s26 + $0x30] sm:$0xff]   ;;  %v13357_v53 = vld [vmem:[#allocation7 + $0x68] sm:$0xff]  }
  0x6a   : > { %302 = vst [vmem:[#allocation2 + $0x108] sm:$0x3] %v13753_v1  ;;  %303 = vst [vmem:[#allocation2 + $0x110] sm:$0xff] %v13753_v1  ;;  %6669 = vmatpush1.bf16.msra.mxu1 %v13339_v10  ;;  %8403 = vmatpush1.bf16.msra.mxu0 %v13340_v11  ;;  %v11256_v51 = vunpack.c.l.bf16 %v11523_v50  ;;  %v11257_v52 = vunpack.c.h.bf16 %v11523_v50  ;;  %v13358_v54 = vld [vmem:[#allocation7 + $0x368] sm:$0xff]   ;;  %v11524_v55 = vld [vmem:[%s13929_s26 + $0x38] sm:$0xff]  }
  0x6b   : > { %304 = vst [vmem:[#allocation2 + $0x118] sm:$0x3] %v13753_v1  ;;  %305 = vst [vmem:[#allocation2 + $0x120] sm:$0xff] %v13753_v1  ;;  %6670 = vmatprep.subr.bf16.mxu1 %v13752_v0  ;;  %8404 = vmatprep.subr.bf16.mxu0 %v13752_v0  ;;  %v11260_v56 = vunpack.c.l.bf16 %v11524_v55  ;;  %v11261_v57 = vunpack.c.h.bf16 %v11524_v55  ;;  %v13359_v58 = vld [vmem:[#allocation7 + $0x70] sm:$0xff]   ;;  %v14190_v60 = vld [vmem:[%s13929_s26 + $0x40] sm:$0xff]  }
  0x6c   : > { %306 = vst [vmem:[#allocation2 + $0x128] sm:$0x3] %v13753_v1  ;;  %307 = vst [vmem:[#allocation2 + $0x130] sm:$0xff] %v13753_v1  ;;  %v13360_v59 = vld [vmem:[#allocation7 + $0x370] sm:$0xff]   ;;  %v11264_v61 = vunpack.c.l.bf16 %v14190_v60  ;;  %v11265_v62 = vunpack.c.h.bf16 %v14190_v60  ;;  %v11526_v63 = vld [vmem:[%s13929_s26 + $0x48] sm:$0xff]  }
  0x6d   : > { %308 = vst [vmem:[#allocation2 + $0x138] sm:$0x3] %v13753_v1  ;;  %309 = vst [vmem:[#allocation2 + $0x140] sm:$0xff] %v13753_v1  ;;  %v13362_v2 = vld [vmem:[#allocation7 + $0x378] sm:$0xff]   ;;  %v11268_v4 = vunpack.c.l.bf16 %v11526_v63  ;;  %v11269_v5 = vunpack.c.h.bf16 %v11526_v63  ;;  %v728_v7 = vld [vmem:[#allocation2 + $0x21] sm:$0xff] }
  0x6e   : > { %310 = vst [vmem:[#allocation2 + $0x148] sm:$0x3] %v13753_v1  ;;  %311 = vst [vmem:[#allocation2 + $0x150] sm:$0xff] %v13753_v1  ;;  %6671 = vmatpush1.bf16.msra.mxu1 %v13341_v12  ;;  %8405 = vmatpush1.bf16.msra.mxu0 %v13342_v13  ;;  %v729_v8 = vld [vmem:[#allocation2 + $0x31] sm:$0xff]  ;;  %v13365_v13 = vld [vmem:[#allocation7 + $0x80] sm:$0xff]  }
  0x6f   : > { %312 = vst [vmem:[#allocation2 + $0x158] sm:$0x3] %v13753_v1  ;;  %313 = vst [vmem:[#allocation2 + $0x160] sm:$0xff] %v13753_v1  ;;  %6672 = vmatprep.subr.bf16.mxu1 %v13752_v0  ;;  %8406 = vmatprep.subr.bf16.mxu0 %v13752_v0  ;;  %v11527_v9 = vld [vmem:[%s13929_s26 + $0x50] sm:$0xff]   ;;  %v730_v20 = vld [vmem:[#allocation2 + $0x41] sm:$0xff] }
  0x70   : > { %314 = vst [vmem:[#allocation2 + $0x168] sm:$0x3] %v13753_v1  ;;  %315 = vst [vmem:[#allocation2 + $0x170] sm:$0xff] %v13753_v1  ;;  %v11272_v10 = vunpack.c.l.bf16 %v11527_v9  ;;  %v11273_v11 = vunpack.c.h.bf16 %v11527_v9  ;;  %v13369_v26 = vld [vmem:[#allocation7 + $0x88] sm:$0xff]   ;;  %v13368_v37 = vld [vmem:[%s13929_s26 + $0x10] sm:$0xff] }
  0x71   : > { %316 = vst [vmem:[#allocation2 + $0x178] sm:$0x3] %v13753_v1  ;;  %317 = vst [vmem:[#allocation2 + $0x180] sm:$0xff] %v13753_v1  ;;  %v11532_v47 = vld [vmem:[%s13929_s26 + $0x78] sm:$0xff]   ;;  %v13385_v63 = vld [vmem:[#allocation7 + $0xa0] sm:$0xff]  }
  0x72   : > { %318 = vst [vmem:[#allocation2 + $0x188] sm:$0x3] %v13753_v1  ;;  %319 = vst [vmem:[#allocation2 + $0x190] sm:$0xff] %v13753_v1  ;;  %6673 = vmatpush1.bf16.msra.mxu1 %v13343_v14  ;;  %8407 = vmatpush1.bf16.msra.mxu0 %v13344_v15  ;;  %v13364_v14 = vld [vmem:[#allocation7 + $0x380] sm:$0xff]   ;;  %v791_v15 = vpack.c.bf16 %v729_v8, %v728_v7  ;;  %v13374_v50 = vld [vmem:[#allocation7 + $0x398] sm:$0xff]  }
  0x73   : > { %320 = vst [vmem:[#allocation2 + $0x198] sm:$0x3] %v13753_v1  ;;  %321 = vst [vmem:[#allocation2 + $0x1a0] sm:$0xff] %v13753_v1  ;;  %6674 = vmatprep.subr.bf16.mxu1 %v13752_v0  ;;  %8408 = vmatprep.subr.bf16.mxu0 %v13752_v0  ;;  %v11535_v9 = vld [vmem:[%s13929_s26 + $0x90] sm:$0xff]  }
  0x74   : > { %322 = vst [vmem:[#allocation2 + $0x1a8] sm:$0x3] %v13753_v1  ;;  %323 = vst [vmem:[#allocation2 + $0x1b0] sm:$0xff] %v13753_v1 }
  0x75   : > { %324 = vst [vmem:[#allocation2 + $0x1b8] sm:$0x3] %v13753_v1  ;;  %325 = vst [vmem:[#allocation2 + $0x1c0] sm:$0xff] %v13753_v1 }
  0x76   : > { %326 = vst [vmem:[#allocation2 + $0x1c8] sm:$0x3] %v13753_v1  ;;  %327 = vst [vmem:[#allocation2 + $0x1d0] sm:$0xff] %v13753_v1  ;;  %6675 = vmatpush1.bf16.msra.mxu1 %v13345_v16  ;;  %8409 = vmatpush1.bf16.msra.mxu0 %v13346_v17  ;;  %v13366_v16 = vld [vmem:[%s13929_s26 + $0x8] sm:$0xff]  ;;  %v11528_v17 = vld [vmem:[%s13929_s26 + $0x58] sm:$0xff]  }
  0x77   : > { %328 = vst [vmem:[#allocation2 + $0x1d8] sm:$0x3] %v13753_v1  ;;  %329 = vst [vmem:[#allocation2 + $0x1e0] sm:$0xff] %v13753_v1  ;;  %6676 = vmatprep.subr.bf16.mxu1 %v13752_v0  ;;  %8410 = vmatprep.subr.bf16.mxu0 %v13752_v0  ;;  %v11276_v21 = vunpack.c.l.bf16 %v11528_v17  ;;  %v11277_v23 = vunpack.c.h.bf16 %v11528_v17  ;;  %v11536_v17 = vld [vmem:[%s13929_s26 + $0x98] sm:$0xff]  }
  0x78   : > { %330 = vst [vmem:[#allocation2 + $0x1e8] sm:$0x3] %v13753_v1  ;;  %331 = vst [vmem:[#allocation2 + $0x1f0] sm:$0xff] %v13753_v1 }
  0x79   : > { %332 = vst [vmem:[#allocation2 + $0x1f8] sm:$0x3] %v13753_v1  ;;  %333 = vst [vmem:[#allocation2 + $0x200] sm:$0xff] %v13753_v1 }
  0x7a   : > { %334 = vst [vmem:[#allocation2 + $0x208] sm:$0x3] %v13753_v1  ;;  %335 = vst [vmem:[#allocation2 + $0x210] sm:$0xff] %v13753_v1  ;;  %6677 = vmatpush1.bf16.msra.mxu1 %v13347_v18  ;;  %8411 = vmatpush1.bf16.msra.mxu0 %v13348_v19  ;;  %v13754_v18 = vmov 0.0|0.0   ;;  %v13367_v19 = vld [vmem:[#allocation7 + $0x388] sm:$0xff]  }
  0x7b   : > { %336 = vst [vmem:[#allocation2 + $0x218] sm:$0x3] %v13753_v1  ;;  %337 = vst [vmem:[#allocation2 + $0x220] sm:$0xff] %v13753_v1  ;;  %6678 = vmatprep.subr.bf16.mxu1 %v13752_v0  ;;  %8412 = vmatprep.subr.bf16.mxu0 %v13752_v0 }
  0x7c   : > { %338 = vst [vmem:[#allocation2 + $0x228] sm:$0x3] %v13753_v1  ;;  %339 = vst [vmem:[#allocation2 + $0x230] sm:$0xff] %v13753_v1 }
  0x7d   : > { %340 = vst [vmem:[#allocation2 + $0x238] sm:$0x3] %v13753_v1  ;;  %341 = vst [vmem:[#allocation2 + $0x240] sm:$0xff] %v13753_v1 }
  0x7e   : > { %342 = vst [vmem:[#allocation2 + $0x248] sm:$0x3] %v13753_v1  ;;  %343 = vst [vmem:[#allocation2 + $0x250] sm:$0xff] %v13753_v1  ;;  %6679 = vmatpush1.bf16.msra.mxu1 %v13349_v27  ;;  %8413 = vmatpush1.bf16.msra.mxu0 %v13350_v28 }
  0x7f   : > { %344 = vst [vmem:[#allocation2 + $0x258] sm:$0x3] %v13753_v1  ;;  %345 = vst [vmem:[#allocation2 + $0x260] sm:$0xff] %v13753_v1  ;;  %6680 = vmatprep.subr.bf16.mxu1 %v13752_v0  ;;  %8414 = vmatprep.subr.bf16.mxu0 %v13752_v0 }
  0x80   : > { %346 = vst [vmem:[#allocation2 + $0x268] sm:$0x3] %v13753_v1  ;;  %347 = vst [vmem:[#allocation2 + $0x270] sm:$0xff] %v13753_v1 }
  0x81   : > { %348 = vst [vmem:[#allocation2 + $0x278] sm:$0x3] %v13753_v1  ;;  %349 = vst [vmem:[#allocation2 + $0x280] sm:$0xff] %v13753_v1 }
  0x82   : > { %350 = vst [vmem:[#allocation2 + $0x288] sm:$0x3] %v13753_v1  ;;  %351 = vst [vmem:[#allocation2 + $0x290] sm:$0xff] %v13753_v1  ;;  %6681 = vmatpush1.bf16.msra.mxu1 %v13351_v32  ;;  %8415 = vmatpush1.bf16.msra.mxu0 %v13352_v34  ;;  %v11530_v32 = vld [vmem:[%s13929_s26 + $0x68] sm:$0xff]  }
  0x83   : > { %352 = vst [vmem:[#allocation2 + $0x298] sm:$0x3] %v13753_v1  ;;  %353 = vst [vmem:[#allocation2 + $0x2a0] sm:$0xff] %v13753_v1  ;;  %6682 = vmatprep.subr.bf16.mxu1 %v13752_v0  ;;  %8416 = vmatprep.subr.bf16.mxu0 %v13752_v0 }
  0x84   : > { %354 = vst [vmem:[#allocation2 + $0x2a8] sm:$0x3] %v13753_v1  ;;  %355 = vst [vmem:[#allocation2 + $0x2b0] sm:$0xff] %v13753_v1 }
  0x85   : > { %356 = vst [vmem:[#allocation2 + $0x2b8] sm:$0x3] %v13753_v1  ;;  %357 = vst [vmem:[#allocation2 + $0x2c0] sm:$0xff] %v13753_v1 }
  0x86   : > { %358 = vst [vmem:[#allocation2 + $0x2c8] sm:$0x3] %v13753_v1  ;;  %359 = vst [vmem:[#allocation2 + $0x2d0] sm:$0xff] %v13753_v1  ;;  %6683 = vmatpush1.bf16.msra.mxu1 %v13353_v40  ;;  %8417 = vmatpush1.bf16.msra.mxu0 %v13354_v41  ;;  %v11531_v40 = vld [vmem:[%s13929_s26 + $0x70] sm:$0xff]  }
  0x87   : > { %360 = vst [vmem:[#allocation2 + $0x2d8] sm:$0x3] %v13753_v1  ;;  %361 = vst [vmem:[#allocation2 + $0x2e0] sm:$0xff] %v13753_v1  ;;  %6684 = vmatprep.subr.bf16.mxu1 %v13752_v0  ;;  %8418 = vmatprep.subr.bf16.mxu0 %v13752_v0  ;;  %v11288_v41 = vunpack.c.l.bf16 %v11531_v40 }
  0x88   : > { %362 = vst [vmem:[#allocation2 + $0x2e8] sm:$0x3] %v13753_v1  ;;  %363 = vst [vmem:[#allocation2 + $0x2f0] sm:$0xff] %v13753_v1 }
  0x89   : > { %364 = vst [vmem:[#allocation2 + $0x2f8] sm:$0x3] %v13753_v1  ;;  %365 = vst [vmem:[#allocation2 + $0x300] sm:$0xff] %v13753_v1 }
  0x8a   : > { %366 = vst [vmem:[#allocation2 + $0x308] sm:$0x3] %v13753_v1  ;;  %367 = vst [vmem:[#allocation2 + $0x310] sm:$0xff] %v13753_v1  ;;  %6685 = vmatpush1.bf16.msra.mxu1 %v13355_v45  ;;  %8419 = vmatpush1.bf16.msra.mxu0 %v13356_v46  ;;  %v732_v45 = vld [vmem:[#allocation2 + $0x61] sm:$0xff]  ;;  %v733_v46 = vld [vmem:[#allocation2 + $0x71] sm:$0xff] }
  0x8b   : > { %368 = vst [vmem:[#allocation2 + $0x318] sm:$0x3] %v13753_v1  ;;  %369 = vst [vmem:[#allocation2 + $0x320] sm:$0xff] %v13753_v1  ;;  %6686 = vmatprep.subr.bf16.mxu1 %v13752_v0  ;;  %8420 = vmatprep.subr.bf16.mxu0 %v13752_v0 }
  0x8c   : > { %370 = vst [vmem:[#allocation2 + $0x328] sm:$0x3] %v13753_v1  ;;  %371 = vst [vmem:[#allocation2 + $0x330] sm:$0xff] %v13753_v1 }
  0x8d   : > { %372 = vst [vmem:[#allocation2 + $0x338] sm:$0x3] %v13753_v1  ;;  %373 = vst [vmem:[#allocation2 + $0x340] sm:$0xff] %v13753_v1 }
  0x8e   : > { %374 = vst [vmem:[#allocation2 + $0x348] sm:$0x3] %v13753_v1  ;;  %375 = vst [vmem:[#allocation2 + $0x350] sm:$0xff] %v13753_v1  ;;  %6687 = vmatpush1.bf16.msra.mxu1 %v13357_v53  ;;  %8421 = vmatpush1.bf16.msra.mxu0 %v13358_v54  ;;  %v13380_v53 = vld [vmem:[#allocation7 + $0x98] sm:$0xff]   ;;  %v11533_v54 = vld [vmem:[%s13929_s26 + $0x80] sm:$0xff]  }
  0x8f   : > { %376 = vst [vmem:[#allocation2 + $0x358] sm:$0x3] %v13753_v1  ;;  %377 = vst [vmem:[#allocation2 + $0x360] sm:$0xff] %v13753_v1  ;;  %6688 = vmatprep.subr.bf16.mxu1 %v13752_v0  ;;  %8422 = vmatprep.subr.bf16.mxu0 %v13752_v0 }
  0x90   : > { %378 = vst [vmem:[#allocation2 + $0x368] sm:$0x3] %v13753_v1  ;;  %379 = vst [vmem:[#allocation2 + $0x370] sm:$0xff] %v13753_v1 }
  0x91   : > { %380 = vst [vmem:[#allocation2 + $0x378] sm:$0x3] %v13753_v1  ;;  %381 = vst [vmem:[#allocation2 + $0x380] sm:$0xff] %v13753_v1 }
  0x92   : > { %382 = vst [vmem:[#allocation2 + $0x388] sm:$0x3] %v13753_v1  ;;  %383 = vst [vmem:[#allocation2 + $0x390] sm:$0xff] %v13753_v1  ;;  %6689 = vmatpush1.bf16.msra.mxu1 %v13359_v58  ;;  %8423 = vmatpush1.bf16.msra.mxu0 %v13360_v59  ;;  %v11297_v58 = vunpack.c.h.bf16 %v11533_v54  ;;  %v13370_v59 = vld [vmem:[%s13929_s26 + $0x18] sm:$0xff] }
  0x93   : > { %384 = vst [vmem:[#allocation2 + $0x398] sm:$0x3] %v13753_v1  ;;  %385 = vst [vmem:[#allocation2 + $0x3a0] sm:$0xff] %v13753_v1  ;;  %6690 = vmatprep.subr.bf16.mxu1 %v13752_v0  ;;  %8424 = vmatprep.subr.bf16.mxu0 %v13752_v0 }
  0x94   : > { %386 = vst [vmem:[#allocation2 + $0x3a8] sm:$0x3] %v13753_v1  ;;  %387 = vst [vmem:[#allocation2 + $0x3b0] sm:$0xff] %v13753_v1 }
  0x95   : > { %388 = vst [vmem:[#allocation2 + $0x3b8] sm:$0x3] %v13753_v1  ;;  %389 = vst [vmem:[#allocation2 + $0x3c0] sm:$0xff] %v13753_v1 }
  0x96   : > { %390 = vst [vmem:[#allocation2 + $0x3c8] sm:$0x3] %v13753_v1  ;;  %391 = vst [vmem:[#allocation2 + $0x3d0] sm:$0xff] %v13753_v1  ;;  %8425 = vmatpush1.bf16.msra.mxu0 %v13362_v2  ;;  %v11534_v2 = vld [vmem:[%s13929_s26 + $0x88] sm:$0xff]  }
  0x97   : > { %392 = vst [vmem:[#allocation2 + $0x3d8] sm:$0x3] %v13753_v1  ;;  %393 = vst [vmem:[#allocation2 + $0x3e0] sm:$0xff] %v13753_v1  ;;  %8683 = vmatprep.subr.bf16.mxu0 %v13752_v0  ;;  %v11300_v7 = vunpack.c.l.bf16 %v11534_v2  ;;  %v11301_v8 = vunpack.c.h.bf16 %v11534_v2 }
  0x98   : > { %394 = vst [vmem:[#allocation2 + $0x3e8] sm:$0x3] %v13753_v1  ;;  %395 = vst [vmem:[#allocation2 + $0x3f0] sm:$0xff] %v13753_v1 }
  0x99   : > { %396 = vst [vmem:[#allocation2 + $0x3f8] sm:$0x3] %v13753_v1  ;;  %397 = vst [vmem:[#allocation2 + $0x400] sm:$0xff] %v13753_v1 }
  0x9a   : > { %398 = vst [vmem:[#allocation2 + $0x408] sm:$0x3] %v13753_v1  ;;  %399 = vst [vmem:[#allocation2 + $0x410] sm:$0xff] %v13753_v1 }
  0x9b   : > { %400 = vst [vmem:[#allocation2 + $0x418] sm:$0x3] %v13753_v1  ;;  %401 = vst [vmem:[#allocation2 + $0x420] sm:$0xff] %v13753_v1 }
  0x9c   : > { %402 = vst [vmem:[#allocation2 + $0x428] sm:$0x3] %v13753_v1  ;;  %403 = vst [vmem:[#allocation2 + $0x430] sm:$0xff] %v13753_v1 }
  0x9d   : > { %404 = vst [vmem:[#allocation2 + $0x438] sm:$0x3] %v13753_v1  ;;  %405 = vst [vmem:[#allocation2 + $0x440] sm:$0xff] %v13753_v1 }
  0x9e   : > { %406 = vst [vmem:[#allocation2 + $0x448] sm:$0x3] %v13753_v1  ;;  %407 = vst [vmem:[#allocation2 + $0x450] sm:$0xff] %v13753_v1 }
  0x9f   : > { %408 = vst [vmem:[#allocation2 + $0x458] sm:$0x3] %v13753_v1  ;;  %409 = vst [vmem:[#allocation2 + $0x460] sm:$0xff] %v13753_v1 }
  0xa0   : > { %410 = vst [vmem:[#allocation2 + $0x468] sm:$0x3] %v13753_v1  ;;  %411 = vst [vmem:[#allocation2 + $0x470] sm:$0xff] %v13753_v1 }
  0xa1   : > { %412 = vst [vmem:[#allocation2 + $0x478] sm:$0x3] %v13753_v1  ;;  %413 = vst [vmem:[#allocation2 + $0x480] sm:$0xff] %v13753_v1 }
  0xa2   : > { %414 = vst [vmem:[#allocation2 + $0x488] sm:$0x3] %v13753_v1  ;;  %415 = vst [vmem:[#allocation2 + $0x490] sm:$0xff] %v13753_v1 }
  0xa3   : > { %416 = vst [vmem:[#allocation2 + $0x498] sm:$0x3] %v13753_v1  ;;  %417 = vst [vmem:[#allocation2 + $0x4a0] sm:$0xff] %v13753_v1 }
  0xa4   : > { %418 = vst [vmem:[#allocation2 + $0x4a8] sm:$0x3] %v13753_v1  ;;  %419 = vst [vmem:[#allocation2 + $0x4b0] sm:$0xff] %v13753_v1 }
  0xa5   : > { %420 = vst [vmem:[#allocation2 + $0x4b8] sm:$0x3] %v13753_v1  ;;  %421 = vst [vmem:[#allocation2 + $0x4c0] sm:$0xff] %v13753_v1 }
  0xa6   : > { %422 = vst [vmem:[#allocation2 + $0x4c8] sm:$0x3] %v13753_v1  ;;  %423 = vst [vmem:[#allocation2 + $0x4d0] sm:$0xff] %v13753_v1 }
  0xa7   : > { %424 = vst [vmem:[#allocation2 + $0x4d8] sm:$0x3] %v13753_v1  ;;  %425 = vst [vmem:[#allocation2 + $0x4e0] sm:$0xff] %v13753_v1 }
  0xa8   : > { %426 = vst [vmem:[#allocation2 + $0x4e8] sm:$0x3] %v13753_v1  ;;  %427 = vst [vmem:[#allocation2 + $0x4f0] sm:$0xff] %v13753_v1 }
  0xa9   : > { %428 = vst [vmem:[#allocation2 + $0x4f8] sm:$0x3] %v13753_v1  ;;  %429 = vst [vmem:[#allocation2 + $0x500] sm:$0xff] %v13753_v1 }
  0xaa   : > { %430 = vst [vmem:[#allocation2 + $0x508] sm:$0x3] %v13753_v1  ;;  %431 = vst [vmem:[#allocation2 + $0x510] sm:$0xff] %v13753_v1 }
  0xab   : > { %432 = vst [vmem:[#allocation2 + $0x518] sm:$0x3] %v13753_v1  ;;  %433 = vst [vmem:[#allocation2 + $0x520] sm:$0xff] %v13753_v1 }
  0xac   : > { %434 = vst [vmem:[#allocation2 + $0x528] sm:$0x3] %v13753_v1  ;;  %435 = vst [vmem:[#allocation2 + $0x530] sm:$0xff] %v13753_v1 }
  0xad   : > { %436 = vst [vmem:[#allocation2 + $0x538] sm:$0x3] %v13753_v1  ;;  %437 = vst [vmem:[#allocation2 + $0x540] sm:$0xff] %v13753_v1 }
  0xae   : > { %438 = vst [vmem:[#allocation2 + $0x548] sm:$0x3] %v13753_v1  ;;  %439 = vst [vmem:[#allocation2 + $0x550] sm:$0xff] %v13753_v1 }
  0xaf   : > { %440 = vst [vmem:[#allocation2 + $0x558] sm:$0x3] %v13753_v1  ;;  %441 = vst [vmem:[#allocation2 + $0x560] sm:$0xff] %v13753_v1 }
  0xb0   : > { %442 = vst [vmem:[#allocation2 + $0x568] sm:$0x3] %v13753_v1  ;;  %443 = vst [vmem:[#allocation2 + $0x570] sm:$0xff] %v13753_v1 }
  0xb1   : > { %444 = vst [vmem:[#allocation2 + $0x578] sm:$0x3] %v13753_v1  ;;  %445 = vst [vmem:[#allocation2 + $0x580] sm:$0xff] %v13753_v1 }
  0xb2   : > { %446 = vst [vmem:[#allocation2 + $0x588] sm:$0x3] %v13753_v1  ;;  %447 = vst [vmem:[#allocation2 + $0x590] sm:$0xff] %v13753_v1 }
  0xb3   : > { %448 = vst [vmem:[#allocation2 + $0x598] sm:$0x3] %v13753_v1  ;;  %449 = vst [vmem:[#allocation2 + $0x5a0] sm:$0xff] %v13753_v1 }
  0xb4   : > { %450 = vst [vmem:[#allocation2 + $0x5a8] sm:$0x3] %v13753_v1  ;;  %451 = vst [vmem:[#allocation2 + $0x5b0] sm:$0xff] %v13753_v1 }
  0xb5   : > { %452 = vst [vmem:[#allocation2 + $0x5b8] sm:$0x3] %v13753_v1  ;;  %453 = vst [vmem:[#allocation2 + $0x5c0] sm:$0xff] %v13753_v1 }
  0xb6   : > { %454 = vst [vmem:[#allocation2 + $0x5c8] sm:$0x3] %v13753_v1  ;;  %455 = vst [vmem:[#allocation2 + $0x5d0] sm:$0xff] %v13753_v1 }
  0xb7   : > { %456 = vst [vmem:[#allocation2 + $0x5d8] sm:$0x3] %v13753_v1  ;;  %457 = vst [vmem:[#allocation2 + $0x5e0] sm:$0xff] %v13753_v1 }
  0xb8   : > { %458 = vst [vmem:[#allocation2 + $0x5e8] sm:$0x3] %v13753_v1  ;;  %459 = vst [vmem:[#allocation2 + $0x5f0] sm:$0xff] %v13753_v1 }
  0xb9   : > { %460 = vst [vmem:[#allocation2 + $0x5f8] sm:$0x3] %v13753_v1  ;;  %461 = vst [vmem:[#allocation2 + $0x600] sm:$0xff] %v13753_v1 }
  0xba   : > { %462 = vst [vmem:[#allocation2 + $0x608] sm:$0x3] %v13753_v1  ;;  %463 = vst [vmem:[#allocation2 + $0x610] sm:$0xff] %v13753_v1 }
  0xbb   : > { %464 = vst [vmem:[#allocation2 + $0x618] sm:$0x3] %v13753_v1  ;;  %465 = vst [vmem:[#allocation2 + $0x620] sm:$0xff] %v13753_v1 }
  0xbc   : > { %466 = vst [vmem:[#allocation2 + $0x628] sm:$0x3] %v13753_v1  ;;  %467 = vst [vmem:[#allocation2 + $0x630] sm:$0xff] %v13753_v1 }
  0xbd   : > { %468 = vst [vmem:[#allocation2 + $0x638] sm:$0x3] %v13753_v1  ;;  %534 = vst [vmem:[#allocation2 + $0xb1] sm:$0xff] %v11232_v24  ;;  %v13361_v1 = vld [vmem:[#allocation7 + $0x78] sm:$0xff]  }
  0xbe   : > { %535 = vst [vmem:[#allocation2 + $0xc1] sm:$0xff] %v11233_v25  ;;  %536 = vst [vmem:[#allocation2 + $0xd1] sm:$0xff] %v11236_v30  ;;  %6691 = vmatpush1.bf16.msra.mxu1 %v13361_v1  ;;  %v11529_v25 = vld [vmem:[%s13929_s26 + $0x60] sm:$0xff]  }
  0xbf   : > { %537 = vst [vmem:[#allocation2 + $0xe1] sm:$0xff] %v11237_v31  ;;  %538 = vst [vmem:[#allocation2 + $0xf1] sm:$0xff] %v11240_v35  ;;  %6949 = vmatprep.subr.bf16.mxu1 %v13752_v0  ;;  %v11280_v27 = vunpack.c.l.bf16 %v11529_v25  ;;  %v11281_v28 = vunpack.c.h.bf16 %v11529_v25  ;;  %v731_v31 = vld [vmem:[#allocation2 + $0x51] sm:$0xff]  ;;  %v11284_v35 = vunpack.c.l.bf16 %v11530_v32  ;;  %v734_v1 = vld [vmem:[#allocation2 + $0xa1] sm:$0xff] }
  0xc0   : > { %539 = vst [vmem:[#allocation2 + $0x101] sm:$0xff] %v11241_v36  ;;  %540 = vst [vmem:[#allocation2 + $0x111] sm:$0xff] %v11244_v38  ;;  %v792_v34 = vpack.c.bf16 %v731_v31, %v730_v20  ;;  %v11285_v36 = vunpack.c.h.bf16 %v11530_v32  ;;  %v13371_v38 = vld [vmem:[#allocation7 + $0x390] sm:$0xff]   ;;  %v11537_v25 = vld [vmem:[%s13929_s26 + $0xa0] sm:$0xff]  }
  0xc1   : > { %541 = vst [vmem:[#allocation2 + $0x121] sm:$0xff] %v11245_v39  ;;  %542 = vst [vmem:[#allocation2 + $0x151] sm:$0xff] %v11248_v43  ;;  %6693 = vmatmul.mubr.bf16.vlgmr.msra.gmra.mrb[0].mxu1 %v13754_v18  ;;  %v13373_v39 = vld [vmem:[#allocation7 + $0x90] sm:$0xff]   ;;  %v11312_v22 = vunpack.c.l.bf16 %v11537_v25  ;;  %v13403_v31 = vld [vmem:[#allocation7 + $0xb8] sm:$0xff]  }
  0xc2   : > { %543 = vst [vmem:[#allocation2 + $0x161] sm:$0xff] %v11249_v44  ;;  %544 = vst [vmem:[#allocation2 + $0x171] sm:$0xff] %v11252_v48  ;;  %6950 = vmatpush1.bf16.msra.mxu1 %v13365_v13  ;;  %6700 = vmatprep.mubr.bf16.mxu1 %v791_v15  ;;  %v11289_v44 = vunpack.c.h.bf16 %v11531_v40  ;;  %v13391_v13 = vld [vmem:[#allocation7 + $0xa8] sm:$0xff]   ;;  %v794_v15 = vpack.c.bf16 %v11232_v24, %v734_v1  ;;  %v13397_v20 = vld [vmem:[#allocation7 + $0xb0] sm:$0xff]   ;;  %v11313_v24 = vunpack.c.h.bf16 %v11537_v25 }
  0xc3   : > { %545 = vst [vmem:[#allocation2 + $0x181] sm:$0xff] %v11253_v49  ;;  %546 = vst [vmem:[#allocation2 + $0x191] sm:$0xff] %v11256_v51  ;;  %6951 = vmatprep.subr.bf16.mxu1 %v13752_v0  ;;  %v11292_v51 = vunpack.c.l.bf16 %v11532_v47  ;;  %v14262_v32 = vld [vmem:[#allocation2] sm:$0xff]  ;;  %v13389_v25 = vld [vmem:[%s13929_s26 + $0x2c] ss:$4 sps:$4 sm:$0xff]  }
  0xc4   : > { %547 = vst [vmem:[#allocation2 + $0x1a1] sm:$0xff] %v11257_v52  ;;  %548 = vst [vmem:[#allocation2 + $0x1b1] sm:$0xff] %v11260_v56  ;;  %v14196_v3 = vld [vmem:[#allocation2 + $0xb0] sm:$0xff]  ;;  %v11293_v52 = vunpack.c.h.bf16 %v11532_v47  ;;  %v793_v56 = vpack.c.bf16 %v733_v46, %v732_v45  ;;  %v13408_v40 = vld [vmem:[#allocation7 + $0xc0] sm:$0xff]  }
  0xc5   : > { %549 = vst [vmem:[#allocation2 + $0x1c1] sm:$0xff] %v11261_v57  ;;  %550 = vst [vmem:[#allocation2 + $0x1f1] sm:$0xff] %v11264_v61  ;;  %v14201_v6 = vld [vmem:[#allocation2 + $0xc0] sm:$0xff]  ;;  %v14213_v29 = vld [vmem:[#allocation2 + $0xd0] sm:$0xff]  ;;  %v11296_v57 = vunpack.c.l.bf16 %v11533_v54 }
  0xc6   : > { %551 = vst [vmem:[#allocation2 + $0x201] sm:$0xff] %v11265_v62  ;;  %552 = vst [vmem:[#allocation2 + $0x211] sm:$0xff] %v11268_v4  ;;  %v2201_v12 = vpack.c.bf16 %v14201_v6, %v14196_v3  ;;  %v14215_v30 = vld [vmem:[#allocation2 + $0xe0] sm:$0xff]  ;;  %6952 = vmatpush1.bf16.msra.mxu1 %v13369_v26  ;;  %v14228_v48 = vld [vmem:[#allocation2 + $0xf0] sm:$0xff]  ;;  %v667_v47 = vpack.c.bf16 %v14213_v29, %v14201_v6 }
  0xc7   : > { %553 = vst [vmem:[#allocation2 + $0x221] sm:$0xff] %v11269_v5  ;;  %554 = vst [vmem:[#allocation2 + $0x231] sm:$0xff] %v11272_v10  ;;  %v2202_v33 = vpack.c.bf16 %v14215_v30, %v14213_v29  ;;  %6953 = vmatprep.subr.bf16.mxu1 %v13752_v0  ;;  %v14230_v49 = vld [vmem:[#allocation2 + $0x100] sm:$0xff]  ;;  %v14242_v4 = vld [vmem:[#allocation2 + $0x110] sm:$0xff] }
  0xc8   : > { %555 = vst [vmem:[#allocation2 + $0x241] sm:$0xff] %v11273_v11  ;;  %8427 = vmatmul.mubr.bf16.vlgmr.msra.gmra.mrb[0].mxu0 %v2201_v12  ;;  %556 = vst [vmem:[#allocation2 + $0x251] sm:$0xff] %v11276_v21  ;;  %v2203_v55 = vpack.c.bf16 %v14230_v49, %v14228_v48  ;;  %v13379_v62 = vld [vmem:[#allocation7 + $0x3a0] sm:$0xff]   ;;  %v13383_v10 = vld [vmem:[#allocation7 + $0x3a8] sm:$0xff]   ;;  %v11304_v11 = vunpack.c.l.bf16 %v11535_v9  ;;  %v11305_v12 = vunpack.c.h.bf16 %v11535_v9  ;;  %v11308_v21 = vunpack.c.l.bf16 %v11536_v17 }
  0xc9   : > { %8684 = vmatpush1.bf16.msra.mxu0 %v13364_v14  ;;  %557 = vst [vmem:[#allocation2 + $0x261] sm:$0xff] %v11277_v23  ;;  %8434 = vmatprep.mubr.bf16.mxu0 %v13366_v16  ;;  %558 = vst [vmem:[#allocation2 + $0x291] sm:$0xff] %v11280_v27  ;;  %v2144_v5 = vld [vmem:[#allocation2 + $0x120] sm:$0xff]  ;;  %v11309_v23 = vunpack.c.h.bf16 %v11536_v17  ;;  %v14256_v26 = vld [vmem:[#allocation2 + $0x150] sm:$0xff] }
  0xca   : > { %8685 = vmatprep.subr.bf16.mxu0 %v13752_v0  ;;  %559 = vst [vmem:[#allocation2 + $0x2a1] sm:$0xff] %v11281_v28  ;;  %560 = vst [vmem:[#allocation2 + $0x2b1] sm:$0xff] %v11284_v35  ;;  %6701 = vmatmul.mubr.bf16.gmra.mrb[4].mxu1 %v13754_v18  ;;  %v2204_v14 = vpack.c.bf16 %v2144_v5, %v14242_v4  ;;  %v13372_v16 = vld [vmem:[%s13929_s26 + $0x20] sm:$0xff]  ;;  %v13392_v28 = vld [vmem:[#allocation7 + $0x3b8] sm:$0xff]   ;;  %v670_v42 = vpack.c.bf16 %v14256_v26, %v14262_v32 }
  0xcb   : > { %561 = vst [vmem:[#allocation2 + $0x2c1] sm:$0xff] %v11285_v36  ;;  %6708 = vmatprep.mubr.bf16.mxu1 %v792_v34  ;;  %562 = vst [vmem:[#allocation2 + $0x2d1] sm:$0xff] %v11288_v41  ;;  %6954 = vmatpush1.bf16.msra.mxu1 %v13373_v39  ;;  %v14258_v27 = vld [vmem:[#allocation2 + $0x160] sm:$0xff]  ;;  %v13376_v34 = vld [vmem:[%s13929_s26 + $0x28] sm:$0xff] }
  0xcc   : > { %563 = vst [vmem:[#allocation2 + $0x2e1] sm:$0xff] %v11289_v44  ;;  %6955 = vmatprep.subr.bf16.mxu1 %v13752_v0  ;;  %564 = vst [vmem:[#allocation2 + $0x2f1] sm:$0xff] %v11292_v51  ;;  %v13396_v35 = vld [vmem:[#allocation7 + $0x3c0] sm:$0xff]   ;;  %v11538_v36 = vld [vmem:[%s13929_s26 + $0xa8] sm:$0xff]  }
  0xcd   : > { %8686 = vmatpush1.bf16.msra.mxu0 %v13367_v19  ;;  %565 = vst [vmem:[#allocation2 + $0x301] sm:$0xff] %v11293_v52  ;;  %566 = vst [vmem:[#allocation2 + $0x331] sm:$0xff] %v11296_v57  ;;  %v13388_v19 = vld [vmem:[#allocation7 + $0x3b0] sm:$0xff]   ;;  %v11317_v39 = vunpack.c.h.bf16 %v11538_v36  ;;  %v14275_v41 = vld [vmem:[#allocation2 + $0x180] sm:$0xff] }
  0xce   : > { %8687 = vmatprep.subr.bf16.mxu0 %v13752_v0  ;;  %567 = vst [vmem:[#allocation2 + $0x341] sm:$0xff] %v11297_v58  ;;  %568 = vst [vmem:[#allocation2 + $0x351] sm:$0xff] %v11300_v7  ;;  %v13400_v44 = vld [vmem:[#allocation7 + $0x3c8] sm:$0xff]   ;;  %v11539_v51 = vld [vmem:[%s13929_s26 + $0xb0] sm:$0xff]  }
  0xcf   : > { %6956 = vmatpush1.bf16.msra.mxu1 %v13380_v53  ;;  %569 = vst [vmem:[#allocation2 + $0x361] sm:$0xff] %v11301_v8  ;;  %570 = vst [vmem:[#allocation2 + $0x371] sm:$0xff] %v11304_v11  ;;  %v13415_v45 = vld [vmem:[#allocation7 + $0xc8] sm:$0xff]   ;;  %v11320_v53 = vunpack.c.l.bf16 %v11539_v51  ;;  %v11321_v54 = vunpack.c.h.bf16 %v11539_v51  ;;  %v14288_v6 = vld [vmem:[#allocation2 + $0x190] sm:$0xff]  ;;  %v669_v11 = vpack.c.bf16 %v14242_v4, %v14230_v49 }
  0xd0   : > { %8435 = vmatmul.mubr.bf16.gmra.mrb[4].mxu0 %v2202_v33  ;;  %6957 = vmatprep.subr.bf16.mxu1 %v13752_v0  ;;  %571 = vst [vmem:[#allocation2 + $0x381] sm:$0xff] %v11305_v12  ;;  %572 = vst [vmem:[#allocation2 + $0x391] sm:$0xff] %v11308_v21  ;;  %v666_v33 = vpack.c.bf16 %v14196_v3, %v14262_v32  ;;  %v14273_v3 = vld [vmem:[#allocation2 + $0x170] sm:$0xff]  ;;  %v14290_v29 = vld [vmem:[#allocation2 + $0x1a0] sm:$0xff] }
  0xd1   : > { %8442 = vmatprep.mubr.bf16.mxu0 %v13368_v37  ;;  %8688 = vmatpush1.bf16.msra.mxu0 %v13371_v38  ;;  %573 = vst [vmem:[#allocation2 + $0x3a1] sm:$0xff] %v11309_v23  ;;  %574 = vst [vmem:[#allocation2 + $0x3d1] sm:$0xff] %v11312_v22  ;;  %v2205_v37 = vpack.c.bf16 %v14258_v27, %v14256_v26  ;;  %v11316_v38 = vunpack.c.l.bf16 %v11538_v36  ;;  %v13377_v46 = vld [vmem:[%s13929_s26 + $0xc] ss:$4 sps:$4 sm:$0xff]   ;;  %v2206_v52 = vpack.c.bf16 %v14275_v41, %v14273_v3  ;;  %v13409_v57 = vld [vmem:[#allocation7 + $0x3d8] sm:$0xff]  }
  0xd2   : > { %8689 = vmatprep.subr.bf16.mxu0 %v13752_v0  ;;  %6709 = vmatmul.mubr.bf16.gmra.mrb[8].mxu1 %v13754_v18  ;;  %575 = vst [vmem:[#allocation2 + $0x3e1] sm:$0xff] %v11313_v24  ;;  %577 = vst [vmem:[#allocation2 + $0x401] sm:$0xff] %v11317_v39  ;;  %v13381_v58 = vld [vmem:[%s13929_s26 + $0x14] ss:$4 sps:$4 sm:$0xff]   ;;  %v13414_v7 = vld [vmem:[#allocation7 + $0x3e0] sm:$0xff]   ;;  %v671_v22 = vpack.c.bf16 %v14273_v3, %v14258_v27  ;;  %v672_v27 = vpack.c.bf16 %v14288_v6, %v14275_v41 }
  0xd3   : > { %6716 = vmatprep.mubr.bf16.mxu1 %v793_v56  ;;  %6958 = vmatpush1.bf16.msra.mxu1 %v13385_v63  ;;  %576 = vst [vmem:[#allocation2 + $0x3f1] sm:$0xff] %v11316_v38  ;;  %v13420_v56 = vld [vmem:[#allocation7 + $0xd0] sm:$0xff]   ;;  %578 = vst [vmem:[#allocation2 + $0x411] sm:$0xff] %v11320_v53  ;;  %v2207_v63 = vpack.c.bf16 %v14290_v29, %v14288_v6  ;;  %v13382_v5 = vld [vmem:[%s13929_s26 + $0x38] sm:$0xff] }
  0xd4   : > { %6959 = vmatprep.subr.bf16.mxu1 %v13752_v0  ;;  %579 = vst [vmem:[#allocation2 + $0x421] sm:$0xff] %v11321_v54  ;;  %v742_v8 = vld [vmem:[#allocation2 + $0x141] sm:$0xff]  ;;  %v13426_v9 = vld [vmem:[#allocation7 + $0xd8] sm:$0xff]   ;;  %v13390_v26 = vld [vmem:[%s13929_s26 + $0x50] sm:$0xff] }
  0xd5   : > { %8690 = vmatpush1.bf16.msra.mxu0 %v13374_v50  ;;  %v13378_v50 = vld [vmem:[%s13929_s26 + $0x30] sm:$0xff]  ;;  %v14315_v49 = vld [vmem:[#allocation2 + $0x200] sm:$0xff]  ;;  %v13427_v4 = vld [vmem:[#allocation7 + $0x3f8] sm:$0xff]  }
  0xd6   : > { %8691 = vmatprep.subr.bf16.mxu0 %v13752_v0  ;;  %v13386_v17 = vld [vmem:[%s13929_s26 + $0x24] ss:$4 sps:$4 sm:$0xff]  }
  0xd7   : > { %6960 = vmatpush1.bf16.msra.mxu1 %v13391_v13  ;;  %v798_v13 = vpack.c.bf16 %v11248_v43, %v742_v8  ;;  %v14327_v21 = vld [vmem:[#allocation2 + $0x220] sm:$0xff]  ;;  %v13399_v54 = vld [vmem:[%s13929_s26 + $0x68] sm:$0xff] }
  0xd8   : > { %8443 = vmatmul.mubr.bf16.gmra.mrb[8].mxu0 %v2203_v55  ;;  %6961 = vmatprep.subr.bf16.mxu1 %v13752_v0  ;;  %v13406_v55 = vld [vmem:[#allocation7 + $0x3d0] sm:$0xff]   ;;  %v13431_v23 = vld [vmem:[#allocation7 + $0xe0] sm:$0xff]  }
  0xd9   : > { %8450 = vmatprep.mubr.bf16.mxu0 %v13370_v59  ;;  %8692 = vmatpush1.bf16.msra.mxu0 %v13379_v62  ;;  %v668_v59 = vpack.c.bf16 %v14228_v48, %v14215_v30  ;;  %v11540_v62 = vld [vmem:[%s13929_s26 + $0xb8] sm:$0xff]   ;;  %v14302_v30 = vld [vmem:[#allocation2 + $0x1b0] sm:$0xff]  ;;  %v2152_v48 = vld [vmem:[#allocation2 + $0x1c0] sm:$0xff] }
  0xda   : > { %8693 = vmatprep.subr.bf16.mxu0 %v13752_v0  ;;  %6717 = vmatmul.mubr.bf16.gmra.mrb[12].mxu1 %v13754_v18  ;;  %v13375_v18 = vld [vmem:[%s13929_s26 + $0x4] ss:$4 sps:$4 sm:$0xff]   ;;  %v11324_v1 = vunpack.c.l.bf16 %v11540_v62  ;;  %v11325_v2 = vunpack.c.h.bf16 %v11540_v62  ;;  %v2208_v12 = vpack.c.bf16 %v2152_v48, %v14302_v30  ;;  %v673_v39 = vpack.c.bf16 %v14302_v30, %v14290_v29  ;;  %v13401_v29 = vld [vmem:[%s13929_s26 + $0x4c] ss:$4 sps:$4 sm:$0xff]   ;;  %v14391_v30 = vld [vmem:[%s13929_s26 + $0xd8] sm:$0xff]  }
  0xdb   : > { %6724 = vmatprep.mubr.bf16.mxu1 %v794_v15  ;;  %6962 = vmatpush1.bf16.msra.mxu1 %v13397_v20  ;;  %v13423_v15 = vld [vmem:[#allocation7 + $0x3f0] sm:$0xff]   ;;  %v750_v36 = vld [vmem:[#allocation2 + $0x1e1] sm:$0xff] }
  0xdc   : > { %6963 = vmatprep.subr.bf16.mxu1 %v13752_v0  ;;  %580 = vst [vmem:[#allocation2 + $0x431] sm:$0xff] %v11324_v1  ;;  %581 = vst [vmem:[#allocation2 + $0x441] sm:$0xff] %v11325_v2  ;;  %v14325_v20 = vld [vmem:[#allocation2 + $0x210] sm:$0xff]  ;;  %v2160_v38 = vld [vmem:[#allocation2 + $0x260] sm:$0xff]  ;;  %v802_v41 = vpack.c.bf16 %v11264_v61, %v750_v36 }
  0xdd   : > { %8694 = vmatpush1.bf16.msra.mxu0 %v13383_v10  ;;  %v13418_v10 = vld [vmem:[#allocation7 + $0x3e8] sm:$0xff]   ;;  %v2210_v24 = vpack.c.bf16 %v14327_v21, %v14325_v20  ;;  %v14375_v6 = vld [vmem:[#allocation2 + $0x2c0] sm:$0xff]  ;;  %v13402_v1 = vld [vmem:[%s13929_s26 + $0x70] sm:$0xff] }
  0xde   : > { %8695 = vmatprep.subr.bf16.mxu0 %v13752_v0  ;;  %v11542_v61 = vld [vmem:[%s13929_s26 + $0xc8] sm:$0xff]   ;;  %v2165_v2 = vld [vmem:[#allocation2 + $0x2d0] sm:$0xff]  ;;  %v13417_v36 = vld [vmem:[%s13929_s26 + $0x98] sm:$0xff] }
  0xdf   : > { %6964 = vmatpush1.bf16.msra.mxu1 %v13403_v31  ;;  %v13393_v31 = vld [vmem:[%s13929_s26 + $0x34] ss:$4 sps:$4 sm:$0xff]   ;;  %v11332_v53 = vunpack.c.l.bf16 %v11542_v61  ;;  %v11333_v62 = vunpack.c.h.bf16 %v11542_v61  ;;  %v13421_v61 = vld [vmem:[%s13929_s26 + $0x84] ss:$4 sps:$4 sm:$0xff]  }
  0xe0   : > { %8451 = vmatmul.mubr.bf16.gmra.mrb[12].mxu0 %v2204_v14  ;;  %6965 = vmatprep.subr.bf16.mxu1 %v13752_v0  ;;  %v13384_v14 = vld [vmem:[%s13929_s26 + $0x40] sm:$0xff] }
  0xe1   : > { %8458 = vmatprep.mubr.bf16.mxu0 %v13372_v16  ;;  %8696 = vmatpush1.bf16.msra.mxu0 %v13388_v19  ;;  %v14313_v16 = vld [vmem:[#allocation2 + $0x1f0] sm:$0xff]  ;;  %v13387_v19 = vld [vmem:[%s13929_s26 + $0x48] sm:$0xff]  ;;  %584 = vst [vmem:[#allocation2 + $0x491] sm:$0xff] %v11332_v53  ;;  %585 = vst [vmem:[#allocation2 + $0x4a1] sm:$0xff] %v11333_v62 }
  0xe2   : > { %8697 = vmatprep.subr.bf16.mxu0 %v13752_v0  ;;  %6725 = vmatmul.mubr.bf16.gmra.mrb[16].mxu1 %v666_v33  ;;  %v2209_v43 = vpack.c.bf16 %v14315_v49, %v14313_v16  ;;  %v674_v60 = vpack.c.bf16 %v14313_v16, %v14262_v32  ;;  %v14431_v62 = vld [vmem:[#allocation2 + $0x420] sm:$0xff] }
  0xe3   : > { %6732 = vmatprep.mubr.bf16.mxu1 %v13375_v18  ;;  %6966 = vmatpush1.bf16.msra.mxu1 %v13408_v40  ;;  %v14338_v18 = vld [vmem:[#allocation2 + $0x240] sm:$0xff] }
  0xe4   : > { %6967 = vmatprep.subr.bf16.mxu1 %v13752_v0  ;;  %v14351_v40 = vld [vmem:[%s13929_s26 + $0xc0] sm:$0xff]  }
  0xe5   : > { %8698 = vmatpush1.bf16.msra.mxu0 %v13392_v28  ;;  %v14336_v28 = vld [vmem:[#allocation2 + $0x230] sm:$0xff] }
  0xe6   : > { %8699 = vmatprep.subr.bf16.mxu0 %v13752_v0  ;;  %v2211_v33 = vpack.c.bf16 %v14338_v18, %v14336_v28  ;;  %v676_v8 = vpack.c.bf16 %v14336_v28, %v14327_v21 }
  0xe7   : > { %6968 = vmatpush1.bf16.msra.mxu1 %v13415_v45  ;;  %v13395_v45 = vld [vmem:[%s13929_s26 + $0x60] sm:$0xff] }
  0xe8   : > { %8459 = vmatmul.mubr.bf16.gmra.mrb[16].mxu0 %v2205_v37  ;;  %6969 = vmatprep.subr.bf16.mxu1 %v13752_v0  ;;  %v13435_v37 = vld [vmem:[#allocation7 + $0xe8] sm:$0xff]  }
  0xe9   : > { %8466 = vmatprep.mubr.bf16.mxu0 %v13376_v34  ;;  %8700 = vmatpush1.bf16.msra.mxu0 %v13396_v35  ;;  %v13394_v34 = vld [vmem:[%s13929_s26 + $0x58] sm:$0xff]  ;;  %v14346_v35 = vld [vmem:[#allocation2 + $0x250] sm:$0xff] }
  0xea   : > { %8701 = vmatprep.subr.bf16.mxu0 %v13752_v0  ;;  %6733 = vmatmul.mubr.bf16.gmra.mrb[20].mxu1 %v667_v47  ;;  %v2212_v3 = vpack.c.bf16 %v2160_v38, %v14346_v35  ;;  %v14363_v47 = vld [vmem:[#allocation2 + $0x2a0] sm:$0xff]  ;;  %v677_v16 = vpack.c.bf16 %v14346_v35, %v14338_v18  ;;  %v2175_v38 = vld [vmem:[#allocation2 + $0x390] sm:$0xff] }
  0xeb   : > { %6740 = vmatprep.mubr.bf16.mxu1 %v13377_v46  ;;  %6970 = vmatpush1.bf16.msra.mxu1 %v13420_v56  ;;  %v14361_v46 = vld [vmem:[#allocation2 + $0x290] sm:$0xff] }
  0xec   : > { %6971 = vmatprep.subr.bf16.mxu1 %v13752_v0  ;;  %v2213_v51 = vpack.c.bf16 %v14363_v47, %v14361_v46  ;;  %v14373_v56 = vld [vmem:[#allocation2 + $0x2b0] sm:$0xff]  ;;  %v678_v21 = vpack.c.bf16 %v14361_v46, %v14262_v32 }
  0xed   : > { %8702 = vmatpush1.bf16.msra.mxu0 %v13400_v44  ;;  %v11328_v44 = vunpack.c.l.bf16 %v14351_v40  ;;  %v679_v28 = vpack.c.bf16 %v14373_v56, %v14363_v47  ;;  %v2173_v32 = vld [vmem:[#allocation2 + $0x370] sm:$0xff]  ;;  %v13419_v47 = vld [vmem:[%s13929_s26 + $0xa0] sm:$0xff] }
  0xee   : > { %8703 = vmatprep.subr.bf16.mxu0 %v13752_v0 }
  0xef   : > { %6972 = vmatpush1.bf16.msra.mxu1 %v13426_v9  ;;  %582 = vst [vmem:[#allocation2 + $0x471] sm:$0xff] %v11328_v44 }
  0xf0   : > { %8467 = vmatmul.mubr.bf16.gmra.mrb[20].mxu0 %v2206_v52  ;;  %6973 = vmatprep.subr.bf16.mxu1 %v13752_v0  ;;  %v11329_v52 = vunpack.c.h.bf16 %v14351_v40  ;;  %v13450_v40 = vld [vmem:[#allocation7 + $0x438] sm:$0xff]  }
  0xf1   : > { %8474 = vmatprep.mubr.bf16.mxu0 %v13378_v50  ;;  %8704 = vmatpush1.bf16.msra.mxu0 %v13406_v55  ;;  %v13398_v50 = vld [vmem:[%s13929_s26 + $0x44] ss:$4 sps:$4 sm:$0xff]   ;;  %v13438_v55 = vld [vmem:[#allocation7 + $0xf0] sm:$0xff]  }
  0xf2   : > { %8705 = vmatprep.subr.bf16.mxu0 %v13752_v0  ;;  %6741 = vmatmul.mubr.bf16.gmra.mrb[24].mxu1 %v668_v59  ;;  %583 = vst [vmem:[#allocation2 + $0x481] sm:$0xff] %v11329_v52  ;;  %v2214_v59 = vpack.c.bf16 %v14375_v6, %v14373_v56  ;;  %v14423_v56 = vld [vmem:[#allocation2 + $0x400] sm:$0xff] }
  0xf3   : > { %6748 = vmatprep.mubr.bf16.mxu1 %v13381_v58  ;;  %6974 = vmatpush1.bf16.msra.mxu1 %v13431_v23  ;;  %v11543_v58 = vld [vmem:[%s13929_s26 + $0xd0] sm:$0xff]  }
  0xf4   : > { %6975 = vmatprep.subr.bf16.mxu1 %v13752_v0  ;;  %v11337_v9 = vunpack.c.h.bf16 %v11543_v58 }
  0xf5   : > { %8706 = vmatpush1.bf16.msra.mxu0 %v13409_v57  ;;  %v675_v57 = vpack.c.bf16 %v14325_v20, %v14315_v49  ;;  %v13410_v20 = vld [vmem:[%s13929_s26 + $0x64] ss:$4 sps:$4 sm:$0xff]  }
  0xf6   : > { %8707 = vmatprep.subr.bf16.mxu0 %v13752_v0  ;;  %587 = vst [vmem:[#allocation2 + $0x4c1] sm:$0xff] %v11337_v9  ;;  %v14439_v9 = vld [vmem:[#allocation2 + $0xc0] sm:$0xff] }
  0xf7   : > { %6976 = vmatpush1.bf16.msra.mxu1 %v13435_v37  ;;  %v766_v37 = vld [vmem:[#allocation2 + $0x321] sm:$0xff] }
  0xf8   : > { %8475 = vmatmul.mubr.bf16.gmra.mrb[24].mxu0 %v2207_v63  ;;  %6977 = vmatprep.subr.bf16.mxu1 %v13752_v0  ;;  %v11336_v63 = vunpack.c.l.bf16 %v11543_v58  ;;  %v13425_v58 = vld [vmem:[%s13929_s26 + $0xb0] sm:$0xff] }
  0xf9   : > { %8482 = vmatprep.mubr.bf16.mxu0 %v13382_v5  ;;  %8708 = vmatpush1.bf16.msra.mxu0 %v13414_v7  ;;  %v14385_v5 = vld [vmem:[#allocation2 + $0x2e0] sm:$0xff]  ;;  %v13404_v7 = vld [vmem:[%s13929_s26 + $0x54] ss:$4 sps:$4 sm:$0xff]  }
  0xfa   : > { %8709 = vmatprep.subr.bf16.mxu0 %v13752_v0  ;;  %6749 = vmatmul.mubr.bf16.gmra.mrb[28].mxu1 %v669_v11  ;;  %586 = vst [vmem:[#allocation2 + $0x4b1] sm:$0xff] %v11336_v63  ;;  %v2215_v48 = vpack.c.bf16 %v14385_v5, %v2165_v2  ;;  %v13405_v11 = vld [vmem:[%s13929_s26 + $0x78] sm:$0xff] }
  0xfb   : > { %6756 = vmatprep.mubr.bf16.mxu1 %v798_v13  ;;  %6978 = vmatpush1.bf16.msra.mxu1 %v13438_v55  ;;  %v758_v13 = vld [vmem:[#allocation2 + $0x281] sm:$0xff]  ;;  %v14421_v55 = vld [vmem:[#allocation2 + $0x3f0] sm:$0xff] }
  0xfc   : > { %6979 = vmatprep.subr.bf16.mxu1 %v13752_v0 }
  0xfd   : > { %8710 = vmatpush1.bf16.msra.mxu0 %v13418_v10  ;;  %v11340_v10 = vunpack.c.l.bf16 %v14391_v30 }
  0xfe   : > { %8711 = vmatprep.subr.bf16.mxu0 %v13752_v0 }
  0xff   : > { %588 = vst [vmem:[#allocation2 + $0x4d1] sm:$0xff] %v11340_v10  ;;  %v14441_v10 = vld [vmem:[#allocation2 + $0xd0] sm:$0xff] }
 0x100   : > { %8483 = vmatmul.mubr.bf16.gmra.mrb[28].mxu0 %v2208_v12  ;;  %v2167_v12 = vld [vmem:[#allocation2 + $0x2f0] sm:$0xff] }
 0x101   : > { %8490 = vmatprep.mubr.bf16.mxu0 %v13384_v14  ;;  %8712 = vmatpush1.bf16.msra.mxu0 %v13423_v15  ;;  %v13442_v14 = vld [vmem:[#allocation7 + $0xf8] sm:$0xff]   ;;  %v2168_v15 = vld [vmem:[#allocation2 + $0x300] sm:$0xff] }
 0x102   : > { %8713 = vmatprep.subr.bf16.mxu0 %v13752_v0  ;;  %6757 = vmatmul.mubr.bf16.gmra.mrb[32].mxu1 %v670_v42  ;;  %v2216_v49 = vpack.c.bf16 %v2168_v15, %v2167_v12  ;;  %v13407_v42 = vld [vmem:[%s13929_s26 + $0x80] sm:$0xff]  ;;  %v2586_v15 = vpack.c.bf16 %v14441_v10, %v14439_v9 }
 0x103   : > { %6764 = vmatprep.mubr.bf16.mxu1 %v13386_v17  ;;  %6980 = vmatpush1.bf16.msra.mxu1 %v13442_v14 }
 0x104   : > { %7238 = vmatprep.subr.bf16.mxu1 %v13752_v0 }
 0x105   : > { %8714 = vmatpush1.bf16.msra.mxu0 %v13427_v4  ;;  %v13593_v4 = vld [vmem:[#allocation2 + $0x291] sm:$0xff] }
 0x106   : > { %8972 = vmatprep.subr.bf16.mxu0 %v13752_v0  ;;  %v806_v17 = vpack.c.bf16 %v13593_v4, %v758_v13  ;;  %v13596_v13 = vld [vmem:[#allocation2 + $0x3d1] sm:$0xff]  ;;  %v14450_v4 = vld [vmem:[#allocation2 + $0xe0] sm:$0xff] }
 0x108   : > { %8491 = vmatmul.mubr.bf16.gmra.mrb[32].mxu0 %v2209_v43  ;;  %v2169_v43 = vld [vmem:[#allocation2 + $0x330] sm:$0xff] }
 0x109   : > { %8498 = vmatprep.mubr.bf16.mxu0 %v13387_v19  ;;  %v2170_v19 = vld [vmem:[#allocation2 + $0x340] sm:$0xff] }
 0x10a   : > { %6765 = vmatmul.mubr.bf16.gmra.mrb[36].mxu1 %v671_v22  ;;  %v2217_v23 = vpack.c.bf16 %v2170_v19, %v2169_v43  ;;  %v2171_v22 = vld [vmem:[#allocation2 + $0x350] sm:$0xff] }
 0x10b   : > { %6772 = vmatprep.mubr.bf16.mxu1 %v13389_v25  ;;  %v13411_v25 = vld [vmem:[%s13929_s26 + $0x88] sm:$0xff] }
 0x110   : > { %8499 = vmatmul.mubr.bf16.gmra.mrb[36].mxu0 %v2210_v24  ;;  %v2172_v24 = vld [vmem:[#allocation2 + $0x360] sm:$0xff] }
 0x111   : > { %8506 = vmatprep.mubr.bf16.mxu0 %v13390_v26  ;;  %v13412_v26 = vld [vmem:[%s13929_s26 + $0x6c] ss:$4 sps:$4 sm:$0xff]   ;;  %v2218_v18 = vpack.c.bf16 %v2172_v24, %v2171_v22  ;;  %v684_v63 = vpack.c.bf16 %v2173_v32, %v2172_v24  ;;  %v14464_v24 = vld [vmem:[#allocation2 + $0x100] sm:$0xff] }
 0x112   : > { %6773 = vmatmul.mubr.bf16.gmra.mrb[40].mxu1 %v672_v27  ;;  %v2174_v27 = vld [vmem:[#allocation2 + $0x380] sm:$0xff] }
 0x113   : > { %6780 = vmatprep.mubr.bf16.mxu1 %v13393_v31  ;;  %v13413_v31 = vld [vmem:[%s13929_s26 + $0x90] sm:$0xff]  ;;  %v2219_v35 = vpack.c.bf16 %v2174_v27, %v2173_v32 }
 0x118   : > { %8507 = vmatmul.mubr.bf16.gmra.mrb[40].mxu0 %v2211_v33  ;;  %v13416_v33 = vld [vmem:[%s13929_s26 + $0x74] ss:$4 sps:$4 sm:$0xff]  }
 0x119   : > { %8514 = vmatprep.mubr.bf16.mxu0 %v13394_v34  ;;  %v680_v34 = vpack.c.bf16 %v2165_v2, %v14375_v6  ;;  %v13424_v6 = vld [vmem:[%s13929_s26 + $0x8c] ss:$4 sps:$4 sm:$0xff]   ;;  %v13428_v2 = vld [vmem:[%s13929_s26 + $0x94] ss:$4 sps:$4 sm:$0xff]  }
 0x11a   : > { %6781 = vmatmul.mubr.bf16.gmra.mrb[44].mxu1 %v673_v39  ;;  %v2176_v39 = vld [vmem:[#allocation2 + $0x3a0] sm:$0xff] }
 0x11b   : > { %6788 = vmatprep.mubr.bf16.mxu1 %v802_v41  ;;  %v2220_v41 = vpack.c.bf16 %v2176_v39, %v2175_v38  ;;  %v13436_v39 = vld [vmem:[%s13929_s26 + $0xb4] ss:$4 sps:$4 sm:$0xff]  }
 0x120   : > { %8515 = vmatmul.mubr.bf16.gmra.mrb[44].mxu0 %v2212_v3  ;;  %v681_v3 = vpack.c.bf16 %v2167_v12, %v14385_v5  ;;  %v13429_v5 = vld [vmem:[%s13929_s26 + $0xb8] sm:$0xff] }
 0x121   : > { %8522 = vmatprep.mubr.bf16.mxu0 %v13395_v45  ;;  %v13594_v45 = vld [vmem:[#allocation2 + $0x331] sm:$0xff] }
 0x122   : > { %6789 = vmatmul.mubr.bf16.gmra.mrb[48].mxu1 %v674_v60  ;;  %v810_v46 = vpack.c.bf16 %v13594_v45, %v766_v37  ;;  %v14413_v60 = vld [vmem:[#allocation2 + $0x3e0] sm:$0xff]  ;;  %v14492_v45 = vld [vmem:[#allocation2 + $0x112] sm:$0xff] }
 0x123   : > { %6796 = vmatprep.mubr.bf16.mxu1 %v13398_v50  ;;  %v2177_v50 = vld [vmem:[#allocation2 + $0x3d0] sm:$0xff] }
 0x124   : > { %v2221_v53 = vpack.c.bf16 %v14413_v60, %v2177_v50 }
 0x128   : > { %8523 = vmatmul.mubr.bf16.gmra.mrb[48].mxu0 %v2213_v51  ;;  %v14416_v51 = vld [vmem:[#allocation2] sm:$0xff] }
 0x129   : > { %8530 = vmatprep.mubr.bf16.mxu0 %v13399_v54  ;;  %v682_v52 = vpack.c.bf16 %v2169_v43, %v14416_v51  ;;  %v13422_v54 = vld [vmem:[%s13929_s26 + $0xa8] sm:$0xff] }
 0x12a   : > { %6797 = vmatmul.mubr.bf16.gmra.mrb[52].mxu1 %v675_v57  ;;  %v2222_v57 = vpack.c.bf16 %v14423_v56, %v14421_v55 }
 0x12b   : > { %6804 = vmatprep.mubr.bf16.mxu1 %v13401_v29  ;;  %v683_v29 = vpack.c.bf16 %v2171_v22, %v2170_v19  ;;  %v13432_v19 = vld [vmem:[%s13929_s26 + $0xa4] ss:$4 sps:$4 sm:$0xff]  }
 0x12c   : > { %v13434_v22 = vld [vmem:[#allocation7 + $0x408] sm:$0xff]  }
 0x130   : > { %8531 = vmatmul.mubr.bf16.gmra.mrb[52].mxu0 %v2214_v59  ;;  %v14429_v59 = vld [vmem:[#allocation2 + $0x410] sm:$0xff] }
 0x131   : > { %8538 = vmatprep.mubr.bf16.mxu0 %v13402_v1  ;;  %v2223_v1 = vpack.c.bf16 %v14431_v62, %v14429_v59  ;;  %v688_v37 = vpack.c.bf16 %v14429_v59, %v14423_v56 }
 0x132   : > { %6805 = vmatmul.mubr.bf16.gmra.mrb[56].mxu1 %v676_v8  ;;  %v2184_v8 = vld [vmem:[#allocation2 + $0x440] sm:$0xff] }
 0x133   : > { %6812 = vmatprep.mubr.bf16.mxu1 %v13404_v7  ;;  %v14437_v7 = vld [vmem:[#allocation2 + $0x430] sm:$0xff] }
 0x134   : > { %v2224_v12 = vpack.c.bf16 %v2184_v8, %v14437_v7  ;;  %v13452_v8 = vld [vmem:[#allocation7 + $0x440] sm:$0xff]  }
 0x138   : > { %8539 = vmatmul.mubr.bf16.gmra.mrb[56].mxu0 %v2215_v48  ;;  %v774_v48 = vld [vmem:[#allocation2 + $0x3c1] sm:$0xff] }
 0x139   : > { %8546 = vmatprep.mubr.bf16.mxu0 %v13405_v11  ;;  %v685_v11 = vpack.c.bf16 %v2175_v38, %v2174_v27  ;;  %v814_v14 = vpack.c.bf16 %v13596_v13, %v774_v48  ;;  %v13437_v27 = vld [vmem:[#allocation7 + $0x410] sm:$0xff]   ;;  %v656_v48 = vld [vmem:[#allocation2 + $0x480] sm:$0xff] }
 0x13a   : > { %6813 = vmatmul.mubr.bf16.gmra.mrb[60].mxu1 %v677_v16  ;;  %v14446_v16 = vld [vmem:[#allocation2 + $0xb2] sm:$0xff]  ;;  %v14525_v13 = vld [vmem:[#allocation2 + $0x182] sm:$0xff] }
 0x13b   : > { %6820 = vmatprep.mubr.bf16.mxu1 %v806_v17  ;;  %v14452_v17 = vld [vmem:[#allocation2 + $0xf0] sm:$0xff] }
 0x140   : > { %8547 = vmatmul.mubr.bf16.gmra.mrb[60].mxu0 %v2216_v49  ;;  %v14448_v49 = vld [vmem:[#allocation2 + $0xc2] sm:$0xff] }
 0x141   : > { %8554 = vmatprep.mubr.bf16.mxu0 %v13407_v42  ;;  %v686_v42 = vpack.c.bf16 %v2177_v50, %v14416_v51  ;;  %v2457_v43 = vpack.c.bf16 %v14448_v49, %v14446_v16  ;;  %v13446_v50 = vld [vmem:[#allocation7 + $0x428] sm:$0xff]  }
 0x142   : > { %6821 = vmatmul.mubr.bf16.gmra.mrb[64].mxu1 %v678_v21  ;;  %v2587_v21 = vpack.c.bf16 %v14452_v17, %v14450_v4 }
 0x143   : > { %6828 = vmatprep.mubr.bf16.mxu1 %v13410_v20  ;;  %v13430_v20 = vld [vmem:[#allocation7 + $0x400] sm:$0xff]  }
 0x148   : > { %8555 = vmatmul.mubr.bf16.gmra.mrb[64].mxu0 %v2217_v23  ;;  %v14460_v23 = vld [vmem:[#allocation2 + $0xd2] sm:$0xff] }
 0x149   : > { %8562 = vmatprep.mubr.bf16.mxu0 %v13411_v25  ;;  %v14462_v25 = vld [vmem:[#allocation2 + $0xe2] sm:$0xff] }
 0x14a   : > { %6829 = vmatmul.mubr.bf16.gmra.mrb[68].mxu1 %v679_v28  ;;  %v687_v28 = vpack.c.bf16 %v14421_v55, %v14413_v60  ;;  %v14494_v60 = vld [vmem:[#allocation2 + $0x160] sm:$0xff] }
 0x14b   : > { %6836 = vmatprep.mubr.bf16.mxu1 %v13412_v26  ;;  %v14466_v26 = vld [vmem:[#allocation2 + $0x110] sm:$0xff] }
 0x14c   : > { %v2588_v32 = vpack.c.bf16 %v14466_v26, %v14464_v24 }
 0x150   : > { %8563 = vmatmul.mubr.bf16.gmra.mrb[68].mxu0 %v2218_v18  ;;  %v2458_v18 = vpack.c.bf16 %v14462_v25, %v14460_v23 }
 0x151   : > { %8570 = vmatprep.mubr.bf16.mxu0 %v13413_v31  ;;  %v13433_v31 = vld [vmem:[%s13929_s26 + $0xac] ss:$4 sps:$4 sm:$0xff]  }
 0x152   : > { %6837 = vmatmul.mubr.bf16.gmra.mrb[72].mxu1 %v680_v34  ;;  %v14479_v34 = vld [vmem:[#allocation2 + $0x102] sm:$0xff] }
 0x153   : > { %6844 = vmatprep.mubr.bf16.mxu1 %v13416_v33  ;;  %v14477_v33 = vld [vmem:[#allocation2 + $0xf2] sm:$0xff] }
 0x154   : > { %v2459_v38 = vpack.c.bf16 %v14479_v34, %v14477_v33 }
 0x158   : > { %8571 = vmatmul.mubr.bf16.gmra.mrb[72].mxu0 %v2219_v35  ;;  %v13441_v35 = vld [vmem:[#allocation7 + $0x418] sm:$0xff]  }
 0x159   : > { %8578 = vmatprep.mubr.bf16.mxu0 %v13417_v36  ;;  %v14481_v36 = vld [vmem:[#allocation2 + $0x120] sm:$0xff] }
 0x15a   : > { %6845 = vmatmul.mubr.bf16.gmra.mrb[76].mxu1 %v681_v3  ;;  %v2589_v3 = vpack.c.bf16 %v14416_v51, %v14481_v36 }
 0x15b   : > { %6852 = vmatprep.mubr.bf16.mxu1 %v810_v46  ;;  %v2400_v46 = vld [vmem:[#allocation2 + $0x122] sm:$0xff] }
 0x160   : > { %8579 = vmatmul.mubr.bf16.gmra.mrb[76].mxu0 %v2220_v41  ;;  %v13444_v41 = vld [vmem:[#allocation7 + $0x420] sm:$0xff]  }
 0x161   : > { %8586 = vmatprep.mubr.bf16.mxu0 %v13419_v47  ;;  %v782_v47 = vld [vmem:[#allocation2 + $0x461] sm:$0xff] }
 0x162   : > { %6853 = vmatmul.mubr.bf16.gmra.mrb[80].mxu1 %v682_v52  ;;  %v689_v52 = vpack.c.bf16 %v14437_v7, %v14431_v62  ;;  %v14513_v62 = vld [vmem:[#allocation2 + $0x190] sm:$0xff] }
 0x163   : > { %6860 = vmatprep.mubr.bf16.mxu1 %v13421_v61  ;;  %v14496_v61 = vld [vmem:[#allocation2 + $0x170] sm:$0xff] }
 0x164   : > { %v2590_v56 = vpack.c.bf16 %v14496_v61, %v14494_v60 }
 0x168   : > { %8587 = vmatmul.mubr.bf16.gmra.mrb[80].mxu0 %v2221_v53  ;;  %v2460_v53 = vpack.c.bf16 %v2400_v46, %v14492_v45  ;;  %v13458_v46 = vld [vmem:[#allocation7 + $0x458] sm:$0xff]  }
 0x169   : > { %8594 = vmatprep.mubr.bf16.mxu0 %v13422_v54  ;;  %v818_v54 = vpack.c.bf16 %v11328_v44, %v782_v47  ;;  %v14511_v44 = vld [vmem:[#allocation2 + $0x180] sm:$0xff]  ;;  %v14556_v47 = vld [vmem:[#allocation2 + $0x1b2] sm:$0xff] }
 0x16a   : > { %6861 = vmatmul.mubr.bf16.gmra.mrb[84].mxu1 %v683_v29  ;;  %v655_v29 = vld [vmem:[#allocation2 + $0x470] sm:$0xff] }
 0x16b   : > { %6868 = vmatprep.mubr.bf16.mxu1 %v13424_v6  ;;  %v13448_v6 = vld [vmem:[#allocation7 + $0x430] sm:$0xff]  }
 0x170   : > { %8595 = vmatmul.mubr.bf16.gmra.mrb[84].mxu0 %v2222_v57  ;;  %v14507_v57 = vld [vmem:[#allocation2 + $0x152] sm:$0xff] }
 0x171   : > { %8602 = vmatprep.mubr.bf16.mxu0 %v13425_v58  ;;  %v14509_v58 = vld [vmem:[#allocation2 + $0x162] sm:$0xff] }
 0x172   : > { %6869 = vmatmul.mubr.bf16.gmra.mrb[88].mxu1 %v684_v63  ;;  %v690_v63 = vpack.c.bf16 %v655_v29, %v14416_v51 }
 0x173   : > { %6876 = vmatprep.mubr.bf16.mxu1 %v13428_v2  ;;  %v13439_v2 = vld [vmem:[%s13929_s26 + $0xc4] ss:$4 sps:$4 sm:$0xff]  }
 0x178   : > { %8603 = vmatmul.mubr.bf16.gmra.mrb[88].mxu0 %v2223_v1  ;;  %v2461_v1 = vpack.c.bf16 %v14509_v58, %v14507_v57 }
 0x179   : > { %8610 = vmatprep.mubr.bf16.mxu0 %v13429_v5  ;;  %v2591_v5 = vpack.c.bf16 %v14513_v62, %v14511_v44 }
 0x17a   : > { %6877 = vmatmul.mubr.bf16.gmra.mrb[92].mxu1 %v685_v11  ;;  %v657_v11 = vld [vmem:[#allocation2 + $0x490] sm:$0xff] }
 0x17b   : > { %6884 = vmatprep.mubr.bf16.mxu1 %v814_v14  ;;  %v13454_v14 = vld [vmem:[#allocation7 + $0x448] sm:$0xff]  }
 0x180   : > { %8611 = vmatmul.mubr.bf16.gmra.mrb[92].mxu0 %v2224_v12  ;;  %v14523_v12 = vld [vmem:[#allocation2 + $0x172] sm:$0xff] }
 0x181   : > { %8715 = vmatprep.mubr.bf16.mxu0 %v2586_v15  ;;  %v14527_v15 = vld [vmem:[#allocation2 + $0x1a0] sm:$0xff] }
 0x182   : > { %6885 = vmatmul.mubr.bf16.gmra.mrb[96].mxu1 %v686_v42  ;;  %v14529_v42 = vld [vmem:[#allocation2 + $0x1b0] sm:$0xff] }
 0x183   : > { %6892 = vmatprep.mubr.bf16.mxu1 %v13432_v19  ;;  %v2462_v19 = vpack.c.bf16 %v14525_v13, %v14523_v12 }
 0x188   : > { %8716 = vmatmul.mubr.bf16.vlgmr.msra.gmra.mrb[0].mxu0 %v2457_v43  ;;  %v14532_v43 = vpack.c.bf16 %v657_v11, %v656_v48 }
 0x189   : > { %8973 = vmatpush1.bf16.msra.mxu0 %v13430_v20  ;;  %8723 = vmatprep.mubr.bf16.mxu0 %v2587_v21  ;;  %v13440_v20 = vld [vmem:[%s13929_s26 + $0xcc] ss:$4 sps:$4 sm:$0xff]   ;;  %v2592_v21 = vpack.c.bf16 %v14529_v42, %v14527_v15 }
 0x18a   : > { %8974 = vmatprep.subr.bf16.mxu0 %v13752_v0  ;;  %6893 = vmatmul.mubr.bf16.gmra.mrb[100].mxu1 %v687_v28  ;;  %16955 = vst [vmem:[#allocation13_spill] sm:$0xff] %v14532_v43  ;;  %v658_v28 = vld [vmem:[#allocation2 + $0x4a0] sm:$0xff] }
 0x18b   : > { %6900 = vmatprep.mubr.bf16.mxu1 %v13433_v31  ;;  %v14541_v31 = vld [vmem:[#allocation2 + $0x192] sm:$0xff] }
 0x18d   : > { %8975 = vmatpush1.bf16.msra.mxu0 %v13434_v22  ;;  %v13456_v22 = vld [vmem:[#allocation7 + $0x450] sm:$0xff]  }
 0x18e   : > { %8976 = vmatprep.subr.bf16.mxu0 %v13752_v0 }
 0x190   : > { %8724 = vmatmul.mubr.bf16.gmra.mrb[4].mxu0 %v2458_v18  ;;  %v659_v18 = vld [vmem:[#allocation2 + $0x4b0] sm:$0xff] }
 0x191   : > { %8731 = vmatprep.mubr.bf16.mxu0 %v2588_v32  ;;  %8977 = vmatpush1.bf16.msra.mxu0 %v13437_v27  ;;  %v14543_v32 = vld [vmem:[#allocation2 + $0x1a2] sm:$0xff] }
 0x192   : > { %8978 = vmatprep.subr.bf16.mxu0 %v13752_v0  ;;  %6901 = vmatmul.mubr.bf16.gmra.mrb[104].mxu1 %v688_v37  ;;  %v14545_v27 = vld [vmem:[#allocation2 + $0x1c0] sm:$0xff]  ;;  %v2463_v37 = vpack.c.bf16 %v14543_v32, %v14541_v31 }
 0x193   : > { %6908 = vmatprep.mubr.bf16.mxu1 %v13436_v39  ;;  %v2593_v39 = vpack.c.bf16 %v14416_v51, %v14545_v27 }
 0x195   : > { %8979 = vmatpush1.bf16.msra.mxu0 %v13441_v35  ;;  %v14548_v35 = vpack.c.bf16 %v659_v18, %v658_v28  ;;  %v13460_v28 = vld [vmem:[#allocation7 + $0x460] sm:$0xff]   ;;  %v14583_v18 = vld [vmem:[#allocation2 + $0x212] sm:$0xff] }
 0x196   : > { %8980 = vmatprep.subr.bf16.mxu0 %v13752_v0 }
 0x197   : > { %16956 = vst [vmem:[#allocation14_spill] sm:$0xff] %v14548_v35 }
 0x198   : > { %8732 = vmatmul.mubr.bf16.gmra.mrb[8].mxu0 %v2459_v38  ;;  %v13443_v38 = vld [vmem:[%s13929_s26 + $0xd4] ss:$4 sps:$4 sm:$0xff]  }
 0x199   : > { %8739 = vmatprep.mubr.bf16.mxu0 %v2589_v3  ;;  %8981 = vmatpush1.bf16.msra.mxu0 %v13444_v41  ;;  %v660_v3 = vld [vmem:[#allocation2 + $0x4c0] sm:$0xff]  ;;  %v661_v41 = vld [vmem:[#allocation2 + $0x4d0] sm:$0xff] }
 0x19a   : > { %8982 = vmatprep.subr.bf16.mxu0 %v13752_v0  ;;  %6909 = vmatmul.mubr.bf16.gmra.mrb[108].mxu1 %v689_v52  ;;  %v14558_v52 = vld [vmem:[#allocation2 + $0x200] sm:$0xff] }
 0x19b   : > { %6916 = vmatprep.mubr.bf16.mxu1 %v818_v54  ;;  %v14562_v54 = vpack.c.bf16 %v661_v41, %v660_v3 }
 0x19d   : > { %8983 = vmatpush1.bf16.msra.mxu0 %v13446_v50  ;;  %v2408_v50 = vld [vmem:[#allocation2 + $0x1c2] sm:$0xff]  ;;  %16957 = vst [vmem:[#allocation15_spill] sm:$0xff] %v14562_v54 }
 0x19e   : > { %8984 = vmatprep.subr.bf16.mxu0 %v13752_v0 }
 0x1a0   : > { %8740 = vmatmul.mubr.bf16.gmra.mrb[12].mxu0 %v2460_v53  ;;  %v14560_v53 = vld [vmem:[#allocation2 + $0x210] sm:$0xff] }
 0x1a1   : > { %8747 = vmatprep.mubr.bf16.mxu0 %v2590_v56  ;;  %8985 = vmatpush1.bf16.msra.mxu0 %v13448_v6  ;;  %v2464_v56 = vpack.c.bf16 %v2408_v50, %v14556_v47  ;;  %v1047_v6 = vpack.c.bf16 %v14416_v51, %v14416_v51  ;;  %v2594_v29 = vpack.c.bf16 %v14560_v53, %v14558_v52  ;;  %v13449_v50 = vld [vmem:[#allocation7 + $0x110] sm:$0xff]  }
 0x1a2   : > { %8986 = vmatprep.subr.bf16.mxu0 %v13752_v0  ;;  %6917 = vmatmul.mubr.bf16.gmra.mrb[112].mxu1 %v690_v63  ;;  %v855_v63 = vld [vmem:[#allocation2 + $0x12] sm:$0xff] }
 0x1a3   : > { %6924 = vmatprep.mubr.bf16.mxu1 %v13439_v2  ;;  %v14573_v2 = vld [vmem:[#allocation2 + $0x202] sm:$0xff] }
 0x1a5   : > { %8987 = vmatpush1.bf16.msra.mxu0 %v13450_v40  ;;  %v854_v40 = vld [vmem:[#allocation2 + $0x2] sm:$0xff] }
 0x1a6   : > { %8988 = vmatprep.subr.bf16.mxu0 %v13752_v0  ;;  %v918_v48 = vpack.c.bf16 %v855_v63, %v854_v40  ;;  %v14598_v40 = vld [vmem:[#allocation2 + $0x232] sm:$0xff]  ;;  %v14600_v63 = vld [vmem:[#allocation2 + $0x242] sm:$0xff] }
 0x1a7   : > { %16958 = vst [vmem:[#allocation16_spill] sm:$0xff] %v14600_v63 }
 0x1a8   : > { %8748 = vmatmul.mubr.bf16.gmra.mrb[16].mxu0 %v2461_v1  ;;  %v14571_v1 = vld [vmem:[#allocation2 + $0x1f2] sm:$0xff] }
 0x1a9   : > { %8755 = vmatprep.mubr.bf16.mxu0 %v2591_v5  ;;  %8989 = vmatpush1.bf16.msra.mxu0 %v13452_v8  ;;  %v14575_v5 = vld [vmem:[#allocation2 + $0x220] sm:$0xff]  ;;  %v14577_v8 = vld [vmem:[#allocation2 + $0x230] sm:$0xff]  ;;  %v2465_v11 = vpack.c.bf16 %v14573_v2, %v14571_v1 }
 0x1aa   : > { %8990 = vmatprep.subr.bf16.mxu0 %v13752_v0  ;;  %6925 = vmatmul.mubr.bf16.gmra.mrb[116].mxu1 %v14532_v43 }
 0x1ab   : > { %6932 = vmatprep.mubr.bf16.mxu1 %v13440_v20  ;;  %v856_v20 = vld [vmem:[#allocation2 + $0x22] sm:$0xff] }
 0x1ad   : > { %8991 = vmatpush1.bf16.msra.mxu0 %v13454_v14  ;;  %v13445_v14 = vld [vmem:[#allocation7 + $0x100] sm:$0xff]  }
 0x1ae   : > { %8992 = vmatprep.subr.bf16.mxu0 %v13752_v0 }
 0x1b0   : > { %8756 = vmatmul.mubr.bf16.gmra.mrb[20].mxu0 %v2462_v19  ;;  %v2595_v19 = vpack.c.bf16 %v14577_v8, %v14575_v5 }
 0x1b1   : > { %8763 = vmatprep.mubr.bf16.mxu0 %v2592_v21  ;;  %8993 = vmatpush1.bf16.msra.mxu0 %v13456_v22  ;;  %v857_v21 = vld [vmem:[#allocation2 + $0x32] sm:$0xff]  ;;  %v13447_v22 = vld [vmem:[#allocation7 + $0x108] sm:$0xff]  }
 0x1b2   : > { %8994 = vmatprep.subr.bf16.mxu0 %v13752_v0  ;;  %6933 = vmatmul.mubr.bf16.gmra.mrb[120].mxu1 %v14548_v35  ;;  %v919_v3 = vpack.c.bf16 %v857_v21, %v856_v20  ;;  %v2467_v20 = vpack.c.bf16 %v14600_v63, %v14598_v40  ;;  %v13457_v63 = vld [vmem:[#allocation7 + $0x130] sm:$0xff]  }
 0x1b3   : > { %6940 = vmatprep.mubr.bf16.mxu1 %v13443_v38  ;;  %v14587_v38 = vld [vmem:[#allocation2 + $0x240] sm:$0xff] }
 0x1b5   : > { %8995 = vmatpush1.bf16.msra.mxu0 %v13458_v46 }
 0x1b6   : > { %8996 = vmatprep.subr.bf16.mxu0 %v13752_v0 }
 0x1b8   : > { %8764 = vmatmul.mubr.bf16.gmra.mrb[24].mxu0 %v2463_v37  ;;  %v14585_v37 = vld [vmem:[#allocation2 + $0x222] sm:$0xff] }
 0x1b9   : > { %8771 = vmatprep.mubr.bf16.mxu0 %v2593_v39  ;;  %v14589_v39 = vld [vmem:[#allocation2 + $0x250] sm:$0xff]  ;;  %8997 = vmatpush1.bf16.msra.mxu0 %v13460_v28  ;;  %v2466_v41 = vpack.c.bf16 %v14585_v37, %v14583_v18  ;;  %v860_v28 = vld [vmem:[#allocation2 + $0x62] sm:$0xff] }
 0x1ba   : > { %6941 = vmatmul.mubr.bf16.gmra.mrb[124].mxu1 %v14562_v54  ;;  %8998 = vmatprep.subr.bf16.mxu0 %v13752_v0  ;;  %v2596_v46 = vpack.c.bf16 %v14589_v39, %v14587_v38 }
 0x1bb   : > { %6981 = vmatprep.mubr.bf16.mxu1 %v1047_v6 }
 0x1c0   : > { %8772 = vmatmul.mubr.bf16.gmra.mrb[28].mxu0 %v2464_v56  ;;  %v858_v56 = vld [vmem:[#allocation2 + $0x42] sm:$0xff] }
 0x1c1   : > { %8779 = vmatprep.mubr.bf16.mxu0 %v2594_v29  ;;  %v859_v29 = vld [vmem:[#allocation2 + $0x52] sm:$0xff] }
 0x1c2   : > { %6982 = vmatmul.mubr.bf16.vlgmr.msra.gmra.mrb[0].mxu1 %v918_v48  ;;  %v13451_v48 = vld [vmem:[#allocation7 + $0x118] sm:$0xff]  }
 0x1c3   : > { %7239 = vmatpush1.bf16.msra.mxu1 %v13445_v14  ;;  %6989 = vmatprep.mubr.bf16.mxu1 %v1047_v6  ;;  %v920_v14 = vpack.c.bf16 %v859_v29, %v858_v56  ;;  %v14613_v56 = vld [vmem:[#allocation2 + $0x2a0] sm:$0xff]  ;;  %v13455_v29 = vld [vmem:[#allocation7 + $0x128] sm:$0xff]  }
 0x1c4   : > { %7240 = vmatprep.subr.bf16.mxu1 %v13752_v0 }
 0x1c7   : > { %7241 = vmatpush1.bf16.msra.mxu1 %v13447_v22  ;;  %v13453_v22 = vld [vmem:[#allocation7 + $0x120] sm:$0xff]  }
 0x1c8   : > { %8780 = vmatmul.mubr.bf16.gmra.mrb[32].mxu0 %v2465_v11  ;;  %7242 = vmatprep.subr.bf16.mxu1 %v13752_v0  ;;  %v14602_v11 = vld [vmem:[#allocation2 + $0x260] sm:$0xff] }
 0x1c9   : > { %8787 = vmatprep.mubr.bf16.mxu0 %v2595_v19  ;;  %v11341_v19 = vunpack.c.h.bf16 %v14391_v30  ;;  %v2597_v21 = vpack.c.bf16 %v14416_v51, %v14602_v11  ;;  %v2416_v30 = vld [vmem:[#allocation2 + $0x262] sm:$0xff] }
 0x1ca   : > { %6990 = vmatmul.mubr.bf16.gmra.mrb[4].mxu1 %v919_v3  ;;  %v861_v3 = vld [vmem:[#allocation2 + $0x72] sm:$0xff] }
 0x1cb   : > { %6997 = vmatprep.mubr.bf16.mxu1 %v1047_v6  ;;  %7243 = vmatpush1.bf16.msra.mxu1 %v13449_v50  ;;  %589 = vst [vmem:[#allocation2 + $0x4e1] sm:$0xff] %v11341_v19  ;;  %v991_v50 = vld [vmem:[#allocation2 + $0xb0] sm:$0xff]  ;;  %v11546_v19 = vld [vmem:[%s13929_s26 + $0xe8] sm:$0xff]   ;;  %v921_v54 = vpack.c.bf16 %v861_v3, %v860_v28 }
 0x1cc   : > { %7244 = vmatprep.subr.bf16.mxu1 %v13752_v0  ;;  %v862_v28 = vld [vmem:[#allocation2 + $0xa2] sm:$0xff]  ;;  %v14626_v3 = vld [vmem:[#allocation2 + $0x292] sm:$0xff] }
 0x1cf   : > { %7245 = vmatpush1.bf16.msra.mxu1 %v13451_v48  ;;  %v14615_v48 = vld [vmem:[#allocation2 + $0x2b0] sm:$0xff] }
 0x1d0   : > { %8788 = vmatmul.mubr.bf16.gmra.mrb[36].mxu0 %v2466_v41  ;;  %7246 = vmatprep.subr.bf16.mxu1 %v13752_v0  ;;  %v14611_v41 = vld [vmem:[#allocation2 + $0x252] sm:$0xff] }
 0x1d1   : > { %8795 = vmatprep.mubr.bf16.mxu0 %v2596_v46  ;;  %v13462_v46 = vld [vmem:[#allocation7 + $0x468] sm:$0xff]   ;;  %v2468_v35 = vpack.c.bf16 %v2416_v30, %v14611_v41  ;;  %v13459_v30 = vld [vmem:[#allocation7 + $0x138] sm:$0xff]  }
 0x1d2   : > { %6998 = vmatmul.mubr.bf16.gmra.mrb[8].mxu1 %v920_v14  ;;  %8999 = vmatpush1.bf16.msra.mxu0 %v13462_v46  ;;  %v11545_v14 = vld [vmem:[%s13929_s26 + $0xe0] sm:$0xff]  }
 0x1d3   : > { %7005 = vmatprep.mubr.bf16.mxu1 %v1047_v6  ;;  %7247 = vmatpush1.bf16.msra.mxu1 %v13453_v22  ;;  %v11348_v6 = vunpack.c.l.bf16 %v11546_v19  ;;  %v11344_v43 = vunpack.c.l.bf16 %v11545_v14  ;;  %v2598_v22 = vpack.c.bf16 %v14615_v48, %v14613_v56  ;;  %v14630_v46 = vld [vmem:[#allocation2 + $0x2c0] sm:$0xff] }
 0x1d4   : > { %7248 = vmatprep.subr.bf16.mxu1 %v13752_v0  ;;  %9000 = vmatprep.subr.bf16.mxu0 %v13752_v0 }
 0x1d5   : > { %592 = vst [vmem:[#allocation2 + $0x531] sm:$0xff] %v11348_v6  ;;  %590 = vst [vmem:[#allocation2 + $0x511] sm:$0xff] %v11344_v43  ;;  %v922_v43 = vpack.c.bf16 %v14446_v16, %v862_v28  ;;  %v13461_v6 = vld [vmem:[#allocation7 + $0x140] sm:$0xff]   ;;  %v13464_v16 = vld [vmem:[#allocation7 + $0x470] sm:$0xff]  }
 0x1d6   : > { %9001 = vmatpush1.bf16.msra.mxu0 %v13464_v16  ;;  %v11548_v28 = vld [vmem:[%s13929_s26 + $0xf8] sm:$0xff]   ;;  %v1054_v16 = vpack.c.bf16 %v14481_v36, %v14466_v26  ;;  %v925_v26 = vpack.c.bf16 %v14492_v45, %v14479_v34  ;;  %v14697_v34 = vld [vmem:[#allocation2 + $0x360] sm:$0xff]  ;;  %v14699_v45 = vld [vmem:[#allocation2 + $0x370] sm:$0xff] }
 0x1d7   : > { %7249 = vmatpush1.bf16.msra.mxu1 %v13455_v29  ;;  %v11547_v29 = vld [vmem:[%s13929_s26 + $0xf0] sm:$0xff]   ;;  %9002 = vmatprep.subr.bf16.mxu0 %v13752_v0 }
 0x1d8   : > { %8796 = vmatmul.mubr.bf16.gmra.mrb[40].mxu0 %v2467_v20  ;;  %v11345_v20 = vunpack.c.h.bf16 %v11545_v14  ;;  %7250 = vmatprep.subr.bf16.mxu1 %v13752_v0 }
 0x1d9   : > { %8803 = vmatprep.mubr.bf16.mxu0 %v2597_v21  ;;  %v1051_v21 = vpack.c.bf16 %v14439_v9, %v991_v50  ;;  %v14628_v9 = vld [vmem:[#allocation2 + $0x2a2] sm:$0xff]  ;;  %v14632_v50 = vld [vmem:[#allocation2 + $0x2d0] sm:$0xff] }
 0x1da   : > { %591 = vst [vmem:[#allocation2 + $0x521] sm:$0xff] %v11345_v20  ;;  %7006 = vmatmul.mubr.bf16.gmra.mrb[12].mxu1 %v921_v54  ;;  %v11349_v54 = vunpack.c.h.bf16 %v11546_v19  ;;  %v2469_v14 = vpack.c.bf16 %v14628_v9, %v14626_v3  ;;  %v1052_v20 = vpack.c.bf16 %v14450_v4, %v14441_v10  ;;  %v14644_v19 = vld [vmem:[#allocation2 + $0x2b2] sm:$0xff]  ;;  %v13463_v10 = vld [vmem:[#allocation7 + $0x148] sm:$0xff]   ;;  %v14648_v4 = vld [vmem:[#allocation2 + $0x2e0] sm:$0xff] }
 0x1db   : > { %7013 = vmatprep.mubr.bf16.mxu1 %v1051_v21  ;;  %7251 = vmatpush1.bf16.msra.mxu1 %v13457_v63  ;;  %v2599_v63 = vpack.c.bf16 %v14632_v50, %v14630_v46  ;;  %v14646_v21 = vld [vmem:[#allocation2 + $0x2c2] sm:$0xff] }
 0x1dc   : > { %7252 = vmatprep.subr.bf16.mxu1 %v13752_v0  ;;  %593 = vst [vmem:[#allocation2 + $0x541] sm:$0xff] %v11349_v54  ;;  %v11356_v54 = vunpack.c.l.bf16 %v11548_v28 }
 0x1de   : > { %596 = vst [vmem:[#allocation2 + $0x571] sm:$0xff] %v11356_v54  ;;  %v14679_v54 = vld [vmem:[#allocation2 + $0x2f2] sm:$0xff] }
 0x1df   : > { %7253 = vmatpush1.bf16.msra.mxu1 %v13459_v30  ;;  %v923_v30 = vpack.c.bf16 %v14460_v23, %v14448_v49  ;;  %v14664_v49 = vld [vmem:[#allocation2 + $0x2d2] sm:$0xff]  ;;  %v14666_v23 = vld [vmem:[#allocation2 + $0x2e2] sm:$0xff] }
 0x1e0   : > { %8804 = vmatmul.mubr.bf16.gmra.mrb[44].mxu0 %v2468_v35  ;;  %v11352_v35 = vunpack.c.l.bf16 %v11547_v29  ;;  %7254 = vmatprep.subr.bf16.mxu1 %v13752_v0 }
 0x1e1   : > { %8811 = vmatprep.mubr.bf16.mxu0 %v2598_v22  ;;  %v14650_v22 = vld [vmem:[#allocation2 + $0x2f0] sm:$0xff] }
 0x1e2   : > { %594 = vst [vmem:[#allocation2 + $0x551] sm:$0xff] %v11352_v35  ;;  %7014 = vmatmul.mubr.bf16.gmra.mrb[16].mxu1 %v922_v43  ;;  %v11353_v43 = vunpack.c.h.bf16 %v11547_v29  ;;  %v2470_v35 = vpack.c.bf16 %v14646_v21, %v14644_v19  ;;  %v14668_v29 = vld [vmem:[#allocation2 + $0x300] sm:$0xff] }
 0x1e3   : > { %7021 = vmatprep.mubr.bf16.mxu1 %v1052_v20  ;;  %7255 = vmatpush1.bf16.msra.mxu1 %v13461_v6  ;;  %v2600_v20 = vpack.c.bf16 %v14650_v22, %v14648_v4  ;;  %v2471_v6 = vpack.c.bf16 %v14666_v23, %v14664_v49 }
 0x1e4   : > { %7256 = vmatprep.subr.bf16.mxu1 %v13752_v0  ;;  %595 = vst [vmem:[#allocation2 + $0x561] sm:$0xff] %v11353_v43  ;;  %v13467_v43 = vld [vmem:[#allocation7 + $0x158] sm:$0xff]  }
 0x1e7   : > { %7257 = vmatpush1.bf16.msra.mxu1 %v13463_v10  ;;  %v2601_v10 = vpack.c.bf16 %v14416_v51, %v14668_v29 }
 0x1e8   : > { %8812 = vmatmul.mubr.bf16.gmra.mrb[48].mxu0 %v2469_v14  ;;  %v1053_v14 = vpack.c.bf16 %v14464_v24, %v14452_v17  ;;  %7258 = vmatprep.subr.bf16.mxu1 %v13752_v0  ;;  %v924_v17 = vpack.c.bf16 %v14477_v33, %v14462_v25  ;;  %v11357_v24 = vunpack.c.h.bf16 %v11548_v28  ;;  %v2424_v25 = vld [vmem:[#allocation2 + $0x302] sm:$0xff]  ;;  %v999_v33 = vld [vmem:[#allocation2 + $0x150] sm:$0xff] }
 0x1e9   : > { %8819 = vmatprep.mubr.bf16.mxu0 %v2599_v63  ;;  %v13465_v63 = vld [vmem:[#allocation7 + $0x150] sm:$0xff]   ;;  %v14681_v28 = vld [vmem:[#allocation2 + $0x340] sm:$0xff]  ;;  %v2472_v36 = vpack.c.bf16 %v2424_v25, %v14679_v54 }
 0x1ea   : > { %7022 = vmatmul.mubr.bf16.gmra.mrb[20].mxu1 %v923_v30  ;;  %597 = vst [vmem:[#allocation2 + $0x581] sm:$0xff] %v11357_v24  ;;  %v13466_v30 = vld [vmem:[#allocation7 + $0x478] sm:$0xff]   ;;  %v14695_v24 = vld [vmem:[#allocation2 + $0x342] sm:$0xff] }
 0x1eb   : > { %7029 = vmatprep.mubr.bf16.mxu1 %v1053_v14  ;;  %7259 = vmatpush1.bf16.msra.mxu1 %v13465_v63  ;;  %v1055_v14 = vpack.c.bf16 %v14494_v60, %v999_v33  ;;  %v870_v63 = vld [vmem:[#allocation2 + $0x142] sm:$0xff] }
 0x1ec   : > { %7260 = vmatprep.subr.bf16.mxu1 %v13752_v0  ;;  %9003 = vmatpush1.bf16.msra.mxu0 %v13466_v30  ;;  %v14708_v30 = vld [vmem:[#allocation2 + $0x352] sm:$0xff]  ;;  %v13469_v25 = vld [vmem:[#allocation7 + $0x160] sm:$0xff]  }
 0x1ed   : > { %9261 = vmatprep.subr.bf16.mxu0 %v13752_v0  ;;  %v14712_v33 = vld [vmem:[#allocation2 + $0x380] sm:$0xff] }
 0x1ef   : > { %7261 = vmatpush1.bf16.msra.mxu1 %v13467_v43  ;;  %v14710_v43 = vld [vmem:[#allocation2 + $0x362] sm:$0xff] }
 0x1f0   : > { %8820 = vmatmul.mubr.bf16.gmra.mrb[52].mxu0 %v2470_v35  ;;  %v14683_v35 = vld [vmem:[#allocation2 + $0x350] sm:$0xff]  ;;  %7262 = vmatprep.subr.bf16.mxu1 %v13752_v0 }
 0x1f1   : > { %8827 = vmatprep.mubr.bf16.mxu0 %v2600_v20  ;;  %v2602_v20 = vpack.c.bf16 %v14683_v35, %v14681_v28 }
 0x1f2   : > { %7030 = vmatmul.mubr.bf16.gmra.mrb[24].mxu1 %v924_v17  ;;  %v14693_v17 = vld [vmem:[#allocation2 + $0x332] sm:$0xff] }
 0x1f3   : > { %7037 = vmatprep.mubr.bf16.mxu1 %v1054_v16  ;;  %v2473_v60 = vpack.c.bf16 %v14695_v24, %v14693_v17  ;;  %v1056_v16 = vpack.c.bf16 %v14511_v44, %v14496_v61  ;;  %7263 = vmatpush1.bf16.msra.mxu1 %v13469_v25  ;;  %v2474_v61 = vpack.c.bf16 %v14710_v43, %v14708_v30  ;;  %v14741_v25 = vld [vmem:[#allocation2 + $0x3e0] sm:$0xff] }
 0x1f4   : > { %v1057_v44 = vpack.c.bf16 %v14527_v15, %v14513_v62  ;;  %7264 = vmatprep.subr.bf16.mxu1 %v13752_v0  ;;  %v1058_v15 = vpack.c.bf16 %v14545_v27, %v14529_v42  ;;  %v2606_v27 = vpack.c.bf16 %v14421_v55, %v14741_v25 }
 0x1f8   : > { %8828 = vmatmul.mubr.bf16.gmra.mrb[56].mxu0 %v2471_v6  ;;  %v926_v6 = vpack.c.bf16 %v14507_v57, %v870_v63  ;;  %v14714_v57 = vld [vmem:[#allocation2 + $0x390] sm:$0xff] }
 0x1f9   : > { %8835 = vmatprep.mubr.bf16.mxu0 %v2601_v10  ;;  %v2603_v10 = vpack.c.bf16 %v14699_v45, %v14697_v34 }
 0x1fa   : > { %7038 = vmatmul.mubr.bf16.gmra.mrb[28].mxu1 %v925_v26  ;;  %v927_v26 = vpack.c.bf16 %v14523_v12, %v14509_v58  ;;  %v14729_v58 = vld [vmem:[#allocation2 + $0x3a0] sm:$0xff]  ;;  %v928_v12 = vpack.c.bf16 %v14541_v31, %v14525_v13  ;;  %v929_v13 = vpack.c.bf16 %v14556_v47, %v14543_v32 }
 0x1fb   : > { %7045 = vmatprep.mubr.bf16.mxu1 %v1055_v14  ;;  %v14725_v14 = vld [vmem:[#allocation2 + $0x372] sm:$0xff]  ;;  %v2605_v63 = vpack.c.bf16 %v14416_v51, %v14729_v58 }
 0x200   : > { %8836 = vmatmul.mubr.bf16.gmra.mrb[60].mxu0 %v2472_v36  ;;  %v2604_v36 = vpack.c.bf16 %v14714_v57, %v14712_v33 }
 0x201   : > { %8843 = vmatprep.mubr.bf16.mxu0 %v2602_v20  ;;  %v14727_v20 = vld [vmem:[#allocation2 + $0x382] sm:$0xff] }
 0x202   : > { %7046 = vmatmul.mubr.bf16.gmra.mrb[32].mxu1 %v926_v6  ;;  %v2475_v62 = vpack.c.bf16 %v14727_v20, %v14725_v14  ;;  %v13471_v6 = vld [vmem:[#allocation7 + $0x168] sm:$0xff]  }
 0x203   : > { %7053 = vmatprep.mubr.bf16.mxu1 %v1056_v16  ;;  %v2432_v16 = vld [vmem:[#allocation2 + $0x3a2] sm:$0xff]  ;;  %7265 = vmatpush1.bf16.msra.mxu1 %v13471_v6  ;;  %v14778_v6 = vld [vmem:[#allocation2 + $0x412] sm:$0xff] }
 0x204   : > { %7266 = vmatprep.subr.bf16.mxu1 %v13752_v0 }
 0x208   : > { %8844 = vmatmul.mubr.bf16.gmra.mrb[64].mxu0 %v2473_v60  ;;  %v14739_v60 = vld [vmem:[#allocation2 + $0x392] sm:$0xff] }
 0x209   : > { %8851 = vmatprep.mubr.bf16.mxu0 %v2603_v10  ;;  %v1007_v10 = vld [vmem:[#allocation2 + $0x1f0] sm:$0xff]  ;;  %v2476_v42 = vpack.c.bf16 %v2432_v16, %v14739_v60  ;;  %v14780_v16 = vld [vmem:[#allocation2 + $0x422] sm:$0xff] }
 0x20a   : > { %7054 = vmatmul.mubr.bf16.gmra.mrb[36].mxu1 %v927_v26  ;;  %v1059_v31 = vpack.c.bf16 %v14558_v52, %v1007_v10  ;;  %v878_v26 = vld [vmem:[#allocation2 + $0x1e2] sm:$0xff]  ;;  %v1060_v52 = vpack.c.bf16 %v14575_v5, %v14560_v53  ;;  %v1061_v53 = vpack.c.bf16 %v14587_v38, %v14577_v8  ;;  %v2479_v10 = vpack.c.bf16 %v14780_v16, %v14778_v6  ;;  %v13475_v38 = vld [vmem:[#allocation7 + $0x178] sm:$0xff]  }
 0x20b   : > { %7061 = vmatprep.mubr.bf16.mxu1 %v1057_v44  ;;  %v14752_v44 = vld [vmem:[#allocation2 + $0x3e2] sm:$0xff]  ;;  %v930_v32 = vpack.c.bf16 %v14571_v1, %v878_v26  ;;  %v931_v1 = vpack.c.bf16 %v14583_v18, %v14573_v2  ;;  %v932_v18 = vpack.c.bf16 %v14598_v40, %v14585_v37  ;;  %v1062_v8 = vpack.c.bf16 %v14602_v11, %v14589_v39  ;;  %v16959_v37 = vld [vmem:[#allocation16_spill] sm:$0xff] }
 0x20c   : > { %v14782_v2 = vld [vmem:[#allocation2 + $0x440] sm:$0xff]  ;;  %v933_v40 = vpack.c.bf16 %v14611_v41, %v16959_v37  ;;  %v14800_v26 = vld [vmem:[#allocation2 + $0x472] sm:$0xff] }
 0x20d   : > { %v2449_v37 = vld [vmem:[#allocation2 + $0x512] sm:$0xff] }
 0x210   : > { %8852 = vmatmul.mubr.bf16.gmra.mrb[68].mxu0 %v2474_v61  ;;  %v14750_v61 = vld [vmem:[#allocation2 + $0x3d2] sm:$0xff] }
 0x211   : > { %8859 = vmatprep.mubr.bf16.mxu0 %v2604_v36  ;;  %v14754_v36 = vld [vmem:[#allocation2 + $0x400] sm:$0xff]  ;;  %v2477_v47 = vpack.c.bf16 %v14752_v44, %v14750_v61 }
 0x212   : > { %7062 = vmatmul.mubr.bf16.gmra.mrb[40].mxu1 %v928_v12  ;;  %v2607_v55 = vpack.c.bf16 %v14429_v59, %v14754_v36  ;;  %v13473_v12 = vld [vmem:[#allocation7 + $0x170] sm:$0xff]  }
 0x213   : > { %7069 = vmatprep.mubr.bf16.mxu1 %v1058_v15  ;;  %v14765_v15 = vld [vmem:[#allocation2 + $0x402] sm:$0xff]  ;;  %7267 = vmatpush1.bf16.msra.mxu1 %v13473_v12 }
 0x214   : > { %7268 = vmatprep.subr.bf16.mxu1 %v13752_v0  ;;  %v14812_v12 = vld [vmem:[#allocation2 + $0x4a2] sm:$0xff] }
 0x217   : > { %7269 = vmatpush1.bf16.msra.mxu1 %v13475_v38  ;;  %v2578_v38 = vld [vmem:[#allocation2 + $0x520] sm:$0xff] }
 0x218   : > { %8860 = vmatmul.mubr.bf16.gmra.mrb[72].mxu0 %v2475_v62  ;;  %v14763_v62 = vld [vmem:[#allocation2 + $0x3f2] sm:$0xff]  ;;  %7527 = vmatprep.subr.bf16.mxu1 %v13752_v0 }
 0x219   : > { %8867 = vmatprep.mubr.bf16.mxu0 %v2605_v63  ;;  %v14767_v63 = vld [vmem:[#allocation2 + $0x420] sm:$0xff]  ;;  %v2478_v59 = vpack.c.bf16 %v14765_v15, %v14763_v62 }
 0x21a   : > { %7070 = vmatmul.mubr.bf16.gmra.mrb[44].mxu1 %v929_v13  ;;  %v2608_v5 = vpack.c.bf16 %v14437_v7, %v14767_v63  ;;  %v2609_v7 = vpack.c.bf16 %v14416_v51, %v14782_v2  ;;  %v14792_v13 = vld [vmem:[#allocation2 + $0x432] sm:$0xff]  ;;  %v886_v51 = vld [vmem:[#allocation2 + $0x282] sm:$0xff] }
 0x21b   : > { %7077 = vmatprep.mubr.bf16.mxu1 %v1059_v31  ;;  %v1015_v31 = vld [vmem:[#allocation2 + $0x290] sm:$0xff] }
 0x21c   : > { %v1063_v11 = vpack.c.bf16 %v14613_v56, %v1015_v31  ;;  %v16961_v56 = vld [vmem:[#allocation14_spill] sm:$0xff] }
 0x21d   : > { %v894_v31 = vld [vmem:[#allocation2 + $0x322] sm:$0xff] }
 0x220   : > { %8868 = vmatmul.mubr.bf16.gmra.mrb[76].mxu0 %v2476_v42  ;;  %v2440_v42 = vld [vmem:[#allocation2 + $0x442] sm:$0xff] }
 0x221   : > { %8875 = vmatprep.mubr.bf16.mxu0 %v2606_v27  ;;  %v2480_v39 = vpack.c.bf16 %v2440_v42, %v14792_v13  ;;  %v16960_v27 = vld [vmem:[#allocation13_spill] sm:$0xff]  ;;  %v2579_v42 = vld [vmem:[#allocation2 + $0x530] sm:$0xff] }
 0x222   : > { %7078 = vmatmul.mubr.bf16.gmra.mrb[48].mxu1 %v930_v32  ;;  %v14802_v32 = vld [vmem:[#allocation2 + $0x482] sm:$0xff] }
 0x223   : > { %7085 = vmatprep.mubr.bf16.mxu1 %v1060_v52  ;;  %v2481_v41 = vpack.c.bf16 %v14802_v32, %v14800_v26  ;;  %v1064_v52 = vpack.c.bf16 %v14630_v46, %v14615_v48  ;;  %v16962_v48 = vld [vmem:[#allocation15_spill] sm:$0xff] }
 0x224   : > { %v14821_v46 = vld [vmem:[#allocation2 + $0x4b2] sm:$0xff] }
 0x228   : > { %8876 = vmatmul.mubr.bf16.gmra.mrb[80].mxu0 %v2477_v47  ;;  %v934_v47 = vpack.c.bf16 %v14626_v3, %v886_v51  ;;  %v938_v51 = vpack.c.bf16 %v14693_v17, %v894_v31  ;;  %v1069_v17 = vpack.c.bf16 %v14712_v33, %v14699_v45  ;;  %v2455_v45 = vld [vmem:[#allocation2 + $0x572] sm:$0xff] }
 0x229   : > { %8883 = vmatprep.mubr.bf16.mxu0 %v2607_v55  ;;  %v14810_v55 = vld [vmem:[#allocation2 + $0x492] sm:$0xff] }
 0x22a   : > { %7086 = vmatmul.mubr.bf16.gmra.mrb[52].mxu1 %v931_v1  ;;  %v935_v1 = vpack.c.bf16 %v14644_v19, %v14628_v9  ;;  %v2482_v3 = vpack.c.bf16 %v14812_v12, %v14810_v55  ;;  %v936_v9 = vpack.c.bf16 %v14664_v49, %v14646_v21  ;;  %v937_v21 = vpack.c.bf16 %v14679_v54, %v14666_v23  ;;  %v1031_v33 = vld [vmem:[#allocation2 + $0x3d0] sm:$0xff] }
 0x22b   : > { %7093 = vmatprep.mubr.bf16.mxu1 %v1061_v53  ;;  %v14823_v53 = vld [vmem:[#allocation2 + $0x4c2] sm:$0xff]  ;;  %v1068_v23 = vpack.c.bf16 %v14697_v34, %v14683_v35  ;;  %v2453_v35 = vld [vmem:[#allocation2 + $0x552] sm:$0xff] }
 0x22c   : > { %v2483_v19 = vpack.c.bf16 %v14823_v53, %v14821_v46  ;;  %v2454_v34 = vld [vmem:[#allocation2 + $0x562] sm:$0xff]  ;;  %v14876_v31 = vld [vmem:[#allocation2 + $0xf1] sm:$0xff] }
 0x230   : > { %8884 = vmatmul.mubr.bf16.gmra.mrb[84].mxu0 %v2478_v59  ;;  %v1065_v59 = vpack.c.bf16 %v14648_v4, %v14632_v50  ;;  %v1066_v50 = vpack.c.bf16 %v14668_v29, %v14650_v22  ;;  %v13597_v4 = vld [vmem:[#allocation2] sm:$0xff]  ;;  %v2614_v29 = vpack.c.bf16 %v2579_v42, %v2578_v38  ;;  %v1033_v38 = vld [vmem:[#allocation2 + $0x3f0] sm:$0xff] }
 0x231   : > { %8891 = vmatprep.mubr.bf16.mxu0 %v2608_v5  ;;  %v14825_v5 = vld [vmem:[#allocation2 + $0x4e0] sm:$0xff] }
 0x232   : > { %7094 = vmatmul.mubr.bf16.gmra.mrb[56].mxu1 %v932_v18  ;;  %v2613_v18 = vpack.c.bf16 %v13597_v4, %v14825_v5  ;;  %v14864_v42 = vld [vmem:[#allocation2 + $0xe2] sm:$0xff] }
 0x233   : > { %7101 = vmatprep.mubr.bf16.mxu1 %v1062_v8  ;;  %v2448_v8 = vld [vmem:[#allocation2 + $0x4e2] sm:$0xff] }
 0x238   : > { %8892 = vmatmul.mubr.bf16.gmra.mrb[88].mxu0 %v2479_v10  ;;  %v14834_v10 = vld [vmem:[#allocation2 + $0x4d2] sm:$0xff] }
 0x239   : > { %8899 = vmatprep.mubr.bf16.mxu0 %v2609_v7  ;;  %v1023_v7 = vld [vmem:[#allocation2 + $0x330] sm:$0xff]  ;;  %v2484_v49 = vpack.c.bf16 %v2448_v8, %v14834_v10  ;;  %v941_v8 = vpack.c.bf16 %v14739_v60, %v14727_v20 }
 0x23a   : > { %7102 = vmatmul.mubr.bf16.gmra.mrb[60].mxu1 %v933_v40  ;;  %v1067_v22 = vpack.c.bf16 %v14681_v28, %v1023_v7  ;;  %v2450_v40 = vld [vmem:[#allocation2 + $0x522] sm:$0xff]  ;;  %v2451_v28 = vld [vmem:[#allocation2 + $0x532] sm:$0xff] }
 0x23b   : > { %7109 = vmatprep.mubr.bf16.mxu1 %v1063_v11  ;;  %v2581_v11 = vld [vmem:[#allocation2 + $0x550] sm:$0xff] }
 0x23c   : > { %v14862_v7 = vld [vmem:[#allocation2 + $0xd1] sm:$0xff] }
 0x240   : > { %8900 = vmatmul.mubr.bf16.gmra.mrb[92].mxu0 %v2480_v39  ;;  %v2580_v39 = vld [vmem:[#allocation2 + $0x540] sm:$0xff] }
 0x241   : > { %8907 = vmatprep.mubr.bf16.mxu0 %v16960_v27  ;;  %v2485_v27 = vpack.c.bf16 %v2450_v40, %v2449_v37  ;;  %v2615_v54 = vpack.c.bf16 %v2581_v11, %v2580_v39  ;;  %v1035_v37 = vld [vmem:[#allocation2 + $0x410] sm:$0xff]  ;;  %v14878_v40 = vld [vmem:[#allocation2 + $0x102] sm:$0xff] }
 0x242   : > { %7110 = vmatmul.mubr.bf16.gmra.mrb[64].mxu1 %v934_v47  ;;  %v2452_v47 = vld [vmem:[#allocation2 + $0x542] sm:$0xff]  ;;  %v14880_v39 = vld [vmem:[#allocation2 + $0x112] sm:$0xff] }
 0x243   : > { %7117 = vmatprep.mubr.bf16.mxu1 %v1064_v52  ;;  %v2583_v52 = vld [vmem:[#allocation2 + $0x570] sm:$0xff] }
 0x248   : > { %8908 = vmatmul.mubr.bf16.gmra.mrb[96].mxu0 %v2481_v41  ;;  %v2582_v41 = vld [vmem:[#allocation2 + $0x560] sm:$0xff] }
 0x249   : > { %8915 = vmatprep.mubr.bf16.mxu0 %v16961_v56  ;;  %v939_v56 = vpack.c.bf16 %v14708_v30, %v14695_v24  ;;  %v2456_v30 = vld [vmem:[#allocation2 + $0x582] sm:$0xff] }
 0x24a   : > { %7118 = vmatmul.mubr.bf16.gmra.mrb[68].mxu1 %v935_v1  ;;  %v2486_v1 = vpack.c.bf16 %v2452_v47, %v2451_v28  ;;  %v14893_v28 = vld [vmem:[#allocation2 + $0x111] sm:$0xff]  ;;  %v14895_v47 = vld [vmem:[#allocation2 + $0x122] sm:$0xff] }
 0x24b   : > { %7125 = vmatprep.mubr.bf16.mxu1 %v1065_v59  ;;  %v2584_v59 = vld [vmem:[#allocation2 + $0x580] sm:$0xff] }
 0x24c   : > { %v2617_v24 = vpack.c.bf16 %v13597_v4, %v2584_v59  ;;  %v14860_v4 = vld [vmem:[#allocation2 + $0xc1] sm:$0xff] }
 0x24d   : > { %v2714_v60 = vpack.c.bf16 %v14862_v7, %v14860_v4  ;;  %v14907_v59 = vld [vmem:[#allocation2 + $0x162] sm:$0xff] }
 0x250   : > { %8916 = vmatmul.mubr.bf16.gmra.mrb[100].mxu0 %v2482_v3  ;;  %v2616_v3 = vpack.c.bf16 %v2583_v52, %v2582_v41  ;;  %v944_v41 = vpack.c.bf16 %v14778_v6, %v14765_v15  ;;  %v1040_v15 = vld [vmem:[#allocation2 + $0x480] sm:$0xff]  ;;  %v13478_v6 = vld [vmem:[#allocation7 + $0x4a8] sm:$0xff]  }
 0x251   : > { %8923 = vmatprep.mubr.bf16.mxu0 %v16962_v48  ;;  %v940_v48 = vpack.c.bf16 %v14725_v14, %v14710_v43  ;;  %v2488_v43 = vpack.c.bf16 %v2456_v30, %v2455_v45  ;;  %v1071_v14 = vpack.c.bf16 %v14741_v25, %v1031_v33  ;;  %v1072_v25 = vpack.c.bf16 %v14754_v36, %v1033_v38  ;;  %v13480_v45 = vld [vmem:[#allocation7 + $0x4b0] sm:$0xff]   ;;  %v910_v30 = vld [vmem:[#allocation2 + $0x462] sm:$0xff] }
 0x252   : > { %7126 = vmatmul.mubr.bf16.gmra.mrb[72].mxu1 %v936_v9  ;;  %v2487_v9 = vpack.c.bf16 %v2454_v34, %v2453_v35  ;;  %v943_v36 = vpack.c.bf16 %v14763_v62, %v14752_v44  ;;  %v1037_v44 = vld [vmem:[#allocation2 + $0x430] sm:$0xff]  ;;  %v13474_v62 = vld [vmem:[#allocation7 + $0x498] sm:$0xff]   ;;  %v14918_v33 = vld [vmem:[#allocation2 + $0x161] sm:$0xff] }
 0x253   : > { %7133 = vmatprep.mubr.bf16.mxu1 %v1066_v50  ;;  %v14851_v50 = vld [vmem:[#allocation2 + $0xc2] sm:$0xff]  ;;  %v2657_v35 = vld [vmem:[#allocation2 + $0x131] sm:$0xff] }
 0x254   : > { %v1039_v34 = vld [vmem:[#allocation2 + $0x470] sm:$0xff] }
 0x258   : > { %8924 = vmatmul.mubr.bf16.gmra.mrb[104].mxu0 %v2483_v19  ;;  %v1070_v19 = vpack.c.bf16 %v14729_v58, %v14714_v57  ;;  %v902_v58 = vld [vmem:[#allocation2 + $0x3c2] sm:$0xff] }
 0x259   : > { %8931 = vmatprep.mubr.bf16.mxu0 %v2613_v18  ;;  %v14853_v18 = vld [vmem:[#allocation2 + $0xd2] sm:$0xff]  ;;  %v942_v20 = vpack.c.bf16 %v14750_v61, %v902_v58  ;;  %v13470_v61 = vld [vmem:[#allocation7 + $0x488] sm:$0xff]   ;;  %v946_v58 = vpack.c.bf16 %v14800_v26, %v910_v30 }
 0x25a   : > { %7134 = vmatmul.mubr.bf16.gmra.mrb[76].mxu1 %v937_v21  ;;  %v2842_v57 = vpack.c.bf16 %v14853_v18, %v14851_v50  ;;  %v14866_v21 = vld [vmem:[#allocation2 + $0xf2] sm:$0xff] }
 0x25b   : > { %7141 = vmatprep.mubr.bf16.mxu1 %v1067_v22  ;;  %v2843_v22 = vpack.c.bf16 %v14866_v21, %v14864_v42  ;;  %v1043_v26 = vld [vmem:[#allocation2 + $0x4b0] sm:$0xff] }
 0x25c   : > { %v1111_v30 = vld [vmem:[#allocation2 + $0x11] sm:$0xff] }
 0x260   : > { %8932 = vmatmul.mubr.bf16.gmra.mrb[108].mxu0 %v2484_v49  ;;  %v13468_v49 = vld [vmem:[#allocation7 + $0x480] sm:$0xff]  }
 0x261   : > { %8939 = vmatprep.mubr.bf16.mxu0 %v2614_v29  ;;  %v14874_v29 = vld [vmem:[#allocation2 + $0xe1] sm:$0xff] }
 0x262   : > { %7142 = vmatmul.mubr.bf16.gmra.mrb[80].mxu1 %v938_v51  ;;  %v2715_v11 = vpack.c.bf16 %v14876_v31, %v14874_v29  ;;  %v1073_v51 = vpack.c.bf16 %v14767_v63, %v1035_v37  ;;  %v2785_v63 = vld [vmem:[#allocation2 + $0x132] sm:$0xff]  ;;  %v1044_v37 = vld [vmem:[#allocation2 + $0x4c0] sm:$0xff] }
 0x263   : > { %7149 = vmatprep.mubr.bf16.mxu1 %v1068_v23  ;;  %v13472_v23 = vld [vmem:[#allocation7 + $0x490] sm:$0xff]  }
 0x268   : > { %8940 = vmatmul.mubr.bf16.gmra.mrb[112].mxu0 %v2485_v27  ;;  %v2844_v27 = vpack.c.bf16 %v14880_v39, %v14878_v40 }
 0x269   : > { %8947 = vmatprep.mubr.bf16.mxu0 %v2615_v54  ;;  %v14891_v54 = vld [vmem:[#allocation2 + $0x101] sm:$0xff] }
 0x26a   : > { %7150 = vmatmul.mubr.bf16.gmra.mrb[84].mxu1 %v939_v56  ;;  %v2716_v52 = vpack.c.bf16 %v14893_v28, %v14891_v54  ;;  %v1074_v56 = vpack.c.bf16 %v14782_v2, %v1037_v44  ;;  %v14909_v2 = vld [vmem:[#allocation2 + $0x172] sm:$0xff] }
 0x26b   : > { %7157 = vmatprep.mubr.bf16.mxu1 %v1069_v17  ;;  %v13476_v17 = vld [vmem:[#allocation7 + $0x4a0] sm:$0xff]  }
 0x270   : > { %8948 = vmatmul.mubr.bf16.gmra.mrb[116].mxu0 %v2486_v1  ;;  %v2845_v1 = vpack.c.bf16 %v2785_v63, %v14895_v47  ;;  %v14949_v63 = vld [vmem:[#allocation2 + $0x1a1] sm:$0xff] }
 0x271   : > { %8955 = vmatprep.mubr.bf16.mxu0 %v2616_v3  ;;  %v14905_v3 = vld [vmem:[#allocation2 + $0x121] sm:$0xff] }
 0x272   : > { %7158 = vmatmul.mubr.bf16.gmra.mrb[88].mxu1 %v940_v48  ;;  %v945_v48 = vpack.c.bf16 %v14792_v13, %v14780_v16  ;;  %v1041_v16 = vld [vmem:[#allocation2 + $0x490] sm:$0xff]  ;;  %v1042_v13 = vld [vmem:[#allocation2 + $0x4a0] sm:$0xff] }
 0x273   : > { %7165 = vmatprep.mubr.bf16.mxu1 %v1070_v19  ;;  %v1075_v19 = vpack.c.bf16 %v1040_v15, %v1039_v34  ;;  %v14962_v34 = vld [vmem:[#allocation2 + $0x1c1] sm:$0xff]  ;;  %v13490_v15 = vld [vmem:[#allocation7 + $0x4d8] sm:$0xff]  }
 0x278   : > { %8956 = vmatmul.mubr.bf16.gmra.mrb[120].mxu0 %v2487_v9  ;;  %v2717_v9 = vpack.c.bf16 %v2657_v35, %v14905_v3 }
 0x279   : > { %8963 = vmatprep.mubr.bf16.mxu0 %v2617_v24  ;;  %v2846_v24 = vpack.c.bf16 %v14909_v2, %v14907_v59 }
 0x27a   : > { %7166 = vmatmul.mubr.bf16.gmra.mrb[92].mxu1 %v941_v8  ;;  %v14920_v8 = vld [vmem:[#allocation2 + $0x171] sm:$0xff] }
 0x27b   : > { %7173 = vmatprep.mubr.bf16.mxu1 %v1071_v14  ;;  %v14922_v14 = vld [vmem:[#allocation2 + $0x182] sm:$0xff]  ;;  %v2718_v38 = vpack.c.bf16 %v14920_v8, %v14918_v33 }
 0x280   : > { %8964 = vmatmul.mubr.bf16.gmra.mrb[124].mxu0 %v2488_v43  ;;  %v13482_v43 = vld [vmem:[#allocation7 + $0x4b8] sm:$0xff]  }
 0x281   : > { %9004 = vmatprep.mubr.bf16.mxu0 %v2842_v57  ;;  %v14924_v57 = vld [vmem:[#allocation2 + $0x192] sm:$0xff] }
 0x282   : > { %7174 = vmatmul.mubr.bf16.gmra.mrb[96].mxu1 %v942_v20  ;;  %v1076_v20 = vpack.c.bf16 %v1042_v13, %v1041_v16  ;;  %v1112_v16 = vld [vmem:[#allocation2 + $0x21] sm:$0xff] }
 0x283   : > { %7181 = vmatprep.mubr.bf16.mxu1 %v1072_v25  ;;  %v13484_v25 = vld [vmem:[#allocation7 + $0x4c0] sm:$0xff]  }
 0x284   : > { %v14974_v13 = vld [vmem:[#allocation2 + $0x201] sm:$0xff] }
 0x288   : > { %9005 = vmatmul.mubr.bf16.vlgmr.msra.gmra.mrb[0].mxu0 %v2714_v60  ;;  %v2847_v60 = vpack.c.bf16 %v14924_v57, %v14922_v14 }
 0x289   : > { %9262 = vmatpush1.bf16.msra.mxu0 %v13468_v49  ;;  %9012 = vmatprep.mubr.bf16.mxu0 %v2843_v22  ;;  %v14933_v49 = vld [vmem:[#allocation2 + $0x181] sm:$0xff]  ;;  %v14935_v22 = vld [vmem:[#allocation2 + $0x191] sm:$0xff] }
 0x28a   : > { %9263 = vmatprep.subr.bf16.mxu0 %v13752_v0  ;;  %7182 = vmatmul.mubr.bf16.gmra.mrb[100].mxu1 %v943_v36  ;;  %v14937_v36 = vld [vmem:[#allocation2 + $0x1a2] sm:$0xff] }
 0x28b   : > { %7189 = vmatprep.mubr.bf16.mxu1 %v1073_v51  ;;  %v947_v51 = vpack.c.bf16 %v14810_v55, %v14802_v32  ;;  %v1045_v32 = vld [vmem:[#allocation2 + $0x4d0] sm:$0xff]  ;;  %v14953_v55 = vld [vmem:[#allocation2 + $0x1c2] sm:$0xff] }
 0x28d   : > { %9264 = vmatpush1.bf16.msra.mxu0 %v13470_v61  ;;  %v13486_v61 = vld [vmem:[#allocation7 + $0x4c8] sm:$0xff]  }
 0x28e   : > { %9265 = vmatprep.subr.bf16.mxu0 %v13752_v0 }
 0x290   : > { %9013 = vmatmul.mubr.bf16.gmra.mrb[4].mxu0 %v2715_v11  ;;  %v14939_v11 = vld [vmem:[#allocation2 + $0x1b2] sm:$0xff] }
 0x291   : > { %9020 = vmatprep.mubr.bf16.mxu0 %v2844_v27  ;;  %9266 = vmatpush1.bf16.msra.mxu0 %v13472_v23  ;;  %v2719_v27 = vpack.c.bf16 %v14935_v22, %v14933_v49  ;;  %v1077_v23 = vpack.c.bf16 %v1044_v37, %v1043_v26  ;;  %v2848_v44 = vpack.c.bf16 %v14939_v11, %v14937_v36 }
 0x292   : > { %9267 = vmatprep.subr.bf16.mxu0 %v13752_v0  ;;  %7190 = vmatmul.mubr.bf16.gmra.mrb[104].mxu1 %v944_v41  ;;  %v14951_v41 = vld [vmem:[#allocation2 + $0x1b1] sm:$0xff] }
 0x293   : > { %7197 = vmatprep.mubr.bf16.mxu1 %v1074_v56  ;;  %v948_v56 = vpack.c.bf16 %v14821_v46, %v14812_v12  ;;  %v14966_v12 = vld [vmem:[#allocation2 + $0x212] sm:$0xff]  ;;  %v949_v46 = vpack.c.bf16 %v14834_v10, %v14823_v53  ;;  %v1242_v53 = vld [vmem:[#allocation2 + $0x42] sm:$0xff] }
 0x294   : > { %v14978_v10 = vld [vmem:[#allocation2 + $0x222] sm:$0xff] }
 0x295   : > { %9268 = vmatpush1.bf16.msra.mxu0 %v13474_v62  ;;  %v13488_v62 = vld [vmem:[#allocation7 + $0x4d0] sm:$0xff]  }
 0x296   : > { %9269 = vmatprep.subr.bf16.mxu0 %v13752_v0 }
 0x298   : > { %9021 = vmatmul.mubr.bf16.gmra.mrb[8].mxu0 %v2716_v52  ;;  %v2793_v52 = vld [vmem:[#allocation2 + $0x1d2] sm:$0xff] }
 0x299   : > { %9028 = vmatprep.mubr.bf16.mxu0 %v2845_v1  ;;  %9270 = vmatpush1.bf16.msra.mxu0 %v13476_v17  ;;  %v2720_v1 = vpack.c.bf16 %v14951_v41, %v14949_v63  ;;  %v1078_v17 = vpack.c.bf16 %v14825_v5, %v1045_v32  ;;  %v2849_v35 = vpack.c.bf16 %v2793_v52, %v14953_v55  ;;  %v1243_v32 = vld [vmem:[#allocation2 + $0x52] sm:$0xff]  ;;  %v1244_v52 = vld [vmem:[#allocation2 + $0x62] sm:$0xff] }
 0x29a   : > { %9271 = vmatprep.subr.bf16.mxu0 %v13752_v0  ;;  %7198 = vmatmul.mubr.bf16.gmra.mrb[108].mxu1 %v945_v48  ;;  %v1239_v48 = vld [vmem:[#allocation2 + $0x12] sm:$0xff] }
 0x29b   : > { %7205 = vmatprep.mubr.bf16.mxu1 %v1075_v19  ;;  %v14964_v19 = vld [vmem:[#allocation2 + $0x202] sm:$0xff] }
 0x29d   : > { %9272 = vmatpush1.bf16.msra.mxu0 %v13478_v6  ;;  %v2665_v6 = vld [vmem:[#allocation2 + $0x1d1] sm:$0xff] }
 0x29e   : > { %9273 = vmatprep.subr.bf16.mxu0 %v13752_v0  ;;  %v2721_v5 = vpack.c.bf16 %v2665_v6, %v14962_v34 }
 0x2a0   : > { %9029 = vmatmul.mubr.bf16.gmra.mrb[12].mxu0 %v2717_v9  ;;  %v1240_v9 = vld [vmem:[#allocation2 + $0x22] sm:$0xff] }
 0x2a1   : > { %9036 = vmatprep.mubr.bf16.mxu0 %v2846_v24  ;;  %9274 = vmatpush1.bf16.msra.mxu0 %v13480_v45  ;;  %v1303_v24 = vpack.c.bf16 %v1240_v9, %v1239_v48  ;;  %v2850_v45 = vpack.c.bf16 %v14966_v12, %v14964_v19  ;;  %v13481_v48 = vld [vmem:[#allocation7 + $0x190] sm:$0xff]  }
 0x2a2   : > { %9275 = vmatprep.subr.bf16.mxu0 %v13752_v0  ;;  %7206 = vmatmul.mubr.bf16.gmra.mrb[112].mxu1 %v946_v58  ;;  %v1241_v58 = vld [vmem:[#allocation2 + $0x32] sm:$0xff] }
 0x2a3   : > { %7213 = vmatprep.mubr.bf16.mxu1 %v1076_v20  ;;  %v1175_v20 = vpack.c.bf16 %v1112_v16, %v1111_v30  ;;  %v1304_v26 = vpack.c.bf16 %v1242_v53, %v1241_v58  ;;  %v1115_v9 = vld [vmem:[#allocation2 + $0x51] sm:$0xff]  ;;  %v1246_v30 = vld [vmem:[#allocation2 + $0x82] sm:$0xff] }
 0x2a4   : > { %v13483_v16 = vld [vmem:[#allocation7 + $0x198] sm:$0xff]   ;;  %v15005_v58 = vld [vmem:[#allocation2 + $0x262] sm:$0xff] }
 0x2a5   : > { %9276 = vmatpush1.bf16.msra.mxu0 %v13482_v43  ;;  %v14976_v43 = vld [vmem:[#allocation2 + $0x211] sm:$0xff] }
 0x2a6   : > { %9277 = vmatprep.subr.bf16.mxu0 %v13752_v0  ;;  %v2801_v53 = vld [vmem:[#allocation2 + $0x272] sm:$0xff] }
 0x2a8   : > { %9037 = vmatmul.mubr.bf16.gmra.mrb[16].mxu0 %v2718_v38  ;;  %v14980_v38 = vld [vmem:[#allocation2 + $0x232] sm:$0xff] }
 0x2a9   : > { %9044 = vmatprep.mubr.bf16.mxu0 %v2847_v60  ;;  %9278 = vmatpush1.bf16.msra.mxu0 %v13484_v25  ;;  %v2722_v60 = vpack.c.bf16 %v14976_v43, %v14974_v13  ;;  %v13477_v25 = vld [vmem:[#allocation7 + $0x180] sm:$0xff]   ;;  %v2851_v37 = vpack.c.bf16 %v14980_v38, %v14978_v10 }
 0x2aa   : > { %9279 = vmatprep.subr.bf16.mxu0 %v13752_v0  ;;  %7214 = vmatmul.mubr.bf16.gmra.mrb[116].mxu1 %v947_v51  ;;  %v1114_v51 = vld [vmem:[#allocation2 + $0x41] sm:$0xff] }
 0x2ab   : > { %7221 = vmatprep.mubr.bf16.mxu1 %v1077_v23  ;;  %v13479_v23 = vld [vmem:[#allocation7 + $0x188] sm:$0xff]  }
 0x2ad   : > { %9280 = vmatpush1.bf16.msra.mxu0 %v13486_v61  ;;  %v1113_v61 = vld [vmem:[#allocation2 + $0x31] sm:$0xff] }
 0x2ae   : > { %9281 = vmatprep.subr.bf16.mxu0 %v13752_v0 }
 0x2b0   : > { %9045 = vmatmul.mubr.bf16.gmra.mrb[20].mxu0 %v2719_v27  ;;  %v14986_v27 = vld [vmem:[#allocation2 + $0x221] sm:$0xff] }
 0x2b1   : > { %9052 = vmatprep.mubr.bf16.mxu0 %v2848_v44  ;;  %9282 = vmatpush1.bf16.msra.mxu0 %v13488_v62  ;;  %v13492_v44 = vld [vmem:[#allocation7 + $0x4e0] sm:$0xff]   ;;  %v14988_v62 = vld [vmem:[#allocation2 + $0x231] sm:$0xff] }
 0x2b2   : > { %9283 = vmatprep.subr.bf16.mxu0 %v13752_v0  ;;  %7222 = vmatmul.mubr.bf16.gmra.mrb[120].mxu1 %v948_v56  ;;  %v14990_v56 = vld [vmem:[#allocation2 + $0x242] sm:$0xff] }
 0x2b3   : > { %7229 = vmatprep.mubr.bf16.mxu1 %v1078_v17  ;;  %v1176_v17 = vpack.c.bf16 %v1114_v51, %v1113_v61  ;;  %v1117_v61 = vld [vmem:[#allocation2 + $0x71] sm:$0xff]  ;;  %v1118_v51 = vld [vmem:[#allocation2 + $0x81] sm:$0xff] }
 0x2b5   : > { %9284 = vmatpush1.bf16.msra.mxu0 %v13490_v15  ;;  %v1305_v15 = vpack.c.bf16 %v1244_v52, %v1243_v32  ;;  %v2673_v32 = vld [vmem:[#allocation2 + $0x271] sm:$0xff] }
 0x2b6   : > { %9285 = vmatprep.subr.bf16.mxu0 %v13752_v0  ;;  %v1247_v52 = vld [vmem:[#allocation2 + $0xb2] sm:$0xff] }
 0x2b8   : > { %9053 = vmatmul.mubr.bf16.gmra.mrb[24].mxu0 %v2720_v1  ;;  %v14992_v1 = vld [vmem:[#allocation2 + $0x252] sm:$0xff] }
 0x2b9   : > { %9060 = vmatprep.mubr.bf16.mxu0 %v2849_v35  ;;  %9286 = vmatpush1.bf16.msra.mxu0 %v13492_v44  ;;  %v2723_v35 = vpack.c.bf16 %v14988_v62, %v14986_v27  ;;  %v2852_v6 = vpack.c.bf16 %v14992_v1, %v14990_v56  ;;  %v13494_v44 = vld [vmem:[#allocation7 + $0x4e8] sm:$0xff]  }
 0x2ba   : > { %7230 = vmatmul.mubr.bf16.gmra.mrb[124].mxu1 %v949_v46  ;;  %9287 = vmatprep.subr.bf16.mxu0 %v13752_v0  ;;  %v1116_v46 = vld [vmem:[#allocation2 + $0x61] sm:$0xff] }
 0x2bb   : > { %7270 = vmatprep.mubr.bf16.mxu1 %v1303_v24  ;;  %v15003_v24 = vld [vmem:[#allocation2 + $0x251] sm:$0xff] }
 0x2bd   : > { %9288 = vmatpush1.bf16.msra.mxu0 %v13494_v44  ;;  %v13496_v44 = vld [vmem:[#allocation7 + $0x4f0] sm:$0xff]  }
 0x2be   : > { %9289 = vmatprep.subr.bf16.mxu0 %v13752_v0 }
 0x2c0   : > { %9061 = vmatmul.mubr.bf16.gmra.mrb[28].mxu0 %v2721_v5  ;;  %v15001_v5 = vld [vmem:[#allocation2 + $0x241] sm:$0xff] }
 0x2c1   : > { %9068 = vmatprep.mubr.bf16.mxu0 %v2850_v45  ;;  %v1245_v45 = vld [vmem:[#allocation2 + $0x72] sm:$0xff]  ;;  %9290 = vmatpush1.bf16.msra.mxu0 %v13496_v44 }
 0x2c2   : > { %7271 = vmatmul.mubr.bf16.vlgmr.msra.gmra.mrb[0].mxu1 %v1175_v20  ;;  %v1177_v20 = vpack.c.bf16 %v1116_v46, %v1115_v9  ;;  %v1307_v9 = vpack.c.bf16 %v14851_v50, %v1247_v52  ;;  %v15031_v50 = vld [vmem:[#allocation2 + $0x2d2] sm:$0xff]  ;;  %v13495_v52 = vld [vmem:[#allocation7 + $0x1c8] sm:$0xff]   ;;  %9291 = vmatprep.subr.bf16.mxu0 %v13752_v0 }
 0x2c3   : > { %7528 = vmatpush1.bf16.msra.mxu1 %v13477_v25  ;;  %7278 = vmatprep.mubr.bf16.mxu1 %v1304_v26  ;;  %v1306_v25 = vpack.c.bf16 %v1246_v30, %v1245_v45  ;;  %v2853_v26 = vpack.c.bf16 %v2801_v53, %v15005_v58  ;;  %v13489_v45 = vld [vmem:[#allocation7 + $0x1b0] sm:$0xff]  }
 0x2c4   : > { %7529 = vmatprep.subr.bf16.mxu1 %v13752_v0  ;;  %v1119_v30 = vld [vmem:[#allocation2 + $0xb1] sm:$0xff] }
 0x2c5   : > { %v15027_v53 = vld [vmem:[#allocation2 + $0x2b1] sm:$0xff] }
 0x2c6   : > { %v1255_v44 = vld [vmem:[#allocation2 + $0x152] sm:$0xff] }
 0x2c7   : > { %7530 = vmatpush1.bf16.msra.mxu1 %v13479_v23  ;;  %v15012_v23 = vld [vmem:[#allocation2 + $0x261] sm:$0xff] }
 0x2c8   : > { %9069 = vmatmul.mubr.bf16.gmra.mrb[32].mxu0 %v2722_v60  ;;  %7531 = vmatprep.subr.bf16.mxu1 %v13752_v0  ;;  %v2724_v60 = vpack.c.bf16 %v15003_v24, %v15001_v5 }
 0x2c9   : > { %9076 = vmatprep.mubr.bf16.mxu0 %v2851_v37  ;;  %v13485_v37 = vld [vmem:[#allocation7 + $0x1a0] sm:$0xff]  }
 0x2ca   : > { %7279 = vmatmul.mubr.bf16.gmra.mrb[4].mxu1 %v1176_v17  ;;  %v13487_v17 = vld [vmem:[#allocation7 + $0x1a8] sm:$0xff]  }
 0x2cb   : > { %7286 = vmatprep.mubr.bf16.mxu1 %v1305_v15  ;;  %7532 = vmatpush1.bf16.msra.mxu1 %v13481_v48  ;;  %v15016_v15 = vld [vmem:[#allocation2 + $0x2b2] sm:$0xff]  ;;  %v2725_v48 = vpack.c.bf16 %v2673_v32, %v15012_v23  ;;  %v15042_v32 = vld [vmem:[#allocation2 + $0x2c1] sm:$0xff] }
 0x2cc   : > { %7533 = vmatprep.subr.bf16.mxu1 %v13752_v0 }
 0x2cf   : > { %7534 = vmatpush1.bf16.msra.mxu1 %v13483_v16  ;;  %v15025_v16 = vld [vmem:[#allocation2 + $0x2a1] sm:$0xff] }
 0x2d0   : > { %9077 = vmatmul.mubr.bf16.gmra.mrb[36].mxu0 %v2723_v35  ;;  %7535 = vmatprep.subr.bf16.mxu1 %v13752_v0  ;;  %v15014_v35 = vld [vmem:[#allocation2 + $0x2a2] sm:$0xff] }
 0x2d1   : > { %9084 = vmatprep.mubr.bf16.mxu0 %v2852_v6  ;;  %v1178_v6 = vpack.c.bf16 %v1118_v51, %v1117_v61  ;;  %v2854_v46 = vpack.c.bf16 %v15016_v15, %v15014_v35  ;;  %v13493_v51 = vld [vmem:[#allocation7 + $0x1c0] sm:$0xff]  }
 0x2d2   : > { %7287 = vmatmul.mubr.bf16.gmra.mrb[8].mxu1 %v1177_v20  ;;  %v13491_v20 = vld [vmem:[#allocation7 + $0x1b8] sm:$0xff]  }
 0x2d3   : > { %7294 = vmatprep.mubr.bf16.mxu1 %v1306_v25  ;;  %7536 = vmatpush1.bf16.msra.mxu1 %v13485_v37  ;;  %v1179_v25 = vpack.c.bf16 %v14860_v4, %v1119_v30  ;;  %v1308_v37 = vpack.c.bf16 %v14864_v42, %v14853_v18  ;;  %v15044_v4 = vld [vmem:[#allocation2 + $0x2d1] sm:$0xff]  ;;  %v1180_v42 = vpack.c.bf16 %v14874_v29, %v14862_v7  ;;  %v15061_v7 = vld [vmem:[#allocation2 + $0x2e1] sm:$0xff] }
 0x2d4   : > { %7537 = vmatprep.subr.bf16.mxu1 %v13752_v0  ;;  %v15048_v18 = vld [vmem:[#allocation2 + $0x2f2] sm:$0xff] }
 0x2d5   : > { %v15063_v29 = vld [vmem:[#allocation2 + $0x2f1] sm:$0xff] }
 0x2d6   : > { %v2809_v30 = vld [vmem:[#allocation2 + $0x312] sm:$0xff] }
 0x2d7   : > { %7538 = vmatpush1.bf16.msra.mxu1 %v13487_v17  ;;  %v15046_v17 = vld [vmem:[#allocation2 + $0x2e2] sm:$0xff] }
 0x2d8   : > { %9085 = vmatmul.mubr.bf16.gmra.mrb[40].mxu0 %v2724_v60  ;;  %7539 = vmatprep.subr.bf16.mxu1 %v13752_v0  ;;  %v15029_v60 = vld [vmem:[#allocation2 + $0x2c2] sm:$0xff] }
 0x2d9   : > { %9092 = vmatprep.mubr.bf16.mxu0 %v2853_v26  ;;  %v2726_v26 = vpack.c.bf16 %v15027_v53, %v15025_v16  ;;  %v2855_v61 = vpack.c.bf16 %v15031_v50, %v15029_v60 }
 0x2da   : > { %7295 = vmatmul.mubr.bf16.gmra.mrb[12].mxu1 %v1178_v6  ;;  %v2727_v6 = vpack.c.bf16 %v15044_v4, %v15042_v32 }
 0x2db   : > { %7302 = vmatprep.mubr.bf16.mxu1 %v1307_v9  ;;  %7540 = vmatpush1.bf16.msra.mxu1 %v13489_v45  ;;  %v2856_v9 = vpack.c.bf16 %v15048_v18, %v15046_v17  ;;  %v15065_v45 = vld [vmem:[#allocation2 + $0x302] sm:$0xff] }
 0x2dc   : > { %7541 = vmatprep.subr.bf16.mxu1 %v13752_v0 }
 0x2df   : > { %7542 = vmatpush1.bf16.msra.mxu1 %v13491_v20  ;;  %v1310_v20 = vpack.c.bf16 %v14895_v47, %v14880_v39  ;;  %v1182_v39 = vpack.c.bf16 %v14905_v3, %v14893_v28  ;;  %v1311_v47 = vpack.c.bf16 %v14907_v59, %v1255_v44  ;;  %v15093_v28 = vld [vmem:[#allocation2 + $0x351] sm:$0xff]  ;;  %v15095_v3 = vld [vmem:[#allocation2 + $0x362] sm:$0xff] }
 0x2e0   : > { %9093 = vmatmul.mubr.bf16.gmra.mrb[44].mxu0 %v2725_v48  ;;  %7543 = vmatprep.subr.bf16.mxu1 %v13752_v0  ;;  %v1309_v48 = vpack.c.bf16 %v14878_v40, %v14866_v21  ;;  %v1181_v21 = vpack.c.bf16 %v14891_v54, %v14876_v31  ;;  %v2728_v40 = vpack.c.bf16 %v15063_v29, %v15061_v7  ;;  %v15079_v31 = vld [vmem:[#allocation2 + $0x352] sm:$0xff]  ;;  %v15124_v44 = vld [vmem:[#allocation2 + $0x381] sm:$0xff] }
 0x2e1   : > { %9100 = vmatprep.mubr.bf16.mxu0 %v2854_v46  ;;  %v13497_v46 = vld [vmem:[#allocation7 + $0x1d0] sm:$0xff]  }
 0x2e2   : > { %7303 = vmatmul.mubr.bf16.gmra.mrb[16].mxu1 %v1179_v25  ;;  %v2857_v25 = vpack.c.bf16 %v2809_v30, %v15065_v45  ;;  %v1312_v30 = vpack.c.bf16 %v14922_v14, %v14909_v2  ;;  %v1313_v14 = vpack.c.bf16 %v14937_v36, %v14924_v57  ;;  %v1314_v36 = vpack.c.bf16 %v14953_v55, %v14939_v11 }
 0x2e3   : > { %7310 = vmatprep.mubr.bf16.mxu1 %v1308_v37  ;;  %7544 = vmatpush1.bf16.msra.mxu1 %v13493_v51  ;;  %v13499_v37 = vld [vmem:[#allocation7 + $0x1d8] sm:$0xff]  }
 0x2e4   : > { %7545 = vmatprep.subr.bf16.mxu1 %v13752_v0  ;;  %v2681_v51 = vld [vmem:[#allocation2 + $0x311] sm:$0xff] }
 0x2e7   : > { %7546 = vmatpush1.bf16.msra.mxu1 %v13495_v52  ;;  %v15077_v52 = vld [vmem:[#allocation2 + $0x342] sm:$0xff] }
 0x2e8   : > { %9101 = vmatmul.mubr.bf16.gmra.mrb[48].mxu0 %v2726_v26  ;;  %7547 = vmatprep.subr.bf16.mxu1 %v13752_v0  ;;  %v13498_v26 = vld [vmem:[#allocation7 + $0x4f8] sm:$0xff]  }
 0x2e9   : > { %9108 = vmatprep.mubr.bf16.mxu0 %v2855_v61  ;;  %v15075_v61 = vld [vmem:[#allocation2 + $0x301] sm:$0xff]  ;;  %9292 = vmatpush1.bf16.msra.mxu0 %v13498_v26 }
 0x2ea   : > { %7311 = vmatmul.mubr.bf16.gmra.mrb[20].mxu1 %v1180_v42  ;;  %9550 = vmatprep.subr.bf16.mxu0 %v13752_v0  ;;  %v2729_v54 = vpack.c.bf16 %v2681_v51, %v15075_v61  ;;  %v2858_v42 = vpack.c.bf16 %v15079_v31, %v15077_v52  ;;  %v15111_v26 = vld [vmem:[#allocation2 + $0x382] sm:$0xff] }
 0x2eb   : > { %7318 = vmatprep.mubr.bf16.mxu1 %v1309_v48  ;;  %7548 = vmatpush1.bf16.msra.mxu1 %v13497_v46  ;;  %v15091_v48 = vld [vmem:[#allocation2 + $0x341] sm:$0xff] }
 0x2ec   : > { %7549 = vmatprep.subr.bf16.mxu1 %v13752_v0  ;;  %v2730_v46 = vpack.c.bf16 %v15093_v28, %v15091_v48 }
 0x2ef   : > { %7550 = vmatpush1.bf16.msra.mxu1 %v13499_v37  ;;  %v1184_v37 = vpack.c.bf16 %v14933_v49, %v14920_v8  ;;  %v15128_v8 = vld [vmem:[#allocation2 + $0x3a2] sm:$0xff]  ;;  %v2817_v49 = vld [vmem:[#allocation2 + $0x3b2] sm:$0xff] }
 0x2f0   : > { %9109 = vmatmul.mubr.bf16.gmra.mrb[52].mxu0 %v2727_v6  ;;  %7551 = vmatprep.subr.bf16.mxu1 %v13752_v0  ;;  %v15089_v6 = vld [vmem:[#allocation2 + $0x151] sm:$0xff] }
 0x2f1   : > { %9116 = vmatprep.mubr.bf16.mxu0 %v2856_v9  ;;  %v15097_v9 = vld [vmem:[#allocation2 + $0x372] sm:$0xff]  ;;  %v1183_v59 = vpack.c.bf16 %v14918_v33, %v15089_v6 }
 0x2f2   : > { %7319 = vmatmul.mubr.bf16.gmra.mrb[24].mxu1 %v1181_v21  ;;  %v2859_v21 = vpack.c.bf16 %v15097_v9, %v15095_v3  ;;  %v15113_v33 = vld [vmem:[#allocation2 + $0x392] sm:$0xff] }
 0x2f3   : > { %7326 = vmatprep.mubr.bf16.mxu1 %v1310_v20  ;;  %v15109_v20 = vld [vmem:[#allocation2 + $0x371] sm:$0xff]  ;;  %v2860_v51 = vpack.c.bf16 %v15113_v33, %v15111_v26 }
 0x2f8   : > { %9117 = vmatmul.mubr.bf16.gmra.mrb[56].mxu0 %v2728_v40  ;;  %v15107_v40 = vld [vmem:[#allocation2 + $0x361] sm:$0xff] }
 0x2f9   : > { %9124 = vmatprep.mubr.bf16.mxu0 %v2857_v25  ;;  %v13501_v25 = vld [vmem:[#allocation7 + $0x1e0] sm:$0xff]   ;;  %v2731_v2 = vpack.c.bf16 %v15109_v20, %v15107_v40 }
 0x2fa   : > { %7327 = vmatmul.mubr.bf16.gmra.mrb[28].mxu1 %v1182_v39  ;;  %v15126_v39 = vld [vmem:[#allocation2 + $0x391] sm:$0xff] }
 0x2fb   : > { %7334 = vmatprep.mubr.bf16.mxu1 %v1311_v47  ;;  %7552 = vmatpush1.bf16.msra.mxu1 %v13501_v25  ;;  %v2732_v57 = vpack.c.bf16 %v15126_v39, %v15124_v44  ;;  %v2861_v47 = vpack.c.bf16 %v2817_v49, %v15128_v8  ;;  %v1316_v49 = vpack.c.bf16 %v14978_v10, %v14966_v12 }
 0x2fc   : > { %7553 = vmatprep.subr.bf16.mxu1 %v13752_v0  ;;  %v1188_v12 = vpack.c.bf16 %v14986_v27, %v14976_v43  ;;  %v15189_v43 = vld [vmem:[#allocation2 + $0x442] sm:$0xff]  ;;  %v2825_v27 = vld [vmem:[#allocation2 + $0x452] sm:$0xff] }
 0x300   : > { %9125 = vmatmul.mubr.bf16.gmra.mrb[60].mxu0 %v2729_v54  ;;  %v1185_v54 = vpack.c.bf16 %v14949_v63, %v14935_v22  ;;  %v15141_v22 = vld [vmem:[#allocation2 + $0x3f2] sm:$0xff]  ;;  %v1186_v63 = vpack.c.bf16 %v14962_v34, %v14951_v41  ;;  %v15156_v41 = vld [vmem:[#allocation2 + $0x402] sm:$0xff] }
 0x301   : > { %9132 = vmatprep.mubr.bf16.mxu0 %v2858_v42  ;;  %v13503_v42 = vld [vmem:[#allocation7 + $0x1e8] sm:$0xff]   ;;  %v15158_v34 = vld [vmem:[#allocation2 + $0x412] sm:$0xff] }
 0x302   : > { %7335 = vmatmul.mubr.bf16.gmra.mrb[32].mxu1 %v1183_v59  ;;  %v15137_v59 = vld [vmem:[#allocation2 + $0x3a1] sm:$0xff] }
 0x303   : > { %7342 = vmatprep.mubr.bf16.mxu1 %v1312_v30  ;;  %v1263_v30 = vld [vmem:[#allocation2 + $0x1f2] sm:$0xff]  ;;  %7554 = vmatpush1.bf16.msra.mxu1 %v13503_v42  ;;  %v15172_v42 = vld [vmem:[#allocation2 + $0x422] sm:$0xff] }
 0x304   : > { %7555 = vmatprep.subr.bf16.mxu1 %v13752_v0  ;;  %v1315_v55 = vpack.c.bf16 %v14964_v19, %v1263_v30 }
 0x308   : > { %9133 = vmatmul.mubr.bf16.gmra.mrb[64].mxu0 %v2730_v46  ;;  %v2689_v46 = vld [vmem:[#allocation2 + $0x3b1] sm:$0xff] }
 0x309   : > { %9140 = vmatprep.mubr.bf16.mxu0 %v2859_v21  ;;  %v15139_v21 = vld [vmem:[#allocation2 + $0x3e2] sm:$0xff]  ;;  %v2733_v11 = vpack.c.bf16 %v2689_v46, %v15137_v59  ;;  %v1317_v46 = vpack.c.bf16 %v14990_v56, %v14980_v38  ;;  %v1318_v56 = vpack.c.bf16 %v15005_v58, %v14992_v1 }
 0x30a   : > { %7343 = vmatmul.mubr.bf16.gmra.mrb[36].mxu1 %v1184_v37  ;;  %v2862_v25 = vpack.c.bf16 %v15141_v22, %v15139_v21  ;;  %v15150_v37 = vld [vmem:[#allocation2 + $0x1f1] sm:$0xff] }
 0x30b   : > { %7350 = vmatprep.mubr.bf16.mxu1 %v1313_v14  ;;  %v15154_v14 = vld [vmem:[#allocation2 + $0x3f1] sm:$0xff]  ;;  %v1187_v19 = vpack.c.bf16 %v14974_v13, %v15150_v37 }
 0x30c   : > { %v15174_v13 = vld [vmem:[#allocation2 + $0x432] sm:$0xff] }
 0x30d   : > { %v2864_v30 = vpack.c.bf16 %v15174_v13, %v15172_v42 }
 0x310   : > { %9141 = vmatmul.mubr.bf16.gmra.mrb[68].mxu0 %v2731_v2  ;;  %v15152_v2 = vld [vmem:[#allocation2 + $0x3e1] sm:$0xff] }
 0x311   : > { %9148 = vmatprep.mubr.bf16.mxu0 %v2860_v51  ;;  %v2734_v51 = vpack.c.bf16 %v15154_v14, %v15152_v2 }
 0x312   : > { %7351 = vmatmul.mubr.bf16.gmra.mrb[40].mxu1 %v1185_v54  ;;  %v2863_v54 = vpack.c.bf16 %v15158_v34, %v15156_v41 }
 0x313   : > { %7358 = vmatprep.mubr.bf16.mxu1 %v1314_v36  ;;  %v15168_v36 = vld [vmem:[#allocation2 + $0x401] sm:$0xff] }
 0x318   : > { %9149 = vmatmul.mubr.bf16.gmra.mrb[72].mxu0 %v2732_v57  ;;  %v13505_v57 = vld [vmem:[#allocation7 + $0x1f0] sm:$0xff]  }
 0x319   : > { %9156 = vmatprep.mubr.bf16.mxu0 %v2861_v47  ;;  %v15170_v47 = vld [vmem:[#allocation2 + $0x411] sm:$0xff]  ;;  %7556 = vmatpush1.bf16.msra.mxu1 %v13505_v57  ;;  %v15200_v57 = vld [vmem:[#allocation2 + $0x482] sm:$0xff] }
 0x31a   : > { %7359 = vmatmul.mubr.bf16.gmra.mrb[44].mxu1 %v1186_v63  ;;  %7557 = vmatprep.subr.bf16.mxu1 %v13752_v0  ;;  %v2735_v10 = vpack.c.bf16 %v15170_v47, %v15168_v36  ;;  %v15185_v63 = vld [vmem:[#allocation2 + $0x421] sm:$0xff] }
 0x31b   : > { %7366 = vmatprep.mubr.bf16.mxu1 %v1315_v55  ;;  %v1189_v55 = vpack.c.bf16 %v15001_v5, %v14988_v62  ;;  %v15202_v62 = vld [vmem:[#allocation2 + $0x492] sm:$0xff]  ;;  %v1190_v5 = vpack.c.bf16 %v15012_v23, %v15003_v24  ;;  %v15217_v24 = vld [vmem:[#allocation2 + $0x4a2] sm:$0xff] }
 0x31c   : > { %v15219_v23 = vld [vmem:[#allocation2 + $0x4b2] sm:$0xff] }
 0x320   : > { %9157 = vmatmul.mubr.bf16.gmra.mrb[76].mxu0 %v2733_v11  ;;  %v15187_v11 = vld [vmem:[#allocation2 + $0x431] sm:$0xff] }
 0x321   : > { %9164 = vmatprep.mubr.bf16.mxu0 %v2862_v25  ;;  %v2736_v38 = vpack.c.bf16 %v15187_v11, %v15185_v63  ;;  %v2865_v25 = vpack.c.bf16 %v2825_v27, %v15189_v43 }
 0x322   : > { %7367 = vmatmul.mubr.bf16.gmra.mrb[48].mxu1 %v1187_v19  ;;  %v13507_v19 = vld [vmem:[#allocation7 + $0x1f8] sm:$0xff]  }
 0x323   : > { %7374 = vmatprep.mubr.bf16.mxu1 %v1316_v49  ;;  %v2697_v49 = vld [vmem:[#allocation2 + $0x451] sm:$0xff]  ;;  %7558 = vmatpush1.bf16.msra.mxu1 %v13507_v19  ;;  %v15233_v19 = vld [vmem:[#allocation2 + $0x4c2] sm:$0xff] }
 0x324   : > { %7816 = vmatprep.subr.bf16.mxu1 %v13752_v0 }
 0x328   : > { %9165 = vmatmul.mubr.bf16.gmra.mrb[80].mxu0 %v2734_v51  ;;  %v15198_v51 = vld [vmem:[#allocation2 + $0x441] sm:$0xff] }
 0x329   : > { %9172 = vmatprep.mubr.bf16.mxu0 %v2863_v54  ;;  %v1271_v54 = vld [vmem:[#allocation2 + $0x292] sm:$0xff]  ;;  %v2737_v1 = vpack.c.bf16 %v2697_v49, %v15198_v51  ;;  %v1192_v49 = vpack.c.bf16 %v15042_v32, %v15027_v53  ;;  %v1193_v32 = vpack.c.bf16 %v15061_v7, %v15044_v4  ;;  %v1194_v4 = vpack.c.bf16 %v15075_v61, %v15063_v29 }
 0x32a   : > { %7375 = vmatmul.mubr.bf16.gmra.mrb[52].mxu1 %v1188_v12  ;;  %v1319_v58 = vpack.c.bf16 %v15014_v35, %v1271_v54  ;;  %v2866_v12 = vpack.c.bf16 %v15202_v62, %v15200_v57  ;;  %v2833_v53 = vld [vmem:[#allocation2 + $0x4f2] sm:$0xff]  ;;  %v1324_v29 = vpack.c.bf16 %v15095_v3, %v15079_v31  ;;  %v2710_v31 = vld [vmem:[#allocation2 + $0x561] sm:$0xff] }
 0x32b   : > { %7382 = vmatprep.mubr.bf16.mxu1 %v1317_v46  ;;  %v15213_v46 = vld [vmem:[#allocation2 + $0x481] sm:$0xff]  ;;  %v2711_v3 = vld [vmem:[#allocation2 + $0x571] sm:$0xff] }
 0x330   : > { %9173 = vmatmul.mubr.bf16.gmra.mrb[84].mxu0 %v2735_v10  ;;  %v15211_v10 = vld [vmem:[#allocation2 + $0x291] sm:$0xff] }
 0x331   : > { %9180 = vmatprep.mubr.bf16.mxu0 %v2864_v30  ;;  %v15215_v30 = vld [vmem:[#allocation2 + $0x491] sm:$0xff]  ;;  %v1191_v35 = vpack.c.bf16 %v15025_v16, %v15211_v10 }
 0x332   : > { %7383 = vmatmul.mubr.bf16.gmra.mrb[56].mxu1 %v1189_v55  ;;  %v2738_v27 = vpack.c.bf16 %v15215_v30, %v15213_v46  ;;  %v1320_v55 = vpack.c.bf16 %v15029_v60, %v15016_v15  ;;  %v15235_v16 = vld [vmem:[#allocation2 + $0x4d2] sm:$0xff]  ;;  %v1321_v60 = vpack.c.bf16 %v15046_v17, %v15031_v50  ;;  %v1322_v17 = vpack.c.bf16 %v15065_v45, %v15048_v18 }
 0x333   : > { %7390 = vmatprep.mubr.bf16.mxu1 %v1318_v56  ;;  %v15229_v56 = vld [vmem:[#allocation2 + $0x4a1] sm:$0xff]  ;;  %v2868_v54 = vpack.c.bf16 %v15235_v16, %v15233_v19  ;;  %v15264_v45 = vld [vmem:[#allocation2 + $0x331] sm:$0xff] }
 0x338   : > { %9181 = vmatmul.mubr.bf16.gmra.mrb[88].mxu0 %v2736_v38  ;;  %v2867_v38 = vpack.c.bf16 %v15219_v23, %v15217_v24 }
 0x339   : > { %9188 = vmatprep.mubr.bf16.mxu0 %v2865_v25  ;;  %v15231_v25 = vld [vmem:[#allocation2 + $0x4b1] sm:$0xff] }
 0x33a   : > { %7391 = vmatmul.mubr.bf16.gmra.mrb[60].mxu1 %v1190_v5  ;;  %v2739_v15 = vpack.c.bf16 %v15231_v25, %v15229_v56  ;;  %v15245_v5 = vld [vmem:[#allocation2 + $0x4c1] sm:$0xff] }
 0x33b   : > { %7398 = vmatprep.mubr.bf16.mxu1 %v1319_v58  ;;  %v15249_v58 = vld [vmem:[#allocation2 + $0x4e2] sm:$0xff] }
 0x340   : > { %9189 = vmatmul.mubr.bf16.gmra.mrb[92].mxu0 %v2737_v1  ;;  %v15247_v1 = vld [vmem:[#allocation2 + $0x4d1] sm:$0xff] }
 0x341   : > { %9196 = vmatprep.mubr.bf16.mxu0 %v2866_v12  ;;  %v2740_v50 = vpack.c.bf16 %v15247_v1, %v15245_v5  ;;  %v2869_v12 = vpack.c.bf16 %v2833_v53, %v15249_v58  ;;  %v2836_v53 = vld [vmem:[#allocation2 + $0x542] sm:$0xff] }
 0x342   : > { %7399 = vmatmul.mubr.bf16.gmra.mrb[64].mxu1 %v1191_v35  ;;  %v15258_v35 = vld [vmem:[#allocation2 + $0x4e1] sm:$0xff] }
 0x343   : > { %7406 = vmatprep.mubr.bf16.mxu1 %v1320_v55  ;;  %v1279_v55 = vld [vmem:[#allocation2 + $0x332] sm:$0xff] }
 0x348   : > { %9197 = vmatmul.mubr.bf16.gmra.mrb[96].mxu0 %v2738_v27  ;;  %v2705_v27 = vld [vmem:[#allocation2 + $0x4f1] sm:$0xff] }
 0x349   : > { %9204 = vmatprep.mubr.bf16.mxu0 %v2867_v38  ;;  %v2834_v38 = vld [vmem:[#allocation2 + $0x522] sm:$0xff]  ;;  %v2741_v7 = vpack.c.bf16 %v2705_v27, %v15258_v35 }
 0x34a   : > { %7407 = vmatmul.mubr.bf16.gmra.mrb[68].mxu1 %v1192_v49  ;;  %v2835_v49 = vld [vmem:[#allocation2 + $0x532] sm:$0xff]  ;;  %v2838_v27 = vld [vmem:[#allocation2 + $0x562] sm:$0xff] }
 0x34b   : > { %7414 = vmatprep.mubr.bf16.mxu1 %v1321_v60  ;;  %v2870_v18 = vpack.c.bf16 %v2835_v49, %v2834_v38  ;;  %v2706_v60 = vld [vmem:[#allocation2 + $0x521] sm:$0xff]  ;;  %v1196_v38 = vpack.c.bf16 %v15107_v40, %v15093_v28  ;;  %v1326_v28 = vpack.c.bf16 %v15128_v8, %v15113_v33  ;;  %v15282_v33 = vld [vmem:[#allocation2 + $0x3d1] sm:$0xff] }
 0x34c   : > { %v3037_v8 = vld [vmem:[#allocation2 + $0x161] sm:$0xff] }
 0x350   : > { %9205 = vmatmul.mubr.bf16.gmra.mrb[100].mxu0 %v2739_v15  ;;  %v1323_v15 = vpack.c.bf16 %v15077_v52, %v1279_v55  ;;  %v2708_v52 = vld [vmem:[#allocation2 + $0x541] sm:$0xff]  ;;  %v2839_v55 = vld [vmem:[#allocation2 + $0x572] sm:$0xff] }
 0x351   : > { %9212 = vmatprep.mubr.bf16.mxu0 %v2868_v54  ;;  %v2707_v54 = vld [vmem:[#allocation2 + $0x531] sm:$0xff] }
 0x352   : > { %7415 = vmatmul.mubr.bf16.gmra.mrb[72].mxu1 %v1193_v32  ;;  %v2837_v32 = vld [vmem:[#allocation2 + $0x552] sm:$0xff] }
 0x353   : > { %7422 = vmatprep.mubr.bf16.mxu1 %v1322_v17  ;;  %v2742_v17 = vpack.c.bf16 %v2707_v54, %v2706_v60  ;;  %v2871_v61 = vpack.c.bf16 %v2837_v32, %v2836_v53  ;;  %v2744_v60 = vpack.c.bf16 %v2711_v3, %v2710_v31  ;;  %v1287_v54 = vld [vmem:[#allocation2 + $0x3d2] sm:$0xff]  ;;  %v3035_v53 = vld [vmem:[#allocation2 + $0x141] sm:$0xff]  ;;  %v1198_v32 = vpack.c.bf16 %v15137_v59, %v15126_v39 }
 0x354   : > { %v1328_v59 = vpack.c.bf16 %v15156_v41, %v15141_v22  ;;  %v1329_v41 = vpack.c.bf16 %v15172_v42, %v15158_v34  ;;  %v2911_v31 = vld [vmem:[#allocation2 + $0x180] sm:$0xff]  ;;  %v2912_v3 = vld [vmem:[#allocation2 + $0x190] sm:$0xff]  ;;  %v1201_v34 = vpack.c.bf16 %v15185_v63, %v15170_v47  ;;  %v13510_v63 = vld [vmem:[#allocation7 + $0x528] sm:$0xff]  }
 0x355   : > { %v15309_v42 = vpack.c.bf16 %v2912_v3, %v2911_v31  ;;  %v1295_v47 = vld [vmem:[#allocation2 + $0x472] sm:$0xff]  ;;  %v1496_v3 = vld [vmem:[#allocation2 + $0x21] sm:$0xff] }
 0x356   : > { %v2922_v31 = vld [vmem:[#allocation2 + $0x250] sm:$0xff] }
 0x358   : > { %9213 = vmatmul.mubr.bf16.gmra.mrb[104].mxu0 %v2740_v50  ;;  %v1195_v50 = vpack.c.bf16 %v15091_v48, %v15264_v45  ;;  %v1325_v48 = vpack.c.bf16 %v15111_v26, %v15097_v9  ;;  %v2712_v9 = vld [vmem:[#allocation2 + $0x581] sm:$0xff]  ;;  %v2713_v26 = vld [vmem:[#allocation2 + $0x591] sm:$0xff] }
 0x359   : > { %9220 = vmatprep.mubr.bf16.mxu0 %v2869_v12  ;;  %v2709_v12 = vld [vmem:[#allocation2 + $0x551] sm:$0xff] }
 0x35a   : > { %7423 = vmatmul.mubr.bf16.gmra.mrb[76].mxu1 %v1194_v4  ;;  %v2743_v49 = vpack.c.bf16 %v2709_v12, %v2708_v52  ;;  %v2872_v4 = vpack.c.bf16 %v2839_v55, %v2838_v27  ;;  %v15286_v52 = vld [vmem:[#allocation2] sm:$0xff]  ;;  %v2910_v27 = vld [vmem:[#allocation2 + $0x170] sm:$0xff]  ;;  %v13502_v55 = vld [vmem:[#allocation7 + $0x508] sm:$0xff]  }
 0x35b   : > { %7430 = vmatprep.mubr.bf16.mxu1 %v1323_v15  ;;  %v2841_v15 = vld [vmem:[#allocation2 + $0x592] sm:$0xff]  ;;  %v2909_v12 = vld [vmem:[#allocation2 + $0x160] sm:$0xff] }
 0x35c   : > { %v15297_v22 = vpack.c.bf16 %v2910_v27, %v2909_v12  ;;  %v13520_v27 = vld [vmem:[#allocation7 + $0x550] sm:$0xff]  }
 0x360   : > { %9221 = vmatmul.mubr.bf16.gmra.mrb[108].mxu0 %v2741_v7  ;;  %v2840_v7 = vld [vmem:[#allocation2 + $0x582] sm:$0xff] }
 0x361   : > { %9228 = vmatprep.mubr.bf16.mxu0 %v2870_v18  ;;  %v1197_v18 = vpack.c.bf16 %v15124_v44, %v15109_v20  ;;  %v2873_v40 = vpack.c.bf16 %v2841_v15, %v2840_v7  ;;  %v3099_v20 = vpack.c.bf16 %v15089_v6, %v3035_v53  ;;  %v2908_v44 = vld [vmem:[#allocation2 + $0x150] sm:$0xff]  ;;  %v13500_v6 = vld [vmem:[#allocation7 + $0x500] sm:$0xff]   ;;  %v1330_v15 = vpack.c.bf16 %v15189_v43, %v15174_v13 }
 0x362   : > { %7431 = vmatmul.mubr.bf16.gmra.mrb[80].mxu1 %v1195_v50  ;;  %v2745_v50 = vpack.c.bf16 %v2713_v26, %v2712_v9  ;;  %v2971_v39 = vpack.c.bf16 %v2908_v44, %v15286_v52  ;;  %v3042_v7 = vld [vmem:[#allocation2 + $0x1b1] sm:$0xff]  ;;  %v3043_v9 = vld [vmem:[#allocation2 + $0x1e1] sm:$0xff]  ;;  %v1202_v13 = vpack.c.bf16 %v15198_v51, %v15187_v11  ;;  %v1331_v26 = vpack.c.bf16 %v15200_v57, %v1295_v47 }
 0x363   : > { %7438 = vmatprep.mubr.bf16.mxu1 %v1324_v29  ;;  %v3038_v29 = vld [vmem:[#allocation2 + $0x171] sm:$0xff]  ;;  %v3045_v51 = vld [vmem:[#allocation2 + $0x201] sm:$0xff] }
 0x364   : > { %v13512_v53 = vld [vmem:[#allocation7 + $0x530] sm:$0xff]   ;;  %v13514_v11 = vld [vmem:[#allocation7 + $0x538] sm:$0xff]  }
 0x368   : > { %9229 = vmatmul.mubr.bf16.gmra.mrb[112].mxu0 %v2742_v17  ;;  %v1327_v17 = vpack.c.bf16 %v15139_v21, %v1287_v54  ;;  %v15291_v21 = vpack.c.bf16 %v3038_v29, %v3037_v8  ;;  %v3103_v54 = vpack.c.bf16 %v15150_v37, %v3043_v9  ;;  %v13516_v8 = vld [vmem:[#allocation7 + $0x540] sm:$0xff]   ;;  %v13511_v9 = vld [vmem:[#allocation7 + $0x208] sm:$0xff]  }
 0x369   : > { %9236 = vmatprep.mubr.bf16.mxu0 %v2871_v61  ;;  %v1199_v61 = vpack.c.bf16 %v15152_v2, %v15282_v33  ;;  %v3039_v2 = vld [vmem:[#allocation2 + $0x181] sm:$0xff] }
 0x36a   : > { %7439 = vmatmul.mubr.bf16.gmra.mrb[84].mxu1 %v1196_v38  ;;  %v3040_v38 = vld [vmem:[#allocation2 + $0x191] sm:$0xff]  ;;  %v2917_v29 = vld [vmem:[#allocation2 + $0x200] sm:$0xff] }
 0x36b   : > { %7446 = vmatprep.mubr.bf16.mxu1 %v1325_v48  ;;  %v15301_v48 = vpack.c.bf16 %v3040_v38, %v3039_v2  ;;  %v2920_v2 = vld [vmem:[#allocation2 + $0x230] sm:$0xff]  ;;  %v1334_v38 = vpack.c.bf16 %v15249_v58, %v15235_v16 }
 0x370   : > { %9237 = vmatmul.mubr.bf16.gmra.mrb[116].mxu0 %v2743_v49  ;;  %v1200_v49 = vpack.c.bf16 %v15168_v36, %v15154_v14  ;;  %v13506_v14 = vld [vmem:[#allocation7 + $0x518] sm:$0xff]   ;;  %v3041_v36 = vld [vmem:[#allocation2 + $0x1a1] sm:$0xff] }
 0x371   : > { %9244 = vmatprep.mubr.bf16.mxu0 %v2872_v4  ;;  %v13504_v4 = vld [vmem:[#allocation7 + $0x510] sm:$0xff]  }
 0x372   : > { %7447 = vmatmul.mubr.bf16.gmra.mrb[88].mxu1 %v1197_v18  ;;  %v15313_v18 = vpack.c.bf16 %v3042_v7, %v3041_v36  ;;  %v3051_v36 = vld [vmem:[#allocation2 + $0x281] sm:$0xff]  ;;  %v2924_v7 = vld [vmem:[#allocation2 + $0x290] sm:$0xff] }
 0x373   : > { %7454 = vmatprep.mubr.bf16.mxu1 %v1326_v28  ;;  %v2913_v28 = vld [vmem:[#allocation2 + $0x1a0] sm:$0xff]  ;;  %v3107_v58 = vpack.c.bf16 %v15211_v10, %v3051_v36  ;;  %v13521_v36 = vld [vmem:[#allocation7 + $0x230] sm:$0xff]  }
 0x374   : > { %v2925_v10 = vld [vmem:[#allocation2 + $0x2a0] sm:$0xff] }
 0x378   : > { %9245 = vmatmul.mubr.bf16.gmra.mrb[120].mxu0 %v2744_v60  ;;  %v13508_v60 = vld [vmem:[#allocation7 + $0x520] sm:$0xff]  }
 0x379   : > { %9252 = vmatprep.mubr.bf16.mxu0 %v2873_v40  ;;  %v2914_v40 = vld [vmem:[#allocation2 + $0x1b0] sm:$0xff] }
 0x37a   : > { %7455 = vmatmul.mubr.bf16.gmra.mrb[92].mxu1 %v1198_v32  ;;  %v15321_v43 = vpack.c.bf16 %v2914_v40, %v2913_v28  ;;  %v15327_v32 = vld [vmem:[#allocation2 + $0x471] sm:$0xff]  ;;  %v13509_v40 = vld [vmem:[#allocation7 + $0x200] sm:$0xff]  }
 0x37b   : > { %7462 = vmatprep.mubr.bf16.mxu1 %v1327_v17  ;;  %v3046_v17 = vld [vmem:[#allocation2 + $0x211] sm:$0xff]  ;;  %v1203_v37 = vpack.c.bf16 %v15213_v46, %v15327_v32  ;;  %v13518_v46 = vld [vmem:[#allocation7 + $0x548] sm:$0xff]  }
 0x37c   : > { %v15335_v44 = vpack.c.bf16 %v3046_v17, %v3045_v51  ;;  %v3054_v28 = vld [vmem:[#allocation2 + $0x2b1] sm:$0xff] }
 0x380   : > { %9253 = vmatmul.mubr.bf16.gmra.mrb[124].mxu0 %v2745_v50  ;;  %v2916_v50 = vld [vmem:[#allocation2 + $0x1f0] sm:$0xff] }
 0x381   : > { %9293 = vmatprep.mubr.bf16.mxu0 %v3099_v20  ;;  %v2975_v57 = vpack.c.bf16 %v2916_v50, %v15286_v52  ;;  %v1332_v20 = vpack.c.bf16 %v15217_v24, %v15202_v62  ;;  %v1204_v62 = vpack.c.bf16 %v15229_v56, %v15215_v30  ;;  %v3049_v30 = vld [vmem:[#allocation2 + $0x241] sm:$0xff]  ;;  %v3050_v56 = vld [vmem:[#allocation2 + $0x251] sm:$0xff] }
 0x382   : > { %7463 = vmatmul.mubr.bf16.gmra.mrb[96].mxu1 %v1199_v61  ;;  %v2918_v61 = vld [vmem:[#allocation2 + $0x210] sm:$0xff]  ;;  %v3055_v50 = vld [vmem:[#allocation2 + $0x2c1] sm:$0xff] }
 0x383   : > { %7470 = vmatprep.mubr.bf16.mxu1 %v1328_v59  ;;  %v3048_v59 = vld [vmem:[#allocation2 + $0x231] sm:$0xff]  ;;  %v15342_v24 = vpack.c.bf16 %v2918_v61, %v2917_v29  ;;  %v1502_v29 = vld [vmem:[#allocation2 + $0x81] sm:$0xff] }
 0x384   : > { %v1503_v61 = vld [vmem:[#allocation2 + $0x91] sm:$0xff] }
 0x388   : > { %9294 = vmatmul.mubr.bf16.vlgmr.msra.gmra.mrb[0].mxu0 %v2971_v39  ;;  %v3047_v39 = vld [vmem:[#allocation2 + $0x221] sm:$0xff] }
 0x389   : > { %9551 = vmatpush1.bf16.msra.mxu0 %v13500_v6  ;;  %9301 = vmatprep.mubr.bf16.mxu0 %v15291_v21  ;;  %v1333_v6 = vpack.c.bf16 %v15233_v19, %v15219_v23  ;;  %v15346_v12 = vpack.c.bf16 %v3048_v59, %v3047_v39  ;;  %v1205_v23 = vpack.c.bf16 %v15245_v5, %v15231_v25  ;;  %v3057_v39 = vld [vmem:[#allocation2 + $0x2e1] sm:$0xff]  ;;  %v3058_v59 = vld [vmem:[#allocation2 + $0x2f1] sm:$0xff] }
 0x38a   : > { %9552 = vmatprep.subr.bf16.mxu0 %v13752_v0  ;;  %7471 = vmatmul.mubr.bf16.gmra.mrb[100].mxu1 %v1200_v49  ;;  %v15358_v49 = vpack.c.bf16 %v3050_v56, %v3049_v30  ;;  %v1206_v25 = vpack.c.bf16 %v15258_v35, %v15247_v1  ;;  %v15371_v1 = vpack.c.bf16 %v15286_v52, %v15286_v52  ;;  %v2930_v30 = vld [vmem:[#allocation2 + $0x2f0] sm:$0xff]  ;;  %v13526_v56 = vld [vmem:[#allocation7 + $0x568] sm:$0xff]  }
 0x38b   : > { %7478 = vmatprep.mubr.bf16.mxu1 %v1329_v41  ;;  %v2921_v41 = vld [vmem:[#allocation2 + $0x240] sm:$0xff]  ;;  %v2979_v35 = vpack.c.bf16 %v2924_v7, %v15286_v52 }
 0x38c   : > { %v15365_v16 = vpack.c.bf16 %v2922_v31, %v2921_v41  ;;  %v13519_v41 = vld [vmem:[#allocation7 + $0x228] sm:$0xff]  }
 0x38d   : > { %9553 = vmatpush1.bf16.msra.mxu0 %v13502_v55  ;;  %v2919_v55 = vld [vmem:[#allocation2 + $0x220] sm:$0xff] }
 0x38e   : > { %9554 = vmatprep.subr.bf16.mxu0 %v13752_v0  ;;  %v15354_v19 = vpack.c.bf16 %v2920_v2, %v2919_v55  ;;  %v13517_v55 = vld [vmem:[#allocation7 + $0x220] sm:$0xff]  }
 0x38f   : > { %v2929_v2 = vld [vmem:[#allocation2 + $0x2e0] sm:$0xff] }
 0x390   : > { %9302 = vmatmul.mubr.bf16.gmra.mrb[4].mxu0 %v15297_v22  ;;  %v15399_v31 = vpack.c.bf16 %v2930_v30, %v2929_v2  ;;  %v1506_v7 = vld [vmem:[#allocation2 + $0xe1] sm:$0xff]  ;;  %v2936_v2 = vld [vmem:[#allocation2 + $0x370] sm:$0xff] }
 0x391   : > { %9309 = vmatprep.mubr.bf16.mxu0 %v15301_v48  ;;  %9555 = vmatpush1.bf16.msra.mxu0 %v13504_v4  ;;  %v13522_v4 = vld [vmem:[#allocation7 + $0x558] sm:$0xff]   ;;  %v1510_v30 = vld [vmem:[#allocation2 + $0x121] sm:$0xff] }
 0x392   : > { %9556 = vmatprep.subr.bf16.mxu0 %v13752_v0  ;;  %7479 = vmatmul.mubr.bf16.gmra.mrb[104].mxu1 %v1201_v34  ;;  %v1498_v34 = vld [vmem:[#allocation2 + $0x41] sm:$0xff] }
 0x393   : > { %7486 = vmatprep.mubr.bf16.mxu1 %v1330_v15  ;;  %v1499_v15 = vld [vmem:[#allocation2 + $0x51] sm:$0xff] }
 0x394   : > { %v1561_v47 = vpack.c.bf16 %v1499_v15, %v1498_v34  ;;  %v1507_v34 = vld [vmem:[#allocation2 + $0xf1] sm:$0xff] }
 0x395   : > { %9557 = vmatpush1.bf16.msra.mxu0 %v13506_v14  ;;  %v1497_v14 = vld [vmem:[#allocation2 + $0x31] sm:$0xff] }
 0x396   : > { %9558 = vmatprep.subr.bf16.mxu0 %v13752_v0  ;;  %v1560_v5 = vpack.c.bf16 %v1497_v14, %v1496_v3  ;;  %v13523_v15 = vld [vmem:[#allocation7 + $0x238] sm:$0xff]  }
 0x398   : > { %9310 = vmatmul.mubr.bf16.gmra.mrb[8].mxu0 %v15309_v42 }
 0x399   : > { %9317 = vmatprep.mubr.bf16.mxu0 %v15313_v18  ;;  %9559 = vmatpush1.bf16.msra.mxu0 %v13508_v60  ;;  %v3053_v60 = vld [vmem:[#allocation2 + $0x2a1] sm:$0xff] }
 0x39a   : > { %9560 = vmatprep.subr.bf16.mxu0 %v13752_v0  ;;  %7487 = vmatmul.mubr.bf16.gmra.mrb[108].mxu1 %v1202_v13  ;;  %v13524_v13 = vld [vmem:[#allocation7 + $0x560] sm:$0xff]  }
 0x39b   : > { %7494 = vmatprep.mubr.bf16.mxu1 %v1331_v26  ;;  %v2926_v26 = vld [vmem:[#allocation2 + $0x2b0] sm:$0xff] }
 0x39c   : > { %v15380_v51 = vpack.c.bf16 %v2926_v26, %v2925_v10  ;;  %v13525_v10 = vld [vmem:[#allocation7 + $0x240] sm:$0xff]  }
 0x39d   : > { %9561 = vmatpush1.bf16.msra.mxu0 %v13510_v63  ;;  %v15374_v63 = vpack.c.bf16 %v3054_v28, %v3053_v60  ;;  %v3061_v60 = vld [vmem:[#allocation2 + $0x341] sm:$0xff]  ;;  %v3062_v28 = vld [vmem:[#allocation2 + $0x351] sm:$0xff] }
 0x39e   : > { %9562 = vmatprep.subr.bf16.mxu0 %v13752_v0  ;;  %v2933_v26 = vld [vmem:[#allocation2 + $0x340] sm:$0xff] }
 0x3a0   : > { %9318 = vmatmul.mubr.bf16.gmra.mrb[12].mxu0 %v15321_v43 }
 0x3a1   : > { %9325 = vmatprep.mubr.bf16.mxu0 %v3103_v54  ;;  %9563 = vmatpush1.bf16.msra.mxu0 %v13512_v53  ;;  %v1500_v54 = vld [vmem:[#allocation2 + $0x61] sm:$0xff]  ;;  %v1501_v53 = vld [vmem:[#allocation2 + $0x71] sm:$0xff] }
 0x3a2   : > { %9564 = vmatprep.subr.bf16.mxu0 %v13752_v0  ;;  %7495 = vmatmul.mubr.bf16.gmra.mrb[112].mxu1 %v1203_v37  ;;  %v1562_v17 = vpack.c.bf16 %v1501_v53, %v1500_v54  ;;  %v2934_v54 = vld [vmem:[#allocation2 + $0x350] sm:$0xff] }
 0x3a3   : > { %7502 = vmatprep.mubr.bf16.mxu1 %v1332_v20  ;;  %v2927_v20 = vld [vmem:[#allocation2 + $0x2c0] sm:$0xff]  ;;  %v13528_v53 = vld [vmem:[#allocation7 + $0x570] sm:$0xff]  }
 0x3a5   : > { %9565 = vmatpush1.bf16.msra.mxu0 %v13514_v11  ;;  %v3056_v11 = vld [vmem:[#allocation2 + $0x2d1] sm:$0xff] }
 0x3a6   : > { %9566 = vmatprep.subr.bf16.mxu0 %v13752_v0  ;;  %v15382_v37 = vpack.c.bf16 %v3056_v11, %v3055_v50  ;;  %v1508_v50 = vld [vmem:[#allocation2 + $0x101] sm:$0xff]  ;;  %v1509_v11 = vld [vmem:[#allocation2 + $0x111] sm:$0xff] }
 0x3a8   : > { %9326 = vmatmul.mubr.bf16.gmra.mrb[16].mxu0 %v2975_v57  ;;  %v13513_v57 = vld [vmem:[#allocation7 + $0x210] sm:$0xff]  }
 0x3a9   : > { %9333 = vmatprep.mubr.bf16.mxu0 %v15335_v44  ;;  %9567 = vmatpush1.bf16.msra.mxu0 %v13516_v8  ;;  %v2928_v8 = vld [vmem:[#allocation2 + $0x2d0] sm:$0xff] }
 0x3aa   : > { %9568 = vmatprep.subr.bf16.mxu0 %v13752_v0  ;;  %7503 = vmatmul.mubr.bf16.gmra.mrb[116].mxu1 %v1204_v62  ;;  %v15389_v62 = vpack.c.bf16 %v2928_v8, %v2927_v20  ;;  %v3064_v20 = vld [vmem:[#allocation2 + $0x371] sm:$0xff] }
 0x3ab   : > { %7510 = vmatprep.mubr.bf16.mxu1 %v1333_v6  ;;  %v1563_v6 = vpack.c.bf16 %v1503_v61, %v1502_v29  ;;  %v15413_v29 = vpack.c.bf16 %v2934_v54, %v2933_v26  ;;  %v1566_v61 = vpack.c.bf16 %v1509_v11, %v1508_v50  ;;  %v13533_v26 = vld [vmem:[#allocation7 + $0x260] sm:$0xff]  }
 0x3ac   : > { %v3071_v54 = vld [vmem:[#allocation2 + $0x401] sm:$0xff] }
 0x3ad   : > { %9569 = vmatpush1.bf16.msra.mxu0 %v13518_v46  ;;  %v13515_v46 = vld [vmem:[#allocation7 + $0x218] sm:$0xff]   ;;  %v1518_v11 = vld [vmem:[#allocation2 + $0x1c1] sm:$0xff] }
 0x3ae   : > { %9570 = vmatprep.subr.bf16.mxu0 %v13752_v0 }
 0x3b0   : > { %9334 = vmatmul.mubr.bf16.gmra.mrb[20].mxu0 %v15342_v24 }
 0x3b1   : > { %9341 = vmatprep.mubr.bf16.mxu0 %v15346_v12  ;;  %9571 = vmatpush1.bf16.msra.mxu0 %v13520_v27  ;;  %v15391_v27 = vpack.c.bf16 %v3058_v59, %v3057_v39  ;;  %v13529_v39 = vld [vmem:[#allocation7 + $0x250] sm:$0xff]   ;;  %v1380_v59 = vld [vmem:[#allocation2 + $0x100] sm:$0xff] }
 0x3b2   : > { %9572 = vmatprep.subr.bf16.mxu0 %v13752_v0  ;;  %7511 = vmatmul.mubr.bf16.gmra.mrb[120].mxu1 %v1205_v23  ;;  %v1504_v23 = vld [vmem:[#allocation2 + $0xc1] sm:$0xff] }
 0x3b3   : > { %7518 = vmatprep.mubr.bf16.mxu1 %v1334_v38  ;;  %v1505_v38 = vld [vmem:[#allocation2 + $0xd1] sm:$0xff] }
 0x3b4   : > { %v1564_v3 = vpack.c.bf16 %v1505_v38, %v1504_v23  ;;  %v3065_v23 = vld [vmem:[#allocation2 + $0x381] sm:$0xff]  ;;  %v3066_v38 = vld [vmem:[#allocation2 + $0x391] sm:$0xff] }
 0x3b5   : > { %9573 = vmatpush1.bf16.msra.mxu0 %v13522_v4  ;;  %v3059_v4 = vld [vmem:[#allocation2 + $0x321] sm:$0xff] }
 0x3b6   : > { %9574 = vmatprep.subr.bf16.mxu0 %v13752_v0  ;;  %v3111_v14 = vpack.c.bf16 %v15264_v45, %v3059_v4 }
 0x3b8   : > { %9342 = vmatmul.mubr.bf16.gmra.mrb[24].mxu0 %v15354_v19 }
 0x3b9   : > { %9349 = vmatprep.mubr.bf16.mxu0 %v15358_v49  ;;  %9575 = vmatpush1.bf16.msra.mxu0 %v13524_v13  ;;  %v1379_v13 = vld [vmem:[#allocation2 + $0xf0] sm:$0xff] }
 0x3ba   : > { %7519 = vmatmul.mubr.bf16.gmra.mrb[124].mxu1 %v1206_v25  ;;  %9576 = vmatprep.subr.bf16.mxu0 %v13752_v0  ;;  %v1376_v25 = vld [vmem:[#allocation2 + $0xc0] sm:$0xff] }
 0x3bb   : > { %7559 = vmatprep.mubr.bf16.mxu1 %v1560_v5  ;;  %v1377_v5 = vld [vmem:[#allocation2 + $0xd0] sm:$0xff] }
 0x3bc   : > { %v1436_v45 = vpack.c.bf16 %v1377_v5, %v1376_v25  ;;  %v13530_v25 = vld [vmem:[#allocation7 + $0x578] sm:$0xff]  }
 0x3bd   : > { %9577 = vmatpush1.bf16.msra.mxu0 %v13526_v56  ;;  %v1511_v56 = vld [vmem:[#allocation2 + $0x131] sm:$0xff] }
 0x3be   : > { %9578 = vmatprep.subr.bf16.mxu0 %v13752_v0  ;;  %v13531_v5 = vld [vmem:[#allocation7 + $0x258] sm:$0xff]  }
 0x3c0   : > { %9350 = vmatmul.mubr.bf16.gmra.mrb[28].mxu0 %v15365_v16 }
 0x3c1   : > { %9357 = vmatprep.mubr.bf16.mxu0 %v3107_v58  ;;  %v2932_v58 = vld [vmem:[#allocation2 + $0x330] sm:$0xff]  ;;  %9579 = vmatpush1.bf16.msra.mxu0 %v13528_v53 }
 0x3c2   : > { %7560 = vmatmul.mubr.bf16.vlgmr.msra.gmra.mrb[0].mxu1 %v15371_v1  ;;  %9580 = vmatprep.subr.bf16.mxu0 %v13752_v0 }
 0x3c3   : > { %7817 = vmatpush1.bf16.msra.mxu1 %v13509_v40  ;;  %7567 = vmatprep.mubr.bf16.mxu1 %v1561_v47  ;;  %v1565_v40 = vpack.c.bf16 %v1507_v34, %v1506_v7  ;;  %v15407_v47 = vpack.c.bf16 %v3062_v28, %v3061_v60  ;;  %v2938_v7 = vld [vmem:[#allocation2 + $0x390] sm:$0xff]  ;;  %v3067_v34 = vld [vmem:[#allocation2 + $0x3c1] sm:$0xff] }
 0x3c4   : > { %7818 = vmatprep.subr.bf16.mxu1 %v13752_v0  ;;  %v3115_v28 = vpack.c.bf16 %v15282_v33, %v3067_v34  ;;  %v2941_v33 = vld [vmem:[#allocation2 + $0x3e0] sm:$0xff] }
 0x3c5   : > { %9581 = vmatpush1.bf16.msra.mxu0 %v13530_v25  ;;  %v2950_v25 = vld [vmem:[#allocation2 + $0x490] sm:$0xff]  ;;  %v1526_v34 = vld [vmem:[#allocation2 + $0x261] sm:$0xff] }
 0x3c6   : > { %9839 = vmatprep.subr.bf16.mxu0 %v13752_v0 }
 0x3c7   : > { %7819 = vmatpush1.bf16.msra.mxu1 %v13511_v9  ;;  %v1378_v9 = vld [vmem:[#allocation2 + $0xe0] sm:$0xff] }
 0x3c8   : > { %9358 = vmatmul.mubr.bf16.gmra.mrb[32].mxu0 %v2979_v35  ;;  %7820 = vmatprep.subr.bf16.mxu1 %v13752_v0  ;;  %v2983_v35 = vpack.c.bf16 %v2932_v58, %v15286_v52  ;;  %v1437_v8 = vpack.c.bf16 %v1379_v13, %v1378_v9  ;;  %v2937_v58 = vld [vmem:[#allocation2 + $0x380] sm:$0xff]  ;;  %v2942_v13 = vld [vmem:[#allocation2 + $0x3f0] sm:$0xff] }
 0x3c9   : > { %9365 = vmatprep.mubr.bf16.mxu0 %v15374_v63  ;;  %v15430_v60 = vpack.c.bf16 %v2938_v7, %v2937_v58  ;;  %v15441_v53 = vpack.c.bf16 %v2942_v13, %v2941_v33  ;;  %v2953_v33 = vld [vmem:[#allocation2 + $0x4c0] sm:$0xff]  ;;  %v2954_v13 = vld [vmem:[#allocation2 + $0x4d0] sm:$0xff] }
 0x3ca   : > { %7568 = vmatmul.mubr.bf16.gmra.mrb[4].mxu1 %v15371_v1 }
 0x3cb   : > { %7575 = vmatprep.mubr.bf16.mxu1 %v1562_v17  ;;  %7821 = vmatpush1.bf16.msra.mxu1 %v13513_v57  ;;  %v13527_v17 = vld [vmem:[#allocation7 + $0x248] sm:$0xff]  }
 0x3cc   : > { %7822 = vmatprep.subr.bf16.mxu1 %v13752_v0  ;;  %v3063_v57 = vld [vmem:[#allocation2 + $0x361] sm:$0xff] }
 0x3cf   : > { %7823 = vmatpush1.bf16.msra.mxu1 %v13515_v46  ;;  %v15415_v46 = vpack.c.bf16 %v3064_v20, %v3063_v57  ;;  %v3073_v57 = vld [vmem:[#allocation2 + $0x421] sm:$0xff]  ;;  %v3074_v20 = vld [vmem:[#allocation2 + $0x431] sm:$0xff] }
 0x3d0   : > { %9366 = vmatmul.mubr.bf16.gmra.mrb[36].mxu0 %v15380_v51  ;;  %7824 = vmatprep.subr.bf16.mxu1 %v13752_v0 }
 0x3d1   : > { %9373 = vmatprep.mubr.bf16.mxu0 %v15382_v37 }
 0x3d2   : > { %7576 = vmatmul.mubr.bf16.gmra.mrb[8].mxu1 %v15371_v1 }
 0x3d3   : > { %7583 = vmatprep.mubr.bf16.mxu1 %v1563_v6  ;;  %7825 = vmatpush1.bf16.msra.mxu1 %v13517_v55  ;;  %v1381_v6 = vld [vmem:[#allocation2 + $0x110] sm:$0xff]  ;;  %v2935_v55 = vld [vmem:[#allocation2 + $0x360] sm:$0xff] }
 0x3d4   : > { %7826 = vmatprep.subr.bf16.mxu1 %v13752_v0  ;;  %v15421_v4 = vpack.c.bf16 %v2936_v2, %v2935_v55  ;;  %v3075_v55 = vld [vmem:[#allocation2 + $0x461] sm:$0xff] }
 0x3d7   : > { %7827 = vmatpush1.bf16.msra.mxu1 %v13519_v41  ;;  %v1438_v41 = vpack.c.bf16 %v1381_v6, %v1380_v59  ;;  %v2945_v59 = vld [vmem:[#allocation2 + $0x420] sm:$0xff]  ;;  %v2946_v6 = vld [vmem:[#allocation2 + $0x430] sm:$0xff] }
 0x3d8   : > { %9374 = vmatmul.mubr.bf16.gmra.mrb[40].mxu0 %v15389_v62  ;;  %7828 = vmatprep.subr.bf16.mxu1 %v13752_v0 }
 0x3d9   : > { %9381 = vmatprep.mubr.bf16.mxu0 %v15391_v27 }
 0x3da   : > { %7584 = vmatmul.mubr.bf16.gmra.mrb[12].mxu1 %v15371_v1 }
 0x3db   : > { %7591 = vmatprep.mubr.bf16.mxu1 %v1564_v3  ;;  %7829 = vmatpush1.bf16.msra.mxu1 %v13521_v36  ;;  %v1567_v3 = vpack.c.bf16 %v1511_v56, %v1510_v30  ;;  %v1382_v36 = vld [vmem:[#allocation2 + $0x120] sm:$0xff]  ;;  %v15462_v30 = vpack.c.bf16 %v2946_v6, %v2945_v59  ;;  %v2948_v56 = vld [vmem:[#allocation2 + $0x470] sm:$0xff] }
 0x3dc   : > { %7830 = vmatprep.subr.bf16.mxu1 %v13752_v0  ;;  %v3087_v59 = vld [vmem:[#allocation2 + $0x541] sm:$0xff]  ;;  %v3088_v6 = vld [vmem:[#allocation2 + $0x551] sm:$0xff] }
 0x3df   : > { %7831 = vmatpush1.bf16.msra.mxu1 %v13523_v15  ;;  %v1439_v15 = vpack.c.bf16 %v15286_v52, %v1382_v36  ;;  %v13537_v36 = vld [vmem:[#allocation7 + $0x270] sm:$0xff]  }
 0x3e0   : > { %9382 = vmatmul.mubr.bf16.gmra.mrb[44].mxu0 %v15399_v31  ;;  %7832 = vmatprep.subr.bf16.mxu1 %v13752_v0 }
 0x3e1   : > { %9389 = vmatprep.mubr.bf16.mxu0 %v3111_v14  ;;  %v15423_v14 = vpack.c.bf16 %v3066_v38, %v3065_v23  ;;  %v3077_v23 = vld [vmem:[#allocation2 + $0x481] sm:$0xff]  ;;  %v3078_v38 = vld [vmem:[#allocation2 + $0x491] sm:$0xff] }
 0x3e2   : > { %7592 = vmatmul.mubr.bf16.gmra.mrb[16].mxu1 %v1436_v45  ;;  %v2940_v45 = vld [vmem:[#allocation2 + $0x3d0] sm:$0xff] }
 0x3e3   : > { %7599 = vmatprep.mubr.bf16.mxu1 %v1565_v40  ;;  %7833 = vmatpush1.bf16.msra.mxu1 %v13525_v10  ;;  %v3070_v40 = vld [vmem:[#allocation2 + $0x3f1] sm:$0xff]  ;;  %v2987_v10 = vpack.c.bf16 %v2940_v45, %v15286_v52 }
 0x3e4   : > { %7834 = vmatprep.subr.bf16.mxu1 %v13752_v0  ;;  %v3082_v45 = vld [vmem:[#allocation2 + $0x4d1] sm:$0xff] }
 0x3e7   : > { %7835 = vmatpush1.bf16.msra.mxu1 %v13527_v17  ;;  %v1519_v17 = vld [vmem:[#allocation2 + $0x1d1] sm:$0xff] }
 0x3e8   : > { %9390 = vmatmul.mubr.bf16.gmra.mrb[48].mxu0 %v2983_v35  ;;  %7836 = vmatprep.subr.bf16.mxu1 %v13752_v0  ;;  %v3069_v35 = vld [vmem:[#allocation2 + $0x3e1] sm:$0xff] }
 0x3e9   : > { %9397 = vmatprep.mubr.bf16.mxu0 %v15407_v47  ;;  %v15436_v9 = vpack.c.bf16 %v3070_v40, %v3069_v35 }
 0x3ea   : > { %7600 = vmatmul.mubr.bf16.gmra.mrb[20].mxu1 %v1437_v8 }
 0x3eb   : > { %7607 = vmatprep.mubr.bf16.mxu1 %v1566_v61  ;;  %7837 = vmatpush1.bf16.msra.mxu1 %v13529_v39  ;;  %v1571_v61 = vpack.c.bf16 %v1519_v17, %v1518_v11  ;;  %v15452_v39 = vpack.c.bf16 %v3074_v20, %v3073_v57  ;;  %v3085_v11 = vld [vmem:[#allocation2 + $0x521] sm:$0xff]  ;;  %v3086_v17 = vld [vmem:[#allocation2 + $0x531] sm:$0xff] }
 0x3ec   : > { %7838 = vmatprep.subr.bf16.mxu1 %v13752_v0  ;;  %v3124_v20 = vpack.c.bf16 %v3086_v17, %v3085_v11  ;;  %v15531_v11 = vld [vmem:[#allocation2 + $0x180] sm:$0xff] }
 0x3ef   : > { %7839 = vmatpush1.bf16.msra.mxu1 %v13531_v5  ;;  %v3079_v5 = vld [vmem:[#allocation2 + $0x4a1] sm:$0xff] }
 0x3f0   : > { %9398 = vmatmul.mubr.bf16.gmra.mrb[52].mxu0 %v15413_v29  ;;  %7840 = vmatprep.subr.bf16.mxu1 %v13752_v0 }
 0x3f1   : > { %9405 = vmatprep.mubr.bf16.mxu0 %v15415_v46 }
 0x3f2   : > { %7608 = vmatmul.mubr.bf16.gmra.mrb[24].mxu1 %v1438_v41  ;;  %v2991_v41 = vpack.c.bf16 %v2948_v56, %v15286_v52  ;;  %v1534_v56 = vld [vmem:[#allocation2 + $0x301] sm:$0xff] }
 0x3f3   : > { %7615 = vmatprep.mubr.bf16.mxu1 %v1567_v3  ;;  %7841 = vmatpush1.bf16.msra.mxu1 %v13533_v26  ;;  %v15468_v3 = vpack.c.bf16 %v3078_v38, %v3077_v23  ;;  %v3083_v26 = vld [vmem:[#allocation2 + $0x501] sm:$0xff]  ;;  %v3090_v38 = vld [vmem:[#allocation2 + $0x571] sm:$0xff] }
 0x3f4   : > { %7842 = vmatprep.subr.bf16.mxu1 %v13752_v0  ;;  %v3089_v23 = vld [vmem:[#allocation2 + $0x561] sm:$0xff] }
 0x3f8   : > { %9406 = vmatmul.mubr.bf16.gmra.mrb[56].mxu0 %v15421_v4 }
 0x3f9   : > { %9413 = vmatprep.mubr.bf16.mxu0 %v15423_v14 }
 0x3fa   : > { %7616 = vmatmul.mubr.bf16.gmra.mrb[28].mxu1 %v1439_v15  ;;  %v1527_v15 = vld [vmem:[#allocation2 + $0x271] sm:$0xff] }
 0x3fb   : > { %7623 = vmatprep.mubr.bf16.mxu1 %v15291_v21  ;;  %v3072_v21 = vld [vmem:[#allocation2 + $0x411] sm:$0xff]  ;;  %v1575_v40 = vpack.c.bf16 %v1527_v15, %v1526_v34 }
 0x3fc   : > { %v15444_v50 = vpack.c.bf16 %v3072_v21, %v3071_v54  ;;  %v3084_v54 = vld [vmem:[#allocation2 + $0x511] sm:$0xff] }
 0x3fd   : > { %v3094_v34 = vld [vmem:[#allocation2 + $0x5d1] sm:$0xff] }
 0x400   : > { %9414 = vmatmul.mubr.bf16.gmra.mrb[60].mxu0 %v15430_v60 }
 0x401   : > { %9421 = vmatprep.mubr.bf16.mxu0 %v3115_v28  ;;  %v3081_v28 = vld [vmem:[#allocation2 + $0x4c1] sm:$0xff] }
 0x402   : > { %7624 = vmatmul.mubr.bf16.gmra.mrb[32].mxu1 %v15297_v22  ;;  %v2943_v22 = vld [vmem:[#allocation2 + $0x400] sm:$0xff] }
 0x403   : > { %7631 = vmatprep.mubr.bf16.mxu1 %v15301_v48  ;;  %v2944_v48 = vld [vmem:[#allocation2 + $0x410] sm:$0xff] }
 0x404   : > { %v15450_v8 = vpack.c.bf16 %v2944_v48, %v2943_v22  ;;  %v15494_v22 = vpack.c.bf16 %v2954_v13, %v2953_v33  ;;  %v2956_v48 = vld [vmem:[#allocation2 + $0x510] sm:$0xff]  ;;  %v3097_v33 = vld [vmem:[#allocation2 + $0x601] sm:$0xff] }
 0x405   : > { %v2995_v57 = vpack.c.bf16 %v2956_v48, %v15286_v52  ;;  %v3098_v13 = vld [vmem:[#allocation2 + $0x611] sm:$0xff] }
 0x406   : > { %v15529_v48 = vld [vmem:[#allocation2 + $0x170] sm:$0xff] }
 0x408   : > { %9422 = vmatmul.mubr.bf16.gmra.mrb[64].mxu0 %v2987_v10  ;;  %v15484_v10 = vpack.c.bf16 %v3082_v45, %v3081_v28  ;;  %v3095_v28 = vld [vmem:[#allocation2 + $0x5e1] sm:$0xff]  ;;  %v3096_v45 = vld [vmem:[#allocation2 + $0x5f1] sm:$0xff] }
 0x409   : > { %9429 = vmatprep.mubr.bf16.mxu0 %v15436_v9 }
 0x40a   : > { %7632 = vmatmul.mubr.bf16.gmra.mrb[36].mxu1 %v15309_v42  ;;  %v15456_v42 = vld [vmem:[#allocation2 + $0x1c0] sm:$0xff] }
 0x40b   : > { %7639 = vmatprep.mubr.bf16.mxu1 %v15313_v18  ;;  %v13535_v18 = vld [vmem:[#allocation7 + $0x268] sm:$0xff]   ;;  %v1443_v2 = vpack.c.bf16 %v15286_v52, %v15456_v42 }
 0x40c   : > { %7843 = vmatpush1.bf16.msra.mxu1 %v13535_v18  ;;  %v2958_v18 = vld [vmem:[#allocation2 + $0x530] sm:$0xff] }
 0x40d   : > { %7844 = vmatprep.subr.bf16.mxu1 %v13752_v0 }
 0x410   : > { %9430 = vmatmul.mubr.bf16.gmra.mrb[68].mxu0 %v15441_v53  ;;  %7845 = vmatpush1.bf16.msra.mxu1 %v13537_v36  ;;  %v3126_v36 = vpack.c.bf16 %v3090_v38, %v3089_v23  ;;  %v13540_v38 = vld [vmem:[#allocation7 + $0x5a0] sm:$0xff]  }
 0x411   : > { %9437 = vmatprep.mubr.bf16.mxu0 %v15444_v50  ;;  %7846 = vmatprep.subr.bf16.mxu1 %v13752_v0 }
 0x412   : > { %7640 = vmatmul.mubr.bf16.gmra.mrb[40].mxu1 %v15321_v43  ;;  %v3119_v43 = vpack.c.bf16 %v15327_v32, %v3075_v55  ;;  %v2949_v32 = vld [vmem:[#allocation2 + $0x480] sm:$0xff] }
 0x413   : > { %7647 = vmatprep.mubr.bf16.mxu1 %v1571_v61  ;;  %v15474_v58 = vpack.c.bf16 %v2950_v25, %v2949_v32  ;;  %v2957_v61 = vld [vmem:[#allocation2 + $0x520] sm:$0xff]  ;;  %v2962_v25 = vld [vmem:[#allocation2 + $0x570] sm:$0xff] }
 0x414   : > { %v2996_v55 = vpack.c.bf16 %v2958_v18, %v2957_v61  ;;  %v15504_v32 = vld [vmem:[#allocation2 + $0x300] sm:$0xff]  ;;  %v15537_v61 = vld [vmem:[#allocation2 + $0x190] sm:$0xff] }
 0x415   : > { %v15539_v18 = vld [vmem:[#allocation2 + $0x1a0] sm:$0xff] }
 0x418   : > { %9438 = vmatmul.mubr.bf16.gmra.mrb[72].mxu0 %v15450_v8 }
 0x419   : > { %9445 = vmatprep.mubr.bf16.mxu0 %v15452_v39 }
 0x41a   : > { %7648 = vmatmul.mubr.bf16.gmra.mrb[44].mxu1 %v1443_v2  ;;  %v3125_v2 = vpack.c.bf16 %v3088_v6, %v3087_v59  ;;  %v3358_v6 = vpack.c.bf16 %v15539_v18, %v15537_v61 }
 0x41b   : > { %7655 = vmatprep.mubr.bf16.mxu1 %v15335_v44  ;;  %v3080_v44 = vld [vmem:[#allocation2 + $0x4b1] sm:$0xff] }
 0x41c   : > { %v15476_v7 = vpack.c.bf16 %v3080_v44, %v3079_v5  ;;  %v3092_v5 = vld [vmem:[#allocation2 + $0x5b1] sm:$0xff]  ;;  %v1451_v44 = vpack.c.bf16 %v15286_v52, %v15504_v32 }
 0x420   : > { %9446 = vmatmul.mubr.bf16.gmra.mrb[76].mxu0 %v15462_v30 }
 0x421   : > { %9453 = vmatprep.mubr.bf16.mxu0 %v3119_v43  ;;  %v2960_v43 = vld [vmem:[#allocation2 + $0x550] sm:$0xff] }
 0x422   : > { %7656 = vmatmul.mubr.bf16.gmra.mrb[48].mxu1 %v15342_v24  ;;  %v2951_v24 = vld [vmem:[#allocation2 + $0x4a0] sm:$0xff] }
 0x423   : > { %7663 = vmatprep.mubr.bf16.mxu1 %v15346_v12  ;;  %v2952_v12 = vld [vmem:[#allocation2 + $0x4b0] sm:$0xff] }
 0x424   : > { %v15482_v35 = vpack.c.bf16 %v2952_v12, %v2951_v24 }
 0x428   : > { %9454 = vmatmul.mubr.bf16.gmra.mrb[80].mxu0 %v2991_v41 }
 0x429   : > { %9461 = vmatprep.mubr.bf16.mxu0 %v15468_v3 }
 0x42a   : > { %7664 = vmatmul.mubr.bf16.gmra.mrb[52].mxu1 %v15354_v19  ;;  %v15488_v19 = vld [vmem:[#allocation2 + $0x260] sm:$0xff] }
 0x42b   : > { %7671 = vmatprep.mubr.bf16.mxu1 %v15358_v49  ;;  %v13539_v49 = vld [vmem:[#allocation7 + $0x278] sm:$0xff]   ;;  %v1447_v21 = vpack.c.bf16 %v15286_v52, %v15488_v19 }
 0x42c   : > { %7847 = vmatpush1.bf16.msra.mxu1 %v13539_v49  ;;  %v1543_v49 = vld [vmem:[#allocation2 + $0x3b1] sm:$0xff] }
 0x42d   : > { %8105 = vmatprep.subr.bf16.mxu1 %v13752_v0 }
 0x430   : > { %9462 = vmatmul.mubr.bf16.gmra.mrb[84].mxu0 %v15474_v58 }
 0x431   : > { %9469 = vmatprep.mubr.bf16.mxu0 %v15476_v7 }
 0x432   : > { %7672 = vmatmul.mubr.bf16.gmra.mrb[56].mxu1 %v15365_v16  ;;  %v3123_v16 = vpack.c.bf16 %v3084_v54, %v3083_v26  ;;  %v3130_v26 = vpack.c.bf16 %v3098_v13, %v3097_v33  ;;  %v15521_v54 = vld [vmem:[#allocation2 + $0x160] sm:$0xff]  ;;  %v15588_v33 = vld [vmem:[#allocation2 + $0x230] sm:$0xff] }
 0x433   : > { %7679 = vmatprep.mubr.bf16.mxu1 %v1575_v40  ;;  %v3129_v40 = vpack.c.bf16 %v3096_v45, %v3095_v28  ;;  %v15590_v13 = vld [vmem:[#allocation2 + $0x240] sm:$0xff] }
 0x438   : > { %9470 = vmatmul.mubr.bf16.gmra.mrb[88].mxu0 %v15482_v35 }
 0x439   : > { %9477 = vmatprep.mubr.bf16.mxu0 %v15484_v10 }
 0x43a   : > { %7680 = vmatmul.mubr.bf16.gmra.mrb[60].mxu1 %v1447_v21 }
 0x43b   : > { %7687 = vmatprep.mubr.bf16.mxu1 %v15374_v63  ;;  %v2959_v63 = vld [vmem:[#allocation2 + $0x540] sm:$0xff] }
 0x440   : > { %9478 = vmatmul.mubr.bf16.gmra.mrb[92].mxu0 %v15494_v22 }
 0x441   : > { %9485 = vmatprep.mubr.bf16.mxu0 %v3123_v16  ;;  %v3164_v16 = vld [vmem:[#allocation2 + $0x152] sm:$0xff] }
 0x442   : > { %7688 = vmatmul.mubr.bf16.gmra.mrb[64].mxu1 %v15380_v51  ;;  %v1535_v51 = vld [vmem:[#allocation2 + $0x311] sm:$0xff] }
 0x443   : > { %7695 = vmatprep.mubr.bf16.mxu1 %v15382_v37  ;;  %v2997_v37 = vpack.c.bf16 %v2960_v43, %v2959_v63  ;;  %v1579_v41 = vpack.c.bf16 %v1535_v51, %v1534_v56  ;;  %v1551_v63 = vld [vmem:[#allocation2 + $0x451] sm:$0xff] }
 0x444   : > { %v13538_v43 = vld [vmem:[#allocation7 + $0x598] sm:$0xff]   ;;  %v15550_v56 = vld [vmem:[#allocation2 + $0x1b0] sm:$0xff] }
 0x448   : > { %9486 = vmatmul.mubr.bf16.gmra.mrb[96].mxu0 %v2995_v57  ;;  %v13532_v57 = vld [vmem:[#allocation7 + $0x580] sm:$0xff]  }
 0x449   : > { %9493 = vmatprep.mubr.bf16.mxu0 %v3124_v20  ;;  %v13534_v20 = vld [vmem:[#allocation7 + $0x588] sm:$0xff]  }
 0x44a   : > { %7696 = vmatmul.mubr.bf16.gmra.mrb[68].mxu1 %v15389_v62  ;;  %v2961_v62 = vld [vmem:[#allocation2 + $0x560] sm:$0xff] }
 0x44b   : > { %7703 = vmatprep.mubr.bf16.mxu1 %v15391_v27  ;;  %v3091_v27 = vld [vmem:[#allocation2 + $0x5a1] sm:$0xff]  ;;  %v2998_v24 = vpack.c.bf16 %v2962_v25, %v2961_v62  ;;  %v15562_v62 = vld [vmem:[#allocation2 + $0x1f0] sm:$0xff] }
 0x44c   : > { %v3127_v12 = vpack.c.bf16 %v3092_v5, %v3091_v27  ;;  %v15564_v25 = vld [vmem:[#allocation2 + $0x200] sm:$0xff] }
 0x44d   : > { %v3360_v5 = vpack.c.bf16 %v15564_v25, %v15562_v62 }
 0x450   : > { %9494 = vmatmul.mubr.bf16.gmra.mrb[100].mxu0 %v2996_v55  ;;  %v3168_v55 = vld [vmem:[#allocation2 + $0x192] sm:$0xff] }
 0x451   : > { %9501 = vmatprep.mubr.bf16.mxu0 %v3125_v2  ;;  %v1550_v2 = vld [vmem:[#allocation2 + $0x441] sm:$0xff] }
 0x452   : > { %7704 = vmatmul.mubr.bf16.gmra.mrb[72].mxu1 %v15399_v31  ;;  %v3093_v31 = vld [vmem:[#allocation2 + $0x5c1] sm:$0xff]  ;;  %v1587_v23 = vpack.c.bf16 %v1551_v63, %v1550_v2  ;;  %v1625_v63 = vld [vmem:[#allocation2 + $0x32] sm:$0xff] }
 0x453   : > { %7711 = vmatprep.mubr.bf16.mxu1 %v1579_v41  ;;  %v3128_v15 = vpack.c.bf16 %v3094_v34, %v3093_v31  ;;  %v3170_v41 = vld [vmem:[#allocation2 + $0x1b2] sm:$0xff]  ;;  %v1624_v2 = vld [vmem:[#allocation2 + $0x22] sm:$0xff] }
 0x454   : > { %v13546_v31 = vld [vmem:[#allocation7 + $0x5b8] sm:$0xff]   ;;  %v15578_v34 = vld [vmem:[#allocation2 + $0x210] sm:$0xff] }
 0x458   : > { %9502 = vmatmul.mubr.bf16.gmra.mrb[104].mxu0 %v2997_v37  ;;  %v3169_v37 = vld [vmem:[#allocation2 + $0x1a2] sm:$0xff] }
 0x459   : > { %9509 = vmatprep.mubr.bf16.mxu0 %v3126_v36  ;;  %v13542_v36 = vld [vmem:[#allocation7 + $0x5a8] sm:$0xff]   ;;  %v15571_v27 = vpack.c.bf16 %v3170_v41, %v3169_v37  ;;  %v15625_v37 = vld [vmem:[#allocation2 + $0x2b0] sm:$0xff]  ;;  %v15627_v41 = vld [vmem:[#allocation2 + $0x2c0] sm:$0xff] }
 0x45a   : > { %7712 = vmatmul.mubr.bf16.gmra.mrb[76].mxu1 %v1451_v44  ;;  %v13544_v44 = vld [vmem:[#allocation7 + $0x5b0] sm:$0xff]  }
 0x45b   : > { %7719 = vmatprep.mubr.bf16.mxu1 %v15407_v47  ;;  %v1542_v47 = vld [vmem:[#allocation2 + $0x3a1] sm:$0xff] }
 0x460   : > { %9510 = vmatmul.mubr.bf16.gmra.mrb[108].mxu0 %v2998_v24  ;;  %v3171_v24 = vld [vmem:[#allocation2 + $0x1e2] sm:$0xff] }
 0x461   : > { %9517 = vmatprep.mubr.bf16.mxu0 %v3127_v12  ;;  %v3172_v12 = vld [vmem:[#allocation2 + $0x1f2] sm:$0xff] }
 0x462   : > { %7720 = vmatmul.mubr.bf16.gmra.mrb[80].mxu1 %v15413_v29  ;;  %v1583_v29 = vpack.c.bf16 %v1543_v49, %v1542_v47  ;;  %v3231_v28 = vpack.c.bf16 %v3172_v12, %v3171_v24  ;;  %v3174_v47 = vld [vmem:[#allocation2 + $0x212] sm:$0xff]  ;;  %v13550_v49 = vld [vmem:[#allocation7 + $0x5c8] sm:$0xff]   ;;  %v3365_v24 = vpack.c.bf16 %v15627_v41, %v15625_v37 }
 0x463   : > { %7727 = vmatprep.mubr.bf16.mxu1 %v15415_v46  ;;  %v15517_v46 = vld [vmem:[#allocation2 + $0x3a0] sm:$0xff] }
 0x464   : > { %v1626_v12 = vld [vmem:[#allocation2 + $0x42] sm:$0xff] }
 0x468   : > { %9518 = vmatmul.mubr.bf16.gmra.mrb[112].mxu0 %v15371_v1 }
 0x469   : > { %9525 = vmatprep.mubr.bf16.mxu0 %v3128_v15  ;;  %v15580_v15 = vld [vmem:[#allocation2 + $0x220] sm:$0xff] }
 0x46a   : > { %7728 = vmatmul.mubr.bf16.gmra.mrb[84].mxu1 %v15421_v4  ;;  %v15519_v4 = vld [vmem:[#allocation2 + $0x150] sm:$0xff]  ;;  %v3361_v45 = vpack.c.bf16 %v15580_v15, %v15578_v34 }
 0x46b   : > { %7735 = vmatprep.mubr.bf16.mxu1 %v15423_v14  ;;  %v1455_v14 = vpack.c.bf16 %v15286_v52, %v15517_v46  ;;  %v3356_v21 = vpack.c.bf16 %v15521_v54, %v15519_v4  ;;  %v3357_v52 = vpack.c.bf16 %v15531_v11, %v15529_v48 }
 0x470   : > { %9526 = vmatmul.mubr.bf16.gmra.mrb[116].mxu0 %v15371_v1 }
 0x471   : > { %9533 = vmatprep.mubr.bf16.mxu0 %v3129_v40  ;;  %v13548_v40 = vld [vmem:[#allocation7 + $0x5c0] sm:$0xff]  }
 0x472   : > { %7736 = vmatmul.mubr.bf16.gmra.mrb[88].mxu1 %v15430_v60  ;;  %v3163_v60 = vld [vmem:[#allocation2 + $0x142] sm:$0xff] }
 0x473   : > { %7743 = vmatprep.mubr.bf16.mxu1 %v1583_v29  ;;  %v3227_v17 = vpack.c.bf16 %v3164_v16, %v3163_v60  ;;  %v1559_v60 = vld [vmem:[#allocation2 + $0x4f1] sm:$0xff] }
 0x474   : > { %v15601_v16 = vld [vmem:[#allocation2 + $0x250] sm:$0xff] }
 0x478   : > { %9534 = vmatmul.mubr.bf16.gmra.mrb[120].mxu0 %v15371_v1 }
 0x479   : > { %9541 = vmatprep.mubr.bf16.mxu0 %v3130_v26  ;;  %v3362_v26 = vpack.c.bf16 %v15590_v13, %v15588_v33 }
 0x47a   : > { %7744 = vmatmul.mubr.bf16.gmra.mrb[92].mxu1 %v1455_v14  ;;  %v3176_v14 = vld [vmem:[#allocation2 + $0x232] sm:$0xff] }
 0x47b   : > { %7751 = vmatprep.mubr.bf16.mxu1 %v15436_v9  ;;  %v3166_v9 = vld [vmem:[#allocation2 + $0x172] sm:$0xff] }
 0x480   : > { %9542 = vmatmul.mubr.bf16.gmra.mrb[124].mxu0 %v15371_v1  ;;  %v3165_v1 = vld [vmem:[#allocation2 + $0x162] sm:$0xff] }
 0x481   : > { %9582 = vmatprep.mubr.bf16.mxu0 %v3356_v21  ;;  %v15542_v59 = vpack.c.bf16 %v3166_v9, %v3165_v1  ;;  %v1558_v21 = vld [vmem:[#allocation2 + $0x4e1] sm:$0xff]  ;;  %v3178_v9 = vld [vmem:[#allocation2 + $0x252] sm:$0xff] }
 0x482   : > { %7752 = vmatmul.mubr.bf16.gmra.mrb[96].mxu1 %v15441_v53  ;;  %v13536_v53 = vld [vmem:[#allocation7 + $0x590] sm:$0xff]   ;;  %v3177_v1 = vld [vmem:[#allocation2 + $0x242] sm:$0xff] }
 0x483   : > { %7759 = vmatprep.mubr.bf16.mxu1 %v15444_v50  ;;  %v3167_v50 = vld [vmem:[#allocation2 + $0x182] sm:$0xff] }
 0x484   : > { %v15553_v51 = vpack.c.bf16 %v3168_v55, %v3167_v50 }
 0x488   : > { %9583 = vmatmul.mubr.bf16.vlgmr.msra.gmra.mrb[0].mxu0 %v3227_v17 }
 0x489   : > { %9840 = vmatpush1.bf16.msra.mxu0 %v13532_v57  ;;  %9590 = vmatprep.mubr.bf16.mxu0 %v3357_v52  ;;  %v1591_v57 = vpack.c.bf16 %v1559_v60, %v1558_v21  ;;  %v13554_v52 = vld [vmem:[#allocation7 + $0x5d8] sm:$0xff]  }
 0x48a   : > { %9841 = vmatprep.subr.bf16.mxu0 %v13752_v0  ;;  %7760 = vmatmul.mubr.bf16.gmra.mrb[100].mxu1 %v15450_v8  ;;  %v3359_v8 = vpack.c.bf16 %v15456_v42, %v15550_v56  ;;  %v15567_v42 = vld [vmem:[#allocation2] sm:$0xff] }
 0x48b   : > { %7767 = vmatprep.mubr.bf16.mxu1 %v15452_v39  ;;  %v15560_v39 = vld [vmem:[#allocation2 + $0x440] sm:$0xff] }
 0x48d   : > { %9842 = vmatpush1.bf16.msra.mxu0 %v13534_v20  ;;  %v1754_v20 = vld [vmem:[#allocation2 + $0xb0] sm:$0xff] }
 0x48e   : > { %9843 = vmatprep.subr.bf16.mxu0 %v13752_v0  ;;  %v1817_v50 = vpack.c.bf16 %v1754_v20, %v15567_v42  ;;  %v1759_v20 = vld [vmem:[#allocation2 + $0x100] sm:$0xff] }
 0x490   : > { %9591 = vmatmul.mubr.bf16.gmra.mrb[4].mxu0 %v15542_v59 }
 0x491   : > { %9598 = vmatprep.mubr.bf16.mxu0 %v3358_v6  ;;  %9844 = vmatpush1.bf16.msra.mxu0 %v13536_v53  ;;  %v15612_v6 = vld [vmem:[#allocation2 + $0x290] sm:$0xff]  ;;  %v15614_v53 = vld [vmem:[#allocation2 + $0x2a0] sm:$0xff] }
 0x492   : > { %9845 = vmatprep.subr.bf16.mxu0 %v13752_v0  ;;  %7768 = vmatmul.mubr.bf16.gmra.mrb[104].mxu1 %v15462_v30  ;;  %v1459_v30 = vpack.c.bf16 %v15567_v42, %v15560_v39  ;;  %v3364_v55 = vpack.c.bf16 %v15614_v53, %v15612_v6 }
 0x493   : > { %7775 = vmatprep.mubr.bf16.mxu1 %v1587_v23  ;;  %v3180_v23 = vld [vmem:[#allocation2 + $0x292] sm:$0xff] }
 0x495   : > { %9846 = vmatpush1.bf16.msra.mxu0 %v13538_v43  ;;  %v3179_v43 = vld [vmem:[#allocation2 + $0x282] sm:$0xff] }
 0x496   : > { %9847 = vmatprep.subr.bf16.mxu0 %v13752_v0 }
 0x498   : > { %9599 = vmatmul.mubr.bf16.gmra.mrb[8].mxu0 %v15553_v51 }
 0x499   : > { %9606 = vmatprep.mubr.bf16.mxu0 %v3359_v8  ;;  %9848 = vmatpush1.bf16.msra.mxu0 %v13540_v38  ;;  %v1755_v8 = vld [vmem:[#allocation2 + $0xc0] sm:$0xff]  ;;  %v1756_v38 = vld [vmem:[#allocation2 + $0xd0] sm:$0xff] }
 0x49a   : > { %9849 = vmatprep.subr.bf16.mxu0 %v13752_v0  ;;  %7776 = vmatmul.mubr.bf16.gmra.mrb[108].mxu1 %v1459_v30  ;;  %v3235_v30 = vpack.c.bf16 %v3180_v23, %v3179_v43 }
 0x49b   : > { %7783 = vmatprep.mubr.bf16.mxu1 %v15468_v3  ;;  %v3173_v3 = vld [vmem:[#allocation2 + $0x202] sm:$0xff] }
 0x49c   : > { %v15593_v29 = vpack.c.bf16 %v3174_v47, %v3173_v3  ;;  %v3182_v3 = vld [vmem:[#allocation2 + $0x2b2] sm:$0xff]  ;;  %v1757_v47 = vld [vmem:[#allocation2 + $0xe0] sm:$0xff] }
 0x49d   : > { %9850 = vmatpush1.bf16.msra.mxu0 %v13542_v36  ;;  %v1688_v36 = vpack.c.bf16 %v1625_v63, %v1624_v2 }
 0x49e   : > { %9851 = vmatprep.subr.bf16.mxu0 %v13752_v0 }
 0x4a0   : > { %9607 = vmatmul.mubr.bf16.gmra.mrb[12].mxu0 %v15571_v27 }
 0x4a1   : > { %9614 = vmatprep.mubr.bf16.mxu0 %v3360_v5  ;;  %9852 = vmatpush1.bf16.msra.mxu0 %v13544_v44  ;;  %v13541_v5 = vld [vmem:[#allocation7 + $0x280] sm:$0xff]   ;;  %v1818_v44 = vpack.c.bf16 %v1756_v38, %v1755_v8 }
 0x4a2   : > { %9853 = vmatprep.subr.bf16.mxu0 %v13752_v0  ;;  %7784 = vmatmul.mubr.bf16.gmra.mrb[112].mxu1 %v15474_v58  ;;  %v13552_v58 = vld [vmem:[#allocation7 + $0x5d0] sm:$0xff]   ;;  %v13549_v8 = vld [vmem:[#allocation7 + $0x2a0] sm:$0xff]  }
 0x4a3   : > { %7791 = vmatprep.mubr.bf16.mxu1 %v15476_v7  ;;  %v3175_v7 = vld [vmem:[#allocation2 + $0x222] sm:$0xff] }
 0x4a4   : > { %v15604_v17 = vpack.c.bf16 %v3176_v14, %v3175_v7  ;;  %v1630_v38 = vld [vmem:[#allocation2 + $0x82] sm:$0xff] }
 0x4a5   : > { %9854 = vmatpush1.bf16.msra.mxu0 %v13546_v31  ;;  %v1627_v31 = vld [vmem:[#allocation2 + $0x52] sm:$0xff] }
 0x4a6   : > { %9855 = vmatprep.subr.bf16.mxu0 %v13752_v0  ;;  %v1689_v7 = vpack.c.bf16 %v1627_v31, %v1626_v12  ;;  %v15652_v12 = vld [vmem:[#allocation2 + $0x330] sm:$0xff]  ;;  %v15654_v31 = vld [vmem:[#allocation2 + $0x340] sm:$0xff] }
 0x4a8   : > { %9615 = vmatmul.mubr.bf16.gmra.mrb[16].mxu0 %v3231_v28  ;;  %v3181_v28 = vld [vmem:[#allocation2 + $0x2a2] sm:$0xff] }
 0x4a9   : > { %9622 = vmatprep.mubr.bf16.mxu0 %v3361_v45  ;;  %9856 = vmatpush1.bf16.msra.mxu0 %v13548_v40  ;;  %v13543_v45 = vld [vmem:[#allocation7 + $0x288] sm:$0xff]   ;;  %v13556_v40 = vld [vmem:[#allocation7 + $0x5e0] sm:$0xff]   ;;  %v15637_v14 = vpack.c.bf16 %v3182_v3, %v3181_v28  ;;  %v13553_v3 = vld [vmem:[#allocation7 + $0x2b0] sm:$0xff]  }
 0x4aa   : > { %9857 = vmatprep.subr.bf16.mxu0 %v13752_v0  ;;  %7792 = vmatmul.mubr.bf16.gmra.mrb[116].mxu1 %v15482_v35  ;;  %v3363_v35 = vpack.c.bf16 %v15488_v19, %v15601_v16 }
 0x4ab   : > { %7799 = vmatprep.mubr.bf16.mxu1 %v15484_v10  ;;  %v15610_v10 = vld [vmem:[#allocation2 + $0x4e0] sm:$0xff] }
 0x4ac   : > { %v1463_v19 = vpack.c.bf16 %v15567_v42, %v15610_v10 }
 0x4ad   : > { %9858 = vmatpush1.bf16.msra.mxu0 %v13550_v49  ;;  %v1758_v49 = vld [vmem:[#allocation2 + $0xf0] sm:$0xff] }
 0x4ae   : > { %9859 = vmatprep.subr.bf16.mxu0 %v13752_v0  ;;  %v1819_v21 = vpack.c.bf16 %v1758_v49, %v1757_v47  ;;  %v1632_v47 = vld [vmem:[#allocation2 + $0xc2] sm:$0xff]  ;;  %v1633_v49 = vld [vmem:[#allocation2 + $0xd2] sm:$0xff] }
 0x4b0   : > { %9623 = vmatmul.mubr.bf16.gmra.mrb[20].mxu0 %v15593_v29 }
 0x4b1   : > { %9630 = vmatprep.mubr.bf16.mxu0 %v3362_v26  ;;  %9860 = vmatpush1.bf16.msra.mxu0 %v13552_v58  ;;  %v15631_v26 = vld [vmem:[#allocation2 + $0x2d0] sm:$0xff]  ;;  %v15633_v58 = vld [vmem:[#allocation2 + $0x2e0] sm:$0xff] }
 0x4b2   : > { %9861 = vmatprep.subr.bf16.mxu0 %v13752_v0  ;;  %7800 = vmatmul.mubr.bf16.gmra.mrb[120].mxu1 %v15494_v22  ;;  %v15619_v22 = vpack.c.bf16 %v3178_v9, %v3177_v1  ;;  %v3366_v60 = vpack.c.bf16 %v15633_v58, %v15631_v26  ;;  %v3183_v1 = vld [vmem:[#allocation2 + $0x2c2] sm:$0xff]  ;;  %v3184_v9 = vld [vmem:[#allocation2 + $0x2d2] sm:$0xff] }
 0x4b3   : > { %7807 = vmatprep.mubr.bf16.mxu1 %v1591_v57  ;;  %v13545_v57 = vld [vmem:[#allocation7 + $0x290] sm:$0xff]   ;;  %v15646_v63 = vpack.c.bf16 %v3184_v9, %v3183_v1  ;;  %v1822_v1 = vpack.c.bf16 %v15529_v48, %v15521_v54  ;;  %v15678_v54 = vld [vmem:[#allocation2 + $0x380] sm:$0xff] }
 0x4b5   : > { %9862 = vmatpush1.bf16.msra.mxu0 %v13554_v52  ;;  %v1629_v52 = vld [vmem:[#allocation2 + $0x72] sm:$0xff] }
 0x4b6   : > { %9863 = vmatprep.subr.bf16.mxu0 %v13752_v0 }
 0x4b8   : > { %9631 = vmatmul.mubr.bf16.gmra.mrb[24].mxu0 %v15604_v17 }
 0x4b9   : > { %9638 = vmatprep.mubr.bf16.mxu0 %v3363_v35  ;;  %9864 = vmatpush1.bf16.msra.mxu0 %v13556_v40  ;;  %v1628_v35 = vld [vmem:[#allocation2 + $0x62] sm:$0xff]  ;;  %v3368_v40 = vpack.c.bf16 %v15654_v31, %v15652_v12 }
 0x4ba   : > { %7808 = vmatmul.mubr.bf16.gmra.mrb[124].mxu1 %v1463_v19  ;;  %9865 = vmatprep.subr.bf16.mxu0 %v13752_v0  ;;  %v1760_v19 = vld [vmem:[#allocation2 + $0x110] sm:$0xff]  ;;  %v1690_v2 = vpack.c.bf16 %v1629_v52, %v1628_v35  ;;  %v1692_v35 = vpack.c.bf16 %v1633_v49, %v1632_v47  ;;  %v1824_v47 = vpack.c.bf16 %v15550_v56, %v15539_v18 }
 0x4bb   : > { %7848 = vmatprep.mubr.bf16.mxu1 %v1817_v50  ;;  %v13547_v50 = vld [vmem:[#allocation7 + $0x298] sm:$0xff]   ;;  %v1820_v43 = vpack.c.bf16 %v1760_v19, %v1759_v20  ;;  %v13557_v20 = vld [vmem:[#allocation7 + $0x2c0] sm:$0xff]   ;;  %v1825_v56 = vpack.c.bf16 %v15562_v62, %v15567_v42 }
 0x4bc   : > { %v1634_v19 = vld [vmem:[#allocation2 + $0xe2] sm:$0xff] }
 0x4c0   : > { %9639 = vmatmul.mubr.bf16.gmra.mrb[28].mxu0 %v15619_v22 }
 0x4c1   : > { %9646 = vmatprep.mubr.bf16.mxu0 %v3364_v55  ;;  %v15643_v55 = vld [vmem:[#allocation2 + $0x2f0] sm:$0xff] }
 0x4c2   : > { %7849 = vmatmul.mubr.bf16.vlgmr.msra.gmra.mrb[0].mxu1 %v1688_v36  ;;  %v3367_v23 = vpack.c.bf16 %v15504_v32, %v15643_v55  ;;  %v1631_v36 = vld [vmem:[#allocation2 + $0x92] sm:$0xff] }
 0x4c3   : > { %8106 = vmatpush1.bf16.msra.mxu1 %v13541_v5  ;;  %7856 = vmatprep.mubr.bf16.mxu1 %v1818_v44  ;;  %v3185_v5 = vld [vmem:[#allocation2 + $0x2e2] sm:$0xff]  ;;  %v3186_v44 = vld [vmem:[#allocation2 + $0x2f2] sm:$0xff]  ;;  %v1691_v32 = vpack.c.bf16 %v1631_v36, %v1630_v38 }
 0x4c4   : > { %8107 = vmatprep.subr.bf16.mxu1 %v13752_v0  ;;  %v15658_v28 = vpack.c.bf16 %v3186_v44, %v3185_v5  ;;  %v15676_v38 = vld [vmem:[#allocation2 + $0x370] sm:$0xff] }
 0x4c5   : > { %v3370_v5 = vpack.c.bf16 %v15678_v54, %v15676_v38  ;;  %v13561_v44 = vld [vmem:[#allocation7 + $0x2d0] sm:$0xff]  }
 0x4c7   : > { %8108 = vmatpush1.bf16.msra.mxu1 %v13543_v45  ;;  %v1821_v45 = vpack.c.bf16 %v15519_v4, %v15567_v42  ;;  %v15668_v4 = vld [vmem:[#allocation2 + $0x360] sm:$0xff] }
 0x4c8   : > { %9647 = vmatmul.mubr.bf16.gmra.mrb[32].mxu0 %v3235_v30  ;;  %8109 = vmatprep.subr.bf16.mxu1 %v13752_v0  ;;  %v13558_v30 = vld [vmem:[#allocation7 + $0x5e8] sm:$0xff]  }
 0x4c9   : > { %9654 = vmatprep.mubr.bf16.mxu0 %v3365_v24  ;;  %v13551_v24 = vld [vmem:[#allocation7 + $0x2a8] sm:$0xff]   ;;  %9866 = vmatpush1.bf16.msra.mxu0 %v13558_v30  ;;  %v1823_v30 = vpack.c.bf16 %v15537_v61, %v15531_v11 }
 0x4ca   : > { %7857 = vmatmul.mubr.bf16.gmra.mrb[4].mxu1 %v1689_v7  ;;  %9867 = vmatprep.subr.bf16.mxu0 %v13752_v0  ;;  %v3187_v7 = vld [vmem:[#allocation2 + $0x322] sm:$0xff] }
 0x4cb   : > { %7864 = vmatprep.mubr.bf16.mxu1 %v1819_v21  ;;  %8110 = vmatpush1.bf16.msra.mxu1 %v13545_v57  ;;  %v3188_v21 = vld [vmem:[#allocation2 + $0x332] sm:$0xff] }
 0x4cc   : > { %8111 = vmatprep.subr.bf16.mxu1 %v13752_v0  ;;  %v15666_v57 = vld [vmem:[#allocation2 + $0x350] sm:$0xff]  ;;  %v3239_v52 = vpack.c.bf16 %v3188_v21, %v3187_v7  ;;  %v1638_v7 = vld [vmem:[#allocation2 + $0x122] sm:$0xff] }
 0x4cd   : > { %v3369_v9 = vpack.c.bf16 %v15668_v4, %v15666_v57  ;;  %v1639_v21 = vld [vmem:[#allocation2 + $0x132] sm:$0xff] }
 0x4ce   : > { %v1695_v18 = vpack.c.bf16 %v1639_v21, %v1638_v7  ;;  %v13567_v7 = vld [vmem:[#allocation7 + $0x2e8] sm:$0xff]  }
 0x4cf   : > { %8112 = vmatpush1.bf16.msra.mxu1 %v13547_v50  ;;  %v1635_v50 = vld [vmem:[#allocation2 + $0xf2] sm:$0xff]  ;;  %v3201_v21 = vld [vmem:[#allocation2 + $0x422] sm:$0xff] }
 0x4d0   : > { %9655 = vmatmul.mubr.bf16.gmra.mrb[36].mxu0 %v15637_v14  ;;  %8113 = vmatprep.subr.bf16.mxu1 %v13752_v0  ;;  %v1693_v48 = vpack.c.bf16 %v1635_v50, %v1634_v19  ;;  %v3195_v50 = vld [vmem:[#allocation2 + $0x3c2] sm:$0xff] }
 0x4d1   : > { %9662 = vmatprep.mubr.bf16.mxu0 %v3366_v60  ;;  %v13555_v60 = vld [vmem:[#allocation7 + $0x2b8] sm:$0xff]  }
 0x4d2   : > { %7865 = vmatmul.mubr.bf16.gmra.mrb[8].mxu1 %v1690_v2  ;;  %v13560_v2 = vld [vmem:[#allocation7 + $0x5f0] sm:$0xff]  }
 0x4d3   : > { %7872 = vmatprep.mubr.bf16.mxu1 %v1820_v43  ;;  %8114 = vmatpush1.bf16.msra.mxu1 %v13549_v8  ;;  %v3189_v43 = vld [vmem:[#allocation2 + $0x342] sm:$0xff] }
 0x4d4   : > { %8115 = vmatprep.subr.bf16.mxu1 %v13752_v0  ;;  %v13559_v8 = vld [vmem:[#allocation7 + $0x2c8] sm:$0xff]   ;;  %9868 = vmatpush1.bf16.msra.mxu0 %v13560_v2  ;;  %v3196_v2 = vld [vmem:[#allocation2 + $0x3d2] sm:$0xff] }
 0x4d5   : > { %9869 = vmatprep.subr.bf16.mxu0 %v13752_v0 }
 0x4d7   : > { %8116 = vmatpush1.bf16.msra.mxu1 %v13551_v24  ;;  %v1636_v24 = vld [vmem:[#allocation2 + $0x102] sm:$0xff] }
 0x4d8   : > { %9663 = vmatmul.mubr.bf16.gmra.mrb[40].mxu0 %v15646_v63  ;;  %8117 = vmatprep.subr.bf16.mxu1 %v13752_v0 }
 0x4d9   : > { %9670 = vmatprep.mubr.bf16.mxu0 %v3367_v23  ;;  %v3190_v23 = vld [vmem:[#allocation2 + $0x352] sm:$0xff] }
 0x4da   : > { %7873 = vmatmul.mubr.bf16.gmra.mrb[12].mxu1 %v1691_v32  ;;  %v15682_v36 = vpack.c.bf16 %v3190_v23, %v3189_v43  ;;  %v1637_v32 = vld [vmem:[#allocation2 + $0x112] sm:$0xff]  ;;  %v15715_v23 = vld [vmem:[#allocation2 + $0x400] sm:$0xff] }
 0x4db   : > { %7880 = vmatprep.mubr.bf16.mxu1 %v1821_v45  ;;  %8118 = vmatpush1.bf16.msra.mxu1 %v13553_v3  ;;  %v3191_v45 = vld [vmem:[#allocation2 + $0x362] sm:$0xff]  ;;  %v15690_v3 = vld [vmem:[#allocation2 + $0x390] sm:$0xff]  ;;  %v1694_v11 = vpack.c.bf16 %v1637_v32, %v1636_v24 }
 0x4dc   : > { %8119 = vmatprep.subr.bf16.mxu1 %v13752_v0  ;;  %v3371_v49 = vpack.c.bf16 %v15517_v46, %v15690_v3  ;;  %v15713_v43 = vld [vmem:[#allocation2 + $0x3f0] sm:$0xff]  ;;  %v15724_v32 = vld [vmem:[#allocation2 + $0x420] sm:$0xff] }
 0x4dd   : > { %v3373_v62 = vpack.c.bf16 %v15715_v23, %v15713_v43  ;;  %v15722_v24 = vld [vmem:[#allocation2 + $0x410] sm:$0xff] }
 0x4df   : > { %8120 = vmatpush1.bf16.msra.mxu1 %v13555_v60  ;;  %v13562_v60 = vld [vmem:[#allocation7 + $0x5f8] sm:$0xff]  }
 0x4e0   : > { %9671 = vmatmul.mubr.bf16.gmra.mrb[44].mxu0 %v15658_v28  ;;  %8121 = vmatprep.subr.bf16.mxu1 %v13752_v0 }
 0x4e1   : > { %9678 = vmatprep.mubr.bf16.mxu0 %v3368_v40  ;;  %v3192_v40 = vld [vmem:[#allocation2 + $0x372] sm:$0xff]  ;;  %9870 = vmatpush1.bf16.msra.mxu0 %v13562_v60 }
 0x4e2   : > { %7881 = vmatmul.mubr.bf16.gmra.mrb[16].mxu1 %v1692_v35  ;;  %v15693_v61 = vpack.c.bf16 %v3192_v40, %v3191_v45  ;;  %v13563_v35 = vld [vmem:[#allocation7 + $0x2d8] sm:$0xff]   ;;  %10128 = vmatprep.subr.bf16.mxu0 %v13752_v0 }
 0x4e3   : > { %7888 = vmatprep.mubr.bf16.mxu1 %v1822_v1  ;;  %8122 = vmatpush1.bf16.msra.mxu1 %v13557_v20  ;;  %v3194_v1 = vld [vmem:[#allocation2 + $0x392] sm:$0xff]  ;;  %v15702_v20 = vld [vmem:[#allocation2 + $0x3e0] sm:$0xff] }
 0x4e4   : > { %8123 = vmatprep.subr.bf16.mxu1 %v13752_v0  ;;  %v3200_v40 = vld [vmem:[#allocation2 + $0x412] sm:$0xff] }
 0x4e5   : > { %v3202_v60 = vld [vmem:[#allocation2 + $0x432] sm:$0xff] }
 0x4e7   : > { %8124 = vmatpush1.bf16.msra.mxu1 %v13559_v8  ;;  %v3243_v8 = vpack.c.bf16 %v3196_v2, %v3195_v50  ;;  %v1830_v2 = vpack.c.bf16 %v15625_v37, %v15614_v53  ;;  %v1831_v53 = vpack.c.bf16 %v15631_v26, %v15627_v41  ;;  %v3207_v37 = vld [vmem:[#allocation2 + $0x4a2] sm:$0xff]  ;;  %v1655_v26 = vld [vmem:[#allocation2 + $0x272] sm:$0xff] }
 0x4e8   : > { %9679 = vmatmul.mubr.bf16.gmra.mrb[48].mxu0 %v3239_v52  ;;  %8125 = vmatprep.subr.bf16.mxu1 %v13752_v0  ;;  %v3193_v52 = vld [vmem:[#allocation2 + $0x382] sm:$0xff] }
 0x4e9   : > { %9686 = vmatprep.mubr.bf16.mxu0 %v3369_v9  ;;  %v15700_v9 = vld [vmem:[#allocation2 + $0x3d0] sm:$0xff]  ;;  %v15706_v46 = vpack.c.bf16 %v3194_v1, %v3193_v52  ;;  %v15749_v52 = vld [vmem:[#allocation2 + $0x480] sm:$0xff] }
 0x4ea   : > { %7889 = vmatmul.mubr.bf16.gmra.mrb[20].mxu1 %v1693_v48  ;;  %v3372_v19 = vpack.c.bf16 %v15702_v20, %v15700_v9  ;;  %v1826_v48 = vpack.c.bf16 %v15578_v34, %v15564_v25  ;;  %v1827_v25 = vpack.c.bf16 %v15588_v33, %v15580_v15  ;;  %v3199_v34 = vld [vmem:[#allocation2 + $0x402] sm:$0xff]  ;;  %v1828_v15 = vpack.c.bf16 %v15601_v16, %v15590_v13 }
 0x4eb   : > { %7896 = vmatprep.mubr.bf16.mxu1 %v1823_v30  ;;  %8126 = vmatpush1.bf16.msra.mxu1 %v13561_v44  ;;  %v3197_v30 = vld [vmem:[#allocation2 + $0x3e2] sm:$0xff] }
 0x4ec   : > { %8127 = vmatprep.subr.bf16.mxu1 %v13752_v0  ;;  %v13565_v44 = vld [vmem:[#allocation7 + $0x2e0] sm:$0xff]  }
 0x4ed   : > { %v3203_v1 = vld [vmem:[#allocation2 + $0x462] sm:$0xff] }
 0x4ef   : > { %8128 = vmatpush1.bf16.msra.mxu1 %v13563_v35  ;;  %v15747_v35 = vld [vmem:[#allocation2 + $0x470] sm:$0xff] }
 0x4f0   : > { %9687 = vmatmul.mubr.bf16.gmra.mrb[52].mxu0 %v15682_v36  ;;  %8129 = vmatprep.subr.bf16.mxu1 %v13752_v0  ;;  %v3376_v16 = vpack.c.bf16 %v15749_v52, %v15747_v35 }
 0x4f1   : > { %9694 = vmatprep.mubr.bf16.mxu0 %v3370_v5  ;;  %v3198_v5 = vld [vmem:[#allocation2 + $0x3f2] sm:$0xff] }
 0x4f2   : > { %7897 = vmatmul.mubr.bf16.gmra.mrb[24].mxu1 %v1694_v11  ;;  %v15726_v45 = vpack.c.bf16 %v3198_v5, %v3197_v30  ;;  %v15735_v11 = vld [vmem:[#allocation2 + $0x430] sm:$0xff]  ;;  %v15771_v5 = vld [vmem:[#allocation2 + $0x4c0] sm:$0xff] }
 0x4f3   : > { %7904 = vmatprep.mubr.bf16.mxu1 %v1824_v47  ;;  %8130 = vmatpush1.bf16.msra.mxu1 %v13565_v44  ;;  %v15737_v47 = vpack.c.bf16 %v3200_v40, %v3199_v34  ;;  %v3375_v33 = vpack.c.bf16 %v15560_v39, %v15735_v11  ;;  %v15753_v39 = vpack.c.bf16 %v3202_v60, %v3201_v21  ;;  %v15769_v30 = vld [vmem:[#allocation2 + $0x4b0] sm:$0xff]  ;;  %v15796_v21 = vld [vmem:[#allocation2 + $0x520] sm:$0xff] }
 0x4f4   : > { %8131 = vmatprep.subr.bf16.mxu1 %v13752_v0  ;;  %v1832_v40 = vpack.c.bf16 %v15643_v55, %v15633_v58  ;;  %v3211_v60 = vld [vmem:[#allocation2 + $0x502] sm:$0xff] }
 0x4f7   : > { %8132 = vmatpush1.bf16.msra.mxu1 %v13567_v7  ;;  %v15794_v7 = vld [vmem:[#allocation2 + $0x510] sm:$0xff] }
 0x4f8   : > { %9695 = vmatmul.mubr.bf16.gmra.mrb[56].mxu0 %v15693_v61  ;;  %8133 = vmatprep.subr.bf16.mxu1 %v13752_v0  ;;  %v3380_v55 = vpack.c.bf16 %v15796_v21, %v15794_v7 }
 0x4f9   : > { %9702 = vmatprep.mubr.bf16.mxu0 %v3371_v49  ;;  %v1647_v49 = vld [vmem:[#allocation2 + $0x1d2] sm:$0xff] }
 0x4fa   : > { %7905 = vmatmul.mubr.bf16.gmra.mrb[28].mxu1 %v1695_v18  ;;  %v3204_v18 = vld [vmem:[#allocation2 + $0x472] sm:$0xff] }
 0x4fb   : > { %7912 = vmatprep.mubr.bf16.mxu1 %v1825_v56  ;;  %v15760_v56 = vld [vmem:[#allocation2 + $0x490] sm:$0xff]  ;;  %v3247_v50 = vpack.c.bf16 %v3204_v18, %v3203_v1  ;;  %v1834_v18 = vpack.c.bf16 %v15666_v57, %v15654_v31 }
 0x4fc   : > { %v3216_v57 = vld [vmem:[#allocation2 + $0x552] sm:$0xff] }
 0x500   : > { %9703 = vmatmul.mubr.bf16.gmra.mrb[60].mxu0 %v15706_v46 }
 0x501   : > { %9710 = vmatprep.mubr.bf16.mxu0 %v3372_v19  ;;  %v15762_v19 = vld [vmem:[#allocation2 + $0x4a0] sm:$0xff] }
 0x502   : > { %7913 = vmatmul.mubr.bf16.gmra.mrb[32].mxu1 %v15542_v59  ;;  %v3374_v59 = vpack.c.bf16 %v15724_v32, %v15722_v24 }
 0x503   : > { %7920 = vmatprep.mubr.bf16.mxu1 %v1826_v48  ;;  %v3205_v48 = vld [vmem:[#allocation2 + $0x482] sm:$0xff] }
 0x508   : > { %9711 = vmatmul.mubr.bf16.gmra.mrb[64].mxu0 %v3243_v8  ;;  %v13569_v8 = vld [vmem:[#allocation7 + $0x2f0] sm:$0xff]  }
 0x509   : > { %9718 = vmatprep.mubr.bf16.mxu0 %v3373_v62  ;;  %v3206_v62 = vld [vmem:[#allocation2 + $0x492] sm:$0xff]  ;;  %8134 = vmatpush1.bf16.msra.mxu1 %v13569_v8  ;;  %v15818_v8 = vld [vmem:[#allocation2 + $0x560] sm:$0xff] }
 0x50a   : > { %7921 = vmatmul.mubr.bf16.gmra.mrb[36].mxu1 %v15553_v51  ;;  %v15745_v51 = vld [vmem:[#allocation2 + $0x1c2] sm:$0xff]  ;;  %8135 = vmatprep.subr.bf16.mxu1 %v13752_v0  ;;  %v15774_v44 = vpack.c.bf16 %v3206_v62, %v3205_v48  ;;  %v1835_v62 = vpack.c.bf16 %v15676_v38, %v15668_v4 }
 0x50b   : > { %7928 = vmatprep.mubr.bf16.mxu1 %v1827_v25  ;;  %v1699_v13 = vpack.c.bf16 %v1647_v49, %v15745_v51  ;;  %v3208_v25 = vld [vmem:[#allocation2 + $0x4b2] sm:$0xff]  ;;  %v15831_v4 = vld [vmem:[#allocation2 + $0x302] sm:$0xff] }
 0x50c   : > { %v15784_v34 = vpack.c.bf16 %v3208_v25, %v3207_v37  ;;  %v3210_v49 = vld [vmem:[#allocation2 + $0x4d2] sm:$0xff]  ;;  %v1836_v25 = vpack.c.bf16 %v15690_v3, %v15678_v54  ;;  %v3217_v38 = vld [vmem:[#allocation2 + $0x562] sm:$0xff]  ;;  %v3384_v54 = vpack.c.bf16 %v15567_v42, %v15567_v42 }
 0x50d   : > { %v3220_v3 = vld [vmem:[#allocation2 + $0x5b2] sm:$0xff] }
 0x510   : > { %9719 = vmatmul.mubr.bf16.gmra.mrb[68].mxu0 %v15726_v45 }
 0x511   : > { %9726 = vmatprep.mubr.bf16.mxu0 %v3374_v59  ;;  %v15782_v59 = vld [vmem:[#allocation2 + $0x4d0] sm:$0xff] }
 0x512   : > { %7929 = vmatmul.mubr.bf16.gmra.mrb[40].mxu1 %v15571_v27  ;;  %v1829_v27 = vpack.c.bf16 %v15612_v6, %v15567_v42  ;;  %v3377_v6 = vpack.c.bf16 %v15762_v19, %v15760_v56  ;;  %v3379_v41 = vpack.c.bf16 %v15610_v10, %v15782_v59 }
 0x513   : > { %7936 = vmatprep.mubr.bf16.mxu1 %v1828_v15  ;;  %v13571_v15 = vld [vmem:[#allocation7 + $0x2f8] sm:$0xff]  }
 0x514   : > { %8136 = vmatpush1.bf16.msra.mxu1 %v13571_v15 }
 0x515   : > { %11700 = vmatprep.subr.bf16.mxu1 %v13752_v0 }
 0x518   : > { %9727 = vmatmul.mubr.bf16.gmra.mrb[72].mxu0 %v15737_v47 }
 0x519   : > { %9734 = vmatprep.mubr.bf16.mxu0 %v3375_v33  ;;  %v3209_v33 = vld [vmem:[#allocation2 + $0x4c2] sm:$0xff] }
 0x51a   : > { %7937 = vmatmul.mubr.bf16.gmra.mrb[44].mxu1 %v1699_v13  ;;  %v15800_v10 = vpack.c.bf16 %v3210_v49, %v3209_v33  ;;  %v3212_v13 = vld [vmem:[#allocation2 + $0x512] sm:$0xff]  ;;  %v1837_v33 = vpack.c.bf16 %v15700_v9, %v15567_v42 }
 0x51b   : > { %7944 = vmatprep.mubr.bf16.mxu1 %v1829_v27  ;;  %v15807_v27 = vld [vmem:[#allocation2 + $0x530] sm:$0xff]  ;;  %v3251_v1 = vpack.c.bf16 %v3212_v13, %v3211_v60  ;;  %v1839_v60 = vpack.c.bf16 %v15722_v24, %v15715_v23  ;;  %v3223_v13 = vld [vmem:[#allocation2 + $0x5e2] sm:$0xff] }
 0x51c   : > { %v3222_v9 = vld [vmem:[#allocation2 + $0x5d2] sm:$0xff]  ;;  %v3225_v23 = vld [vmem:[#allocation2 + $0x602] sm:$0xff] }
 0x51d   : > { %v3226_v24 = vld [vmem:[#allocation2 + $0x612] sm:$0xff] }
 0x520   : > { %9735 = vmatmul.mubr.bf16.gmra.mrb[76].mxu0 %v15753_v39 }
 0x521   : > { %9742 = vmatprep.mubr.bf16.mxu0 %v3376_v16  ;;  %v15809_v16 = vld [vmem:[#allocation2 + $0x540] sm:$0xff] }
 0x522   : > { %7945 = vmatmul.mubr.bf16.gmra.mrb[48].mxu1 %v15593_v29  ;;  %v3378_v29 = vpack.c.bf16 %v15771_v5, %v15769_v30 }
 0x523   : > { %7952 = vmatprep.mubr.bf16.mxu1 %v1830_v2  ;;  %v3214_v2 = vld [vmem:[#allocation2 + $0x532] sm:$0xff] }
 0x528   : > { %9743 = vmatmul.mubr.bf16.gmra.mrb[80].mxu0 %v3247_v50  ;;  %v3213_v50 = vld [vmem:[#allocation2 + $0x522] sm:$0xff] }
 0x529   : > { %9750 = vmatprep.mubr.bf16.mxu0 %v3377_v6  ;;  %v15816_v6 = vld [vmem:[#allocation2 + $0x550] sm:$0xff]  ;;  %v3252_v48 = vpack.c.bf16 %v3214_v2, %v3213_v50  ;;  %v3258_v2 = vpack.c.bf16 %v3226_v24, %v3225_v23  ;;  %v1846_v23 = vpack.c.bf16 %v15807_v27, %v15796_v21  ;;  %v15944_v21 = vld [vmem:[#allocation2 + $0x242] sm:$0xff] }
 0x52a   : > { %7953 = vmatmul.mubr.bf16.gmra.mrb[52].mxu1 %v15604_v17  ;;  %v15792_v17 = vld [vmem:[#allocation2 + $0x262] sm:$0xff]  ;;  %v3382_v31 = vpack.c.bf16 %v15818_v8, %v15816_v6 }
 0x52b   : > { %7960 = vmatprep.mubr.bf16.mxu1 %v1831_v53  ;;  %v1703_v58 = vpack.c.bf16 %v1655_v26, %v15792_v17  ;;  %v15825_v53 = vld [vmem:[#allocation2 + $0x570] sm:$0xff] }
 0x530   : > { %9751 = vmatmul.mubr.bf16.gmra.mrb[84].mxu0 %v15774_v44 }
 0x531   : > { %9758 = vmatprep.mubr.bf16.mxu0 %v3378_v29  ;;  %v3347_v29 = vld [vmem:[#allocation2 + $0x580] sm:$0xff] }
 0x532   : > { %7961 = vmatmul.mubr.bf16.gmra.mrb[56].mxu1 %v15619_v22  ;;  %v1833_v22 = vpack.c.bf16 %v15652_v12, %v15567_v42  ;;  %v3381_v12 = vpack.c.bf16 %v15809_v16, %v15807_v27 }
 0x533   : > { %7968 = vmatprep.mubr.bf16.mxu1 %v1832_v40  ;;  %v3383_v40 = vpack.c.bf16 %v3347_v29, %v15825_v53 }
 0x538   : > { %9759 = vmatmul.mubr.bf16.gmra.mrb[88].mxu0 %v15784_v34 }
 0x539   : > { %9766 = vmatprep.mubr.bf16.mxu0 %v3379_v41  ;;  %v3218_v41 = vld [vmem:[#allocation2 + $0x572] sm:$0xff] }
 0x53a   : > { %7969 = vmatmul.mubr.bf16.gmra.mrb[60].mxu1 %v1703_v58  ;;  %v3254_v15 = vpack.c.bf16 %v3218_v41, %v3217_v38  ;;  %v1838_v58 = vpack.c.bf16 %v15713_v43, %v15702_v20  ;;  %v15847_v20 = vld [vmem:[#allocation2 + $0x3a2] sm:$0xff]  ;;  %v1671_v43 = vld [vmem:[#allocation2 + $0x3b2] sm:$0xff] }
 0x53b   : > { %7976 = vmatprep.mubr.bf16.mxu1 %v1833_v22  ;;  %v3221_v22 = vld [vmem:[#allocation2 + $0x5c2] sm:$0xff]  ;;  %v1711_v50 = vpack.c.bf16 %v1671_v43, %v15847_v20  ;;  %v13568_v41 = vld [vmem:[#allocation7 + $0x610] sm:$0xff]  }
 0x53c   : > { %v15879_v38 = vld [vmem:[#allocation2 + $0x1a2] sm:$0xff]  ;;  %v15925_v43 = vld [vmem:[#allocation2 + $0x212] sm:$0xff] }
 0x540   : > { %9767 = vmatmul.mubr.bf16.gmra.mrb[92].mxu0 %v15800_v10 }
 0x541   : > { %9774 = vmatprep.mubr.bf16.mxu0 %v3380_v55  ;;  %v3256_v55 = vpack.c.bf16 %v3222_v9, %v3221_v22  ;;  %v3427_v22 = vld [vmem:[#allocation2 + $0x1c1] sm:$0xff] }
 0x542   : > { %7977 = vmatmul.mubr.bf16.gmra.mrb[64].mxu1 %v15637_v14  ;;  %v3215_v14 = vld [vmem:[#allocation2 + $0x542] sm:$0xff] }
 0x543   : > { %7984 = vmatprep.mubr.bf16.mxu1 %v1834_v18  ;;  %v3253_v37 = vpack.c.bf16 %v3216_v57, %v3215_v14  ;;  %v13564_v57 = vld [vmem:[#allocation7 + $0x600] sm:$0xff]  }
 0x548   : > { %9775 = vmatmul.mubr.bf16.gmra.mrb[96].mxu0 %v3251_v1  ;;  %v3224_v1 = vld [vmem:[#allocation2 + $0x5f2] sm:$0xff] }
 0x549   : > { %9782 = vmatprep.mubr.bf16.mxu0 %v3381_v12  ;;  %v3257_v18 = vpack.c.bf16 %v3224_v1, %v3223_v13  ;;  %v15851_v12 = vld [vmem:[#allocation2 + $0x162] sm:$0xff]  ;;  %v13574_v13 = vld [vmem:[#allocation7 + $0x630] sm:$0xff]  }
 0x54a   : > { %7985 = vmatmul.mubr.bf16.gmra.mrb[68].mxu1 %v15646_v63  ;;  %v1663_v63 = vld [vmem:[#allocation2 + $0x312] sm:$0xff] }
 0x54b   : > { %7992 = vmatprep.mubr.bf16.mxu1 %v1835_v62  ;;  %v1707_v26 = vpack.c.bf16 %v1663_v63, %v15831_v4  ;;  %v15862_v62 = vld [vmem:[#allocation2 + $0x172] sm:$0xff] }
 0x54c   : > { %v15877_v63 = vld [vmem:[#allocation2 + $0x192] sm:$0xff] }
 0x54d   : > { %v15921_v1 = vld [vmem:[#allocation2 + $0x1f1] sm:$0xff] }
 0x550   : > { %9783 = vmatmul.mubr.bf16.gmra.mrb[100].mxu0 %v3252_v48  ;;  %v15860_v48 = vld [vmem:[#allocation2 + $0x161] sm:$0xff] }
 0x551   : > { %9790 = vmatprep.mubr.bf16.mxu0 %v3382_v31  ;;  %v15864_v31 = vld [vmem:[#allocation2 + $0x182] sm:$0xff] }
 0x552   : > { %7993 = vmatmul.mubr.bf16.gmra.mrb[72].mxu1 %v15658_v28  ;;  %v3219_v28 = vld [vmem:[#allocation2 + $0x5a2] sm:$0xff]  ;;  %v3613_v29 = vpack.c.bf16 %v15864_v31, %v15862_v62 }
 0x553   : > { %8000 = vmatprep.mubr.bf16.mxu1 %v1836_v25  ;;  %v3255_v49 = vpack.c.bf16 %v3220_v3, %v3219_v28  ;;  %v15875_v25 = vld [vmem:[#allocation2 + $0x181] sm:$0xff] }
 0x554   : > { %v13572_v28 = vld [vmem:[#allocation7 + $0x620] sm:$0xff]  }
 0x555   : > { %v15905_v3 = vld [vmem:[#allocation2 + $0x442] sm:$0xff] }
 0x558   : > { %9791 = vmatmul.mubr.bf16.gmra.mrb[104].mxu0 %v3253_v37  ;;  %v15873_v37 = vld [vmem:[#allocation2 + $0x171] sm:$0xff] }
 0x559   : > { %9798 = vmatprep.mubr.bf16.mxu0 %v3383_v40  ;;  %v13566_v40 = vld [vmem:[#allocation7 + $0x608] sm:$0xff]  }
 0x55a   : > { %8001 = vmatmul.mubr.bf16.gmra.mrb[76].mxu1 %v1707_v26  ;;  %v15890_v26 = vld [vmem:[#allocation2 + $0x191] sm:$0xff] }
 0x55b   : > { %8008 = vmatprep.mubr.bf16.mxu1 %v1837_v33  ;;  %v13570_v33 = vld [vmem:[#allocation7 + $0x618] sm:$0xff]  }
 0x560   : > { %9799 = vmatmul.mubr.bf16.gmra.mrb[108].mxu0 %v3254_v15  ;;  %v15892_v15 = vld [vmem:[#allocation2 + $0x1a1] sm:$0xff] }
 0x561   : > { %9806 = vmatprep.mubr.bf16.mxu0 %v3384_v54 }
 0x562   : > { %8009 = vmatmul.mubr.bf16.gmra.mrb[80].mxu1 %v15682_v36  ;;  %v1840_v36 = vpack.c.bf16 %v15735_v11, %v15724_v32  ;;  %v1841_v32 = vpack.c.bf16 %v15747_v35, %v15567_v42  ;;  %v15858_v11 = vld [vmem:[#allocation2 + $0x151] sm:$0xff]  ;;  %v1842_v35 = vpack.c.bf16 %v15760_v56, %v15749_v52  ;;  %v3485_v52 = vpack.c.bf16 %v15875_v25, %v15873_v37 }
 0x563   : > { %8016 = vmatprep.mubr.bf16.mxu1 %v1838_v58  ;;  %v3484_v14 = vpack.c.bf16 %v15860_v48, %v15858_v11  ;;  %v3614_v56 = vpack.c.bf16 %v15879_v38, %v15877_v63  ;;  %v15907_v58 = vld [vmem:[#allocation2 + $0x1b1] sm:$0xff] }
 0x568   : > { %9807 = vmatmul.mubr.bf16.gmra.mrb[112].mxu0 %v3255_v49  ;;  %v1679_v49 = vld [vmem:[#allocation2 + $0x452] sm:$0xff] }
 0x569   : > { %9814 = vmatprep.mubr.bf16.mxu0 %v3384_v54  ;;  %v1715_v9 = vpack.c.bf16 %v1679_v49, %v15905_v3 }
 0x56a   : > { %8017 = vmatmul.mubr.bf16.gmra.mrb[84].mxu1 %v15693_v61  ;;  %v15849_v61 = vld [vmem:[#allocation2 + $0x152] sm:$0xff] }
 0x56b   : > { %8024 = vmatprep.mubr.bf16.mxu1 %v1839_v60 }
 0x570   : > { %9815 = vmatmul.mubr.bf16.gmra.mrb[116].mxu0 %v3256_v55  ;;  %v1845_v55 = vpack.c.bf16 %v15794_v7, %v15567_v42  ;;  %v15927_v42 = vld [vmem:[#allocation2 + $0x222] sm:$0xff] }
 0x571   : > { %9822 = vmatprep.mubr.bf16.mxu0 %v3384_v54  ;;  %v3617_v24 = vpack.c.bf16 %v15927_v42, %v15925_v43 }
 0x572   : > { %8025 = vmatmul.mubr.bf16.gmra.mrb[88].mxu1 %v15706_v46  ;;  %v3612_v46 = vpack.c.bf16 %v15851_v12, %v15849_v61 }
 0x573   : > { %8032 = vmatprep.mubr.bf16.mxu1 %v1840_v36  ;;  %v13575_v36 = vld [vmem:[#allocation7 + $0x638] sm:$0xff]  }
 0x578   : > { %9823 = vmatmul.mubr.bf16.gmra.mrb[120].mxu0 %v3257_v18  ;;  %v15923_v18 = vld [vmem:[#allocation2 + $0x201] sm:$0xff] }
 0x579   : > { %9830 = vmatprep.mubr.bf16.mxu0 %v3384_v54  ;;  %v15894_v54 = vld [vmem:[#allocation2 + $0x1b2] sm:$0xff]  ;;  %v3488_v7 = vpack.c.bf16 %v15923_v18, %v15921_v1 }
 0x57a   : > { %8033 = vmatmul.mubr.bf16.gmra.mrb[92].mxu1 %v1711_v50  ;;  %v13576_v50 = vld [vmem:[#allocation7 + $0x640] sm:$0xff]  }
 0x57b   : > { %8040 = vmatprep.mubr.bf16.mxu1 %v1841_v32  ;;  %v15940_v32 = vld [vmem:[#allocation2 + $0x221] sm:$0xff] }
 0x580   : > { %9831 = vmatmul.mubr.bf16.gmra.mrb[124].mxu0 %v3258_v2  ;;  %v15938_v2 = vld [vmem:[#allocation2 + $0x211] sm:$0xff] }
 0x581   : > { %9871 = vmatprep.mubr.bf16.mxu0 %v3612_v46  ;;  %v13577_v46 = vld [vmem:[#allocation7 + $0x648] sm:$0xff]   ;;  %v3489_v27 = vpack.c.bf16 %v15940_v32, %v15938_v2 }
 0x582   : > { %8041 = vmatmul.mubr.bf16.gmra.mrb[96].mxu1 %v15726_v45  ;;  %v1843_v45 = vpack.c.bf16 %v15769_v30, %v15762_v19  ;;  %v3486_v19 = vpack.c.bf16 %v15892_v15, %v15890_v26  ;;  %v1844_v30 = vpack.c.bf16 %v15782_v59, %v15771_v5  ;;  %v13573_v5 = vld [vmem:[#allocation7 + $0x628] sm:$0xff]   ;;  %v15909_v59 = vld [vmem:[#allocation2 + $0x1f2] sm:$0xff] }
 0x583   : > { %8048 = vmatprep.mubr.bf16.mxu1 %v1842_v35 }
 0x588   : > { %9872 = vmatmul.mubr.bf16.vlgmr.msra.gmra.mrb[0].mxu0 %v3484_v14  ;;  %v15942_v14 = vld [vmem:[#allocation2 + $0x232] sm:$0xff] }
 0x589   : > { %10129 = vmatpush1.bf16.msra.mxu0 %v13564_v57  ;;  %9879 = vmatprep.mubr.bf16.mxu0 %v3613_v29  ;;  %v3618_v35 = vpack.c.bf16 %v15944_v21, %v15942_v14  ;;  %v13578_v57 = vld [vmem:[#allocation7 + $0x650] sm:$0xff]  }
 0x58a   : > { %10130 = vmatprep.subr.bf16.mxu0 %v13752_v0  ;;  %8049 = vmatmul.mubr.bf16.gmra.mrb[100].mxu1 %v15737_v47  ;;  %v3615_v47 = vpack.c.bf16 %v15745_v51, %v15894_v54  ;;  %v15911_v51 = vld [vmem:[#allocation2 + $0x202] sm:$0xff]  ;;  %v15955_v29 = vld [vmem:[#allocation2 + $0x231] sm:$0xff] }
 0x58b   : > { %8056 = vmatprep.mubr.bf16.mxu1 %v1843_v45  ;;  %v3616_v60 = vpack.c.bf16 %v15911_v51, %v15909_v59  ;;  %v15969_v45 = vld [vmem:[#allocation2 + $0x4e2] sm:$0xff] }
 0x58d   : > { %10131 = vmatpush1.bf16.msra.mxu0 %v13566_v40  ;;  %v15957_v40 = vld [vmem:[#allocation2 + $0x241] sm:$0xff] }
 0x58e   : > { %10132 = vmatprep.subr.bf16.mxu0 %v13752_v0 }
 0x590   : > { %9880 = vmatmul.mubr.bf16.gmra.mrb[4].mxu0 %v3485_v52  ;;  %v15959_v52 = vld [vmem:[#allocation2 + $0x252] sm:$0xff] }
 0x591   : > { %9887 = vmatprep.mubr.bf16.mxu0 %v3614_v56  ;;  %10133 = vmatpush1.bf16.msra.mxu0 %v13568_v41  ;;  %v1687_v56 = vld [vmem:[#allocation2 + $0x4f2] sm:$0xff] }
 0x592   : > { %10134 = vmatprep.subr.bf16.mxu0 %v13752_v0  ;;  %8057 = vmatmul.mubr.bf16.gmra.mrb[104].mxu1 %v15753_v39  ;;  %v3487_v39 = vpack.c.bf16 %v3427_v22, %v15907_v58  ;;  %v15971_v41 = vld [vmem:[#allocation2 + $0x251] sm:$0xff]  ;;  %v1881_v22 = vld [vmem:[#allocation2 + $0xa1] sm:$0xff] }
 0x593   : > { %8064 = vmatprep.mubr.bf16.mxu1 %v1844_v30  ;;  %v2009_v30 = vld [vmem:[#allocation2 + $0xa2] sm:$0xff] }
 0x595   : > { %10135 = vmatpush1.bf16.msra.mxu0 %v13570_v33  ;;  %v13579_v33 = vld [vmem:[#allocation7 + $0x658] sm:$0xff]  }
 0x596   : > { %10136 = vmatprep.subr.bf16.mxu0 %v13752_v0 }
 0x598   : > { %9888 = vmatmul.mubr.bf16.gmra.mrb[8].mxu0 %v3486_v19  ;;  %v3435_v19 = vld [vmem:[#allocation2 + $0x261] sm:$0xff] }
 0x599   : > { %9895 = vmatprep.mubr.bf16.mxu0 %v3615_v47  ;;  %10137 = vmatpush1.bf16.msra.mxu0 %v13572_v28  ;;  %v2010_v47 = vld [vmem:[#allocation2 + $0xb2] sm:$0xff] }
 0x59a   : > { %10138 = vmatprep.subr.bf16.mxu0 %v13752_v0  ;;  %8065 = vmatmul.mubr.bf16.gmra.mrb[108].mxu1 %v1715_v9  ;;  %v15973_v28 = vld [vmem:[#allocation2 + $0x292] sm:$0xff] }
 0x59b   : > { %8072 = vmatprep.mubr.bf16.mxu1 %v1845_v55  ;;  %v15982_v9 = vld [vmem:[#allocation2 + $0x291] sm:$0xff]  ;;  %v2011_v55 = vld [vmem:[#allocation2 + $0xc2] sm:$0xff] }
 0x59d   : > { %10139 = vmatpush1.bf16.msra.mxu0 %v13573_v5  ;;  %v1882_v5 = vld [vmem:[#allocation2 + $0xb1] sm:$0xff] }
 0x59e   : > { %10140 = vmatprep.subr.bf16.mxu0 %v13752_v0 }
 0x5a0   : > { %9896 = vmatmul.mubr.bf16.gmra.mrb[12].mxu0 %v3487_v39  ;;  %v15984_v39 = vld [vmem:[#allocation2 + $0x2a1] sm:$0xff] }
 0x5a1   : > { %9903 = vmatprep.mubr.bf16.mxu0 %v3616_v60  ;;  %10141 = vmatpush1.bf16.msra.mxu0 %v13574_v13  ;;  %v2012_v60 = vld [vmem:[#allocation2 + $0xd2] sm:$0xff] }
 0x5a2   : > { %10142 = vmatprep.subr.bf16.mxu0 %v13752_v0  ;;  %8073 = vmatmul.mubr.bf16.gmra.mrb[112].mxu1 %v15774_v44  ;;  %v1847_v44 = vpack.c.bf16 %v15816_v6, %v15809_v16  ;;  %v3490_v16 = vpack.c.bf16 %v15957_v40, %v15955_v29  ;;  %v1848_v6 = vpack.c.bf16 %v15825_v53, %v15818_v8  ;;  %v15975_v8 = vld [vmem:[#allocation2 + $0x2a2] sm:$0xff]  ;;  %v15986_v13 = vld [vmem:[#allocation2 + $0x2b2] sm:$0xff] }
 0x5a3   : > { %8080 = vmatprep.mubr.bf16.mxu1 %v1846_v23  ;;  %v2073_v53 = vpack.c.bf16 %v2010_v47, %v2009_v30  ;;  %v3620_v49 = vpack.c.bf16 %v15975_v8, %v15973_v28  ;;  %v3492_v23 = vpack.c.bf16 %v15984_v39, %v15982_v9 }
 0x5a5   : > { %10143 = vmatpush1.bf16.msra.mxu0 %v13575_v36  ;;  %v15988_v36 = vld [vmem:[#allocation2 + $0x2c2] sm:$0xff] }
 0x5a6   : > { %10144 = vmatprep.subr.bf16.mxu0 %v13752_v0 }
 0x5a8   : > { %9904 = vmatmul.mubr.bf16.gmra.mrb[16].mxu0 %v3488_v7  ;;  %v1945_v7 = vpack.c.bf16 %v1882_v5, %v1881_v22  ;;  %v16009_v22 = vld [vmem:[#allocation2 + $0x2d1] sm:$0xff]  ;;  %v16011_v5 = vld [vmem:[#allocation2 + $0x2e1] sm:$0xff] }
 0x5a9   : > { %9911 = vmatprep.mubr.bf16.mxu0 %v3617_v24  ;;  %10145 = vmatpush1.bf16.msra.mxu0 %v13576_v50  ;;  %v2074_v24 = vpack.c.bf16 %v2012_v60, %v2011_v55  ;;  %v3621_v50 = vpack.c.bf16 %v15988_v36, %v15986_v13  ;;  %v2015_v55 = vld [vmem:[#allocation2 + $0x102] sm:$0xff]  ;;  %v2016_v60 = vld [vmem:[#allocation2 + $0x112] sm:$0xff] }
 0x5aa   : > { %10146 = vmatprep.subr.bf16.mxu0 %v13752_v0  ;;  %8081 = vmatmul.mubr.bf16.gmra.mrb[116].mxu1 %v15784_v34  ;;  %v3619_v34 = vpack.c.bf16 %v15792_v17, %v15959_v52  ;;  %v1719_v17 = vpack.c.bf16 %v1687_v56, %v15969_v45  ;;  %v15998_v56 = vld [vmem:[#allocation2 + $0x2d2] sm:$0xff] }
 0x5ab   : > { %8088 = vmatprep.mubr.bf16.mxu1 %v1847_v44  ;;  %v1884_v44 = vld [vmem:[#allocation2 + $0xd1] sm:$0xff] }
 0x5ad   : > { %10147 = vmatpush1.bf16.msra.mxu0 %v13577_v46  ;;  %v1883_v46 = vld [vmem:[#allocation2 + $0xc1] sm:$0xff] }
 0x5ae   : > { %10148 = vmatprep.subr.bf16.mxu0 %v13752_v0 }
 0x5b0   : > { %9912 = vmatmul.mubr.bf16.gmra.mrb[20].mxu0 %v3489_v27  ;;  %v13600_v27 = vld [vmem:[#allocation7 + $0x300] sm:$0xff]  }
 0x5b1   : > { %9919 = vmatprep.mubr.bf16.mxu0 %v3618_v35  ;;  %10149 = vmatpush1.bf16.msra.mxu0 %v13578_v57  ;;  %v15994_v35 = vld [vmem:[#allocation2 + $0x2b1] sm:$0xff]  ;;  %v13580_v57 = vld [vmem:[#allocation7 + $0x660] sm:$0xff]  }
 0x5b2   : > { %10150 = vmatprep.subr.bf16.mxu0 %v13752_v0  ;;  %8089 = vmatmul.mubr.bf16.gmra.mrb[120].mxu1 %v15800_v10  ;;  %v3491_v10 = vpack.c.bf16 %v3435_v19, %v15971_v41  ;;  %v1946_v19 = vpack.c.bf16 %v1884_v44, %v1883_v46  ;;  %v2076_v46 = vpack.c.bf16 %v2016_v60, %v2015_v55  ;;  %v13603_v44 = vld [vmem:[#allocation7 + $0x318] sm:$0xff]  }
 0x5b3   : > { %8096 = vmatprep.mubr.bf16.mxu1 %v1848_v6  ;;  %v2013_v6 = vld [vmem:[#allocation2 + $0xe2] sm:$0xff] }
 0x5b5   : > { %10151 = vmatpush1.bf16.msra.mxu0 %v13579_v33  ;;  %v16000_v33 = vld [vmem:[#allocation2 + $0x2e2] sm:$0xff] }
 0x5b6   : > { %10152 = vmatprep.subr.bf16.mxu0 %v13752_v0 }
 0x5b8   : > { %9920 = vmatmul.mubr.bf16.gmra.mrb[24].mxu0 %v3490_v16  ;;  %v15996_v16 = vld [vmem:[#allocation2 + $0x2c1] sm:$0xff] }
 0x5b9   : > { %9927 = vmatprep.mubr.bf16.mxu0 %v3619_v34  ;;  %v2014_v34 = vld [vmem:[#allocation2 + $0xf2] sm:$0xff]  ;;  %10153 = vmatpush1.bf16.msra.mxu0 %v13580_v57  ;;  %v3493_v30 = vpack.c.bf16 %v15996_v16, %v15994_v35  ;;  %v1887_v57 = vld [vmem:[#allocation2 + $0x101] sm:$0xff] }
 0x5ba   : > { %8097 = vmatmul.mubr.bf16.gmra.mrb[124].mxu1 %v1719_v17  ;;  %10154 = vmatprep.subr.bf16.mxu0 %v13752_v0  ;;  %v2075_v47 = vpack.c.bf16 %v2014_v34, %v2013_v6  ;;  %v13601_v17 = vld [vmem:[#allocation7 + $0x308] sm:$0xff]   ;;  %v1888_v6 = vld [vmem:[#allocation2 + $0x111] sm:$0xff] }
 0x5bb   : > { %8137 = vmatprep.mubr.bf16.mxu1 %v2073_v53  ;;  %v1885_v53 = vld [vmem:[#allocation2 + $0xe1] sm:$0xff] }
 0x5bc   : > { %v13581_v34 = vld [vmem:[#allocation7 + $0x668] sm:$0xff]  }
 0x5bd   : > { %10155 = vmatpush1.bf16.msra.mxu0 %v13581_v34  ;;  %v2078_v34 = vpack.c.bf16 %v15862_v62, %v15851_v12  ;;  %v16057_v12 = vld [vmem:[#allocation2 + $0x382] sm:$0xff]  ;;  %v1950_v62 = vpack.c.bf16 %v15873_v37, %v15860_v48  ;;  %v16070_v48 = vld [vmem:[#allocation2 + $0x371] sm:$0xff] }
 0x5be   : > { %10156 = vmatprep.subr.bf16.mxu0 %v13752_v0  ;;  %v16072_v37 = vld [vmem:[#allocation2 + $0x381] sm:$0xff] }
 0x5c0   : > { %9928 = vmatmul.mubr.bf16.gmra.mrb[28].mxu0 %v3491_v10  ;;  %v3622_v10 = vpack.c.bf16 %v16000_v33, %v15998_v56 }
 0x5c1   : > { %9935 = vmatprep.mubr.bf16.mxu0 %v3620_v49  ;;  %v1886_v49 = vld [vmem:[#allocation2 + $0xf1] sm:$0xff] }
 0x5c2   : > { %8138 = vmatmul.mubr.bf16.vlgmr.msra.gmra.mrb[0].mxu1 %v1945_v7  ;;  %v13602_v7 = vld [vmem:[#allocation7 + $0x310] sm:$0xff]  }
 0x5c3   : > { %11716 = vmatpush1.bf16.msra.mxu1 %v13600_v27  ;;  %8145 = vmatprep.mubr.bf16.mxu1 %v2074_v24  ;;  %v1947_v24 = vpack.c.bf16 %v1886_v49, %v1885_v53  ;;  %v1948_v53 = vpack.c.bf16 %v1888_v6, %v1887_v57 }
 0x5c4   : > { %11701 = vmatprep.subr.bf16.mxu1 %v13752_v0 }
 0x5c7   : > { %11717 = vmatpush1.bf16.msra.mxu1 %v13601_v17  ;;  %v13604_v17 = vld [vmem:[#allocation7 + $0x320] sm:$0xff]  }
 0x5c8   : > { %9936 = vmatmul.mubr.bf16.gmra.mrb[32].mxu0 %v3492_v23  ;;  %11702 = vmatprep.subr.bf16.mxu1 %v13752_v0  ;;  %v16013_v23 = vld [vmem:[#allocation2 + $0x2f2] sm:$0xff] }
 0x5c9   : > { %9943 = vmatprep.mubr.bf16.mxu0 %v3621_v50  ;;  %v3494_v50 = vpack.c.bf16 %v16011_v5, %v16009_v22  ;;  %v3623_v27 = vpack.c.bf16 %v15831_v4, %v16013_v23  ;;  %v16025_v4 = vld [vmem:[#allocation2 + $0x342] sm:$0xff] }
 0x5ca   : > { %8146 = vmatmul.mubr.bf16.gmra.mrb[4].mxu1 %v1946_v19  ;;  %v16021_v19 = vld [vmem:[#allocation2 + $0x2f1] sm:$0xff] }
 0x5cb   : > { %8153 = vmatprep.mubr.bf16.mxu1 %v2075_v47  ;;  %11718 = vmatpush1.bf16.msra.mxu1 %v13602_v7  ;;  %v2017_v47 = vld [vmem:[#allocation2 + $0x142] sm:$0xff] }
 0x5cc   : > { %11703 = vmatprep.subr.bf16.mxu1 %v13752_v0  ;;  %v2077_v55 = vpack.c.bf16 %v15849_v61, %v2017_v47  ;;  %v13605_v7 = vld [vmem:[#allocation7 + $0x328] sm:$0xff]   ;;  %v13607_v47 = vld [vmem:[#allocation7 + $0x338] sm:$0xff]  }
 0x5cd   : > { %v16040_v61 = vld [vmem:[#allocation2 + $0x362] sm:$0xff] }
 0x5cf   : > { %11719 = vmatpush1.bf16.msra.mxu1 %v13603_v44  ;;  %v16038_v44 = vld [vmem:[#allocation2 + $0x352] sm:$0xff] }
 0x5d0   : > { %9944 = vmatmul.mubr.bf16.gmra.mrb[36].mxu0 %v3493_v30  ;;  %11704 = vmatprep.subr.bf16.mxu1 %v13752_v0  ;;  %v3443_v30 = vld [vmem:[#allocation2 + $0x301] sm:$0xff] }
 0x5d1   : > { %9951 = vmatprep.mubr.bf16.mxu0 %v3622_v10  ;;  %v16023_v10 = vld [vmem:[#allocation2 + $0x332] sm:$0xff]  ;;  %v3495_v49 = vpack.c.bf16 %v3443_v30, %v16021_v19  ;;  %v3625_v30 = vpack.c.bf16 %v16040_v61, %v16038_v44 }
 0x5d2   : > { %8154 = vmatmul.mubr.bf16.gmra.mrb[8].mxu1 %v1947_v24  ;;  %v3624_v60 = vpack.c.bf16 %v16025_v4, %v16023_v10  ;;  %v1889_v24 = vld [vmem:[#allocation2 + $0x141] sm:$0xff] }
 0x5d3   : > { %8161 = vmatprep.mubr.bf16.mxu1 %v2076_v46  ;;  %11720 = vmatpush1.bf16.msra.mxu1 %v13604_v17  ;;  %v16036_v46 = vld [vmem:[#allocation2 + $0x341] sm:$0xff]  ;;  %v1949_v57 = vpack.c.bf16 %v15858_v11, %v1889_v24  ;;  %v13582_v17 = vld [vmem:[#allocation7 + $0x670] sm:$0xff]  }
 0x5d4   : > { %11705 = vmatprep.subr.bf16.mxu1 %v13752_v0  ;;  %v16053_v11 = vld [vmem:[#allocation2 + $0x361] sm:$0xff]  ;;  %10157 = vmatpush1.bf16.msra.mxu0 %v13582_v17  ;;  %v13583_v17 = vld [vmem:[#allocation7 + $0x678] sm:$0xff]  }
 0x5d5   : > { %10158 = vmatprep.subr.bf16.mxu0 %v13752_v0 }
 0x5d7   : > { %11721 = vmatpush1.bf16.msra.mxu1 %v13605_v7  ;;  %v2079_v7 = vpack.c.bf16 %v15877_v63, %v15864_v31  ;;  %v1951_v31 = vpack.c.bf16 %v15890_v26, %v15875_v25  ;;  %v3498_v63 = vpack.c.bf16 %v16072_v37, %v16070_v48  ;;  %v3451_v25 = vld [vmem:[#allocation2 + $0x3a1] sm:$0xff] }
 0x5d8   : > { %9952 = vmatmul.mubr.bf16.gmra.mrb[40].mxu0 %v3494_v50  ;;  %11706 = vmatprep.subr.bf16.mxu1 %v13752_v0  ;;  %v16034_v50 = vld [vmem:[#allocation2 + $0x331] sm:$0xff]  ;;  %v2025_v26 = vld [vmem:[#allocation2 + $0x1e2] sm:$0xff] }
 0x5d9   : > { %9959 = vmatprep.mubr.bf16.mxu0 %v3623_v27  ;;  %v13606_v27 = vld [vmem:[#allocation7 + $0x330] sm:$0xff]   ;;  %v3496_v6 = vpack.c.bf16 %v16036_v46, %v16034_v50  ;;  %10159 = vmatpush1.bf16.msra.mxu0 %v13583_v17 }
 0x5da   : > { %8162 = vmatmul.mubr.bf16.gmra.mrb[12].mxu1 %v1948_v53  ;;  %v16051_v53 = vld [vmem:[#allocation2 + $0x351] sm:$0xff] }
 0x5db   : > { %8169 = vmatprep.mubr.bf16.mxu1 %v2077_v55  ;;  %11722 = vmatpush1.bf16.msra.mxu1 %v13606_v27  ;;  %v16055_v55 = vld [vmem:[#allocation2 + $0x372] sm:$0xff]  ;;  %v13609_v27 = vld [vmem:[#allocation7 + $0x348] sm:$0xff]  }
 0x5dc   : > { %11707 = vmatprep.subr.bf16.mxu1 %v13752_v0  ;;  %v3626_v24 = vpack.c.bf16 %v16057_v12, %v16055_v55 }
 0x5df   : > { %11723 = vmatpush1.bf16.msra.mxu1 %v13607_v47  ;;  %v13611_v47 = vld [vmem:[#allocation7 + $0x358] sm:$0xff]  }
 0x5e0   : > { %9960 = vmatmul.mubr.bf16.gmra.mrb[44].mxu0 %v3495_v49  ;;  %11708 = vmatprep.subr.bf16.mxu1 %v13752_v0  ;;  %v13608_v49 = vld [vmem:[#allocation7 + $0x340] sm:$0xff]  }
 0x5e1   : > { %9967 = vmatprep.mubr.bf16.mxu0 %v3624_v60  ;;  %v3497_v60 = vpack.c.bf16 %v16053_v11, %v16051_v53 }
 0x5e2   : > { %8170 = vmatmul.mubr.bf16.gmra.mrb[16].mxu1 %v1949_v57  ;;  %v13610_v57 = vld [vmem:[#allocation7 + $0x350] sm:$0xff]  }
 0x5e3   : > { %8177 = vmatprep.mubr.bf16.mxu1 %v2078_v34  ;;  %11724 = vmatpush1.bf16.msra.mxu1 %v13608_v49  ;;  %v2080_v34 = vpack.c.bf16 %v15894_v54, %v15879_v38  ;;  %v16086_v49 = vld [vmem:[#allocation2 + $0x391] sm:$0xff]  ;;  %v16090_v38 = vld [vmem:[#allocation2 + $0x3e2] sm:$0xff] }
 0x5e4   : > { %11709 = vmatprep.subr.bf16.mxu1 %v13752_v0  ;;  %v3499_v54 = vpack.c.bf16 %v3451_v25, %v16086_v49  ;;  %v13615_v25 = vld [vmem:[#allocation7 + $0x378] sm:$0xff]  }
 0x5e7   : > { %11725 = vmatpush1.bf16.msra.mxu1 %v13609_v27  ;;  %v13613_v27 = vld [vmem:[#allocation7 + $0x368] sm:$0xff]  }
 0x5e8   : > { %9968 = vmatmul.mubr.bf16.gmra.mrb[48].mxu0 %v3496_v6  ;;  %11710 = vmatprep.subr.bf16.mxu1 %v13752_v0  ;;  %v16074_v6 = vld [vmem:[#allocation2 + $0x392] sm:$0xff] }
 0x5e9   : > { %9975 = vmatprep.mubr.bf16.mxu0 %v3625_v30  ;;  %v3627_v30 = vpack.c.bf16 %v15847_v20, %v16074_v6  ;;  %v1952_v20 = vpack.c.bf16 %v15907_v58, %v15892_v15  ;;  %v13614_v15 = vld [vmem:[#allocation7 + $0x370] sm:$0xff]  }
 0x5ea   : > { %8178 = vmatmul.mubr.bf16.gmra.mrb[20].mxu1 %v1950_v62  ;;  %v13612_v62 = vld [vmem:[#allocation7 + $0x360] sm:$0xff]   ;;  %v16104_v58 = vld [vmem:[#allocation2 + $0x3f2] sm:$0xff] }
 0x5eb   : > { %8185 = vmatprep.mubr.bf16.mxu1 %v2079_v7  ;;  %11726 = vmatpush1.bf16.msra.mxu1 %v13610_v57  ;;  %v2081_v7 = vpack.c.bf16 %v15909_v59, %v2025_v26  ;;  %v1897_v57 = vld [vmem:[#allocation2 + $0x1e1] sm:$0xff]  ;;  %v16116_v26 = vld [vmem:[#allocation2 + $0x3f1] sm:$0xff] }
 0x5ec   : > { %11711 = vmatprep.subr.bf16.mxu1 %v13752_v0  ;;  %v16106_v59 = vld [vmem:[#allocation2 + $0x402] sm:$0xff] }
 0x5ed   : > { %v3629_v17 = vpack.c.bf16 %v16106_v59, %v16104_v58 }
 0x5ef   : > { %11727 = vmatpush1.bf16.msra.mxu1 %v13611_v47  ;;  %v2082_v47 = vpack.c.bf16 %v15925_v43, %v15911_v51  ;;  %v1954_v51 = vpack.c.bf16 %v15938_v2, %v15923_v18  ;;  %v1955_v18 = vpack.c.bf16 %v15955_v29, %v15940_v32  ;;  %v16150_v32 = vld [vmem:[#allocation2 + $0x482] sm:$0xff]  ;;  %v1956_v29 = vpack.c.bf16 %v15971_v41, %v15957_v40 }
 0x5f0   : > { %9976 = vmatmul.mubr.bf16.gmra.mrb[52].mxu0 %v3497_v60  ;;  %11712 = vmatprep.subr.bf16.mxu1 %v13752_v0  ;;  %v16088_v60 = vld [vmem:[#allocation2 + $0x3d2] sm:$0xff] }
 0x5f1   : > { %9983 = vmatprep.mubr.bf16.mxu0 %v3626_v24  ;;  %v3628_v24 = vpack.c.bf16 %v16090_v38, %v16088_v60 }
 0x5f2   : > { %8186 = vmatmul.mubr.bf16.gmra.mrb[24].mxu1 %v1951_v31  ;;  %v16100_v31 = vld [vmem:[#allocation2 + $0x3d1] sm:$0xff] }
 0x5f3   : > { %8193 = vmatprep.mubr.bf16.mxu1 %v2080_v34  ;;  %11728 = vmatpush1.bf16.msra.mxu1 %v13612_v62  ;;  %v1953_v34 = vpack.c.bf16 %v15921_v1, %v1897_v57  ;;  %v16120_v1 = vld [vmem:[#allocation2 + $0x412] sm:$0xff]  ;;  %v16122_v62 = vld [vmem:[#allocation2 + $0x422] sm:$0xff] }
 0x5f4   : > { %11713 = vmatprep.subr.bf16.mxu1 %v13752_v0  ;;  %v16146_v57 = vld [vmem:[#allocation2 + $0x431] sm:$0xff] }
 0x5f7   : > { %11729 = vmatpush1.bf16.msra.mxu1 %v13613_v27  ;;  %v16136_v27 = vld [vmem:[#allocation2 + $0x432] sm:$0xff] }
 0x5f8   : > { %9984 = vmatmul.mubr.bf16.gmra.mrb[56].mxu0 %v3498_v63  ;;  %11714 = vmatprep.subr.bf16.mxu1 %v13752_v0  ;;  %v16102_v63 = vld [vmem:[#allocation2 + $0x3e1] sm:$0xff] }
 0x5f9   : > { %9991 = vmatprep.mubr.bf16.mxu0 %v3627_v30  ;;  %v3500_v30 = vpack.c.bf16 %v16102_v63, %v16100_v31 }
 0x5fa   : > { %8194 = vmatmul.mubr.bf16.gmra.mrb[28].mxu1 %v1952_v20  ;;  %v2083_v20 = vpack.c.bf16 %v15942_v14, %v15927_v42  ;;  %v2084_v42 = vpack.c.bf16 %v15959_v52, %v15944_v21  ;;  %v3631_v14 = vpack.c.bf16 %v15905_v3, %v16136_v27 }
 0x5fb   : > { %8201 = vmatprep.mubr.bf16.mxu1 %v2081_v7  ;;  %11730 = vmatpush1.bf16.msra.mxu1 %v13614_v15  ;;  %v16132_v7 = vld [vmem:[#allocation2 + $0x411] sm:$0xff]  ;;  %v3459_v15 = vld [vmem:[#allocation2 + $0x441] sm:$0xff] }
 0x5fc   : > { %11715 = vmatprep.subr.bf16.mxu1 %v13752_v0  ;;  %v16118_v0 = vld [vmem:[#allocation2 + $0x401] sm:$0xff]  ;;  %v3503_v21 = vpack.c.bf16 %v3459_v15, %v16146_v57  ;;  %v16195_v15 = vld [vmem:[#allocation2 + $0x4b1] sm:$0xff] }
 0x5fd   : > { %v3501_v43 = vpack.c.bf16 %v16118_v0, %v16116_v26 }
 0x5ff   : > { %11731 = vmatpush1.bf16.msra.mxu1 %v13615_v25  ;;  %v16160_v25 = vld [vmem:[#allocation2 + $0x481] sm:$0xff] }
 0x600   : > { %9992 = vmatmul.mubr.bf16.gmra.mrb[60].mxu0 %v3499_v54  ;;  %v3630_v54 = vpack.c.bf16 %v16122_v62, %v16120_v1 }
 0x601   : > { %9999 = vmatprep.mubr.bf16.mxu0 %v3628_v24  ;;  %v16134_v24 = vld [vmem:[#allocation2 + $0x421] sm:$0xff] }
 0x602   : > { %8202 = vmatmul.mubr.bf16.gmra.mrb[32].mxu1 %v1953_v34  ;;  %v3502_v2 = vpack.c.bf16 %v16134_v24, %v16132_v7  ;;  %v2033_v34 = vld [vmem:[#allocation2 + $0x282] sm:$0xff] }
 0x603   : > { %8209 = vmatprep.mubr.bf16.mxu1 %v2082_v47  ;;  %v2085_v52 = vpack.c.bf16 %v15973_v28, %v2033_v34  ;;  %v1905_v47 = vld [vmem:[#allocation2 + $0x281] sm:$0xff]  ;;  %v2086_v28 = vpack.c.bf16 %v15986_v13, %v15975_v8  ;;  %v2087_v13 = vpack.c.bf16 %v15998_v56, %v15988_v36  ;;  %v2088_v56 = vpack.c.bf16 %v16013_v23, %v16000_v33 }
 0x604   : > { %v1957_v40 = vpack.c.bf16 %v15982_v9, %v1905_v47  ;;  %v16180_v9 = vld [vmem:[#allocation2 + $0x4b2] sm:$0xff]  ;;  %v16197_v34 = vld [vmem:[#allocation2 + $0x4c1] sm:$0xff]  ;;  %v1960_v47 = vpack.c.bf16 %v16021_v19, %v16011_v5 }
 0x605   : > { %v16205_v36 = vpack.c.bf16 %v16197_v34, %v16195_v15  ;;  %v16233_v5 = vld [vmem:[#allocation2 + $0x542] sm:$0xff] }
 0x608   : > { %10000 = vmatmul.mubr.bf16.gmra.mrb[64].mxu0 %v3500_v30  ;;  %v16148_v30 = vld [vmem:[#allocation2 + $0x472] sm:$0xff] }
 0x609   : > { %10007 = vmatprep.mubr.bf16.mxu0 %v3629_v17  ;;  %v3632_v3 = vpack.c.bf16 %v16150_v32, %v16148_v30  ;;  %v16158_v17 = vld [vmem:[#allocation2 + $0x471] sm:$0xff] }
 0x60a   : > { %8210 = vmatmul.mubr.bf16.gmra.mrb[36].mxu1 %v1954_v51  ;;  %v16162_v51 = vld [vmem:[#allocation2 + $0x492] sm:$0xff]  ;;  %v16169_v41 = vpack.c.bf16 %v16160_v25, %v16158_v17 }
 0x60b   : > { %8217 = vmatprep.mubr.bf16.mxu1 %v2083_v20 }
 0x610   : > { %10008 = vmatmul.mubr.bf16.gmra.mrb[68].mxu0 %v3501_v43  ;;  %v16164_v43 = vld [vmem:[#allocation2 + $0x4a2] sm:$0xff] }
 0x611   : > { %10015 = vmatprep.mubr.bf16.mxu0 %v3630_v54  ;;  %v3633_v20 = vpack.c.bf16 %v16164_v43, %v16162_v51  ;;  %v16176_v54 = vld [vmem:[#allocation2 + $0x491] sm:$0xff] }
 0x612   : > { %8218 = vmatmul.mubr.bf16.gmra.mrb[40].mxu1 %v1955_v18  ;;  %v16178_v18 = vld [vmem:[#allocation2 + $0x4a1] sm:$0xff] }
 0x613   : > { %8225 = vmatprep.mubr.bf16.mxu1 %v2084_v42  ;;  %v1958_v42 = vpack.c.bf16 %v15994_v35, %v15984_v39  ;;  %v16188_v8 = vpack.c.bf16 %v16178_v18, %v16176_v54  ;;  %v16199_v39 = vld [vmem:[#allocation2 + $0x4d2] sm:$0xff]  ;;  %v1959_v35 = vpack.c.bf16 %v16009_v22, %v15996_v16  ;;  %v16216_v22 = vld [vmem:[#allocation2 + $0x522] sm:$0xff] }
 0x614   : > { %v16214_v16 = vld [vmem:[#allocation2 + $0x512] sm:$0xff] }
 0x615   : > { %v3636_v23 = vpack.c.bf16 %v16216_v22, %v16214_v16 }
 0x618   : > { %10016 = vmatmul.mubr.bf16.gmra.mrb[72].mxu0 %v3502_v2  ;;  %v16182_v2 = vld [vmem:[#allocation2 + $0x4c2] sm:$0xff] }
 0x619   : > { %10023 = vmatprep.mubr.bf16.mxu0 %v3631_v14  ;;  %v3634_v14 = vpack.c.bf16 %v16182_v2, %v16180_v9 }
 0x61a   : > { %8226 = vmatmul.mubr.bf16.gmra.mrb[44].mxu1 %v1956_v29  ;;  %v3635_v29 = vpack.c.bf16 %v15969_v45, %v16199_v39 }
 0x61b   : > { %8233 = vmatprep.mubr.bf16.mxu1 %v2085_v52  ;;  %v3467_v52 = vld [vmem:[#allocation2 + $0x4e1] sm:$0xff] }
 0x620   : > { %10024 = vmatmul.mubr.bf16.gmra.mrb[76].mxu0 %v3503_v21  ;;  %v16212_v21 = vld [vmem:[#allocation2 + $0x4d1] sm:$0xff] }
 0x621   : > { %10031 = vmatprep.mubr.bf16.mxu0 %v3632_v3  ;;  %v2041_v3 = vld [vmem:[#allocation2 + $0x322] sm:$0xff]  ;;  %v16221_v33 = vpack.c.bf16 %v3467_v52, %v16212_v21 }
 0x622   : > { %8234 = vmatmul.mubr.bf16.gmra.mrb[48].mxu1 %v1957_v40  ;;  %v2089_v45 = vpack.c.bf16 %v16023_v10, %v2041_v3  ;;  %v1913_v40 = vld [vmem:[#allocation2 + $0x321] sm:$0xff]  ;;  %v2091_v3 = vpack.c.bf16 %v16055_v55, %v16040_v61  ;;  %v2092_v55 = vpack.c.bf16 %v16074_v6, %v16057_v12 }
 0x623   : > { %8241 = vmatprep.mubr.bf16.mxu1 %v2086_v28  ;;  %v16227_v28 = vld [vmem:[#allocation2 + $0x511] sm:$0xff]  ;;  %v1961_v19 = vpack.c.bf16 %v16034_v50, %v1913_v40  ;;  %v16249_v50 = vld [vmem:[#allocation2 + $0x541] sm:$0xff]  ;;  %v1963_v40 = vpack.c.bf16 %v16070_v48, %v16053_v11  ;;  %v1964_v48 = vpack.c.bf16 %v16086_v49, %v16072_v37  ;;  %v2094_v37 = vpack.c.bf16 %v16104_v58, %v16090_v38 }
 0x624   : > { %v16253_v52 = vld [vmem:[#allocation2 + $0x562] sm:$0xff]  ;;  %v3480_v38 = vld [vmem:[#allocation2 + $0x5f1] sm:$0xff] }
 0x625   : > { %v3605_v11 = vld [vmem:[#allocation2 + $0x5c2] sm:$0xff] }
 0x626   : > { %v3481_v58 = vld [vmem:[#allocation2 + $0x601] sm:$0xff] }
 0x628   : > { %10032 = vmatmul.mubr.bf16.gmra.mrb[80].mxu0 %v16169_v41 }
 0x629   : > { %10039 = vmatprep.mubr.bf16.mxu0 %v3633_v20  ;;  %v16229_v20 = vld [vmem:[#allocation2 + $0x521] sm:$0xff] }
 0x62a   : > { %8242 = vmatmul.mubr.bf16.gmra.mrb[52].mxu1 %v1958_v42  ;;  %v16231_v42 = vld [vmem:[#allocation2 + $0x532] sm:$0xff]  ;;  %v16238_v10 = vpack.c.bf16 %v16229_v20, %v16227_v28 }
 0x62b   : > { %8249 = vmatprep.mubr.bf16.mxu1 %v2087_v13  ;;  %v2090_v13 = vpack.c.bf16 %v16038_v44, %v16025_v4  ;;  %v1962_v4 = vpack.c.bf16 %v16051_v53, %v16036_v46  ;;  %v16271_v46 = vld [vmem:[#allocation2 + $0x572] sm:$0xff]  ;;  %v3603_v53 = vld [vmem:[#allocation2 + $0x582] sm:$0xff] }
 0x62c   : > { %16963 = vst [vmem:[#allocation16_spill] sm:$0xff] %v16238_v10 }
 0x630   : > { %10040 = vmatmul.mubr.bf16.gmra.mrb[84].mxu0 %v16188_v8 }
 0x631   : > { %10047 = vmatprep.mubr.bf16.mxu0 %v3634_v14  ;;  %v3637_v14 = vpack.c.bf16 %v16233_v5, %v16231_v42 }
 0x632   : > { %8250 = vmatmul.mubr.bf16.gmra.mrb[56].mxu1 %v1959_v35  ;;  %v16245_v35 = vld [vmem:[#allocation7 + $0x680] sm:$0xff]  }
 0x633   : > { %8257 = vmatprep.mubr.bf16.mxu1 %v2088_v56  ;;  %v16247_v56 = vld [vmem:[#allocation2 + $0x531] sm:$0xff]  ;;  %11620 = vmatprep.subr.bf16.mxu1 %v16245_v35 }
 0x634   : > { %v16260_v44 = vpack.c.bf16 %v16249_v50, %v16247_v56 }
 0x636   : > { %16964 = vst [vmem:[#allocation13_spill] sm:$0xff] %v16260_v44 }
 0x638   : > { %10048 = vmatmul.mubr.bf16.gmra.mrb[88].mxu0 %v16205_v36 }
 0x639   : > { %10055 = vmatprep.mubr.bf16.mxu0 %v3635_v29  ;;  %v16251_v29 = vld [vmem:[#allocation2 + $0x552] sm:$0xff] }
 0x63a   : > { %8258 = vmatmul.mubr.bf16.gmra.mrb[60].mxu1 %v1960_v47  ;;  %v3638_v47 = vpack.c.bf16 %v16253_v52, %v16251_v29 }
 0x63b   : > { %8265 = vmatprep.mubr.bf16.mxu1 %v2089_v45  ;;  %v16267_v45 = vld [vmem:[#allocation2 + $0x551] sm:$0xff] }
 0x640   : > { %10056 = vmatmul.mubr.bf16.gmra.mrb[92].mxu0 %v16221_v33 }
 0x641   : > { %10063 = vmatprep.mubr.bf16.mxu0 %v3636_v23  ;;  %v16269_v23 = vld [vmem:[#allocation2 + $0x561] sm:$0xff] }
 0x642   : > { %8266 = vmatmul.mubr.bf16.gmra.mrb[64].mxu1 %v1961_v19  ;;  %v16277_v61 = vpack.c.bf16 %v16269_v23, %v16267_v45  ;;  %v3639_v19 = vpack.c.bf16 %v3603_v53, %v16271_v46  ;;  %v1921_v53 = vld [vmem:[#allocation2 + $0x3c1] sm:$0xff] }
 0x643   : > { %8273 = vmatprep.mubr.bf16.mxu1 %v2090_v13  ;;  %v16283_v13 = vld [vmem:[#allocation2 + $0x571] sm:$0xff] }
 0x644   : > { %16965 = vst [vmem:[#allocation14_spill] sm:$0xff] %v16277_v61 }
 0x648   : > { %10064 = vmatmul.mubr.bf16.gmra.mrb[96].mxu0 %v16238_v10 }
 0x649   : > { %10071 = vmatprep.mubr.bf16.mxu0 %v3637_v14  ;;  %v3475_v14 = vld [vmem:[#allocation2 + $0x581] sm:$0xff] }
 0x64a   : > { %8274 = vmatmul.mubr.bf16.gmra.mrb[68].mxu1 %v1962_v4  ;;  %v2049_v4 = vld [vmem:[#allocation2 + $0x3c2] sm:$0xff] }
 0x64b   : > { %8281 = vmatprep.mubr.bf16.mxu1 %v2091_v3  ;;  %v3604_v3 = vld [vmem:[#allocation2 + $0x5b2] sm:$0xff]  ;;  %v2093_v12 = vpack.c.bf16 %v16088_v60, %v2049_v4 }
 0x64c   : > { %v3640_v6 = vpack.c.bf16 %v3605_v11, %v3604_v3  ;;  %v3478_v60 = vld [vmem:[#allocation2 + $0x5d1] sm:$0xff]  ;;  %v3609_v3 = vld [vmem:[#allocation2 + $0x602] sm:$0xff]  ;;  %v1966_v11 = vpack.c.bf16 %v16116_v26, %v16102_v63  ;;  %v2096_v63 = vpack.c.bf16 %v16136_v27, %v16122_v62 }
 0x64d   : > { %v3608_v4 = vld [vmem:[#allocation2 + $0x5f2] sm:$0xff]  ;;  %v1929_v62 = vld [vmem:[#allocation2 + $0x461] sm:$0xff] }
 0x64e   : > { %v3677_v27 = vld [vmem:[#allocation2 + $0x160] sm:$0xff] }
 0x650   : > { %10072 = vmatmul.mubr.bf16.gmra.mrb[100].mxu0 %v16260_v44  ;;  %v1965_v44 = vpack.c.bf16 %v16100_v31, %v1921_v53  ;;  %v2095_v31 = vpack.c.bf16 %v16120_v1, %v16106_v59  ;;  %v3482_v59 = vld [vmem:[#allocation2 + $0x611] sm:$0xff]  ;;  %v3483_v1 = vld [vmem:[#allocation2 + $0x621] sm:$0xff] }
 0x651   : > { %10079 = vmatprep.mubr.bf16.mxu0 %v3638_v47  ;;  %v16288_v47 = vpack.c.bf16 %v3475_v14, %v16283_v13  ;;  %v3479_v14 = vld [vmem:[#allocation2 + $0x5e1] sm:$0xff] }
 0x652   : > { %8282 = vmatmul.mubr.bf16.gmra.mrb[72].mxu1 %v1963_v40  ;;  %v3476_v40 = vld [vmem:[#allocation2 + $0x5b1] sm:$0xff]  ;;  %v2057_v53 = vld [vmem:[#allocation2 + $0x462] sm:$0xff] }
 0x653   : > { %8289 = vmatprep.mubr.bf16.mxu1 %v2092_v55  ;;  %v3477_v55 = vld [vmem:[#allocation2 + $0x5c1] sm:$0xff] }
 0x654   : > { %v3512_v10 = vpack.c.bf16 %v3477_v55, %v3476_v40  ;;  %v3805_v40 = vld [vmem:[#allocation2 + $0x161] sm:$0xff]  ;;  %v3806_v55 = vld [vmem:[#allocation2 + $0x171] sm:$0xff] }
 0x658   : > { %10080 = vmatmul.mubr.bf16.gmra.mrb[104].mxu0 %v16277_v61  ;;  %v3607_v61 = vld [vmem:[#allocation2 + $0x5e2] sm:$0xff] }
 0x659   : > { %10087 = vmatprep.mubr.bf16.mxu0 %v3639_v19  ;;  %v3606_v19 = vld [vmem:[#allocation2 + $0x5d2] sm:$0xff] }
 0x65a   : > { %8290 = vmatmul.mubr.bf16.gmra.mrb[76].mxu1 %v1964_v48  ;;  %v3641_v49 = vpack.c.bf16 %v3607_v61, %v3606_v19  ;;  %v3513_v48 = vpack.c.bf16 %v3479_v14, %v3478_v60  ;;  %v1967_v61 = vpack.c.bf16 %v16132_v7, %v16118_v0  ;;  %v1968_v19 = vpack.c.bf16 %v16146_v57, %v16134_v24  ;;  %v3807_v60 = vld [vmem:[#allocation2 + $0x181] sm:$0xff]  ;;  %v3808_v14 = vld [vmem:[#allocation2 + $0x191] sm:$0xff] }
 0x65b   : > { %8297 = vmatprep.mubr.bf16.mxu1 %v2093_v12  ;;  %v3642_v12 = vpack.c.bf16 %v3609_v3, %v3608_v4  ;;  %v2097_v0 = vpack.c.bf16 %v16148_v30, %v2057_v53  ;;  %v3869_v7 = vpack.c.bf16 %v3806_v55, %v3805_v40  ;;  %v1969_v4 = vpack.c.bf16 %v16158_v17, %v1929_v62  ;;  %v3679_v57 = vld [vmem:[#allocation2 + $0x180] sm:$0xff]  ;;  %v3680_v30 = vld [vmem:[#allocation2 + $0x190] sm:$0xff] }
 0x65c   : > { %v3870_v24 = vpack.c.bf16 %v3808_v14, %v3807_v60  ;;  %v2099_v17 = vpack.c.bf16 %v16180_v9, %v16164_v43  ;;  %v3683_v43 = vld [vmem:[#allocation2 + $0x1c0] sm:$0xff]  ;;  %v1972_v53 = vpack.c.bf16 %v16212_v21, %v16197_v34  ;;  %v3816_v21 = vld [vmem:[#allocation2 + $0x231] sm:$0xff] }
 0x65d   : > { %v2065_v9 = vld [vmem:[#allocation2 + $0x502] sm:$0xff] }
 0x65e   : > { %v3815_v34 = vld [vmem:[#allocation2 + $0x221] sm:$0xff] }
 0x660   : > { %10088 = vmatmul.mubr.bf16.gmra.mrb[108].mxu0 %v16288_v47 }
 0x661   : > { %10095 = vmatprep.mubr.bf16.mxu0 %v3640_v6  ;;  %v3514_v6 = vpack.c.bf16 %v3481_v58, %v3480_v38  ;;  %v3742_v38 = vpack.c.bf16 %v3680_v30, %v3679_v57  ;;  %v3817_v57 = vld [vmem:[#allocation2 + $0x241] sm:$0xff]  ;;  %v3818_v30 = vld [vmem:[#allocation2 + $0x251] sm:$0xff] }
 0x662   : > { %8298 = vmatmul.mubr.bf16.gmra.mrb[80].mxu1 %v1965_v44  ;;  %v3611_v44 = vld [vmem:[#allocation2 + $0x622] sm:$0xff] }
 0x663   : > { %8305 = vmatprep.mubr.bf16.mxu1 %v2094_v37  ;;  %v3515_v37 = vpack.c.bf16 %v3483_v1, %v3482_v59  ;;  %v3814_v59 = vld [vmem:[#allocation2 + $0x211] sm:$0xff] }
 0x668   : > { %10096 = vmatmul.mubr.bf16.gmra.mrb[112].mxu0 %v3512_v10  ;;  %v3610_v10 = vld [vmem:[#allocation2 + $0x612] sm:$0xff] }
 0x669   : > { %10103 = vmatprep.mubr.bf16.mxu0 %v3641_v49  ;;  %v3643_v26 = vpack.c.bf16 %v3611_v44, %v3610_v10  ;;  %v3678_v49 = vld [vmem:[#allocation2 + $0x170] sm:$0xff]  ;;  %v3811_v10 = vld [vmem:[#allocation2 + $0x1c1] sm:$0xff] }
 0x66a   : > { %8306 = vmatmul.mubr.bf16.gmra.mrb[84].mxu1 %v1966_v11  ;;  %v3741_v3 = vpack.c.bf16 %v3678_v49, %v3677_v27  ;;  %v2098_v11 = vpack.c.bf16 %v16162_v51, %v16150_v32  ;;  %v3681_v32 = vld [vmem:[#allocation2 + $0x1a0] sm:$0xff]  ;;  %v3682_v51 = vld [vmem:[#allocation2 + $0x1b0] sm:$0xff] }
 0x66b   : > { %8313 = vmatprep.mubr.bf16.mxu1 %v2095_v31  ;;  %v3810_v31 = vld [vmem:[#allocation2 + $0x1b1] sm:$0xff] }
 0x66c   : > { %v3812_v44 = vld [vmem:[#allocation2 + $0x1d1] sm:$0xff] }
 0x670   : > { %10104 = vmatmul.mubr.bf16.gmra.mrb[116].mxu0 %v3513_v48  ;;  %v3809_v48 = vld [vmem:[#allocation2 + $0x1a1] sm:$0xff] }
 0x671   : > { %10111 = vmatprep.mubr.bf16.mxu0 %v3642_v12  ;;  %v1970_v12 = vpack.c.bf16 %v16176_v54, %v16160_v25  ;;  %v3871_v58 = vpack.c.bf16 %v3810_v31, %v3809_v48  ;;  %v2100_v25 = vpack.c.bf16 %v16199_v39, %v16182_v2  ;;  %v3872_v54 = vpack.c.bf16 %v3812_v44, %v3811_v10  ;;  %v3820_v10 = vld [vmem:[#allocation2 + $0x271] sm:$0xff] }
 0x672   : > { %8314 = vmatmul.mubr.bf16.gmra.mrb[88].mxu1 %v1967_v61  ;;  %v1971_v61 = vpack.c.bf16 %v16195_v15, %v16178_v18  ;;  %v16323_v15 = vld [vmem:[#allocation2] sm:$0xff]  ;;  %v2101_v39 = vpack.c.bf16 %v16214_v16, %v2065_v9  ;;  %v2102_v16 = vpack.c.bf16 %v16231_v42, %v16216_v22  ;;  %v2103_v22 = vpack.c.bf16 %v16251_v29, %v16233_v5  ;;  %v3822_v9 = vld [vmem:[#allocation2 + $0x2b1] sm:$0xff] }
 0x673   : > { %8321 = vmatprep.mubr.bf16.mxu1 %v2096_v63  ;;  %v3744_v2 = vpack.c.bf16 %v16323_v15, %v3683_v43  ;;  %v2104_v5 = vpack.c.bf16 %v16271_v46, %v16253_v52  ;;  %v3821_v43 = vld [vmem:[#allocation2 + $0x2a1] sm:$0xff] }
 0x674   : > { %v3877_v46 = vpack.c.bf16 %v3822_v9, %v3821_v43  ;;  %v16389_v43 = vld [vmem:[#allocation2 + $0x4d0] sm:$0xff]  ;;  %v16391_v9 = vld [vmem:[#allocation2 + $0x4e0] sm:$0xff] }
 0x678   : > { %10112 = vmatmul.mubr.bf16.gmra.mrb[120].mxu0 %v3514_v6  ;;  %v3743_v6 = vpack.c.bf16 %v3682_v51, %v3681_v32  ;;  %v3819_v51 = vld [vmem:[#allocation2 + $0x261] sm:$0xff] }
 0x679   : > { %10119 = vmatprep.mubr.bf16.mxu0 %v3643_v26  ;;  %v3813_v26 = vld [vmem:[#allocation2 + $0x201] sm:$0xff] }
 0x67a   : > { %8322 = vmatmul.mubr.bf16.gmra.mrb[92].mxu1 %v1968_v19  ;;  %v3873_v55 = vpack.c.bf16 %v3814_v59, %v3813_v26  ;;  %v1937_v19 = vld [vmem:[#allocation2 + $0x501] sm:$0xff] }
 0x67b   : > { %8329 = vmatprep.mubr.bf16.mxu1 %v2097_v0  ;;  %v3686_v0 = vld [vmem:[#allocation2 + $0x210] sm:$0xff]  ;;  %v1973_v27 = vpack.c.bf16 %v16227_v28, %v1937_v19  ;;  %v1974_v28 = vpack.c.bf16 %v16247_v56, %v16229_v20  ;;  %v1975_v20 = vpack.c.bf16 %v16267_v45, %v16249_v50  ;;  %v1976_v50 = vpack.c.bf16 %v16283_v13, %v16269_v23 }
 0x67c   : > { %v3824_v23 = vld [vmem:[#allocation2 + $0x2d1] sm:$0xff] }
 0x680   : > { %10120 = vmatmul.mubr.bf16.gmra.mrb[124].mxu0 %v3515_v37  ;;  %v3685_v37 = vld [vmem:[#allocation2 + $0x200] sm:$0xff] }
 0x681   : > { %10160 = vmatprep.mubr.bf16.mxu0 %v3869_v7  ;;  %v3745_v60 = vpack.c.bf16 %v3686_v0, %v3685_v37 }
 0x682   : > { %8330 = vmatmul.mubr.bf16.gmra.mrb[96].mxu1 %v1969_v4  ;;  %v3874_v4 = vpack.c.bf16 %v3816_v21, %v3815_v34 }
 0x683   : > { %8337 = vmatprep.mubr.bf16.mxu1 %v2098_v11  ;;  %v3688_v11 = vld [vmem:[#allocation2 + $0x230] sm:$0xff] }
 0x688   : > { %10161 = vmatmul.mubr.bf16.vlgmr.msra.gmra.mrb[0].mxu0 %v3741_v3  ;;  %v3687_v3 = vld [vmem:[#allocation2 + $0x220] sm:$0xff] }
 0x689   : > { %10168 = vmatprep.mubr.bf16.mxu0 %v3870_v24 }
 0x68a   : > { %8338 = vmatmul.mubr.bf16.gmra.mrb[100].mxu1 %v1970_v12  ;;  %v3746_v12 = vpack.c.bf16 %v3688_v11, %v3687_v3  ;;  %v3825_v3 = vld [vmem:[#allocation2 + $0x2e1] sm:$0xff]  ;;  %v3826_v11 = vld [vmem:[#allocation2 + $0x2f1] sm:$0xff] }
 0x68b   : > { %8345 = vmatprep.mubr.bf16.mxu1 %v2099_v17  ;;  %v3689_v17 = vld [vmem:[#allocation2 + $0x240] sm:$0xff] }
 0x690   : > { %10169 = vmatmul.mubr.bf16.gmra.mrb[4].mxu0 %v3742_v38  ;;  %v3875_v38 = vpack.c.bf16 %v3818_v30, %v3817_v57 }
 0x691   : > { %10176 = vmatprep.mubr.bf16.mxu0 %v3871_v58  ;;  %v3690_v58 = vld [vmem:[#allocation2 + $0x250] sm:$0xff] }
 0x692   : > { %8346 = vmatmul.mubr.bf16.gmra.mrb[104].mxu1 %v1971_v61  ;;  %v3747_v61 = vpack.c.bf16 %v3690_v58, %v3689_v17  ;;  %v3698_v17 = vld [vmem:[#allocation2 + $0x2f0] sm:$0xff] }
 0x693   : > { %8353 = vmatprep.mubr.bf16.mxu1 %v2100_v25  ;;  %v3691_v25 = vld [vmem:[#allocation2 + $0x260] sm:$0xff] }
 0x694   : > { %v3748_v59 = vpack.c.bf16 %v16323_v15, %v3691_v25  ;;  %v13589_v25 = vld [vmem:[#allocation7 + $0x6a8] sm:$0xff]  }
 0x695   : > { %v16317_v63 = vpop.f32.mrb[0].mxu1 }
 0x696   : > { %v8141_v1 = vpop.f32.mrb[1].mxu1 }
 0x697   : > { %v16321_v18 = vpop.f32.mrb[2].mxu1  ;;  %v2185_v1 = vld [vmem:[#allocation2 + $0x470] sm:$0xff] }
 0x698   : > { %10177 = vmatmul.mubr.bf16.gmra.mrb[8].mxu0 %v3743_v6  ;;  %v8144_v40 = vpop.f32.mrb[3].mxu1  ;;  %v3876_v6 = vpack.c.bf16 %v3820_v10, %v3819_v51  ;;  %v3827_v51 = vld [vmem:[#allocation2 + $0x301] sm:$0xff]  ;;  %v3828_v10 = vld [vmem:[#allocation2 + $0x311] sm:$0xff] }
 0x699   : > { %10184 = vmatprep.mubr.bf16.mxu0 %v3872_v54 }
 0x69a   : > { %8354 = vmatmul.mubr.bf16.gmra.mrb[108].mxu1 %v1972_v53  ;;  %v16358_v53 = vld [vmem:[#allocation2 + $0x480] sm:$0xff] }
 0x69b   : > { %8361 = vmatprep.mubr.bf16.mxu1 %v2101_v39  ;;  %v3694_v39 = vld [vmem:[#allocation2 + $0x2b0] sm:$0xff]  ;;  %v2225_v19 = vpack.c.bf16 %v16358_v53, %v2185_v1 }
 0x69d   : > { %v16327_v7 = vpop.f32.mrb[4].mxu1 }
 0x69e   : > { %v8149_v62 = vpop.f32.mrb[5].mxu1 }
 0x69f   : > { %v16330_v49 = vpop.f32.mrb[6].mxu1  ;;  %v13585_v62 = vld [vmem:[#allocation7 + $0x688] sm:$0xff]  }
 0x6a0   : > { %10185 = vmatmul.mubr.bf16.gmra.mrb[12].mxu0 %v3744_v2  ;;  %v8152_v14 = vpop.f32.mrb[7].mxu1  ;;  %v3693_v2 = vld [vmem:[#allocation2 + $0x2a0] sm:$0xff] }
 0x6a1   : > { %10192 = vmatprep.mubr.bf16.mxu0 %v3873_v55  ;;  %v3823_v55 = vld [vmem:[#allocation2 + $0x2c1] sm:$0xff]  ;;  %v3749_v0 = vpack.c.bf16 %v3694_v39, %v3693_v2  ;;  %v13586_v14 = vld [vmem:[#allocation7 + $0x690] sm:$0xff]   ;;  %v2228_v2 = vpack.c.bf16 %v16391_v9, %v16389_v43 }
 0x6a2   : > { %8362 = vmatmul.mubr.bf16.gmra.mrb[112].mxu1 %v1973_v27  ;;  %v3878_v21 = vpack.c.bf16 %v3824_v23, %v3823_v55  ;;  %v16368_v27 = vld [vmem:[#allocation2 + $0x4a0] sm:$0xff] }
 0x6a3   : > { %8369 = vmatprep.mubr.bf16.mxu1 %v2102_v16  ;;  %v3696_v16 = vld [vmem:[#allocation2 + $0x2d0] sm:$0xff] }
 0x6a5   : > { %v16334_v24 = vpop.f32.mrb[8].mxu1 }
 0x6a6   : > { %v8157_v48 = vpop.f32.mrb[9].mxu1 }
 0x6a7   : > { %v16338_v31 = vpop.f32.mrb[10].mxu1 }
 0x6a8   : > { %10193 = vmatmul.mubr.bf16.gmra.mrb[16].mxu0 %v3745_v60  ;;  %v8160_v42 = vpop.f32.mrb[11].mxu1  ;;  %v3695_v60 = vld [vmem:[#allocation2 + $0x2c0] sm:$0xff] }
 0x6a9   : > { %10200 = vmatprep.mubr.bf16.mxu0 %v3874_v4  ;;  %v3750_v48 = vpack.c.bf16 %v3696_v16, %v3695_v60  ;;  %v16380_v42 = vld [vmem:[#allocation2 + $0x4c0] sm:$0xff] }
 0x6aa   : > { %8370 = vmatmul.mubr.bf16.gmra.mrb[116].mxu1 %v1974_v28  ;;  %v3831_v16 = vld [vmem:[#allocation2 + $0x361] sm:$0xff] }
 0x6ab   : > { %8377 = vmatprep.mubr.bf16.mxu1 %v2103_v22  ;;  %v16378_v22 = vld [vmem:[#allocation2 + $0x4b0] sm:$0xff] }
 0x6ad   : > { %v16342_v32 = vpop.f32.mrb[12].mxu1 }
 0x6ae   : > { %v8165_v44 = vpop.f32.mrb[13].mxu1 }
 0x6af   : > { %v16346_v56 = vpop.f32.mrb[14].mxu1  ;;  %v13588_v44 = vld [vmem:[#allocation7 + $0x6a0] sm:$0xff]  }
 0x6b0   : > { %10201 = vmatmul.mubr.bf16.gmra.mrb[20].mxu0 %v3746_v12  ;;  %v8168_v29 = vpop.f32.mrb[15].mxu1  ;;  %v3879_v12 = vpack.c.bf16 %v3826_v11, %v3825_v3 }
 0x6b1   : > { %10208 = vmatprep.mubr.bf16.mxu0 %v3875_v38  ;;  %v3697_v38 = vld [vmem:[#allocation2 + $0x2e0] sm:$0xff] }
 0x6b2   : > { %8378 = vmatmul.mubr.bf16.gmra.mrb[120].mxu1 %v1975_v20 }
 0x6b3   : > { %8385 = vmatprep.mubr.bf16.mxu1 %v2104_v5 }
 0x6b5   : > { %v16350_v54 = vpop.f32.mrb[16].mxu1 }
 0x6b6   : > { %v8173_v26 = vpop.f32.mrb[17].mxu1 }
 0x6b7   : > { %v16354_v45 = vpop.f32.mrb[18].mxu1  ;;  %v3699_v26 = vld [vmem:[#allocation2 + $0x300] sm:$0xff] }
 0x6b8   : > { %10209 = vmatmul.mubr.bf16.gmra.mrb[24].mxu0 %v3747_v61  ;;  %v8176_v52 = vpop.f32.mrb[19].mxu1  ;;  %v2227_v61 = vpack.c.bf16 %v16380_v42, %v16378_v22 }
 0x6b9   : > { %10216 = vmatprep.mubr.bf16.mxu0 %v3876_v6  ;;  %v3880_v6 = vpack.c.bf16 %v3828_v10, %v3827_v51  ;;  %v3830_v52 = vld [vmem:[#allocation2 + $0x351] sm:$0xff] }
 0x6ba   : > { %8386 = vmatmul.mubr.bf16.gmra.mrb[124].mxu1 %v1976_v50  ;;  %v3704_v51 = vld [vmem:[#allocation2 + $0x370] sm:$0xff] }
 0x6bb   : > { %8618 = vmatprep.mubr.bf16.mxu1 %v16169_v41  ;;  %v16366_v41 = vld [vmem:[#allocation2 + $0x490] sm:$0xff] }
 0x6bc   : > { %v2226_v30 = vpack.c.bf16 %v16368_v27, %v16366_v41 }
 0x6bd   : > { %v16360_v40 = vpop.f32.mrb[20].mxu1 }
 0x6be   : > { %v8181_v13 = vpop.f32.mrb[21].mxu1 }
 0x6bf   : > { %v16363_v37 = vpop.f32.mrb[22].mxu1  ;;  %v13591_v13 = vld [vmem:[#allocation7 + $0x6b8] sm:$0xff]  }
 0x6c0   : > { %10217 = vmatmul.mubr.bf16.gmra.mrb[28].mxu0 %v3748_v59  ;;  %v8184_v34 = vpop.f32.mrb[23].mxu1  ;;  %v3829_v59 = vld [vmem:[#allocation2 + $0x341] sm:$0xff] }
 0x6c1   : > { %10224 = vmatprep.mubr.bf16.mxu0 %v3877_v46  ;;  %v13590_v46 = vld [vmem:[#allocation7 + $0x6b0] sm:$0xff]   ;;  %v3881_v23 = vpack.c.bf16 %v3830_v52, %v3829_v59  ;;  %v16401_v34 = vld [vmem:[#allocation2 + $0x520] sm:$0xff]  ;;  %v16968_v59 = vld [vmem:[#allocation14_spill] sm:$0xff] }
 0x6c2   : > { %8619 = vmatmul.mubr.bf16.vlgmr.msra.gmra.mrb[96].mxu1 %v2225_v19  ;;  %v16966_v19 = vld [vmem:[#allocation16_spill] sm:$0xff]  ;;  %v16420_v52 = vld [vmem:[#allocation2 + $0x550] sm:$0xff] }
 0x6c3   : > { %11621 = vmatpush3.bf16.msra.mxu1 %v16245_v35  ;;  %8626 = vmatprep.mubr.bf16.mxu1 %v16188_v8  ;;  %v13587_v8 = vld [vmem:[#allocation7 + $0x698] sm:$0xff]  }
 0x6c4   : > { %11622 = vmatprep.subr.bf16.mxu1 %v13585_v62 }
 0x6c5   : > { %v16371_v4 = vpop.f32.mrb[24].mxu1 }
 0x6c6   : > { %v8189_v57 = vpop.f32.mrb[25].mxu1 }
 0x6c7   : > { %v16375_v35 = vpop.f32.mrb[26].mxu1  ;;  %11623 = vmatpush3.bf16.msra.mxu1 %v13585_v62  ;;  %v3702_v62 = vld [vmem:[#allocation2 + $0x350] sm:$0xff] }
 0x6c8   : > { %10225 = vmatmul.mubr.bf16.gmra.mrb[32].mxu0 %v3749_v0  ;;  %v8192_v28 = vpop.f32.mrb[27].mxu1  ;;  %11624 = vmatprep.subr.bf16.mxu1 %v13586_v14  ;;  %v2193_v0 = vld [vmem:[#allocation2 + $0x510] sm:$0xff] }
 0x6c9   : > { %10232 = vmatprep.mubr.bf16.mxu0 %v3878_v21  ;;  %v3701_v21 = vld [vmem:[#allocation2 + $0x340] sm:$0xff]  ;;  %v2229_v11 = vpack.c.bf16 %v16401_v34, %v2193_v0 }
 0x6ca   : > { %8627 = vmatmul.mubr.bf16.gmra.mrb[100].mxu1 %v2226_v30  ;;  %v3753_v30 = vpack.c.bf16 %v3702_v62, %v3701_v21 }
 0x6cb   : > { %8634 = vmatprep.mubr.bf16.mxu1 %v16205_v36  ;;  %11625 = vmatpush3.bf16.msra.mxu1 %v13586_v14  ;;  %v3751_v36 = vpack.c.bf16 %v3698_v17, %v3697_v38  ;;  %v3832_v14 = vld [vmem:[#allocation2 + $0x371] sm:$0xff]  ;;  %v16411_v38 = vld [vmem:[#allocation2 + $0x540] sm:$0xff] }
 0x6cc   : > { %11626 = vmatprep.subr.bf16.mxu1 %v13587_v8  ;;  %v3882_v28 = vpack.c.bf16 %v3832_v14, %v3831_v16  ;;  %v3703_v17 = vld [vmem:[#allocation2 + $0x360] sm:$0xff]  ;;  %v16431_v14 = vld [vmem:[#allocation2 + $0x570] sm:$0xff] }
 0x6cd   : > { %v16382_v58 = vpop.f32.mrb[28].mxu1 }
 0x6ce   : > { %v8197_v20 = vpop.f32.mrb[29].mxu1 }
 0x6cf   : > { %v16386_v5 = vpop.f32.mrb[30].mxu1  ;;  %11627 = vmatpush3.bf16.msra.mxu1 %v13587_v8  ;;  %v16409_v8 = vld [vmem:[#allocation2 + $0x530] sm:$0xff] }
 0x6d0   : > { %10233 = vmatmul.mubr.bf16.gmra.mrb[36].mxu0 %v3750_v48  ;;  %v8200_v29 = vpop.f32.mrb[31].mxu1  ;;  %11628 = vmatprep.subr.bf16.mxu1 %v13588_v44  ;;  %v3834_v20 = vld [vmem:[#allocation2 + $0x391] sm:$0xff] }
 0x6d1   : > { %10240 = vmatprep.mubr.bf16.mxu0 %v3879_v12  ;;  %v16967_v12 = vld [vmem:[#allocation13_spill] sm:$0xff] }
 0x6d2   : > { %8635 = vmatmul.mubr.bf16.gmra.mrb[104].mxu1 %v2227_v61 }
 0x6d3   : > { %8642 = vmatprep.mubr.bf16.mxu1 %v16221_v33  ;;  %11629 = vmatpush3.bf16.msra.mxu1 %v13588_v44  ;;  %v3752_v33 = vpack.c.bf16 %v16323_v15, %v3699_v26  ;;  %v3833_v44 = vld [vmem:[#allocation2 + $0x381] sm:$0xff] }
 0x6d4   : > { %11630 = vmatprep.subr.bf16.mxu1 %v13589_v25  ;;  %v3883_v26 = vpack.c.bf16 %v3834_v20, %v3833_v44 }
 0x6d5   : > { %v16393_v50 = vpop.f32.mrb[32].mxu1 }
 0x6d6   : > { %v8205_v1 = vpop.f32.mrb[33].mxu1 }
 0x6d7   : > { %v16397_v39 = vpop.f32.mrb[34].mxu1  ;;  %11631 = vmatpush3.bf16.msra.mxu1 %v13589_v25  ;;  %v3705_v1 = vld [vmem:[#allocation2 + $0x380] sm:$0xff] }
 0x6d8   : > { %10241 = vmatmul.mubr.bf16.gmra.mrb[40].mxu0 %v3751_v36  ;;  %v8208_v55 = vpop.f32.mrb[35].mxu1  ;;  %11632 = vmatprep.subr.bf16.mxu1 %v13590_v46  ;;  %v2230_v36 = vpack.c.bf16 %v16411_v38, %v16409_v8 }
 0x6d9   : > { %10248 = vmatprep.mubr.bf16.mxu0 %v3880_v6  ;;  %v3754_v6 = vpack.c.bf16 %v3704_v51, %v3703_v17  ;;  %v3835_v55 = vld [vmem:[#allocation2 + $0x3a1] sm:$0xff]  ;;  %v3838_v17 = vld [vmem:[#allocation2 + $0x3f1] sm:$0xff] }
 0x6da   : > { %8643 = vmatmul.mubr.bf16.gmra.mrb[108].mxu1 %v2228_v2  ;;  %v3706_v2 = vld [vmem:[#allocation2 + $0x390] sm:$0xff] }
 0x6db   : > { %8650 = vmatprep.mubr.bf16.mxu1 %v16966_v19  ;;  %11633 = vmatpush3.bf16.msra.mxu1 %v13590_v46  ;;  %v16422_v46 = vld [vmem:[#allocation2 + $0x560] sm:$0xff]  ;;  %v3755_v21 = vpack.c.bf16 %v3706_v2, %v3705_v1  ;;  %v3710_v1 = vld [vmem:[#allocation2 + $0x3f0] sm:$0xff] }
 0x6dc   : > { %11634 = vmatprep.subr.bf16.mxu1 %v13591_v13  ;;  %v2231_v19 = vpack.c.bf16 %v16422_v46, %v16420_v52  ;;  %v3937_v2 = vld [vmem:[#allocation2 + $0x1a2] sm:$0xff] }
 0x6dd   : > { %v16403_v60 = vpop.f32.mrb[36].mxu1 }
 0x6de   : > { %v8213_v3 = vpop.f32.mrb[37].mxu1 }
 0x6df   : > { %v16406_v57 = vpop.f32.mrb[38].mxu1  ;;  %11635 = vmatpush3.bf16.msra.mxu1 %v13591_v13  ;;  %v16433_v3 = vld [vmem:[#allocation2 + $0x580] sm:$0xff] }
 0x6e0   : > { %10249 = vmatmul.mubr.bf16.gmra.mrb[44].mxu0 %v3752_v33  ;;  %v8216_v48 = vpop.f32.mrb[39].mxu1  ;;  %v2232_v44 = vpack.c.bf16 %v16433_v3, %v16431_v14 }
 0x6e1   : > { %10256 = vmatprep.mubr.bf16.mxu0 %v3881_v23  ;;  %v3836_v23 = vld [vmem:[#allocation2 + $0x3b1] sm:$0xff] }
 0x6e2   : > { %8651 = vmatmul.mubr.bf16.gmra.mrb[112].mxu1 %v2229_v11  ;;  %v3884_v16 = vpack.c.bf16 %v3836_v23, %v3835_v55  ;;  %v3707_v11 = vld [vmem:[#allocation2 + $0x3a0] sm:$0xff]  ;;  %v3934_v48 = vld [vmem:[#allocation2 + $0x172] sm:$0xff] }
 0x6e3   : > { %8658 = vmatprep.mubr.bf16.mxu1 %v16967_v12  ;;  %v3837_v12 = vld [vmem:[#allocation2 + $0x3e1] sm:$0xff]  ;;  %v3938_v55 = vld [vmem:[#allocation2 + $0x1b2] sm:$0xff] }
 0x6e5   : > { %v16413_v10 = vpop.f32.mrb[40].mxu1 }
 0x6e6   : > { %v8221_v61 = vpop.f32.mrb[41].mxu1 }
 0x6e7   : > { %v16417_v29 = vpop.f32.mrb[42].mxu1 }
 0x6e8   : > { %10257 = vmatmul.mubr.bf16.gmra.mrb[48].mxu0 %v3753_v30  ;;  %v8224_v25 = vpop.f32.mrb[43].mxu1  ;;  %v3933_v30 = vld [vmem:[#allocation2 + $0x162] sm:$0xff] }
 0x6e9   : > { %10264 = vmatprep.mubr.bf16.mxu0 %v3882_v28  ;;  %v3997_v61 = vpack.c.bf16 %v3934_v48, %v3933_v30  ;;  %v3709_v25 = vld [vmem:[#allocation2 + $0x3e0] sm:$0xff]  ;;  %v3999_v30 = vpack.c.bf16 %v3938_v55, %v3937_v2 }
 0x6ea   : > { %8659 = vmatmul.mubr.bf16.gmra.mrb[116].mxu1 %v2230_v36 }
 0x6eb   : > { %8666 = vmatprep.mubr.bf16.mxu1 %v16968_v59  ;;  %v3936_v59 = vld [vmem:[#allocation2 + $0x192] sm:$0xff] }
 0x6ed   : > { %v16424_v33 = vpop.f32.mrb[44].mxu1 }
 0x6ee   : > { %v8229_v13 = vpop.f32.mrb[45].mxu1 }
 0x6ef   : > { %v16428_v0 = vpop.f32.mrb[46].mxu1  ;;  %v3839_v13 = vld [vmem:[#allocation2 + $0x401] sm:$0xff] }
 0x6f0   : > { %10265 = vmatmul.mubr.bf16.gmra.mrb[52].mxu0 %v3754_v6  ;;  %v8232_v62 = vpop.f32.mrb[47].mxu1  ;;  %v3885_v6 = vpack.c.bf16 %v3838_v17, %v3837_v12  ;;  %v3711_v17 = vld [vmem:[#allocation2 + $0x400] sm:$0xff] }
 0x6f1   : > { %10272 = vmatprep.mubr.bf16.mxu0 %v3883_v26  ;;  %v3935_v26 = vld [vmem:[#allocation2 + $0x182] sm:$0xff] }
 0x6f2   : > { %8667 = vmatmul.mubr.bf16.gmra.mrb[120].mxu1 %v2231_v19  ;;  %v3840_v19 = vld [vmem:[#allocation2 + $0x411] sm:$0xff]  ;;  %v3998_v62 = vpack.c.bf16 %v3936_v59, %v3935_v26 }
 0x6f3   : > { %8674 = vmatprep.mubr.bf16.mxu1 %v16288_v47  ;;  %v3756_v47 = vpack.c.bf16 %v16323_v15, %v3707_v11  ;;  %v3757_v11 = vpack.c.bf16 %v3710_v1, %v3709_v25  ;;  %v3886_v12 = vpack.c.bf16 %v3840_v19, %v3839_v13  ;;  %v3842_v26 = vld [vmem:[#allocation2 + $0x431] sm:$0xff]  ;;  %v3713_v19 = vld [vmem:[#allocation2 + $0x420] sm:$0xff] }
 0x6f5   : > { %v16435_v28 = vpop.f32.mrb[48].mxu1 }
 0x6f6   : > { %v8237_v51 = vpop.f32.mrb[49].mxu1 }
 0x6f7   : > { %v16439_v20 = vpop.f32.mrb[50].mxu1  ;;  %v3939_v51 = vld [vmem:[#allocation2 + $0x1c2] sm:$0xff] }
 0x6f8   : > { %10273 = vmatmul.mubr.bf16.gmra.mrb[56].mxu0 %v3755_v21  ;;  %v8240_v36 = vpop.f32.mrb[51].mxu1 }
 0x6f9   : > { %10280 = vmatprep.mubr.bf16.mxu0 %v3884_v16  ;;  %v3942_v36 = vld [vmem:[#allocation2 + $0x212] sm:$0xff] }
 0x6fa   : > { %8675 = vmatmul.mubr.bf16.gmra.mrb[124].mxu1 %v2232_v44  ;;  %v3940_v44 = vld [vmem:[#allocation2 + $0x1d2] sm:$0xff] }
 0x6fb   : > { %11636 = vmatprep.mubr.bf16.mxu1 %v3997_v61  ;;  %v3941_v61 = vld [vmem:[#allocation2 + $0x202] sm:$0xff] }
 0x6fc   : > { %v4001_v2 = vpack.c.bf16 %v3942_v36, %v3941_v61 }
 0x6fd   : > { %v16442_v23 = vpop.f32.mrb[52].mxu1 }
 0x6fe   : > { %v8245_v21 = vpop.f32.mrb[53].mxu1 }
 0x6ff   : > { %v16444_v16 = vpop.f32.mrb[54].mxu1  ;;  %v3841_v21 = vld [vmem:[#allocation2 + $0x421] sm:$0xff] }
 0x700   : > { %10281 = vmatmul.mubr.bf16.gmra.mrb[60].mxu0 %v3756_v47  ;;  %16969 = vst [vmem:[#allocation15_spill] sm:$0xff] %v16444_v16  ;;  %v8248_v48 = vpop.f32.mrb[55].mxu1  ;;  %v3712_v47 = vld [vmem:[#allocation2 + $0x410] sm:$0xff]  ;;  %v4000_v16 = vpack.c.bf16 %v3940_v44, %v3939_v51  ;;  %v3887_v13 = vpack.c.bf16 %v3842_v26, %v3841_v21  ;;  %v3947_v21 = vld [vmem:[#allocation2 + $0x262] sm:$0xff] }
 0x701   : > { %10288 = vmatprep.mubr.bf16.mxu0 %v3885_v6  ;;  %v3758_v1 = vpack.c.bf16 %v3712_v47, %v3711_v17  ;;  %v3945_v48 = vld [vmem:[#allocation2 + $0x242] sm:$0xff]  ;;  %v3844_v51 = vld [vmem:[#allocation2 + $0x451] sm:$0xff] }
 0x702   : > { %11637 = vmatmul.mubr.bf16.vlgmr.msra.gmra.mrb[128].mxu1 %v3998_v62  ;;  %v3943_v62 = vld [vmem:[#allocation2 + $0x222] sm:$0xff]  ;;  %v3948_v26 = vld [vmem:[#allocation2 + $0x272] sm:$0xff] }
 0x703   : > { %11640 = vmatprep.mubr.bf16.mxu1 %v3999_v30  ;;  %v3714_v30 = vld [vmem:[#allocation2 + $0x430] sm:$0xff] }
 0x704   : > { %v3759_v47 = vpack.c.bf16 %v3714_v30, %v3713_v19 }
 0x705   : > { %v16446_v6 = vpop.f32.mrb[56].mxu1 }
 0x706   : > { %16970 = vst [vmem:[#allocation16_spill] sm:$0xff] %v16446_v6  ;;  %v8253_v59 = vpop.f32.mrb[57].mxu1 }
 0x707   : > { %v16448_v25 = vpop.f32.mrb[58].mxu1  ;;  %v3843_v59 = vld [vmem:[#allocation2 + $0x441] sm:$0xff] }
 0x708   : > { %10289 = vmatmul.mubr.bf16.gmra.mrb[64].mxu0 %v3757_v11  ;;  %16971 = vst [vmem:[#allocation13_spill] sm:$0xff] %v16448_v25  ;;  %v8256_v55 = vpop.f32.mrb[59].mxu1  ;;  %v3944_v11 = vld [vmem:[#allocation2 + $0x232] sm:$0xff]  ;;  %v3888_v36 = vpack.c.bf16 %v3844_v51, %v3843_v59  ;;  %v3953_v51 = vld [vmem:[#allocation2 + $0x2e2] sm:$0xff] }
 0x709   : > { %10296 = vmatprep.mubr.bf16.mxu0 %v3886_v12  ;;  %v3946_v12 = vld [vmem:[#allocation2 + $0x252] sm:$0xff]  ;;  %v4002_v25 = vpack.c.bf16 %v3944_v11, %v3943_v62  ;;  %v4004_v11 = vpack.c.bf16 %v3948_v26, %v3947_v21 }
 0x70a   : > { %11641 = vmatmul.mubr.bf16.gmra.mrb[132].mxu1 %v4000_v16  ;;  %v4003_v61 = vpack.c.bf16 %v3946_v12, %v3945_v48  ;;  %v3950_v55 = vld [vmem:[#allocation2 + $0x2b2] sm:$0xff]  ;;  %v3951_v12 = vld [vmem:[#allocation2 + $0x2c2] sm:$0xff] }
 0x70b   : > { %11644 = vmatprep.mubr.bf16.mxu1 %v4001_v2  ;;  %v3949_v2 = vld [vmem:[#allocation2 + $0x2a2] sm:$0xff]  ;;  %v3952_v59 = vld [vmem:[#allocation2 + $0x2d2] sm:$0xff] }
 0x70c   : > { %v4005_v30 = vpack.c.bf16 %v3950_v55, %v3949_v2  ;;  %v4006_v26 = vpack.c.bf16 %v3952_v59, %v3951_v12  ;;  %v3850_v12 = vld [vmem:[#allocation2 + $0x4d1] sm:$0xff] }
 0x70d   : > { %v16450_v6 = vpop.f32.mrb[60].mxu1 }
 0x70e   : > { %16972 = vst [vmem:[#allocation14_spill] sm:$0xff] %v16450_v6  ;;  %v8261_v44 = vpop.f32.mrb[61].mxu1  ;;  %v3845_v6 = vld [vmem:[#allocation2 + $0x481] sm:$0xff] }
 0x70f   : > { %v16452_v17 = vpop.f32.mrb[62].mxu1  ;;  %v3846_v44 = vld [vmem:[#allocation2 + $0x491] sm:$0xff] }
 0x710   : > { %10297 = vmatmul.mubr.bf16.gmra.mrb[68].mxu0 %v3758_v1  ;;  %16973 = vst [vmem:[#allocation17_spill] sm:$0xff] %v16452_v17  ;;  %v8264_v16 = vpop.f32.mrb[63].mxu1  ;;  %v3715_v1 = vld [vmem:[#allocation2 + $0x440] sm:$0xff]  ;;  %v3889_v48 = vpack.c.bf16 %v3846_v44, %v3845_v6 }
 0x711   : > { %10304 = vmatprep.mubr.bf16.mxu0 %v3887_v13  ;;  %v3760_v19 = vpack.c.bf16 %v16323_v15, %v3715_v1  ;;  %v3847_v16 = vld [vmem:[#allocation2 + $0x4a1] sm:$0xff]  ;;  %v3761_v1 = vpack.c.bf16 %v16366_v41, %v16358_v53  ;;  %v3762_v53 = vpack.c.bf16 %v16378_v22, %v16368_v27  ;;  %v3763_v27 = vpack.c.bf16 %v16389_v43, %v16380_v42 }
 0x712   : > { %11645 = vmatmul.mubr.bf16.gmra.mrb[136].mxu1 %v4002_v25  ;;  %v3955_v44 = vld [vmem:[#allocation2 + $0x302] sm:$0xff]  ;;  %v3764_v42 = vpack.c.bf16 %v16323_v15, %v16391_v9  ;;  %v3765_v9 = vpack.c.bf16 %v16409_v8, %v16401_v34  ;;  %v3766_v34 = vpack.c.bf16 %v16420_v52, %v16411_v38  ;;  %v3767_v38 = vpack.c.bf16 %v16431_v14, %v16422_v46  ;;  %v3862_v14 = vld [vmem:[#allocation2 + $0x5d1] sm:$0xff] }
 0x713   : > { %11648 = vmatprep.mubr.bf16.mxu1 %v4003_v61  ;;  %v3861_v46 = vld [vmem:[#allocation2 + $0x5c1] sm:$0xff] }
 0x715   : > { %v16454_v13 = vpop.f32.mrb[64].mxu1 }
 0x716   : > { %v8269_v62 = vpop.f32.mrb[65].mxu1 }
 0x717   : > { %v16456_v17 = vpop.f32.mrb[66].mxu1 }
 0x718   : > { %10305 = vmatmul.mubr.bf16.gmra.mrb[72].mxu0 %v3759_v47  ;;  %v8272_v25 = vpop.f32.mrb[67].mxu1  ;;  %v3954_v47 = vld [vmem:[#allocation2 + $0x2f2] sm:$0xff] }
 0x719   : > { %10312 = vmatprep.mubr.bf16.mxu0 %v3888_v36  ;;  %v3848_v36 = vld [vmem:[#allocation2 + $0x4b1] sm:$0xff]  ;;  %v4007_v6 = vpack.c.bf16 %v3954_v47, %v3953_v51 }
 0x71a   : > { %11649 = vmatmul.mubr.bf16.gmra.mrb[140].mxu1 %v4004_v11  ;;  %v3890_v55 = vpack.c.bf16 %v3848_v36, %v3847_v16  ;;  %v3956_v11 = vld [vmem:[#allocation2 + $0x312] sm:$0xff]  ;;  %v3959_v16 = vld [vmem:[#allocation2 + $0x362] sm:$0xff] }
 0x71b   : > { %11652 = vmatprep.mubr.bf16.mxu1 %v4005_v30  ;;  %v3958_v30 = vld [vmem:[#allocation2 + $0x352] sm:$0xff] }
 0x71c   : > { %v3960_v36 = vld [vmem:[#allocation2 + $0x372] sm:$0xff] }
 0x71d   : > { %v16459_v61 = vpop.f32.mrb[68].mxu1 }
 0x71e   : > { %v8277_v21 = vpop.f32.mrb[69].mxu1 }
 0x71f   : > { %v16461_v62 = vpop.f32.mrb[70].mxu1  ;;  %v4008_v21 = vpack.c.bf16 %v3956_v11, %v3955_v44  ;;  %v4010_v11 = vpack.c.bf16 %v3960_v36, %v3959_v16 }
 0x720   : > { %10313 = vmatmul.mubr.bf16.gmra.mrb[76].mxu0 %v3760_v19  ;;  %16974 = vst [vmem:[#allocation18_spill] sm:$0xff] %v16461_v62  ;;  %v8280_v2 = vpop.f32.mrb[71].mxu1  ;;  %v3957_v19 = vld [vmem:[#allocation2 + $0x342] sm:$0xff] }
 0x721   : > { %10320 = vmatprep.mubr.bf16.mxu0 %v3889_v48  ;;  %v3849_v48 = vld [vmem:[#allocation2 + $0x4c1] sm:$0xff]  ;;  %v4009_v41 = vpack.c.bf16 %v3958_v30, %v3957_v19 }
 0x722   : > { %11653 = vmatmul.mubr.bf16.gmra.mrb[144].mxu1 %v4006_v26  ;;  %v3891_v47 = vpack.c.bf16 %v3850_v12, %v3849_v48  ;;  %v3961_v26 = vld [vmem:[#allocation2 + $0x382] sm:$0xff]  ;;  %v3964_v12 = vld [vmem:[#allocation2 + $0x3b2] sm:$0xff] }
 0x723   : > { %11656 = vmatprep.mubr.bf16.mxu1 %v4007_v6  ;;  %v3851_v2 = vld [vmem:[#allocation2 + $0x4e1] sm:$0xff] }
 0x724   : > { %v3963_v48 = vld [vmem:[#allocation2 + $0x3a2] sm:$0xff] }
 0x725   : > { %v16465_v25 = vpop.f32.mrb[72].mxu1  ;;  %v4012_v36 = vpack.c.bf16 %v3964_v12, %v3963_v48 }
 0x726   : > { %v8285_v59 = vpop.f32.mrb[73].mxu1 }
 0x727   : > { %v16467_v62 = vpop.f32.mrb[74].mxu1 }
 0x728   : > { %10321 = vmatmul.mubr.bf16.gmra.mrb[80].mxu0 %v3761_v1  ;;  %v8288_v51 = vpop.f32.mrb[75].mxu1  ;;  %v3962_v1 = vld [vmem:[#allocation2 + $0x392] sm:$0xff] }
 0x729   : > { %10328 = vmatprep.mubr.bf16.mxu0 %v3890_v55  ;;  %v3852_v55 = vld [vmem:[#allocation2 + $0x4f1] sm:$0xff]  ;;  %v4011_v22 = vpack.c.bf16 %v3962_v1, %v3961_v26  ;;  %v3853_v51 = vld [vmem:[#allocation2 + $0x521] sm:$0xff] }
 0x72a   : > { %11657 = vmatmul.mubr.bf16.gmra.mrb[148].mxu1 %v4008_v21  ;;  %v3892_v30 = vpack.c.bf16 %v3852_v55, %v3851_v2  ;;  %v3965_v21 = vld [vmem:[#allocation2 + $0x3e2] sm:$0xff]  ;;  %v3968_v55 = vld [vmem:[#allocation2 + $0x412] sm:$0xff] }
 0x72b   : > { %11660 = vmatprep.mubr.bf16.mxu1 %v4009_v41  ;;  %v3967_v2 = vld [vmem:[#allocation2 + $0x402] sm:$0xff] }
 0x72c   : > { %v4014_v12 = vpack.c.bf16 %v3968_v55, %v3967_v2  ;;  %v3858_v2 = vld [vmem:[#allocation2 + $0x571] sm:$0xff] }
 0x72d   : > { %v16471_v6 = vpop.f32.mrb[76].mxu1 }
 0x72e   : > { %v8293_v44 = vpop.f32.mrb[77].mxu1 }
 0x72f   : > { %v16473_v59 = vpop.f32.mrb[78].mxu1 }
 0x730   : > { %10329 = vmatmul.mubr.bf16.gmra.mrb[84].mxu0 %v3762_v53  ;;  %v8296_v19 = vpop.f32.mrb[79].mxu1  ;;  %v3966_v53 = vld [vmem:[#allocation2 + $0x3f2] sm:$0xff] }
 0x731   : > { %10336 = vmatprep.mubr.bf16.mxu0 %v3891_v47  ;;  %v3854_v47 = vld [vmem:[#allocation2 + $0x531] sm:$0xff]  ;;  %v4013_v43 = vpack.c.bf16 %v3966_v53, %v3965_v21  ;;  %v3855_v19 = vld [vmem:[#allocation2 + $0x541] sm:$0xff] }
 0x732   : > { %11661 = vmatmul.mubr.bf16.gmra.mrb[152].mxu1 %v4010_v11  ;;  %v3893_v1 = vpack.c.bf16 %v3854_v47, %v3853_v51  ;;  %v3969_v11 = vld [vmem:[#allocation2 + $0x422] sm:$0xff] }
 0x733   : > { %11664 = vmatprep.mubr.bf16.mxu1 %v4011_v22  ;;  %v3971_v47 = vld [vmem:[#allocation2 + $0x442] sm:$0xff] }
 0x735   : > { %v16477_v41 = vpop.f32.mrb[80].mxu1 }
 0x736   : > { %v8301_v16 = vpop.f32.mrb[81].mxu1 }
 0x737   : > { %v16479_v44 = vpop.f32.mrb[82].mxu1 }
 0x738   : > { %10337 = vmatmul.mubr.bf16.gmra.mrb[88].mxu0 %v3763_v27  ;;  %v8304_v26 = vpop.f32.mrb[83].mxu1  ;;  %v3970_v27 = vld [vmem:[#allocation2 + $0x432] sm:$0xff] }
 0x739   : > { %10344 = vmatprep.mubr.bf16.mxu0 %v3892_v30  ;;  %v3856_v30 = vld [vmem:[#allocation2 + $0x551] sm:$0xff]  ;;  %v4015_v21 = vpack.c.bf16 %v3970_v27, %v3969_v11 }
 0x73a   : > { %11665 = vmatmul.mubr.bf16.gmra.mrb[156].mxu1 %v4012_v36  ;;  %v3894_v51 = vpack.c.bf16 %v3856_v30, %v3855_v19  ;;  %v3972_v36 = vld [vmem:[#allocation2 + $0x452] sm:$0xff]  ;;  %v3975_v19 = vld [vmem:[#allocation2 + $0x4a2] sm:$0xff] }
 0x73b   : > { %11668 = vmatprep.mubr.bf16.mxu1 %v4013_v43  ;;  %v3974_v43 = vld [vmem:[#allocation2 + $0x492] sm:$0xff] }
 0x73c   : > { %v3976_v30 = vld [vmem:[#allocation2 + $0x4b2] sm:$0xff] }
 0x73d   : > { %v16483_v22 = vpop.f32.mrb[84].mxu1 }
 0x73e   : > { %v8309_v48 = vpop.f32.mrb[85].mxu1 }
 0x73f   : > { %v16485_v16 = vpop.f32.mrb[86].mxu1  ;;  %v4016_v48 = vpack.c.bf16 %v3972_v36, %v3971_v47  ;;  %v4018_v36 = vpack.c.bf16 %v3976_v30, %v3975_v19 }
 0x740   : > { %10345 = vmatmul.mubr.bf16.gmra.mrb[92].mxu0 %v3764_v42  ;;  %16975 = vst [vmem:[#allocation19_spill] sm:$0xff] %v16485_v16  ;;  %v8312_v53 = vpop.f32.mrb[87].mxu1  ;;  %v3973_v42 = vld [vmem:[#allocation2 + $0x482] sm:$0xff] }
 0x741   : > { %10352 = vmatprep.mubr.bf16.mxu0 %v3893_v1  ;;  %v3857_v1 = vld [vmem:[#allocation2 + $0x561] sm:$0xff]  ;;  %v4017_v8 = vpack.c.bf16 %v3974_v43, %v3973_v42 }
 0x742   : > { %11669 = vmatmul.mubr.bf16.gmra.mrb[160].mxu1 %v4014_v12  ;;  %v3895_v27 = vpack.c.bf16 %v3858_v2, %v3857_v1  ;;  %v3977_v12 = vld [vmem:[#allocation2 + $0x4c2] sm:$0xff]  ;;  %v16504_v1 = vld [vmem:[%s16932_s2] ss:$0 sm:$0xff] }
 0x743   : > { %11672 = vmatprep.mubr.bf16.mxu1 %v4015_v21  ;;  %v3859_v53 = vld [vmem:[#allocation2 + $0x581] sm:$0xff]  ;;  %v11734_v30 = vadd.f32 %v16504_v1, %v16321_v18  ;;  %v3986_v18 = vld [vmem:[#allocation2 + $0x572] sm:$0xff] }
 0x744   : > { %v3979_v2 = vld [vmem:[#allocation2 + $0x4e2] sm:$0xff] }
 0x745   : > { %v16489_v26 = vpop.f32.mrb[88].mxu1 }
 0x746   : > { %v8317_v55 = vpop.f32.mrb[89].mxu1 }
 0x747   : > { %v16491_v16 = vpop.f32.mrb[90].mxu1 }
 0x748   : > { %10353 = vmatmul.mubr.bf16.gmra.mrb[96].mxu0 %v3765_v9  ;;  %v8320_v11 = vpop.f32.mrb[91].mxu1  ;;  %v3978_v9 = vld [vmem:[#allocation2 + $0x4d2] sm:$0xff] }
 0x749   : > { %10360 = vmatprep.mubr.bf16.mxu0 %v3894_v51  ;;  %v3860_v51 = vld [vmem:[#allocation2 + $0x591] sm:$0xff]  ;;  %v4019_v52 = vpack.c.bf16 %v3978_v9, %v3977_v12  ;;  %v11732_v11 = vadd.f32 %v16504_v1, %v16317_v63  ;;  %v3983_v63 = vld [vmem:[#allocation2 + $0x542] sm:$0xff] }
 0x74a   : > { %11673 = vmatmul.mubr.bf16.gmra.mrb[164].mxu1 %v4016_v48  ;;  %v3896_v43 = vpack.c.bf16 %v3860_v51, %v3859_v53  ;;  %v3980_v48 = vld [vmem:[#allocation2 + $0x4f2] sm:$0xff]  ;;  %v3768_v53 = vpack.c.bf16 %v16323_v15, %v16433_v3 }
 0x74b   : > { %11676 = vmatprep.mubr.bf16.mxu1 %v4017_v8  ;;  %v3982_v8 = vld [vmem:[#allocation2 + $0x532] sm:$0xff]  ;;  %v4020_v19 = vpack.c.bf16 %v3980_v48, %v3979_v2  ;;  %v11736_v2 = vadd.f32 %v16504_v1, %v16327_v7  ;;  %v3863_v48 = vld [vmem:[#allocation2 + $0x5e1] sm:$0xff] }
 0x74d   : > { %v16495_v21 = vpop.f32.mrb[92].mxu1 }
 0x74e   : > { %v8325_v47 = vpop.f32.mrb[93].mxu1 }
 0x74f   : > { %v16497_v55 = vpop.f32.mrb[94].mxu1 }
 0x750   : > { %10361 = vmatmul.mubr.bf16.gmra.mrb[100].mxu0 %v3766_v34  ;;  %v8328_v42 = vpop.f32.mrb[95].mxu1  ;;  %v3981_v34 = vld [vmem:[#allocation2 + $0x522] sm:$0xff] }
 0x751   : > { %10368 = vmatprep.mubr.bf16.mxu0 %v3895_v27  ;;  %v4021_v51 = vpack.c.bf16 %v3982_v8, %v3981_v34  ;;  %v3984_v42 = vld [vmem:[#allocation2 + $0x552] sm:$0xff]  ;;  %v11738_v8 = vadd.f32 %v16504_v1, %v16330_v49  ;;  %v3989_v49 = vld [vmem:[#allocation2 + $0x5c2] sm:$0xff] }
 0x752   : > { %11677 = vmatmul.mubr.bf16.gmra.mrb[168].mxu1 %v4018_v36  ;;  %v3897_v36 = vpack.c.bf16 %v3862_v14, %v3861_v46  ;;  %v4022_v34 = vpack.c.bf16 %v3984_v42, %v3983_v63  ;;  %v3866_v63 = vld [vmem:[#allocation2 + $0x611] sm:$0xff] }
 0x753   : > { %11680 = vmatprep.mubr.bf16.mxu1 %v4019_v52 }
 0x758   : > { %10369 = vmatmul.mubr.bf16.gmra.mrb[104].mxu0 %v3767_v38 }
 0x759   : > { %10376 = vmatprep.mubr.bf16.mxu0 %v3896_v43  ;;  %v3985_v43 = vld [vmem:[#allocation2 + $0x562] sm:$0xff] }
 0x75a   : > { %11681 = vmatmul.mubr.bf16.gmra.mrb[172].mxu1 %v4020_v19  ;;  %v4023_v19 = vpack.c.bf16 %v3986_v18, %v3985_v43  ;;  %v11742_v18 = vadd.f32 %v16504_v1, %v16338_v31  ;;  %v11744_v31 = vadd.f32 %v16504_v1, %v16342_v32  ;;  %v3995_v32 = vld [vmem:[#allocation2 + $0x622] sm:$0xff] }
 0x75b   : > { %v10162_v27 = vpop.f32.mrb[0].mxu0  ;;  %11684 = vmatprep.mubr.bf16.mxu1 %v4021_v51  ;;  %v3987_v51 = vld [vmem:[#allocation2 + $0x582] sm:$0xff] }
 0x75c   : > { %v16510_v12 = vadd.f32 %v11732_v11, %v10162_v27  ;;  %v10164_v9 = vpop.f32.mrb[1].mxu0  ;;  %v3864_v11 = vld [vmem:[#allocation2 + $0x5f1] sm:$0xff]  ;;  %v16524_v27 = vpack.c.bf16 %v16323_v15, %v16323_v15  ;;  %v3865_v15 = vld [vmem:[#allocation2 + $0x601] sm:$0xff] }
 0x75d   : > { %v10165_v47 = vpop.f32.mrb[2].mxu0  ;;  %v3898_v9 = vpack.c.bf16 %v3864_v11, %v3863_v48 }
 0x75e   : > { %v16514_v38 = vadd.f32 %v11734_v30, %v10165_v47  ;;  %v10167_v52 = vpop.f32.mrb[3].mxu0  ;;  %v3988_v47 = vld [vmem:[#allocation2 + $0x592] sm:$0xff] }
 0x75f   : > { %v11740_v52 = vadd.f32 %v16504_v1, %v16334_v24  ;;  %v4024_v43 = vpack.c.bf16 %v3988_v47, %v3987_v51  ;;  %v3991_v24 = vld [vmem:[#allocation2 + $0x5e2] sm:$0xff]  ;;  %v3868_v51 = vld [vmem:[#allocation2 + $0x631] sm:$0xff] }
 0x760   : > { %10377 = vmatmul.mubr.bf16.gmra.mrb[108].mxu0 %v3768_v53 }
 0x761   : > { %10384 = vmatprep.mubr.bf16.mxu0 %v3897_v36  ;;  %v3990_v36 = vld [vmem:[#allocation2 + $0x5d2] sm:$0xff] }
 0x762   : > { %11685 = vmatmul.mubr.bf16.gmra.mrb[176].mxu1 %v4022_v34  ;;  %v4025_v11 = vpack.c.bf16 %v3990_v36, %v3989_v49  ;;  %v3899_v34 = vpack.c.bf16 %v3866_v63, %v3865_v15  ;;  %v11746_v36 = vadd.f32 %v16504_v1, %v16346_v56 }
 0x763   : > { %v10170_v3 = vpop.f32.mrb[4].mxu0  ;;  %11688 = vmatprep.mubr.bf16.mxu1 %v4023_v19  ;;  %v3992_v19 = vld [vmem:[#allocation2 + $0x5f2] sm:$0xff] }
 0x764   : > { %v16520_v46 = vadd.f32 %v11736_v2, %v10170_v3  ;;  %v10172_v14 = vpop.f32.mrb[5].mxu0  ;;  %v4026_v49 = vpack.c.bf16 %v3992_v19, %v3991_v24 }
 0x765   : > { %v10173_v30 = vpop.f32.mrb[6].mxu0 }
 0x766   : > { %v16526_v53 = vadd.f32 %v11738_v8, %v10173_v30  ;;  %v10175_v7 = vpop.f32.mrb[7].mxu0  ;;  %v3993_v30 = vld [vmem:[#allocation2 + $0x602] sm:$0xff] }
 0x767   : > { %v3867_v7 = vld [vmem:[#allocation2 + $0x621] sm:$0xff] }
 0x768   : > { %10385 = vmatmul.mubr.bf16.gmra.mrb[112].mxu0 %v16524_v27 }
 0x769   : > { %10392 = vmatprep.mubr.bf16.mxu0 %v3898_v9  ;;  %v3994_v9 = vld [vmem:[#allocation2 + $0x612] sm:$0xff] }
 0x76a   : > { %11689 = vmatmul.mubr.bf16.gmra.mrb[180].mxu1 %v4024_v43  ;;  %v4027_v63 = vpack.c.bf16 %v3994_v9, %v3993_v30  ;;  %v3900_v43 = vpack.c.bf16 %v3868_v51, %v3867_v7  ;;  %v11752_v7 = vadd.f32 %v16504_v1, %v16360_v40 }
 0x76b   : > { %v10178_v42 = vpop.f32.mrb[8].mxu0  ;;  %11692 = vmatprep.mubr.bf16.mxu1 %v4025_v11  ;;  %v3996_v11 = vld [vmem:[#allocation2 + $0x632] sm:$0xff] }
 0x76c   : > { %v16533_v2 = vadd.f32 %v11740_v52, %v10178_v42  ;;  %v10180_v48 = vpop.f32.mrb[9].mxu0 }
 0x76d   : > { %v10181_v3 = vpop.f32.mrb[10].mxu0 }
 0x76e   : > { %v16535_v8 = vadd.f32 %v11742_v18, %v10181_v3  ;;  %v10183_v14 = vpop.f32.mrb[11].mxu0  ;;  %v11748_v3 = vadd.f32 %v16504_v1, %v16350_v54  ;;  %v11754_v54 = vadd.f32 %v16504_v1, %v16363_v37 }
 0x76f   : > { %v11750_v14 = vadd.f32 %v16504_v1, %v16354_v45 }
 0x770   : > { %10393 = vmatmul.mubr.bf16.gmra.mrb[116].mxu0 %v16524_v27 }
 0x771   : > { %10400 = vmatprep.mubr.bf16.mxu0 %v3899_v34  ;;  %v4028_v34 = vpack.c.bf16 %v3996_v11, %v3995_v32  ;;  %v11760_v11 = vadd.f32 %v16504_v1, %v16382_v58  ;;  %v11766_v58 = vadd.f32 %v16504_v1, %v16397_v39  ;;  %v11770_v39 = vadd.f32 %v16504_v1, %v16406_v57 }
 0x772   : > { %11693 = vmatmul.mubr.bf16.gmra.mrb[184].mxu1 %v4026_v49  ;;  %v11774_v57 = vadd.f32 %v16504_v1, %v16417_v29  ;;  %v11778_v29 = vadd.f32 %v16504_v1, %v16428_v0  ;;  %v11782_v0 = vadd.f32 %v16504_v1, %v16439_v20 }
 0x773   : > { %v10186_v47 = vpop.f32.mrb[12].mxu0  ;;  %11696 = vmatprep.mubr.bf16.mxu1 %v4027_v63  ;;  %v11756_v63 = vadd.f32 %v16504_v1, %v16371_v4 }
 0x774   : > { %v16542_v52 = vadd.f32 %v11744_v31, %v10186_v47  ;;  %v10188_v15 = vpop.f32.mrb[13].mxu0 }
 0x775   : > { %v10189_v42 = vpop.f32.mrb[14].mxu0 }
 0x776   : > { %v16544_v18 = vadd.f32 %v11746_v36, %v10189_v42  ;;  %v10191_v48 = vpop.f32.mrb[15].mxu0 }
 0x778   : > { %10401 = vmatmul.mubr.bf16.gmra.mrb[120].mxu0 %v16524_v27 }
 0x779   : > { %10408 = vmatprep.mubr.bf16.mxu0 %v3900_v43 }
 0x77a   : > { %11697 = vmatmul.mubr.bf16.gmra.mrb[188].mxu1 %v4028_v34 }
 0x77b   : > { %v10194_v56 = vpop.f32.mrb[16].mxu0 }
 0x77c   : > { %v16551_v24 = vadd.f32 %v11748_v3, %v10194_v56  ;;  %v10196_v19 = vpop.f32.mrb[17].mxu0  ;;  %v11762_v56 = vadd.f32 %v16504_v1, %v16386_v5 }
 0x77d   : > { %v10197_v30 = vpop.f32.mrb[18].mxu0 }
 0x77e   : > { %v16553_v9 = vadd.f32 %v11750_v14, %v10197_v30  ;;  %v10199_v31 = vpop.f32.mrb[19].mxu0  ;;  %v11764_v30 = vadd.f32 %v16504_v1, %v16393_v50  ;;  %v11768_v50 = vadd.f32 %v16504_v1, %v16403_v60  ;;  %v11772_v60 = vadd.f32 %v16504_v1, %v16413_v10 }
 0x77f   : > { %v11776_v10 = vadd.f32 %v16504_v1, %v16424_v33  ;;  %v11780_v33 = vadd.f32 %v16504_v1, %v16435_v28  ;;  %v11784_v28 = vadd.f32 %v16504_v1, %v16442_v23 }
 0x780   : > { %10409 = vmatmul.mubr.bf16.gmra.mrb[124].mxu0 %v16524_v27  ;;  %v11758_v27 = vadd.f32 %v16504_v1, %v16375_v35 }
 0x783   : > { %v10202_v51 = vpop.f32.mrb[20].mxu0 }
 0x784   : > { %v16560_v47 = vadd.f32 %v11752_v7, %v10202_v51  ;;  %v10204_v45 = vpop.f32.mrb[21].mxu0 }
 0x785   : > { %v10205_v49 = vpop.f32.mrb[22].mxu0 }
 0x786   : > { %v16562_v36 = vadd.f32 %v11754_v54, %v10205_v49  ;;  %v10207_v15 = vpop.f32.mrb[23].mxu0 }
 0x78b   : > { %v10210_v42 = vpop.f32.mrb[24].mxu0 }
 0x78c   : > { %v16568_v43 = vadd.f32 %v11756_v63, %v10210_v42  ;;  %v10212_v40 = vpop.f32.mrb[25].mxu0 }
 0x78d   : > { %v10213_v48 = vpop.f32.mrb[26].mxu0 }
 0x78e   : > { %v16570_v32 = vadd.f32 %v11758_v27, %v10213_v48  ;;  %v10215_v37 = vpop.f32.mrb[27].mxu0 }
 0x793   : > { %v10218_v3 = vpop.f32.mrb[28].mxu0 }
 0x794   : > { %v16576_v34 = vadd.f32 %v11760_v11, %v10218_v3  ;;  %v10220_v4 = vpop.f32.mrb[29].mxu0 }
 0x795   : > { %v10221_v14 = vpop.f32.mrb[30].mxu0  ;;  %v16582_v31 = vpop.f32.mrb[96].mxu1 }
 0x796   : > { %v16578_v19 = vadd.f32 %v11762_v56, %v10221_v14  ;;  %v10223_v35 = vpop.f32.mrb[31].mxu0  ;;  %v8622_v51 = vpop.f32.mrb[97].mxu1 }
 0x797   : > { %v16588_v45 = vpop.f32.mrb[98].mxu1 }
 0x798   : > { %16976 = vst [vmem:[#allocation20_spill] sm:$0xff] %v16588_v45  ;;  %v8625_v15 = vpop.f32.mrb[99].mxu1 }
 0x79b   : > { %v10226_v7 = vpop.f32.mrb[32].mxu0 }
 0x79c   : > { %v16586_v54 = vadd.f32 %v11764_v30, %v10226_v7  ;;  %v10228_v5 = vpop.f32.mrb[33].mxu0 }
 0x79d   : > { %v10229_v49 = vpop.f32.mrb[34].mxu0  ;;  %v16594_v27 = vpop.f32.mrb[100].mxu1 }
 0x79e   : > { %v16590_v63 = vadd.f32 %v11766_v58, %v10229_v49  ;;  %v10231_v42 = vpop.f32.mrb[35].mxu0  ;;  %16977 = vst [vmem:[#allocation21_spill] sm:$0xff] %v16594_v27  ;;  %v8630_v48 = vpop.f32.mrb[101].mxu1 }
 0x79f   : > { %v16600_v3 = vpop.f32.mrb[102].mxu1 }
 0x7a0   : > { %16978 = vst [vmem:[#allocation22_spill] sm:$0xff] %v16600_v3  ;;  %v8633_v4 = vpop.f32.mrb[103].mxu1 }
 0x7a3   : > { %v10234_v40 = vpop.f32.mrb[36].mxu0 }
 0x7a4   : > { %v16598_v37 = vadd.f32 %v11768_v50, %v10234_v40  ;;  %v10236_v11 = vpop.f32.mrb[37].mxu0 }
 0x7a5   : > { %v10237_v56 = vpop.f32.mrb[38].mxu0  ;;  %v16606_v30 = vpop.f32.mrb[104].mxu1 }
 0x7a6   : > { %v16602_v14 = vadd.f32 %v11770_v39, %v10237_v56  ;;  %v10239_v35 = vpop.f32.mrb[39].mxu0  ;;  %16979 = vst [vmem:[#allocation23_spill] sm:$0xff] %v16606_v30  ;;  %v8638_v51 = vpop.f32.mrb[105].mxu1  ;;  %v16994_v30 = vld [vmem:[#allocation17_spill] sm:$0xff] }
 0x7a7   : > { %v16612_v49 = vpop.f32.mrb[106].mxu1 }
 0x7a8   : > { %16980 = vst [vmem:[#allocation24_spill] sm:$0xff] %v16612_v49  ;;  %v8641_v42 = vpop.f32.mrb[107].mxu1 }
 0x7ab   : > { %v10242_v7 = vpop.f32.mrb[40].mxu0 }
 0x7ac   : > { %v16610_v58 = vadd.f32 %v11772_v60, %v10242_v7  ;;  %v10244_v5 = vpop.f32.mrb[41].mxu0 }
 0x7ad   : > { %v10245_v15 = vpop.f32.mrb[42].mxu0  ;;  %v16618_v48 = vpop.f32.mrb[108].mxu1 }
 0x7ae   : > { %v16614_v50 = vadd.f32 %v11774_v57, %v10245_v15  ;;  %v10247_v40 = vpop.f32.mrb[43].mxu0  ;;  %16981 = vst [vmem:[#allocation25_spill] sm:$0xff] %v16618_v48  ;;  %v8646_v11 = vpop.f32.mrb[109].mxu1  ;;  %v16990_v48 = vld [vmem:[#allocation13_spill] sm:$0xff] }
 0x7af   : > { %v16624_v35 = vpop.f32.mrb[110].mxu1 }
 0x7b0   : > { %16982 = vst [vmem:[#allocation26_spill] sm:$0xff] %v16624_v35  ;;  %v8649_v7 = vpop.f32.mrb[111].mxu1 }
 0x7b3   : > { %v10250_v39 = vpop.f32.mrb[44].mxu0 }
 0x7b4   : > { %v16622_v56 = vadd.f32 %v11776_v10, %v10250_v39  ;;  %v10252_v4 = vpop.f32.mrb[45].mxu0 }
 0x7b5   : > { %v10253_v60 = vpop.f32.mrb[46].mxu0  ;;  %v16630_v5 = vpop.f32.mrb[112].mxu1 }
 0x7b6   : > { %v16626_v51 = vadd.f32 %v11778_v29, %v10253_v60  ;;  %v10255_v57 = vpop.f32.mrb[47].mxu0  ;;  %16983 = vst [vmem:[#allocation27_spill] sm:$0xff] %v16630_v5  ;;  %v8654_v42 = vpop.f32.mrb[113].mxu1  ;;  %v16986_v5 = vld [vmem:[#allocation15_spill] sm:$0xff] }
 0x7b7   : > { %v16636_v39 = vpop.f32.mrb[114].mxu1  ;;  %v11786_v20 = vadd.f32 %v16504_v1, %v16986_v5  ;;  %v11790_v5 = vadd.f32 %v16504_v1, %v16990_v48  ;;  %v11794_v48 = vadd.f32 %v16504_v1, %v16994_v30  ;;  %v11798_v30 = vadd.f32 %v16504_v1, %v16456_v17 }
 0x7b8   : > { %16984 = vst [vmem:[#allocation28_spill] sm:$0xff] %v16636_v39  ;;  %v8657_v4 = vpop.f32.mrb[115].mxu1 }
 0x7bb   : > { %v10258_v15 = vpop.f32.mrb[48].mxu0 }
 0x7bc   : > { %v16634_v40 = vadd.f32 %v11780_v33, %v10258_v15  ;;  %v10260_v10 = vpop.f32.mrb[49].mxu0 }
 0x7bd   : > { %v10261_v11 = vpop.f32.mrb[50].mxu0  ;;  %v16642_v7 = vpop.f32.mrb[116].mxu1 }
 0x7be   : > { %v16638_v29 = vadd.f32 %v11782_v0, %v10261_v11  ;;  %v10263_v60 = vpop.f32.mrb[51].mxu0  ;;  %16985 = vst [vmem:[#allocation29_spill] sm:$0xff] %v16642_v7  ;;  %v8662_v42 = vpop.f32.mrb[117].mxu1 }
 0x7bf   : > { %v16648_v10 = vpop.f32.mrb[118].mxu1  ;;  %v16988_v60 = vld [vmem:[#allocation16_spill] sm:$0xff] }
 0x7c0   : > { %16987 = vst [vmem:[#allocation15_spill] sm:$0xff] %v16648_v10  ;;  %v8665_v4 = vpop.f32.mrb[119].mxu1  ;;  %v11788_v23 = vadd.f32 %v16504_v1, %v16988_v60 }
 0x7c3   : > { %v10266_v57 = vpop.f32.mrb[52].mxu0 }
 0x7c4   : > { %v16646_v33 = vadd.f32 %v11784_v28, %v10266_v57  ;;  %v10268_v15 = vpop.f32.mrb[53].mxu0 }
 0x7c5   : > { %v10269_v39 = vpop.f32.mrb[54].mxu0  ;;  %v16654_v35 = vpop.f32.mrb[120].mxu1 }
 0x7c6   : > { %v16650_v0 = vadd.f32 %v11786_v20, %v10269_v39  ;;  %v10271_v11 = vpop.f32.mrb[55].mxu0  ;;  %16989 = vst [vmem:[#allocation16_spill] sm:$0xff] %v16654_v35  ;;  %v8670_v42 = vpop.f32.mrb[121].mxu1 }
 0x7c7   : > { %v16660_v15 = vpop.f32.mrb[122].mxu1  ;;  %v16992_v11 = vld [vmem:[#allocation14_spill] sm:$0xff] }
 0x7c8   : > { %16991 = vst [vmem:[#allocation13_spill] sm:$0xff] %v16660_v15  ;;  %v8673_v4 = vpop.f32.mrb[123].mxu1  ;;  %v11792_v60 = vadd.f32 %v16504_v1, %v16992_v11 }
 0x7cb   : > { %v10274_v7 = vpop.f32.mrb[56].mxu0 }
 0x7cc   : > { %v16658_v28 = vadd.f32 %v11788_v23, %v10274_v7  ;;  %v10276_v57 = vpop.f32.mrb[57].mxu0 }
 0x7cd   : > { %v10277_v10 = vpop.f32.mrb[58].mxu0  ;;  %v16666_v49 = vpop.f32.mrb[124].mxu1 }
 0x7ce   : > { %v16662_v39 = vadd.f32 %v11790_v5, %v10277_v10  ;;  %v10279_v20 = vpop.f32.mrb[59].mxu0  ;;  %16993 = vst [vmem:[#allocation14_spill] sm:$0xff] %v16666_v49  ;;  %v8678_v42 = vpop.f32.mrb[125].mxu1 }
 0x7cf   : > { %v16672_v57 = vpop.f32.mrb[126].mxu1  ;;  %v11796_v20 = vadd.f32 %v16504_v1, %v16454_v13 }
 0x7d0   : > { %16995 = vst [vmem:[#allocation17_spill] sm:$0xff] %v16672_v57  ;;  %v8681_v4 = vpop.f32.mrb[127].mxu1 }
 0x7d3   : > { %v10282_v35 = vpop.f32.mrb[60].mxu0 }
 0x7d4   : > { %v16670_v7 = vadd.f32 %v11792_v60, %v10282_v35  ;;  %v10284_v23 = vpop.f32.mrb[61].mxu0 }
 0x7d5   : > { %v10285_v15 = vpop.f32.mrb[62].mxu0  ;;  %v11638_v11 = vpop.f32.mrb[128].mxu1 }
 0x7d6   : > { %v16674_v10 = vadd.f32 %v11794_v48, %v10285_v15  ;;  %v10287_v5 = vpop.f32.mrb[63].mxu0  ;;  %v10460_v42 = vadd.f32 %v16520_v46, %v11638_v11  ;;  %v10451_v3 = vpop.f32.mrb[129].mxu1 }
 0x7d7   : > { %v10452_v23 = vadd.f32 %v16510_v12, %v10451_v3  ;;  %v11639_v15 = vpop.f32.mrb[130].mxu1 }
 0x7d8   : > { %v10463_v4 = vadd.f32 %v16526_v53, %v11639_v15  ;;  %v10454_v5 = vpop.f32.mrb[131].mxu1  ;;  %v10708_v11 = vmax.f32 %v10460_v42, 0.0  ;;  %v16996_v42 = vld [vmem:[#allocation18_spill] sm:$0xff] }
 0x7d9   : > { %v10455_v46 = vadd.f32 %v16514_v38, %v10454_v5  ;;  %v10706_v45 = vmax.f32 %v10452_v23, 0.0 }
 0x7da   : > { %v10709_v27 = vmax.f32 %v10463_v4, 0.0 }
 0x7db   : > { %v10290_v49 = vpop.f32.mrb[64].mxu0  ;;  %v10707_v17 = vmax.f32 %v10455_v46, 0.0 }
 0x7dc   : > { %v16681_v35 = vadd.f32 %v11796_v20, %v10290_v49  ;;  %v10292_v60 = vpop.f32.mrb[65].mxu0  ;;  %v11366_v49 = vpack.c.bf16 %v10709_v27, %v10708_v11  ;;  %v11800_v20 = vadd.f32 %v16504_v1, %v16459_v61 }
 0x7dd   : > { %v10293_v48 = vpop.f32.mrb[66].mxu0  ;;  %v11361_v12 = vpack.c.bf16 %v10707_v17, %v10706_v45  ;;  %v11642_v3 = vpop.f32.mrb[132].mxu1 }
 0x7de   : > { %v16685_v13 = vadd.f32 %v11798_v30, %v10293_v48  ;;  %v10295_v57 = vpop.f32.mrb[67].mxu0  ;;  %11549 = vst [vmem:[%s16692_s8 + $0x8] sm:$0xff] %v11366_v49   ;;  %v10467_v38 = vpop.f32.mrb[133].mxu1  ;;  %v11802_v30 = vadd.f32 %v16504_v1, %v16996_v42  ;;  %v11806_v42 = vadd.f32 %v16504_v1, %v16467_v62 }
 0x7df   : > { %v10476_v57 = vadd.f32 %v16542_v52, %v11642_v3  ;;  %11362 = vst [vmem:[%s16692_s8] sm:$0xff] %v11361_v12   ;;  %v10468_v61 = vadd.f32 %v16533_v2, %v10467_v38  ;;  %v11643_v45 = vpop.f32.mrb[134].mxu1  ;;  %v11804_v2 = vadd.f32 %v16504_v1, %v16465_v25 }
 0x7e0   : > { %v10479_v15 = vadd.f32 %v16544_v18, %v11643_v45  ;;  %v10470_v48 = vpop.f32.mrb[135].mxu1 }
 0x7e1   : > { %v10471_v5 = vadd.f32 %v16535_v8, %v10470_v48  ;;  %v10712_v46 = vmax.f32 %v10476_v57, 0.0  ;;  %v10710_v17 = vmax.f32 %v10468_v61, 0.0 }
 0x7e2   : > { %v10713_v11 = vmax.f32 %v10479_v15, 0.0 }
 0x7e3   : > { %v10298_v53 = vpop.f32.mrb[68].mxu0  ;;  %v10711_v49 = vmax.f32 %v10471_v5, 0.0 }
 0x7e4   : > { %v16699_v27 = vadd.f32 %v11800_v20, %v10298_v53  ;;  %v10300_v60 = vpop.f32.mrb[69].mxu0  ;;  %v11376_v20 = vpack.c.bf16 %v10713_v11, %v10712_v46 }
 0x7e5   : > { %v10301_v23 = vpop.f32.mrb[70].mxu0  ;;  %v11371_v12 = vpack.c.bf16 %v10711_v49, %v10710_v17  ;;  %v11646_v3 = vpop.f32.mrb[136].mxu1 }
 0x7e6   : > { %v16703_v4 = vadd.f32 %v11802_v30, %v10301_v23  ;;  %v10303_v52 = vpop.f32.mrb[71].mxu0  ;;  %11551 = vst [vmem:[%s16692_s8 + $0x18] sm:$0xff] %v11376_v20   ;;  %v10492_v18 = vadd.f32 %v16560_v47, %v11646_v3  ;;  %v10483_v38 = vpop.f32.mrb[137].mxu1 }
 0x7e7   : > { %11550 = vst [vmem:[%s16692_s8 + $0x10] sm:$0xff] %v11371_v12   ;;  %v10484_v30 = vadd.f32 %v16551_v24, %v10483_v38  ;;  %v11647_v60 = vpop.f32.mrb[138].mxu1  ;;  %v11808_v24 = vadd.f32 %v16504_v1, %v16471_v6 }
 0x7e8   : > { %v10495_v25 = vadd.f32 %v16562_v36, %v11647_v60  ;;  %v10486_v45 = vpop.f32.mrb[139].mxu1  ;;  %v10716_v48 = vmax.f32 %v10492_v18, 0.0 }
 0x7e9   : > { %v10487_v15 = vadd.f32 %v16553_v9, %v10486_v45  ;;  %v10714_v52 = vmax.f32 %v10484_v30, 0.0 }
 0x7ea   : > { %v10717_v62 = vmax.f32 %v10495_v25, 0.0 }
 0x7eb   : > { %v10306_v53 = vpop.f32.mrb[72].mxu0  ;;  %v10715_v5 = vmax.f32 %v10487_v15, 0.0 }
 0x7ec   : > { %v16713_v8 = vadd.f32 %v11804_v2, %v10306_v53  ;;  %v10308_v57 = vpop.f32.mrb[73].mxu0  ;;  %v11386_v46 = vpack.c.bf16 %v10717_v62, %v10716_v48  ;;  %v11810_v2 = vadd.f32 %v16504_v1, %v16473_v59  ;;  %v11814_v62 = vadd.f32 %v16504_v1, %v16479_v44 }
 0x7ed   : > { %v10309_v61 = vpop.f32.mrb[74].mxu0  ;;  %v11381_v11 = vpack.c.bf16 %v10715_v5, %v10714_v52  ;;  %v11650_v17 = vpop.f32.mrb[140].mxu1 }
 0x7ee   : > { %v16717_v23 = vadd.f32 %v11806_v42, %v10309_v61  ;;  %v10311_v47 = vpop.f32.mrb[75].mxu0  ;;  %11553 = vst [vmem:[%s16692_s8 + $0x28] sm:$0xff] %v11386_v46   ;;  %v10508_v36 = vadd.f32 %v16576_v34, %v11650_v17  ;;  %v10499_v20 = vpop.f32.mrb[141].mxu1 }
 0x7ef   : > { %11552 = vst [vmem:[%s16692_s8 + $0x20] sm:$0xff] %v11381_v11   ;;  %v10500_v3 = vadd.f32 %v16568_v43, %v10499_v20  ;;  %v11651_v53 = vpop.f32.mrb[142].mxu1  ;;  %v11812_v43 = vadd.f32 %v16504_v1, %v16477_v41 }
 0x7f0   : > { %v10511_v6 = vadd.f32 %v16578_v19, %v11651_v53  ;;  %v10502_v38 = vpop.f32.mrb[143].mxu1  ;;  %v10720_v30 = vmax.f32 %v10508_v36, 0.0 }
 0x7f1   : > { %v10503_v57 = vadd.f32 %v16570_v32, %v10502_v38  ;;  %v10718_v60 = vmax.f32 %v10500_v3, 0.0  ;;  %v16997_v38 = vld [vmem:[#allocation19_spill] sm:$0xff] }
 0x7f2   : > { %v10721_v59 = vmax.f32 %v10511_v6, 0.0 }
 0x7f3   : > { %v10314_v49 = vpop.f32.mrb[76].mxu0  ;;  %v10719_v61 = vmax.f32 %v10503_v57, 0.0 }
 0x7f4   : > { %v16727_v9 = vadd.f32 %v11808_v24, %v10314_v49  ;;  %v10316_v12 = vpop.f32.mrb[77].mxu0  ;;  %v11396_v25 = vpack.c.bf16 %v10721_v59, %v10720_v30 }
 0x7f5   : > { %v10317_v18 = vpop.f32.mrb[78].mxu0  ;;  %v11391_v45 = vpack.c.bf16 %v10719_v61, %v10718_v60  ;;  %v11654_v47 = vpop.f32.mrb[144].mxu1 }
 0x7f6   : > { %v16731_v42 = vadd.f32 %v11810_v2, %v10317_v18  ;;  %v10319_v34 = vpop.f32.mrb[79].mxu0  ;;  %11555 = vst [vmem:[%s16692_s8 + $0x38] sm:$0xff] %v11396_v25   ;;  %v10524_v19 = vadd.f32 %v16598_v37, %v11654_v47  ;;  %v10515_v48 = vpop.f32.mrb[145].mxu1 }
 0x7f7   : > { %11554 = vst [vmem:[%s16692_s8 + $0x30] sm:$0xff] %v11391_v45   ;;  %v10516_v5 = vadd.f32 %v16586_v54, %v10515_v48  ;;  %v11655_v46 = vpop.f32.mrb[146].mxu1  ;;  %v11816_v54 = vadd.f32 %v16504_v1, %v16483_v22  ;;  %v11818_v34 = vadd.f32 %v16504_v1, %v16997_v38  ;;  %v11826_v38 = vadd.f32 %v16504_v1, %v16497_v55 }
 0x7f8   : > { %v10527_v41 = vadd.f32 %v16602_v14, %v11655_v46  ;;  %v10518_v11 = vpop.f32.mrb[147].mxu1  ;;  %v10724_v36 = vmax.f32 %v10524_v19, 0.0 }
 0x7f9   : > { %v10519_v49 = vadd.f32 %v16590_v63, %v10518_v11  ;;  %v10722_v20 = vmax.f32 %v10516_v5, 0.0 }
 0x7fa   : > { %v10725_v44 = vmax.f32 %v10527_v41, 0.0 }
 0x7fb   : > { %v10322_v15 = vpop.f32.mrb[80].mxu0  ;;  %v10723_v2 = vmax.f32 %v10519_v49, 0.0 }
 0x7fc   : > { %v16741_v32 = vadd.f32 %v11812_v43, %v10322_v15  ;;  %v10324_v52 = vpop.f32.mrb[81].mxu0  ;;  %v11406_v12 = vpack.c.bf16 %v10725_v44, %v10724_v36 }
 0x7fd   : > { %v10325_v24 = vpop.f32.mrb[82].mxu0  ;;  %v11401_v3 = vpack.c.bf16 %v10723_v2, %v10722_v20  ;;  %v11658_v53 = vpop.f32.mrb[148].mxu1 }
 0x7fe   : > { %v16745_v17 = vadd.f32 %v11814_v62, %v10325_v24  ;;  %v10327_v37 = vpop.f32.mrb[83].mxu0  ;;  %11557 = vst [vmem:[%s16692_s8 + $0x48] sm:$0xff] %v11406_v12   ;;  %v10540_v14 = vadd.f32 %v16622_v56, %v11658_v53  ;;  %v10531_v6 = vpop.f32.mrb[149].mxu1  ;;  %v11822_v24 = vadd.f32 %v16504_v1, %v16491_v16 }
 0x7ff   : > { %11556 = vst [vmem:[%s16692_s8 + $0x40] sm:$0xff] %v11401_v3   ;;  %v10532_v30 = vadd.f32 %v16610_v58, %v10531_v6  ;;  %v11659_v59 = vpop.f32.mrb[150].mxu1  ;;  %v11820_v58 = vadd.f32 %v16504_v1, %v16489_v26 }
 0x800   : > { %v10543_v22 = vadd.f32 %v16626_v51, %v11659_v59  ;;  %v10534_v61 = vpop.f32.mrb[151].mxu1  ;;  %v10728_v45 = vmax.f32 %v10540_v14, 0.0 }
 0x801   : > { %v10535_v43 = vadd.f32 %v16614_v50, %v10534_v61  ;;  %v10726_v15 = vmax.f32 %v10532_v30, 0.0 }
 0x802   : > { %v10729_v47 = vmax.f32 %v10543_v22, 0.0 }
 0x803   : > { %v10330_v18 = vpop.f32.mrb[84].mxu0  ;;  %v10727_v19 = vmax.f32 %v10535_v43, 0.0 }
 0x804   : > { %v16755_v63 = vadd.f32 %v11816_v54, %v10330_v18  ;;  %v10332_v57 = vpop.f32.mrb[85].mxu0  ;;  %v11416_v48 = vpack.c.bf16 %v10729_v47, %v10728_v45 }
 0x805   : > { %v10333_v60 = vpop.f32.mrb[86].mxu0  ;;  %v11411_v62 = vpack.c.bf16 %v10727_v19, %v10726_v15  ;;  %v11662_v52 = vpop.f32.mrb[152].mxu1 }
 0x806   : > { %v16759_v25 = vadd.f32 %v11818_v34, %v10333_v60  ;;  %v10335_v56 = vpop.f32.mrb[87].mxu0  ;;  %11559 = vst [vmem:[%s16692_s8 + $0x58] sm:$0xff] %v11416_v48   ;;  %v10556_v51 = vadd.f32 %v16646_v33, %v11662_v52  ;;  %v10547_v46 = vpop.f32.mrb[153].mxu1 }
 0x807   : > { %11558 = vst [vmem:[%s16692_s8 + $0x50] sm:$0xff] %v11411_v62   ;;  %v10548_v11 = vadd.f32 %v16634_v40, %v10547_v46  ;;  %v11663_v37 = vpop.f32.mrb[154].mxu1  ;;  %v11824_v40 = vadd.f32 %v16504_v1, %v16495_v21  ;;  %v16998_v62 = vld [vmem:[#allocation20_spill] sm:$0xff] }
 0x808   : > { %v10559_v26 = vadd.f32 %v16650_v0, %v11663_v37  ;;  %v10550_v36 = vpop.f32.mrb[155].mxu1  ;;  %v10732_v2 = vmax.f32 %v10556_v51, 0.0  ;;  %v11830_v52 = vadd.f32 %v16504_v1, %v16998_v62 }
 0x809   : > { %v10551_v20 = vadd.f32 %v16638_v29, %v10550_v36  ;;  %v10730_v12 = vmax.f32 %v10548_v11, 0.0 }
 0x80a   : > { %v10733_v16 = vmax.f32 %v10559_v26, 0.0 }
 0x80b   : > { %v10338_v5 = vpop.f32.mrb[88].mxu0  ;;  %v10731_v54 = vmax.f32 %v10551_v20, 0.0 }
 0x80c   : > { %v16769_v50 = vadd.f32 %v11820_v58, %v10338_v5  ;;  %v10340_v41 = vpop.f32.mrb[89].mxu0  ;;  %v11426_v3 = vpack.c.bf16 %v10733_v16, %v10732_v2  ;;  %v16999_v2 = vld [vmem:[#allocation21_spill] sm:$0xff] }
 0x80d   : > { %v10341_v49 = vpop.f32.mrb[90].mxu0  ;;  %v11421_v53 = vpack.c.bf16 %v10731_v54, %v10730_v12  ;;  %v11666_v18 = vpop.f32.mrb[156].mxu1 }
 0x80e   : > { %v16773_v44 = vadd.f32 %v11822_v24, %v10341_v49  ;;  %v10343_v33 = vpop.f32.mrb[91].mxu0  ;;  %11561 = vst [vmem:[%s16692_s8 + $0x68] sm:$0xff] %v11426_v3   ;;  %v10572_v0 = vadd.f32 %v16670_v7, %v11666_v18  ;;  %v10563_v6 = vpop.f32.mrb[157].mxu1 }
 0x80f   : > { %11560 = vst [vmem:[%s16692_s8 + $0x60] sm:$0xff] %v11421_v53   ;;  %v10564_v57 = vadd.f32 %v16658_v28, %v10563_v6  ;;  %v11667_v30 = vpop.f32.mrb[158].mxu1  ;;  %v11828_v28 = vadd.f32 %v16504_v1, %v16582_v31 }
 0x810   : > { %v10575_v21 = vadd.f32 %v16674_v10, %v11667_v30  ;;  %v10566_v60 = vpop.f32.mrb[159].mxu1  ;;  %v10736_v56 = vmax.f32 %v10572_v0, 0.0 }
 0x811   : > { %v10567_v61 = vadd.f32 %v16662_v39, %v10566_v60  ;;  %v10734_v43 = vmax.f32 %v10564_v57, 0.0 }
 0x812   : > { %v10737_v55 = vmax.f32 %v10575_v21, 0.0 }
 0x813   : > { %v10346_v14 = vpop.f32.mrb[92].mxu0  ;;  %v10735_v45 = vmax.f32 %v10567_v61, 0.0 }
 0x814   : > { %v16783_v29 = vadd.f32 %v11824_v40, %v10346_v14  ;;  %v10348_v34 = vpop.f32.mrb[93].mxu0  ;;  %v11436_v47 = vpack.c.bf16 %v10737_v55, %v10736_v56  ;;  %v17000_v40 = vld [vmem:[#allocation22_spill] sm:$0xff]  ;;  %v17001_v56 = vld [vmem:[#allocation23_spill] sm:$0xff] }
 0x815   : > { %v10349_v59 = vpop.f32.mrb[94].mxu0  ;;  %v11431_v15 = vpack.c.bf16 %v10735_v45, %v10734_v43  ;;  %v11670_v19 = vpop.f32.mrb[160].mxu1  ;;  %v11834_v53 = vadd.f32 %v16504_v1, %v17000_v40 }
 0x816   : > { %v16787_v22 = vadd.f32 %v11826_v38, %v10349_v59  ;;  %v10351_v7 = vpop.f32.mrb[95].mxu0  ;;  %11563 = vst [vmem:[%s16692_s8 + $0x78] sm:$0xff] %v11436_v47   ;;  %v10588_v10 = vadd.f32 %v16699_v27, %v11670_v19  ;;  %v10579_v58 = vpop.f32.mrb[161].mxu1 }
 0x817   : > { %11562 = vst [vmem:[%s16692_s8 + $0x70] sm:$0xff] %v11431_v15   ;;  %v10580_v51 = vadd.f32 %v16681_v35, %v10579_v58  ;;  %v11671_v46 = vpop.f32.mrb[162].mxu1  ;;  %v11832_v35 = vadd.f32 %v16504_v1, %v16999_v2 }
 0x818   : > { %v10591_v31 = vadd.f32 %v16703_v4, %v11671_v46  ;;  %v10582_v41 = vpop.f32.mrb[163].mxu1  ;;  %v10740_v49 = vmax.f32 %v10588_v10, 0.0 }
 0x819   : > { %v10583_v37 = vadd.f32 %v16685_v13, %v10582_v41  ;;  %v10738_v36 = vmax.f32 %v10580_v51, 0.0 }
 0x81a   : > { %v10741_v26 = vmax.f32 %v10591_v31, 0.0 }
 0x81b   : > { %v10354_v48 = vpop.f32.mrb[96].mxu0  ;;  %v10739_v33 = vmax.f32 %v10583_v37, 0.0  ;;  %v17003_v37 = vld [vmem:[#allocation25_spill] sm:$0xff] }
 0x81c   : > { %v16797_v39 = vadd.f32 %v11828_v28, %v10354_v48  ;;  %v10356_v5 = vpop.f32.mrb[97].mxu0  ;;  %v11446_v20 = vpack.c.bf16 %v10741_v26, %v10740_v49  ;;  %v17002_v28 = vld [vmem:[#allocation24_spill] sm:$0xff] }
 0x81d   : > { %v10357_v24 = vpop.f32.mrb[98].mxu0  ;;  %v11441_v16 = vpack.c.bf16 %v10739_v33, %v10738_v36  ;;  %v11674_v12 = vpop.f32.mrb[164].mxu1  ;;  %v11838_v15 = vadd.f32 %v16504_v1, %v17002_v28 }
 0x81e   : > { %v16801_v11 = vadd.f32 %v11830_v52, %v10357_v24  ;;  %v10359_v27 = vpop.f32.mrb[99].mxu0  ;;  %11565 = vst [vmem:[%s16692_s8 + $0x88] sm:$0xff] %v11446_v20   ;;  %v10604_v4 = vadd.f32 %v16727_v9, %v11674_v12  ;;  %v10595_v3 = vpop.f32.mrb[165].mxu1  ;;  %v17004_v20 = vld [vmem:[#allocation26_spill] sm:$0xff] }
 0x81f   : > { %11564 = vst [vmem:[%s16692_s8 + $0x80] sm:$0xff] %v11441_v16   ;;  %v10596_v14 = vadd.f32 %v16713_v8, %v10595_v3  ;;  %v11675_v0 = vpop.f32.mrb[166].mxu1  ;;  %v11836_v8 = vadd.f32 %v16504_v1, %v17001_v56  ;;  %v11842_v2 = vadd.f32 %v16504_v1, %v17004_v20 }
 0x820   : > { %v10607_v38 = vadd.f32 %v16731_v42, %v11675_v0  ;;  %v10598_v34 = vpop.f32.mrb[167].mxu1  ;;  %v10744_v59 = vmax.f32 %v10604_v4, 0.0 }
 0x821   : > { %v10599_v30 = vadd.f32 %v16717_v23, %v10598_v34  ;;  %v10742_v60 = vmax.f32 %v10596_v14, 0.0  ;;  %v17005_v34 = vld [vmem:[#allocation27_spill] sm:$0xff] }
 0x822   : > { %v10745_v21 = vmax.f32 %v10607_v38, 0.0 }
 0x823   : > { %v10362_v54 = vpop.f32.mrb[100].mxu0  ;;  %v10743_v7 = vmax.f32 %v10599_v30, 0.0 }
 0x824   : > { %v16811_v13 = vadd.f32 %v11832_v35, %v10362_v54  ;;  %v10364_v18 = vpop.f32.mrb[101].mxu0  ;;  %v11456_v61 = vpack.c.bf16 %v10745_v21, %v10744_v59 }
 0x825   : > { %v10365_v6 = vpop.f32.mrb[102].mxu0  ;;  %v11451_v55 = vpack.c.bf16 %v10743_v7, %v10742_v60  ;;  %v11678_v43 = vpop.f32.mrb[168].mxu1  ;;  %v16849_v60 = vld [vmem:[%s16932_s2] ss:$0 sm:$0xff] }
 0x826   : > { %v16815_v57 = vadd.f32 %v11834_v53, %v10365_v6  ;;  %v10367_v9 = vpop.f32.mrb[103].mxu0  ;;  %11567 = vst [vmem:[%s16692_s8 + $0x98] sm:$0xff] %v11456_v61   ;;  %v10620_v42 = vadd.f32 %v16755_v63, %v11678_v43  ;;  %v10611_v47 = vpop.f32.mrb[169].mxu1 }
 0x827   : > { %11566 = vst [vmem:[%s16692_s8 + $0x90] sm:$0xff] %v11451_v55   ;;  %v10612_v48 = vadd.f32 %v16741_v32, %v10611_v47  ;;  %v11679_v10 = vpop.f32.mrb[170].mxu1  ;;  %v11840_v32 = vadd.f32 %v16504_v1, %v17003_v37  ;;  %v11844_v9 = vadd.f32 %v16504_v1, %v17005_v34 }
 0x828   : > { %v10623_v62 = vadd.f32 %v16759_v25, %v11679_v10  ;;  %v10614_v52 = vpop.f32.mrb[171].mxu1  ;;  %v10748_v46 = vmax.f32 %v10620_v42, 0.0 }
 0x829   : > { %v10615_v51 = vadd.f32 %v16745_v17, %v10614_v52  ;;  %v10746_v31 = vmax.f32 %v10612_v48, 0.0 }
 0x82a   : > { %v10749_v24 = vmax.f32 %v10623_v62, 0.0 }
 0x82b   : > { %v10370_v45 = vpop.f32.mrb[104].mxu0  ;;  %v10747_v41 = vmax.f32 %v10615_v51, 0.0 }
 0x82c   : > { %v16825_v23 = vadd.f32 %v11836_v8, %v10370_v45  ;;  %v10372_v19 = vpop.f32.mrb[105].mxu0  ;;  %v11466_v27 = vpack.c.bf16 %v10749_v24, %v10748_v46  ;;  %v17008_v46 = vld [vmem:[#allocation15_spill] sm:$0xff] }
 0x82d   : > { %v10373_v58 = vpop.f32.mrb[106].mxu0  ;;  %v11461_v49 = vpack.c.bf16 %v10747_v41, %v10746_v31  ;;  %v11682_v26 = vpop.f32.mrb[172].mxu1  ;;  %v11850_v24 = vadd.f32 %v16849_v60, %v17008_v46 }
 0x82e   : > { %v16829_v5 = vadd.f32 %v11838_v15, %v10373_v58  ;;  %v10375_v63 = vpop.f32.mrb[107].mxu0  ;;  %11569 = vst [vmem:[%s16692_s8 + $0xa8] sm:$0xff] %v11466_v27   ;;  %v10636_v25 = vadd.f32 %v16783_v29, %v11682_v26  ;;  %v10627_v33 = vpop.f32.mrb[173].mxu1  ;;  %v17007_v58 = vld [vmem:[#allocation29_spill] sm:$0xff] }
 0x82f   : > { %11568 = vst [vmem:[%s16692_s8 + $0xa0] sm:$0xff] %v11461_v49   ;;  %v10628_v16 = vadd.f32 %v16769_v50, %v10627_v33  ;;  %v11683_v12 = vpop.f32.mrb[174].mxu1  ;;  %v11848_v62 = vadd.f32 %v16849_v60, %v17007_v58 }
 0x830   : > { %v10639_v4 = vadd.f32 %v16787_v22, %v11683_v12  ;;  %v10630_v3 = vpop.f32.mrb[175].mxu1  ;;  %v10752_v18 = vmax.f32 %v10636_v25, 0.0 }
 0x831   : > { %v10631_v29 = vadd.f32 %v16773_v44, %v10630_v3  ;;  %v10750_v0 = vmax.f32 %v10628_v16, 0.0  ;;  %v17006_v44 = vld [vmem:[#allocation28_spill] sm:$0xff] }
 0x832   : > { %v10753_v14 = vmax.f32 %v10639_v4, 0.0  ;;  %v11846_v7 = vadd.f32 %v16849_v60, %v17006_v44  ;;  %v17009_v16 = vld [vmem:[#allocation16_spill] sm:$0xff] }
 0x833   : > { %v10378_v36 = vpop.f32.mrb[108].mxu0  ;;  %v10751_v6 = vmax.f32 %v10631_v29, 0.0  ;;  %v11852_v12 = vadd.f32 %v16849_v60, %v17009_v16 }
 0x834   : > { %v11841_v17 = vadd.f32 %v11840_v32, %v10378_v36  ;;  %v10380_v35 = vpop.f32.mrb[109].mxu0  ;;  %v11476_v38 = vpack.c.bf16 %v10753_v14, %v10752_v18 }
 0x835   : > { %v10381_v54 = vpop.f32.mrb[110].mxu0  ;;  %v11471_v50 = vpack.c.bf16 %v10751_v6, %v10750_v0  ;;  %v11686_v30 = vpop.f32.mrb[176].mxu1 }
 0x836   : > { %v11843_v40 = vadd.f32 %v11842_v2, %v10381_v54  ;;  %v10383_v53 = vpop.f32.mrb[111].mxu0  ;;  %11571 = vst [vmem:[%s16692_s8 + $0xb8] sm:$0xff] %v11476_v38   ;;  %v10652_v22 = vadd.f32 %v16811_v13, %v11686_v30  ;;  %v10643_v21 = vpop.f32.mrb[177].mxu1 }
 0x837   : > { %11570 = vst [vmem:[%s16692_s8 + $0xb0] sm:$0xff] %v11471_v50   ;;  %v10644_v1 = vadd.f32 %v16797_v39, %v10643_v21  ;;  %v11687_v8 = vpop.f32.mrb[178].mxu1  ;;  %v17010_v53 = vld [vmem:[#allocation13_spill] sm:$0xff] }
 0x838   : > { %v10655_v43 = vadd.f32 %v16815_v57, %v11687_v8  ;;  %v10646_v13 = vpop.f32.mrb[179].mxu1  ;;  %v10756_v28 = vmax.f32 %v10652_v22, 0.0  ;;  %v11854_v29 = vadd.f32 %v16849_v60, %v17010_v53 }
 0x839   : > { %v10647_v47 = vadd.f32 %v16801_v11, %v10646_v13  ;;  %v10754_v19 = vmax.f32 %v10644_v1, 0.0  ;;  %v17012_v13 = vld [vmem:[#allocation17_spill] sm:$0xff] }
 0x83a   : > { %v10757_v15 = vmax.f32 %v10655_v43, 0.0 }
 0x83b   : > { %v10386_v59 = vpop.f32.mrb[112].mxu0  ;;  %v10755_v48 = vmax.f32 %v10647_v47, 0.0 }
 0x83c   : > { %v11845_v61 = vadd.f32 %v11844_v9, %v10386_v59  ;;  %v10388_v56 = vpop.f32.mrb[113].mxu0  ;;  %v11486_v10 = vpack.c.bf16 %v10757_v15, %v10756_v28 }
 0x83d   : > { %v10389_v55 = vpop.f32.mrb[114].mxu0  ;;  %v11481_v39 = vpack.c.bf16 %v10755_v48, %v10754_v19  ;;  %v11690_v52 = vpop.f32.mrb[180].mxu1  ;;  %v17011_v56 = vld [vmem:[#allocation14_spill] sm:$0xff] }
 0x83e   : > { %v11847_v45 = vadd.f32 %v11846_v7, %v10389_v55  ;;  %v10391_v42 = vpop.f32.mrb[115].mxu0  ;;  %11573 = vst [vmem:[%s16692_s8 + $0xc8] sm:$0xff] %v11486_v10   ;;  %v10668_v51 = vadd.f32 %v11841_v17, %v11690_v52  ;;  %v10659_v57 = vpop.f32.mrb[181].mxu1  ;;  %v11856_v1 = vadd.f32 %v16849_v60, %v17011_v56 }
 0x83f   : > { %11572 = vst [vmem:[%s16692_s8 + $0xc0] sm:$0xff] %v11481_v39   ;;  %v10660_v41 = vadd.f32 %v16825_v23, %v10659_v57  ;;  %v11691_v27 = vpop.f32.mrb[182].mxu1  ;;  %v11858_v42 = vadd.f32 %v16849_v60, %v17012_v13 }
 0x840   : > { %v10671_v32 = vadd.f32 %v11843_v40, %v11691_v27  ;;  %v10662_v49 = vpop.f32.mrb[183].mxu1  ;;  %v10760_v33 = vmax.f32 %v10668_v51, 0.0 }
 0x841   : > { %v10663_v25 = vadd.f32 %v16829_v5, %v10662_v49  ;;  %v10758_v2 = vmax.f32 %v10660_v41, 0.0 }
 0x842   : > { %v10761_v20 = vmax.f32 %v10671_v32, 0.0 }
 0x843   : > { %v10394_v63 = vpop.f32.mrb[116].mxu0  ;;  %v10759_v17 = vmax.f32 %v10663_v25, 0.0 }
 0x844   : > { %v11849_v31 = vadd.f32 %v11848_v62, %v10394_v63  ;;  %v10396_v11 = vpop.f32.mrb[117].mxu0  ;;  %v11496_v35 = vpack.c.bf16 %v10761_v20, %v10760_v33 }
 0x845   : > { %v10397_v37 = vpop.f32.mrb[118].mxu0  ;;  %v11491_v54 = vpack.c.bf16 %v10759_v17, %v10758_v2  ;;  %v11694_v23 = vpop.f32.mrb[184].mxu1 }
 0x846   : > { %v11851_v26 = vadd.f32 %v11850_v24, %v10397_v37  ;;  %v10399_v36 = vpop.f32.mrb[119].mxu0  ;;  %11575 = vst [vmem:[%s16692_s8 + $0xd8] sm:$0xff] %v11496_v35   ;;  %v10684_v3 = vadd.f32 %v11849_v31, %v11694_v23  ;;  %v10675_v40 = vpop.f32.mrb[185].mxu1 }
 0x847   : > { %11574 = vst [vmem:[%s16692_s8 + $0xd0] sm:$0xff] %v11491_v54   ;;  %v10676_v14 = vadd.f32 %v11845_v61, %v10675_v40  ;;  %v11695_v0 = vpop.f32.mrb[186].mxu1 }
 0x848   : > { %v10687_v38 = vadd.f32 %v11851_v26, %v11695_v0  ;;  %v10678_v34 = vpop.f32.mrb[187].mxu1  ;;  %v10764_v59 = vmax.f32 %v10684_v3, 0.0 }
 0x849   : > { %v10679_v30 = vadd.f32 %v11847_v45, %v10678_v34  ;;  %v10762_v21 = vmax.f32 %v10676_v14, 0.0 }
 0x84a   : > { %v10765_v22 = vmax.f32 %v10687_v38, 0.0 }
 0x84b   : > { %v10402_v4 = vpop.f32.mrb[120].mxu0  ;;  %v10763_v44 = vmax.f32 %v10679_v30, 0.0 }
 0x84c   : > { %v11853_v18 = vadd.f32 %v11852_v12, %v10402_v4  ;;  %v10404_v5 = vpop.f32.mrb[121].mxu0  ;;  %v11506_v7 = vpack.c.bf16 %v10765_v22, %v10764_v59 }
 0x84d   : > { %v10405_v6 = vpop.f32.mrb[122].mxu0  ;;  %v11501_v8 = vpack.c.bf16 %v10763_v44, %v10762_v21  ;;  %v11698_v55 = vpop.f32.mrb[188].mxu1 }
 0x84e   : > { %v11855_v9 = vadd.f32 %v11854_v29, %v10405_v6  ;;  %v10407_v50 = vpop.f32.mrb[123].mxu0  ;;  %11577 = vst [vmem:[%s16692_s8 + $0xe8] sm:$0xff] %v11506_v7   ;;  %v10691_v43 = vpop.f32.mrb[189].mxu1 }
 0x84f   : > { %11576 = vst [vmem:[%s16692_s8 + $0xe0] sm:$0xff] %v11501_v8   ;;  %v10692_v28 = vadd.f32 %v11853_v18, %v10691_v43  ;;  %v11699_v15 = vpop.f32.mrb[190].mxu1 }
 0x850   : > { %v10694_v48 = vpop.f32.mrb[191].mxu1 }
 0x851   : > { %v10695_v39 = vadd.f32 %v11855_v9, %v10694_v48  ;;  %v10766_v52 = vmax.f32 %v10692_v28, 0.0 }
 0x853   : > { %v10410_v61 = vpop.f32.mrb[124].mxu0  ;;  %v10767_v51 = vmax.f32 %v10695_v39, 0.0 }
 0x854   : > { %v11857_v45 = vadd.f32 %v11856_v1, %v10410_v61  ;;  %v10412_v47 = vpop.f32.mrb[125].mxu0 }
 0x855   : > { %v10413_v19 = vpop.f32.mrb[126].mxu0  ;;  %v11511_v46 = vpack.c.bf16 %v10767_v51, %v10766_v52 }
 0x856   : > { %v10700_v10 = vadd.f32 %v11857_v45, %v11698_v55  ;;  %v11859_v58 = vadd.f32 %v11858_v42, %v10413_v19  ;;  %v10415_v62 = vpop.f32.mrb[127].mxu0 }
 0x857   : > { %11578 = vst [vmem:[%s16692_s8 + $0xf0] sm:$0xff] %v11511_v46  }
 0x858   : > { %v10703_v63 = vadd.f32 %v11859_v58, %v11699_v15  ;;  %v10768_v60 = vmax.f32 %v10700_v10, 0.0 }
 0x85a   : > { %v10769_v57 = vmax.f32 %v10703_v63, 0.0 }
 0x85c   : > { %v11516_v24 = vpack.c.bf16 %v10769_v57, %v10768_v60 }
 0x85e   : > { %11579 = vst [vmem:[%s16692_s8 + $0xf8] sm:$0xff] %v11516_v24  }
 0x85f   : > { %13689 = shalt.err (!%p13686_p7)
}
 0x860   : > { %s13690_s7 = scalar_lea.hbm %s16882_s28, 4096  ;;  %s13694_s18 = scalar_lea.hbm %s16933_s3, 8192 }
 0x861   : > { %p13691_p9 = scmp.ne.s32.totalorder %s16882_s28, %s13690_s7  ;;  %p13695_p5 = scmp.lt.u32.totalorder %s16882_s28, %s16933_s3 }
 0x862   : > { %p13696_p11 = scmp.lt.u32.totalorder %s13694_s18, %s13690_s7  ;;  %p13698_p4 = scmp.lt.u32.totalorder %s13690_s7, %s16882_s28 }
 0x863   : > { %p13692_p1 = pnand %p13691_p9, %p13872_p12 }
 0x864   : > { %p13697_p2 = por %p13696_p11, %p13695_p5 }
 0x865   : > { %p13693_p0 = pneg %p13692_p1 }
 0x866   : > { %p13699_p6 = por %p13698_p4, %p13697_p2 }
 0x868   : > { %p13700_p8 = pnand %p13699_p6, %p13693_p0 }
 0x86a   : > { %13703 = shalt.err (!%p13700_p8)
}
 0x86b   : > { %s13756_s9 = smov 64   ;;  %s13757_s4 = smov 4  }
 0x86c   : > { %13274 = dma.vmem_to_hbm [thread:$0]  (%p13872_p12), %s16884_s5, 4096, %s16882_s28, %s10899_s23, %s13756_s9, %s13756_s9, %s13757_s4  }
 0x86d PF: > { %s10927_s25 = sand.u32 1, %s13734_s12   ;;  %p17013_p10 = scmp.ne.s32.totalorder %s16945_s19, 0 }
 0x86e   : > { %p17014_p13 = scmp.ge.s32.totalorder %s13746_s15, 2  ;;  %s10928_s11 = scalar_lea.sflag [#allocation6], %s10927_s25 }
 0x870   : > { %p13285_p3 = pnand %p17014_p13, %p17013_p10 }
 0x872   : > { %13729 = dma.done.wait (!%p13285_p3), %s10928_s11, 4096  }
 0x873   : > { %13731 = vsyncadd (!%p13285_p3), %s10928_s11, 4294963200  ;;  %p17_p7 = scmp.ge.s32.totalorder %s13834_s24, 4   ;;  %s17015_s12 = smov %s13738_s13 }
 0x874   : > { %s17016_s13 = smov %s13742_s14  ;;  %s17017_s14 = smov %s13868_s17 }
 0x875   : > { %s17018_s15 = smov %s13834_s24  ;;  %19 = sbr.rel (!%p17_p7) target bundleno = 6 (0x6), region = 89 }
 0x87c   :  { %10933 = vsyncpa [#allocation5], 1 }
 0x87d   :  { %10935 = vsyncpa [#allocation5 + $0x1], 1 }
 0x87e   :  { %10936 = vsyncpa [#allocation8], 1 }
 0x87f   :  { %10937 = vsyncpa [#allocation6], 1 }
 0x880   :  { %10939 = vsyncpa [#allocation6 + $0x1], 1 }

</bundles_post_ra>
